<compile_context>
chip_gen: v7x
topology: tpu7x:2x2x1
jax: 0.10.0
libtpu: 0.0.40
codegen_flags: <defaults>
</compile_context>

<pallas_src>
import math
import jax
import jax.numpy as jnp
import numpy as np
from jax import lax
from jax.experimental import pallas as pl
from jax.experimental.pallas import tpu as pltpu

# --- small synthetic config (GPTConfig scaled down) ---
B, T = 2, 128          # batch, sequence (== block_size here)
C = 128                # n_embd
H = 4                  # n_head
D = C // H             # head_dim = 32
V = 512                # vocab_size
L = 2                  # n_layer
TV = 512               # lm_head vocab tile (lane-dense multiple of 128)
TM = 128               # lm_head row tile over flattened (B*T)
LN_EPS = 1e-5
GELU_C = 0.7978845608028654   # sqrt(2/pi)
VMEM_LIMIT = 48 * 1024 * 1024  # explicit scoped-VMEM budget (safe on v5e/v6e/v7x)

LAYER_PARAM_NAMES = ("ln1_w", "ln1_b", "wqkv", "bqkv", "wpr", "bpr",
                     "ln2_w", "ln2_b", "wfc", "bfc", "wp2", "bp2")


def _layernorm(x, w, b):
    mu = jnp.mean(x, axis=-1, keepdims=True)
    var = jnp.mean(jnp.square(x - mu), axis=-1, keepdims=True)
    return (x - mu) * lax.rsqrt(var + LN_EPS) * w + b


def _gelu_tanh(x):
    # matches nn.GELU(approximate='tanh')
    return 0.5 * x * (1.0 + jnp.tanh(GELU_C * (x + 0.044715 * x * x * x)))


# ---------------- Pallas kernels ----------------

def gpt_blocks_kernel(x_ref, bias_ref, lnfw_ref, lnfb_ref,
                      ln1w, ln1b, wqkv, bqkv, wpr, bpr,
                      ln2w, ln2b, wfc, bfc, wp2, bp2,
                      hf_ref, res_ref):
    """All L transformer blocks + final LayerNorm, fused.  grid = (batch, layer).

    The f32 residual stream is carried in the VMEM scratch res_ref (resident
    across the L axis, never written to HBM).  hf_ref (bf16) is written only
    on the last layer step and is the lm_head input.
    """
    l = pl.program_id(1)
    bf16 = jnp.bfloat16

    @pl.when(l == 0)
    def _():
        res_ref[...] = x_ref[0]                       # load residual once per batch elt

    x = res_ref[...]                                  # (T, C) f32 residual

    # ----- attention branch -----
    h = _layernorm(x, ln1w[0], ln1b[0]).astype(bf16)
    # single fused QKV matmul (N = 3C, lane dense); q columns pre-scaled by 1/sqrt(D)
    qkv = (jnp.dot(h, wqkv[0], preferred_element_type=jnp.float32)
           + bqkv[0]).astype(bf16)                    # (T, 3C) bf16, no f32 round-trip later
    bias = bias_ref[...]                              # (T, T) additive causal bias (resident)

    o_heads = []
    for hd in range(H):                               # per-head: bounds live f32 score set
        qh = qkv[:, hd * D:(hd + 1) * D]
        kh = qkv[:, C + hd * D:C + (hd + 1) * D]
        vh = qkv[:, 2 * C + hd * D:2 * C + (hd + 1) * D]
        s = jnp.einsum("td,sd->ts", qh, kh,
                       preferred_element_type=jnp.float32) + bias      # (T, T) f32
        m = jnp.max(s, axis=-1, keepdims=True)
        p = jnp.exp(s - m)                            # unnormalized probs
        denom = jnp.sum(p, axis=-1, keepdims=True)
        oh = jnp.dot(p.astype(bf16), vh, preferred_element_type=jnp.float32)
        oh = oh * pl.reciprocal(denom, approx=True)   # deferred softmax norm (EUP slot)
        o_heads.append(oh.astype(bf16))
    o = jnp.concatenate(o_heads, axis=-1)             # (T, C) bf16, head-major lanes

    # head re-merge folded into ONE output-projection matmul (K = C)
    y = jnp.dot(o, wpr[0], preferred_element_type=jnp.float32) + bpr[0]
    x = x + y

    # ----- MLP branch -----
    h2 = _layernorm(x, ln2w[0], ln2b[0]).astype(bf16)
    f = jnp.dot(h2, wfc[0], preferred_element_type=jnp.float32) + bfc[0]
    f = _gelu_tanh(f).astype(bf16)                    # GELU in f32 (v5e-safe), cast for MXU
    x = x + jnp.dot(f, wp2[0], preferred_element_type=jnp.float32) + bp2[0]

    res_ref[...] = x

    # ----- final LayerNorm fused into the last layer step -----
    @pl.when(l == L - 1)
    def _():
        hf_ref[0] = _layernorm(x, lnfw_ref[...], lnfb_ref[...]).astype(bf16)


def lm_head_kernel(hf_ref, w_ref, out_ref):
    """Pure tied lm_head matmul on the flattened (B*T, C) bf16 activations."""
    out_ref[...] = jnp.dot(hf_ref[...], w_ref[...],
                           preferred_element_type=jnp.float32)


# ---------------- wrappers ----------------

def _layer_spec(arr):
    """BlockSpec for an (L, ...) stacked per-layer parameter: block over L only."""
    return pl.BlockSpec((1,) + tuple(arr.shape[1:]), lambda b, l: (l, 0, 0))


def run_gpt_blocks(x, kp):
    in_specs = [
        pl.BlockSpec((1, T, C), lambda b, l: (b, 0, 0)),   # embeddings (per-batch, const over l)
        pl.BlockSpec((T, T), lambda b, l: (0, 0)),         # causal bias (resident)
        pl.BlockSpec((1, C), lambda b, l: (0, 0)),         # ln_f weight
        pl.BlockSpec((1, C), lambda b, l: (0, 0)),         # ln_f bias
    ]
    args = [x, kp["attn_bias"], kp["lnf_w"], kp["lnf_b"]]
    for name in LAYER_PARAM_NAMES:
        in_specs.append(_layer_spec(kp[name]))
        args.append(kp[name])
    return pl.pallas_call(
        gpt_blocks_kernel,
        out_shape=jax.ShapeDtypeStruct((B, T, C), jnp.bfloat16),
        grid=(B, L),
        in_specs=in_specs,
        # hf block index depends only on b -> resident over L, written at l == L-1.
        out_specs=pl.BlockSpec((1, T, C), lambda b, l: (b, 0, 0)),
        scratch_shapes=[pltpu.VMEM((T, C), jnp.float32)],   # residual stream
        compiler_params=pltpu.CompilerParams(
            dimension_semantics=("parallel", "arbitrary"),
            vmem_limit_bytes=VMEM_LIMIT),
    )(*args)


def run_lm_head(hf2d, lm_wT):
    M = hf2d.shape[0]
    assert V % TV == 0 and M % TM == 0
    # Vocab axis OUTERMOST: each (C, TV) weight tile is fetched once and reused
    # across all row tiles (inner axis).
    grid = (V // TV, M // TM)
    return pl.pallas_call(
        lm_head_kernel,
        out_shape=jax.ShapeDtypeStruct((M, V), jnp.float32),
        grid=grid,
        in_specs=[pl.BlockSpec((TM, C), lambda j, i: (i, 0)),
                  pl.BlockSpec((C, TV), lambda j, i: (0, j))],
        out_specs=pl.BlockSpec((TM, TV), lambda j, i: (i, j)),
        compiler_params=pltpu.CompilerParams(
            dimension_semantics=("parallel", "parallel"),
            vmem_limit_bytes=VMEM_LIMIT),
    )(hf2d, lm_wT)


@jax.jit
def gpt_forward_pallas(idx, kp):
    # embedding gather (glue, plain JAX)
    tok_emb = jnp.take(kp["wte"], idx, axis=0)                     # (B, T, C) f32
    x = tok_emb + kp["wpe"][:T][None]
    hf = run_gpt_blocks(x, kp)                                     # (B, T, C) bf16
    logits = run_lm_head(hf.reshape(B * T, C), kp["lm_wT"])        # (B*T, V) f32
    return logits.reshape(B, T, V)


# ---------------- pure JAX reference (same mixed precision) ----------------

@jax.jit
def gpt_forward_ref(idx, kp):
    bf16 = jnp.bfloat16
    x = jnp.take(kp["wte"], idx, axis=0) + kp["wpe"][:T][None]
    bias = kp["attn_bias"]
    for l in range(L):
        h = _layernorm(x, kp["ln1_w"][l], kp["ln1_b"][l]).astype(bf16)
        qkv = (jnp.einsum("btc,cf->btf", h, kp["wqkv"][l],
                          preferred_element_type=jnp.float32)
               + kp["bqkv"][l]).astype(bf16)                       # (B, T, 3C)
        q = qkv[..., 0 * C:1 * C].reshape(B, T, H, D).transpose(0, 2, 1, 3)
        k = qkv[..., 1 * C:2 * C].reshape(B, T, H, D).transpose(0, 2, 1, 3)
        v = qkv[..., 2 * C:3 * C].reshape(B, T, H, D).transpose(0, 2, 1, 3)
        s = jnp.einsum("bhtd,bhsd->bhts", q, k,
                       preferred_element_type=jnp.float32) + bias
        m = jnp.max(s, axis=-1, keepdims=True)
        p = jnp.exp(s - m)
        o = jnp.einsum("bhts,bhsd->bhtd", p.astype(bf16), v,
                       preferred_element_type=jnp.float32)
        o = o / jnp.sum(p, axis=-1, keepdims=True)
        o = o.transpose(0, 2, 1, 3).reshape(B, T, C).astype(bf16)
        y = jnp.dot(o, kp["wpr"][l], preferred_element_type=jnp.float32) + kp["bpr"][l]
        x = x + y
        h2 = _layernorm(x, kp["ln2_w"][l], kp["ln2_b"][l]).astype(bf16)
        f = jnp.dot(h2, kp["wfc"][l], preferred_element_type=jnp.float32) + kp["bfc"][l]
        f = _gelu_tanh(f).astype(bf16)
        x = x + jnp.dot(f, kp["wp2"][l], preferred_element_type=jnp.float32) + kp["bp2"][l]
    hf = _layernorm(x, kp["lnf_w"], kp["lnf_b"]).astype(bf16)
    return jnp.einsum("btc,cv->btv", hf, kp["lm_wT"],
                      preferred_element_type=jnp.float32)


# ---------------- parameter init (PyTorch-style) + kernel layout derivation ----------------

def init_base_params(key):
    def normal(k, shape):
        return 0.02 * jax.random.normal(k, shape, jnp.float32)

    keys = jax.random.split(key, 2 + 4 * L)
    ki = iter(keys)
    wte = normal(next(ki), (V, C))             # tied with lm_head.weight
    wpe = normal(next(ki), (T, C))
    blocks = []
    for _ in range(L):
        blocks.append(dict(
            ln1_w=jnp.ones((C,), jnp.float32), ln1_b=jnp.zeros((C,), jnp.float32),
            wqkv=normal(next(ki), (C, 3 * C)), bqkv=jnp.zeros((3 * C,), jnp.float32),
            wpr=normal(next(ki), (C, C)), bpr=jnp.zeros((C,), jnp.float32),
            ln2_w=jnp.ones((C,), jnp.float32), ln2_b=jnp.zeros((C,), jnp.float32),
            wfc=normal(next(ki), (C, 4 * C)), bfc=jnp.zeros((4 * C,), jnp.float32),
            wp2=normal(next(ki), (4 * C, C)), bp2=jnp.zeros((C,), jnp.float32),
        ))
    return dict(wte=wte, wpe=wpe, blocks=blocks,
                lnf_w=jnp.ones((C,), jnp.float32), lnf_b=jnp.zeros((C,), jnp.float32))


def derive_kernel_params(base):
    """Stack per-layer weights over L, fold the 1/sqrt(D) scale into the q
    columns of the fused QKV projection, cast matmul weights to bf16, and
    precompute the causal additive bias."""
    bf16 = jnp.bfloat16
    scale = 1.0 / math.sqrt(D)

    stacked = {name: [] for name in LAYER_PARAM_NAMES}
    for blk in base["blocks"]:
        wqkv = blk["wqkv"].at[:, :C].multiply(scale)   # fold 1/sqrt(D) into q weights
        bqkv = blk["bqkv"].at[:C].multiply(scale)      # ... and q bias
        stacked["ln1_w"].append(blk["ln1_w"].reshape(1, C))
        stacked["ln1_b"].append(blk["ln1_b"].reshape(1, C))
        stacked["wqkv"].append(wqkv.astype(bf16))
        stacked["bqkv"].append(bqkv.reshape(1, 3 * C))
        stacked["wpr"].append(blk["wpr"].astype(bf16))     # (C, C), rows head-major
        stacked["bpr"].append(blk["bpr"].reshape(1, C))
        stacked["ln2_w"].append(blk["ln2_w"].reshape(1, C))
        stacked["ln2_b"].append(blk["ln2_b"].reshape(1, C))
        stacked["wfc"].append(blk["wfc"].astype(bf16))
        stacked["bfc"].append(blk["bfc"].reshape(1, 4 * C))
        stacked["wp2"].append(blk["wp2"].astype(bf16))
        stacked["bp2"].append(blk["bp2"].reshape(1, C))

    kp = {name: jnp.stack(vals, axis=0) for name, vals in stacked.items()}
    kp["wte"] = base["wte"]                      # f32 table for the embedding gather
    kp["wpe"] = base["wpe"]
    kp["lnf_w"] = base["lnf_w"].reshape(1, C)
    kp["lnf_b"] = base["lnf_b"].reshape(1, C)
    kp["lm_wT"] = base["wte"].T.astype(bf16)     # weight tying: lm_head = wte
    # Causal additive bias, built once on host; DMA'd once and VMEM-resident.
    row = jnp.arange(T)[:, None]
    col = jnp.arange(T)[None, :]
    kp["attn_bias"] = jnp.where(col <= row, 0.0, -1e30).astype(jnp.float32)
    return kp


if __name__ == "__main__":
    key = jax.random.PRNGKey(0)
    pkey, ikey = jax.random.split(key)
    base = init_base_params(pkey)
    kp = derive_kernel_params(base)
    idx = jax.random.randint(ikey, (B, T), 0, V, dtype=jnp.int32)

    logits = jax.block_until_ready(gpt_forward_pallas(idx, kp))
    ref = jax.block_until_ready(gpt_forward_ref(idx, kp))

    assert logits.shape == (B, T, V)
    np.testing.assert_allclose(np.asarray(logits), np.asarray(ref),
                               rtol=1e-2, atol=1e-2)
    print("KERNEL_OK")
</pallas_src>

<mosaic_0001>
module attributes {stable_mosaic.version = 11 : i64} {
  func.func @lm_head_kernel(%arg0: i32, %arg1: i32, %arg2: memref<128x128xbf16, #tpu.memory_space<vmem>>, %arg3: memref<128x512xbf16, #tpu.memory_space<vmem>>, %arg4: memref<128x512xf32, #tpu.memory_space<vmem>>) attributes {dimension_semantics = [#tpu.dimension_semantics<parallel>, #tpu.dimension_semantics<parallel>], iteration_bounds = array<i64: 1, 2>, scalar_prefetch = 0 : i64, scratch_operands = 0 : i64, tpu.core_type = #tpu.core_type<tc>, window_params = [{transform_indices = @transform_0, window_bounds = array<i64: 128, 128>}, {transform_indices = @transform_1, window_bounds = array<i64: 128, 512>}, {transform_indices = @transform_2, window_bounds = array<i64: 128, 512>}]} {
    %c0 = arith.constant 0 : index
    %c0_0 = arith.constant 0 : index
    %0 = vector.load %arg2[%c0, %c0_0] : memref<128x128xbf16, #tpu.memory_space<vmem>>, vector<128x128xbf16>
    %c0_1 = arith.constant 0 : index
    %c0_2 = arith.constant 0 : index
    %1 = vector.load %arg3[%c0_1, %c0_2] : memref<128x512xbf16, #tpu.memory_space<vmem>>, vector<128x512xbf16>
    %cst = arith.constant dense<0.000000e+00> : vector<128x512xf32>
    %2 = tpu.matmul %0, %1, %cst {dimension_numbers = #tpu.dot_dimension_numbers<[1], [0], [0], [1], [0, 0, 1, 1], [], []>} : vector<128x128xbf16>, vector<128x512xbf16>, vector<128x512xf32> -> vector<128x512xf32>
    %c0_3 = arith.constant 0 : index
    %c0_4 = arith.constant 0 : index
    %3 = vector.load %arg4[%c0_3, %c0_4] : memref<128x512xf32, #tpu.memory_space<vmem>>, vector<128x512xf32>
    tpu.vector_store %arg4[%c0_3, %c0_4], %2 {strides = array<i32>} : memref<128x512xf32, #tpu.memory_space<vmem>>, vector<128x512xf32>,
    return
  }
  func.func @transform_0(%arg0: i32, %arg1: i32) -> (i32, i32) {
    %c0_i32 = arith.constant 0 : i32
    %c0_i32_0 = arith.constant 0 : i32
    return %arg1, %c0_i32 : i32, i32
  }
  func.func @transform_1(%arg0: i32, %arg1: i32) -> (i32, i32) {
    %c0_i32 = arith.constant 0 : i32
    %c0_i32_0 = arith.constant 0 : i32
    return %c0_i32, %arg0 : i32, i32
  }
  func.func @transform_2(%arg0: i32, %arg1: i32) -> (i32, i32) {
    %c0_i32 = arith.constant 0 : i32
    return %arg1, %arg0 : i32, i32
  }
}

module attributes {stable_mosaic.version = 11 : i64} {
  func.func @gpt_blocks_kernel(%arg0: i32, %arg1: i32, %arg2: memref<1x128x128xf32, #tpu.memory_space<vmem>>, %arg3: memref<128x128xf32, #tpu.memory_space<vmem>>, %arg4: memref<1x128xf32, #tpu.memory_space<vmem>>, %arg5: memref<1x128xf32, #tpu.memory_space<vmem>>, %arg6: memref<1x1x128xf32, #tpu.memory_space<vmem>>, %arg7: memref<1x1x128xf32, #tpu.memory_space<vmem>>, %arg8: memref<1x128x384xbf16, #tpu.memory_space<vmem>>, %arg9: memref<1x1x384xf32, #tpu.memory_space<vmem>>, %arg10: memref<1x128x128xbf16, #tpu.memory_space<vmem>>, %arg11: memref<1x1x128xf32, #tpu.memory_space<vmem>>, %arg12: memref<1x1x128xf32, #tpu.memory_space<vmem>>, %arg13: memref<1x1x128xf32, #tpu.memory_space<vmem>>, %arg14: memref<1x128x512xbf16, #tpu.memory_space<vmem>>, %arg15: memref<1x1x512xf32, #tpu.memory_space<vmem>>, %arg16: memref<1x512x128xbf16, #tpu.memory_space<vmem>>, %arg17: memref<1x1x128xf32, #tpu.memory_space<vmem>>, %arg18: memref<1x128x128xbf16, #tpu.memory_space<vmem>>, %arg19: memref<128x128xf32, #tpu.memory_space<vmem>>) attributes {dimension_semantics = [#tpu.dimension_semantics<parallel>, #tpu.dimension_semantics<arbitrary>], iteration_bounds = array<i64: 2, 2>, scalar_prefetch = 0 : i64, scratch_operands = 1 : i64, tpu.core_type = #tpu.core_type<tc>, window_params = [{transform_indices = @transform_0, window_bounds = array<i64: 1, 128, 128>}, {pipeline_mode = #tpu.pipeline_mode<synchronous>, transform_indices = @transform_1, window_bounds = array<i64: 128, 128>}, {pipeline_mode = #tpu.pipeline_mode<synchronous>, transform_indices = @transform_2, window_bounds = array<i64: 1, 128>}, {pipeline_mode = #tpu.pipeline_mode<synchronous>, transform_indices = @transform_3, window_bounds = array<i64: 1, 128>}, {transform_indices = @transform_4, window_bounds = array<i64: 1, 1, 128>}, {transform_indices = @transform_5, window_bounds = array<i64: 1, 1, 128>}, {transform_indices = @transform_6, window_bounds = array<i64: 1, 128, 384>}, {transform_indices = @transform_7, window_bounds = array<i64: 1, 1, 384>}, {transform_indices = @transform_8, window_bounds = array<i64: 1, 128, 128>}, {transform_indices = @transform_9, window_bounds = array<i64: 1, 1, 128>}, {transform_indices = @transform_10, window_bounds = array<i64: 1, 1, 128>}, {transform_indices = @transform_11, window_bounds = array<i64: 1, 1, 128>}, {transform_indices = @transform_12, window_bounds = array<i64: 1, 128, 512>}, {transform_indices = @transform_13, window_bounds = array<i64: 1, 1, 512>}, {transform_indices = @transform_14, window_bounds = array<i64: 1, 512, 128>}, {transform_indices = @transform_15, window_bounds = array<i64: 1, 1, 128>}, {transform_indices = @transform_16, window_bounds = array<i64: 1, 128, 128>}]} {
    %c0_i32 = arith.constant 0 : i32
    %0 = arith.cmpi eq, %arg1, %c0_i32 : i32
    %1 = arith.extui %0 : i1 to i32
    %c0_i32_0 = arith.constant 0 : i32
    %2 = arith.cmpi ne, %1, %c0_i32_0 : i32
    scf.if %2 {
      %c0_76 = arith.constant 0 : index
      %c0_77 = arith.constant 0 : index
      %c0_78 = arith.constant 0 : index
      %181 = vector.load %arg2[%c0_76, %c0_77, %c0_78] : memref<1x128x128xf32, #tpu.memory_space<vmem>>, vector<1x128x128xf32>
      %182 = vector.shape_cast %181 : vector<1x128x128xf32> to vector<128x128xf32>
      %c0_79 = arith.constant 0 : index
      %c0_80 = arith.constant 0 : index
      %183 = vector.load %arg19[%c0_79, %c0_80] : memref<128x128xf32, #tpu.memory_space<vmem>>, vector<128x128xf32>
      tpu.vector_store %arg19[%c0_79, %c0_80], %182 {strides = array<i32>} : memref<128x128xf32, #tpu.memory_space<vmem>>, vector<128x128xf32>,
    } else {
    }
    %c0 = arith.constant 0 : index
    %c0_1 = arith.constant 0 : index
    %3 = vector.load %arg19[%c0, %c0_1] : memref<128x128xf32, #tpu.memory_space<vmem>>, vector<128x128xf32>
    %c0_2 = arith.constant 0 : index
    %c0_3 = arith.constant 0 : index
    %c0_4 = arith.constant 0 : index
    %4 = vector.load %arg6[%c0_2, %c0_3, %c0_4] : memref<1x1x128xf32, #tpu.memory_space<vmem>>, vector<1x1x128xf32>
    %5 = vector.shape_cast %4 : vector<1x1x128xf32> to vector<1x128xf32>
    %c0_5 = arith.constant 0 : index
    %c0_6 = arith.constant 0 : index
    %c0_7 = arith.constant 0 : index
    %6 = vector.load %arg7[%c0_5, %c0_6, %c0_7] : memref<1x1x128xf32, #tpu.memory_space<vmem>>, vector<1x1x128xf32>
    %7 = vector.shape_cast %6 : vector<1x1x128xf32> to vector<1x128xf32>
    %cst = arith.constant dense<0.000000e+00> : vector<128xf32>
    %8 = vector.multi_reduction <add>, %3, %cst [1] : vector<128x128xf32> to vector<128xf32>
    %9 = vector.shape_cast %8 : vector<128xf32> to vector<128x1xf32>
    %cst_8 = arith.constant 1.280000e+02 : f32
    %10 = vector.broadcast %cst_8 : f32 to vector<128x1xf32>
    %11 = arith.divf %9, %10 : vector<128x1xf32>
    %12 = vector.broadcast %11 : vector<128x1xf32> to vector<128x128xf32>
    %13 = arith.subf %3, %12 : vector<128x128xf32>
    %14 = arith.mulf %13, %13 : vector<128x128xf32>
    %cst_9 = arith.constant dense<0.000000e+00> : vector<128xf32>
    %15 = vector.multi_reduction <add>, %14, %cst_9 [1] : vector<128x128xf32> to vector<128xf32>
    %16 = vector.shape_cast %15 : vector<128xf32> to vector<128x1xf32>
    %cst_10 = arith.constant 1.280000e+02 : f32
    %17 = vector.broadcast %cst_10 : f32 to vector<128x1xf32>
    %18 = arith.divf %16, %17 : vector<128x1xf32>
    %19 = vector.broadcast %11 : vector<128x1xf32> to vector<128x128xf32>
    %20 = arith.subf %3, %19 : vector<128x128xf32>
    %cst_11 = arith.constant 9.99999974E-6 : f32
    %21 = vector.broadcast %cst_11 : f32 to vector<128x1xf32>
    %22 = arith.addf %18, %21 : vector<128x1xf32>
    %23 = math.rsqrt %22 : vector<128x1xf32>
    %24 = vector.broadcast %23 : vector<128x1xf32> to vector<128x128xf32>
    %25 = arith.mulf %20, %24 : vector<128x128xf32>
    %26 = vector.broadcast %5 : vector<1x128xf32> to vector<128x128xf32>
    %27 = arith.mulf %25, %26 : vector<128x128xf32>
    %28 = vector.broadcast %7 : vector<1x128xf32> to vector<128x128xf32>
    %29 = arith.addf %27, %28 : vector<128x128xf32>
    %30 = arith.truncf %29 : vector<128x128xf32> to vector<128x128xbf16>
    %c0_12 = arith.constant 0 : index
    %c0_13 = arith.constant 0 : index
    %c0_14 = arith.constant 0 : index
    %31 = vector.load %arg8[%c0_12, %c0_13, %c0_14] : memref<1x128x384xbf16, #tpu.memory_space<vmem>>, vector<1x128x384xbf16>
    %32 = vector.shape_cast %31 : vector<1x128x384xbf16> to vector<128x384xbf16>
    %cst_15 = arith.constant dense<0.000000e+00> : vector<128x384xf32>
    %33 = tpu.matmul %30, %32, %cst_15 {dimension_numbers = #tpu.dot_dimension_numbers<[1], [0], [0], [1], [0, 0, 1, 1], [], []>} : vector<128x128xbf16>, vector<128x384xbf16>, vector<128x384xf32> -> vector<128x384xf32>
    %c0_16 = arith.constant 0 : index
    %c0_17 = arith.constant 0 : index
    %c0_18 = arith.constant 0 : index
    %34 = vector.load %arg9[%c0_16, %c0_17, %c0_18] : memref<1x1x384xf32, #tpu.memory_space<vmem>>, vector<1x1x384xf32>
    %35 = vector.shape_cast %34 : vector<1x1x384xf32> to vector<1x384xf32>
    %36 = vector.broadcast %35 : vector<1x384xf32> to vector<128x384xf32>
    %37 = arith.addf %33, %36 : vector<128x384xf32>
    %38 = arith.truncf %37 : vector<128x384xf32> to vector<128x384xbf16>
    %c0_19 = arith.constant 0 : index
    %c0_20 = arith.constant 0 : index
    %39 = vector.load %arg3[%c0_19, %c0_20] : memref<128x128xf32, #tpu.memory_space<vmem>>, vector<128x128xf32>
    %40 = vector.extract_strided_slice %38 {offsets = [0, 0], sizes = [128, 32], strides = [1, 1]} : vector<128x384xbf16> to vector<128x32xbf16>
    %41 = vector.extract_strided_slice %38 {offsets = [0, 128], sizes = [128, 32], strides = [1, 1]} : vector<128x384xbf16> to vector<128x32xbf16>
    %42 = vector.extract_strided_slice %38 {offsets = [0, 256], sizes = [128, 32], strides = [1, 1]} : vector<128x384xbf16> to vector<128x32xbf16>
    "tpu.trace_start"() <{level = 10 : i32, message = "td,sd->ts"}> : () -> ()
    %cst_21 = arith.constant dense<0.000000e+00> : vector<128x128xf32>
    %43 = tpu.matmul %40, %41, %cst_21 {dimension_numbers = #tpu.dot_dimension_numbers<[1], [1], [0], [0], [0, 0, 1, 0], [], []>} : vector<128x32xbf16>, vector<128x32xbf16>, vector<128x128xf32> -> vector<128x128xf32>
    "tpu.trace_stop"() : () -> ()
    %44 = arith.addf %43, %39 : vector<128x128xf32>
    %cst_22 = arith.constant dense<0xFF800000> : vector<128xf32>
    %45 = vector.multi_reduction <maximumf>, %44, %cst_22 [1] : vector<128x128xf32> to vector<128xf32>
    %46 = vector.shape_cast %45 : vector<128xf32> to vector<128x1xf32>
    %47 = vector.broadcast %46 : vector<128x1xf32> to vector<128x128xf32>
    %48 = arith.subf %44, %47 : vector<128x128xf32>
    %49 = math.exp %48 : vector<128x128xf32>
    %cst_23 = arith.constant dense<0.000000e+00> : vector<128xf32>
    %50 = vector.multi_reduction <add>, %49, %cst_23 [1] : vector<128x128xf32> to vector<128xf32>
    %51 = vector.shape_cast %50 : vector<128xf32> to vector<128x1xf32>
    %52 = arith.truncf %49 : vector<128x128xf32> to vector<128x128xbf16>
    %cst_24 = arith.constant dense<0.000000e+00> : vector<128x32xf32>
    %53 = tpu.matmul %52, %42, %cst_24 {dimension_numbers = #tpu.dot_dimension_numbers<[1], [0], [0], [1], [0, 0, 1, 1], [], []>} : vector<128x128xbf16>, vector<128x32xbf16>, vector<128x32xf32> -> vector<128x32xf32>
    %54 = tpu.reciprocal %51 {approx = true} : vector<128x1xf32> -> vector<128x1xf32>
    %55 = vector.broadcast %54 : vector<128x1xf32> to vector<128x32xf32>
    %56 = arith.mulf %53, %55 : vector<128x32xf32>
    %57 = arith.truncf %56 : vector<128x32xf32> to vector<128x32xbf16>
    %58 = vector.extract_strided_slice %38 {offsets = [0, 32], sizes = [128, 32], strides = [1, 1]} : vector<128x384xbf16> to vector<128x32xbf16>
    %59 = vector.extract_strided_slice %38 {offsets = [0, 160], sizes = [128, 32], strides = [1, 1]} : vector<128x384xbf16> to vector<128x32xbf16>
    %60 = vector.extract_strided_slice %38 {offsets = [0, 288], sizes = [128, 32], strides = [1, 1]} : vector<128x384xbf16> to vector<128x32xbf16>
    "tpu.trace_start"() <{level = 10 : i32, message = "td,sd->ts"}> : () -> ()
    %cst_25 = arith.constant dense<0.000000e+00> : vector<128x128xf32>
    %61 = tpu.matmul %58, %59, %cst_25 {dimension_numbers = #tpu.dot_dimension_numbers<[1], [1], [0], [0], [0, 0, 1, 0], [], []>} : vector<128x32xbf16>, vector<128x32xbf16>, vector<128x128xf32> -> vector<128x128xf32>
    "tpu.trace_stop"() : () -> ()
    %62 = arith.addf %61, %39 : vector<128x128xf32>
    %cst_26 = arith.constant dense<0xFF800000> : vector<128xf32>
    %63 = vector.multi_reduction <maximumf>, %62, %cst_26 [1] : vector<128x128xf32> to vector<128xf32>
    %64 = vector.shape_cast %63 : vector<128xf32> to vector<128x1xf32>
    %65 = vector.broadcast %64 : vector<128x1xf32> to vector<128x128xf32>
    %66 = arith.subf %62, %65 : vector<128x128xf32>
    %67 = math.exp %66 : vector<128x128xf32>
    %cst_27 = arith.constant dense<0.000000e+00> : vector<128xf32>
    %68 = vector.multi_reduction <add>, %67, %cst_27 [1] : vector<128x128xf32> to vector<128xf32>
    %69 = vector.shape_cast %68 : vector<128xf32> to vector<128x1xf32>
    %70 = arith.truncf %67 : vector<128x128xf32> to vector<128x128xbf16>
    %cst_28 = arith.constant dense<0.000000e+00> : vector<128x32xf32>
    %71 = tpu.matmul %70, %60, %cst_28 {dimension_numbers = #tpu.dot_dimension_numbers<[1], [0], [0], [1], [0, 0, 1, 1], [], []>} : vector<128x128xbf16>, vector<128x32xbf16>, vector<128x32xf32> -> vector<128x32xf32>
    %72 = tpu.reciprocal %69 {approx = true} : vector<128x1xf32> -> vector<128x1xf32>
    %73 = vector.broadcast %72 : vector<128x1xf32> to vector<128x32xf32>
    %74 = arith.mulf %71, %73 : vector<128x32xf32>
    %75 = arith.truncf %74 : vector<128x32xf32> to vector<128x32xbf16>
    %76 = vector.extract_strided_slice %38 {offsets = [0, 64], sizes = [128, 32], strides = [1, 1]} : vector<128x384xbf16> to vector<128x32xbf16>
    %77 = vector.extract_strided_slice %38 {offsets = [0, 192], sizes = [128, 32], strides = [1, 1]} : vector<128x384xbf16> to vector<128x32xbf16>
    %78 = vector.extract_strided_slice %38 {offsets = [0, 320], sizes = [128, 32], strides = [1, 1]} : vector<128x384xbf16> to vector<128x32xbf16>
    "tpu.trace_start"() <{level = 10 : i32, message = "td,sd->ts"}> : () -> ()
    %cst_29 = arith.constant dense<0.000000e+00> : vector<128x128xf32>
    %79 = tpu.matmul %76, %77, %cst_29 {dimension_numbers = #tpu.dot_dimension_numbers<[1], [1], [0], [0], [0, 0, 1, 0], [], []>} : vector<128x32xbf16>, vector<128x32xbf16>, vector<128x128xf32> -> vector<128x128xf32>
    "tpu.trace_stop"() : () -> ()
    %80 = arith.addf %79, %39 : vector<128x128xf32>
    %cst_30 = arith.constant dense<0xFF800000> : vector<128xf32>
    %81 = vector.multi_reduction <maximumf>, %80, %cst_30 [1] : vector<128x128xf32> to vector<128xf32>
    %82 = vector.shape_cast %81 : vector<128xf32> to vector<128x1xf32>
    %83 = vector.broadcast %82 : vector<128x1xf32> to vector<128x128xf32>
    %84 = arith.subf %80, %83 : vector<128x128xf32>
    %85 = math.exp %84 : vector<128x128xf32>
    %cst_31 = arith.constant dense<0.000000e+00> : vector<128xf32>
    %86 = vector.multi_reduction <add>, %85, %cst_31 [1] : vector<128x128xf32> to vector<128xf32>
    %87 = vector.shape_cast %86 : vector<128xf32> to vector<128x1xf32>
    %88 = arith.truncf %85 : vector<128x128xf32> to vector<128x128xbf16>
    %cst_32 = arith.constant dense<0.000000e+00> : vector<128x32xf32>
    %89 = tpu.matmul %88, %78, %cst_32 {dimension_numbers = #tpu.dot_dimension_numbers<[1], [0], [0], [1], [0, 0, 1, 1], [], []>} : vector<128x128xbf16>, vector<128x32xbf16>, vector<128x32xf32> -> vector<128x32xf32>
    %90 = tpu.reciprocal %87 {approx = true} : vector<128x1xf32> -> vector<128x1xf32>
    %91 = vector.broadcast %90 : vector<128x1xf32> to vector<128x32xf32>
    %92 = arith.mulf %89, %91 : vector<128x32xf32>
    %93 = arith.truncf %92 : vector<128x32xf32> to vector<128x32xbf16>
    %94 = vector.extract_strided_slice %38 {offsets = [0, 96], sizes = [128, 32], strides = [1, 1]} : vector<128x384xbf16> to vector<128x32xbf16>
    %95 = vector.extract_strided_slice %38 {offsets = [0, 224], sizes = [128, 32], strides = [1, 1]} : vector<128x384xbf16> to vector<128x32xbf16>
    %96 = vector.extract_strided_slice %38 {offsets = [0, 352], sizes = [128, 32], strides = [1, 1]} : vector<128x384xbf16> to vector<128x32xbf16>
    "tpu.trace_start"() <{level = 10 : i32, message = "td,sd->ts"}> : () -> ()
    %cst_33 = arith.constant dense<0.000000e+00> : vector<128x128xf32>
    %97 = tpu.matmul %94, %95, %cst_33 {dimension_numbers = #tpu.dot_dimension_numbers<[1], [1], [0], [0], [0, 0, 1, 0], [], []>} : vector<128x32xbf16>, vector<128x32xbf16>, vector<128x128xf32> -> vector<128x128xf32>
    "tpu.trace_stop"() : () -> ()
    %98 = arith.addf %97, %39 : vector<128x128xf32>
    %cst_34 = arith.constant dense<0xFF800000> : vector<128xf32>
    %99 = vector.multi_reduction <maximumf>, %98, %cst_34 [1] : vector<128x128xf32> to vector<128xf32>
    %100 = vector.shape_cast %99 : vector<128xf32> to vector<128x1xf32>
    %101 = vector.broadcast %100 : vector<128x1xf32> to vector<128x128xf32>
    %102 = arith.subf %98, %101 : vector<128x128xf32>
    %103 = math.exp %102 : vector<128x128xf32>
    %cst_35 = arith.constant dense<0.000000e+00> : vector<128xf32>
    %104 = vector.multi_reduction <add>, %103, %cst_35 [1] : vector<128x128xf32> to vector<128xf32>
    %105 = vector.shape_cast %104 : vector<128xf32> to vector<128x1xf32>
    %106 = arith.truncf %103 : vector<128x128xf32> to vector<128x128xbf16>
    %cst_36 = arith.constant dense<0.000000e+00> : vector<128x32xf32>
    %107 = tpu.matmul %106, %96, %cst_36 {dimension_numbers = #tpu.dot_dimension_numbers<[1], [0], [0], [1], [0, 0, 1, 1], [], []>} : vector<128x128xbf16>, vector<128x32xbf16>, vector<128x32xf32> -> vector<128x32xf32>
    %108 = tpu.reciprocal %105 {approx = true} : vector<128x1xf32> -> vector<128x1xf32>
    %109 = vector.broadcast %108 : vector<128x1xf32> to vector<128x32xf32>
    %110 = arith.mulf %107, %109 : vector<128x32xf32>
    %111 = arith.truncf %110 : vector<128x32xf32> to vector<128x32xbf16>
    %112 = tpu.concatenate %57, %75, %93, %111 in 1 : vector<128x32xbf16>, vector<128x32xbf16>, vector<128x32xbf16>, vector<128x32xbf16> -> vector<128x128xbf16>
    %c0_37 = arith.constant 0 : index
    %c0_38 = arith.constant 0 : index
    %c0_39 = arith.constant 0 : index
    %113 = vector.load %arg10[%c0_37, %c0_38, %c0_39] : memref<1x128x128xbf16, #tpu.memory_space<vmem>>, vector<1x128x128xbf16>
    %114 = vector.shape_cast %113 : vector<1x128x128xbf16> to vector<128x128xbf16>
    %cst_40 = arith.constant dense<0.000000e+00> : vector<128x128xf32>
    %115 = tpu.matmul %112, %114, %cst_40 {dimension_numbers = #tpu.dot_dimension_numbers<[1], [0], [0], [1], [0, 0, 1, 1], [], []>} : vector<128x128xbf16>, vector<128x128xbf16>, vector<128x128xf32> -> vector<128x128xf32>
    %c0_41 = arith.constant 0 : index
    %c0_42 = arith.constant 0 : index
    %c0_43 = arith.constant 0 : index
    %116 = vector.load %arg11[%c0_41, %c0_42, %c0_43] : memref<1x1x128xf32, #tpu.memory_space<vmem>>, vector<1x1x128xf32>
    %117 = vector.shape_cast %116 : vector<1x1x128xf32> to vector<1x128xf32>
    %118 = vector.broadcast %117 : vector<1x128xf32> to vector<128x128xf32>
    %119 = arith.addf %115, %118 : vector<128x128xf32>
    %120 = arith.addf %3, %119 : vector<128x128xf32>
    %c0_44 = arith.constant 0 : index
    %c0_45 = arith.constant 0 : index
    %c0_46 = arith.constant 0 : index
    %121 = vector.load %arg12[%c0_44, %c0_45, %c0_46] : memref<1x1x128xf32, #tpu.memory_space<vmem>>, vector<1x1x128xf32>
    %122 = vector.shape_cast %121 : vector<1x1x128xf32> to vector<1x128xf32>
    %c0_47 = arith.constant 0 : index
    %c0_48 = arith.constant 0 : index
    %c0_49 = arith.constant 0 : index
    %123 = vector.load %arg13[%c0_47, %c0_48, %c0_49] : memref<1x1x128xf32, #tpu.memory_space<vmem>>, vector<1x1x128xf32>
    %124 = vector.shape_cast %123 : vector<1x1x128xf32> to vector<1x128xf32>
    %cst_50 = arith.constant dense<0.000000e+00> : vector<128xf32>
    %125 = vector.multi_reduction <add>, %120, %cst_50 [1] : vector<128x128xf32> to vector<128xf32>
    %126 = vector.shape_cast %125 : vector<128xf32> to vector<128x1xf32>
    %cst_51 = arith.constant 1.280000e+02 : f32
    %127 = vector.broadcast %cst_51 : f32 to vector<128x1xf32>
    %128 = arith.divf %126, %127 : vector<128x1xf32>
    %129 = vector.broadcast %128 : vector<128x1xf32> to vector<128x128xf32>
    %130 = arith.subf %120, %129 : vector<128x128xf32>
    %131 = arith.mulf %130, %130 : vector<128x128xf32>
    %cst_52 = arith.constant dense<0.000000e+00> : vector<128xf32>
    %132 = vector.multi_reduction <add>, %131, %cst_52 [1] : vector<128x128xf32> to vector<128xf32>
    %133 = vector.shape_cast %132 : vector<128xf32> to vector<128x1xf32>
    %cst_53 = arith.constant 1.280000e+02 : f32
    %134 = vector.broadcast %cst_53 : f32 to vector<128x1xf32>
    %135 = arith.divf %133, %134 : vector<128x1xf32>
    %136 = vector.broadcast %128 : vector<128x1xf32> to vector<128x128xf32>
    %137 = arith.subf %120, %136 : vector<128x128xf32>
    %cst_54 = arith.constant 9.99999974E-6 : f32
    %138 = vector.broadcast %cst_54 : f32 to vector<128x1xf32>
    %139 = arith.addf %135, %138 : vector<128x1xf32>
    %140 = math.rsqrt %139 : vector<128x1xf32>
    %141 = vector.broadcast %140 : vector<128x1xf32> to vector<128x128xf32>
    %142 = arith.mulf %137, %141 : vector<128x128xf32>
    %143 = vector.broadcast %122 : vector<1x128xf32> to vector<128x128xf32>
    %144 = arith.mulf %142, %143 : vector<128x128xf32>
    %145 = vector.broadcast %124 : vector<1x128xf32> to vector<128x128xf32>
    %146 = arith.addf %144, %145 : vector<128x128xf32>
    %147 = arith.truncf %146 : vector<128x128xf32> to vector<128x128xbf16>
    %c0_55 = arith.constant 0 : index
    %c0_56 = arith.constant 0 : index
    %c0_57 = arith.constant 0 : index
    %148 = vector.load %arg14[%c0_55, %c0_56, %c0_57] : memref<1x128x512xbf16, #tpu.memory_space<vmem>>, vector<1x128x512xbf16>
    %149 = vector.shape_cast %148 : vector<1x128x512xbf16> to vector<128x512xbf16>
    %cst_58 = arith.constant dense<0.000000e+00> : vector<128x512xf32>
    %150 = tpu.matmul %147, %149, %cst_58 {dimension_numbers = #tpu.dot_dimension_numbers<[1], [0], [0], [1], [0, 0, 1, 1], [], []>} : vector<128x128xbf16>, vector<128x512xbf16>, vector<128x512xf32> -> vector<128x512xf32>
    %c0_59 = arith.constant 0 : index
    %c0_60 = arith.constant 0 : index
    %c0_61 = arith.constant 0 : index
    %151 = vector.load %arg15[%c0_59, %c0_60, %c0_61] : memref<1x1x512xf32, #tpu.memory_space<vmem>>, vector<1x1x512xf32>
    %152 = vector.shape_cast %151 : vector<1x1x512xf32> to vector<1x512xf32>
    %153 = vector.broadcast %152 : vector<1x512xf32> to vector<128x512xf32>
    %154 = arith.addf %150, %153 : vector<128x512xf32>
    %cst_62 = arith.constant 5.000000e-01 : f32
    %155 = vector.broadcast %cst_62 : f32 to vector<128x512xf32>
    %156 = arith.mulf %155, %154 : vector<128x512xf32>
    %cst_63 = arith.constant 4.471500e-02 : f32
    %157 = vector.broadcast %cst_63 : f32 to vector<128x512xf32>
    %158 = arith.mulf %157, %154 : vector<128x512xf32>
    %159 = arith.mulf %158, %154 : vector<128x512xf32>
    %160 = arith.mulf %159, %154 : vector<128x512xf32>
    %161 = arith.addf %154, %160 : vector<128x512xf32>
    %cst_64 = arith.constant 0.797884583 : f32
    %162 = vector.broadcast %cst_64 : f32 to vector<128x512xf32>
    %163 = arith.mulf %162, %161 : vector<128x512xf32>
    %164 = math.tanh %163 : vector<128x512xf32>
    %cst_65 = arith.constant 1.000000e+00 : f32
    %165 = vector.broadcast %cst_65 : f32 to vector<128x512xf32>
    %166 = arith.addf %165, %164 : vector<128x512xf32>
    %167 = arith.mulf %156, %166 : vector<128x512xf32>
    %168 = arith.truncf %167 : vector<128x512xf32> to vector<128x512xbf16>
    %c0_66 = arith.constant 0 : index
    %c0_67 = arith.constant 0 : index
    %c0_68 = arith.constant 0 : index
    %169 = vector.load %arg16[%c0_66, %c0_67, %c0_68] : memref<1x512x128xbf16, #tpu.memory_space<vmem>>, vector<1x512x128xbf16>
    %170 = vector.shape_cast %169 : vector<1x512x128xbf16> to vector<512x128xbf16>
    %cst_69 = arith.constant dense<0.000000e+00> : vector<128x128xf32>
    %171 = tpu.matmul %168, %170, %cst_69 {dimension_numbers = #tpu.dot_dimension_numbers<[1], [0], [0], [1], [0, 0, 1, 1], [], []>} : vector<128x512xbf16>, vector<512x128xbf16>, vector<128x128xf32> -> vector<128x128xf32>
    %172 = arith.addf %120, %171 : vector<128x128xf32>
    %c0_70 = arith.constant 0 : index
    %c0_71 = arith.constant 0 : index
    %c0_72 = arith.constant 0 : index
    %173 = vector.load %arg17[%c0_70, %c0_71, %c0_72] : memref<1x1x128xf32, #tpu.memory_space<vmem>>, vector<1x1x128xf32>
    %174 = vector.shape_cast %173 : vector<1x1x128xf32> to vector<1x128xf32>
    %175 = vector.broadcast %174 : vector<1x128xf32> to vector<128x128xf32>
    %176 = arith.addf %172, %175 : vector<128x128xf32>
    %c0_73 = arith.constant 0 : index
    %c0_74 = arith.constant 0 : index
    %177 = vector.load %arg19[%c0_73, %c0_74] : memref<128x128xf32, #tpu.memory_space<vmem>>, vector<128x128xf32>
    tpu.vector_store %arg19[%c0_73, %c0_74], %176 {strides = array<i32>} : memref<128x128xf32, #tpu.memory_space<vmem>>, vector<128x128xf32>,
    %c1_i32 = arith.constant 1 : i32
    %178 = arith.cmpi eq, %arg1, %c1_i32 : i32
    %179 = arith.extui %178 : i1 to i32
    %c0_i32_75 = arith.constant 0 : i32
    %180 = arith.cmpi ne, %179, %c0_i32_75 : i32
    scf.if %180 {
      %c0_76 = arith.constant 0 : index
      %c0_77 = arith.constant 0 : index
      %181 = vector.load %arg4[%c0_76, %c0_77] : memref<1x128xf32, #tpu.memory_space<vmem>>, vector<1x128xf32>
      %c0_78 = arith.constant 0 : index
      %c0_79 = arith.constant 0 : index
      %182 = vector.load %arg5[%c0_78, %c0_79] : memref<1x128xf32, #tpu.memory_space<vmem>>, vector<1x128xf32>
      %cst_80 = arith.constant dense<0.000000e+00> : vector<128xf32>
      %183 = vector.multi_reduction <add>, %176, %cst_80 [1] : vector<128x128xf32> to vector<128xf32>
      %184 = vector.shape_cast %183 : vector<128xf32> to vector<128x1xf32>
      %cst_81 = arith.constant 1.280000e+02 : f32
      %185 = vector.broadcast %cst_81 : f32 to vector<128x1xf32>
      %186 = arith.divf %184, %185 : vector<128x1xf32>
      %187 = vector.broadcast %186 : vector<128x1xf32> to vector<128x128xf32>
      %188 = arith.subf %176, %187 : vector<128x128xf32>
      %189 = arith.mulf %188, %188 : vector<128x128xf32>
      %cst_82 = arith.constant dense<0.000000e+00> : vector<128xf32>
      %190 = vector.multi_reduction <add>, %189, %cst_82 [1] : vector<128x128xf32> to vector<128xf32>
      %191 = vector.shape_cast %190 : vector<128xf32> to vector<128x1xf32>
      %cst_83 = arith.constant 1.280000e+02 : f32
      %192 = vector.broadcast %cst_83 : f32 to vector<128x1xf32>
      %193 = arith.divf %191, %192 : vector<128x1xf32>
      %194 = vector.broadcast %186 : vector<128x1xf32> to vector<128x128xf32>
      %195 = arith.subf %176, %194 : vector<128x128xf32>
      %cst_84 = arith.constant 9.99999974E-6 : f32
      %196 = vector.broadcast %cst_84 : f32 to vector<128x1xf32>
      %197 = arith.addf %193, %196 : vector<128x1xf32>
      %198 = math.rsqrt %197 : vector<128x1xf32>
      %199 = vector.broadcast %198 : vector<128x1xf32> to vector<128x128xf32>
      %200 = arith.mulf %195, %199 : vector<128x128xf32>
      %201 = vector.broadcast %181 : vector<1x128xf32> to vector<128x128xf32>
      %202 = arith.mulf %200, %201 : vector<128x128xf32>
      %203 = vector.broadcast %182 : vector<1x128xf32> to vector<128x128xf32>
      %204 = arith.addf %202, %203 : vector<128x128xf32>
      %205 = arith.truncf %204 : vector<128x128xf32> to vector<128x128xbf16>
      %c0_85 = arith.constant 0 : index
      %c0_86 = arith.constant 0 : index
      %c0_87 = arith.constant 0 : index
      %206 = vector.load %arg18[%c0_85, %c0_86, %c0_87] : memref<1x128x128xbf16, #tpu.memory_space<vmem>>, vector<1x128x128xbf16>
      %207 = vector.shape_cast %206 : vector<1x128x128xbf16> to vector<128x128xbf16>
      %208 = vector.shape_cast %205 : vector<128x128xbf16> to vector<1x128x128xbf16>
      tpu.vector_store %arg18[%c0_85, %c0_86, %c0_87], %208 {strides = array<i32>} : memref<1x128x128xbf16, #tpu.memory_space<vmem>>, vector<1x128x128xbf16>,
    } else {
    }
    return
  }
  func.func @transform_0(%arg0: i32, %arg1: i32) -> (i32, i32, i32) {
    %c0_i32 = arith.constant 0 : i32
    %c0_i32_0 = arith.constant 0 : i32
    %c0_i32_1 = arith.constant 0 : i32
    return %arg0, %c0_i32, %c0_i32_0 : i32, i32, i32
  }
  func.func @transform_1(%arg0: i32, %arg1: i32) -> (i32, i32) {
    %c0_i32 = arith.constant 0 : i32
    %c0_i32_0 = arith.constant 0 : i32
    %c0_i32_1 = arith.constant 0 : i32
    return %c0_i32, %c0_i32_0 : i32, i32
  }
  func.func @transform_2(%arg0: i32, %arg1: i32) -> (i32, i32) {
    %c0_i32 = arith.constant 0 : i32
    %c0_i32_0 = arith.constant 0 : i32
    %c0_i32_1 = arith.constant 0 : i32
    return %c0_i32, %c0_i32_0 : i32, i32
  }
  func.func @transform_3(%arg0: i32, %arg1: i32) -> (i32, i32) {
    %c0_i32 = arith.constant 0 : i32
    %c0_i32_0 = arith.constant 0 : i32
    %c0_i32_1 = arith.constant 0 : i32
    return %c0_i32, %c0_i32_0 : i32, i32
  }
  func.func @transform_4(%arg0: i32, %arg1: i32) -> (i32, i32, i32) {
    %c0_i32 = arith.constant 0 : i32
    %c0_i32_0 = arith.constant 0 : i32
    %c0_i32_1 = arith.constant 0 : i32
    return %arg1, %c0_i32, %c0_i32_0 : i32, i32, i32
  }
  func.func @transform_5(%arg0: i32, %arg1: i32) -> (i32, i32, i32) {
    %c0_i32 = arith.constant 0 : i32
    %c0_i32_0 = arith.constant 0 : i32
    %c0_i32_1 = arith.constant 0 : i32
    return %arg1, %c0_i32, %c0_i32_0 : i32, i32, i32
  }
  func.func @transform_6(%arg0: i32, %arg1: i32) -> (i32, i32, i32) {
    %c0_i32 = arith.constant 0 : i32
    %c0_i32_0 = arith.constant 0 : i32
    %c0_i32_1 = arith.constant 0 : i32
    return %arg1, %c0_i32, %c0_i32_0 : i32, i32, i32
  }
  func.func @transform_7(%arg0: i32, %arg1: i32) -> (i32, i32, i32) {
    %c0_i32 = arith.constant 0 : i32
    %c0_i32_0 = arith.constant 0 : i32
    %c0_i32_1 = arith.constant 0 : i32
    return %arg1, %c0_i32, %c0_i32_0 : i32, i32, i32
  }
  func.func @transform_8(%arg0: i32, %arg1: i32) -> (i32, i32, i32) {
    %c0_i32 = arith.constant 0 : i32
    %c0_i32_0 = arith.constant 0 : i32
    %c0_i32_1 = arith.constant 0 : i32
    return %arg1, %c0_i32, %c0_i32_0 : i32, i32, i32
  }
  func.func @transform_9(%arg0: i32, %arg1: i32) -> (i32, i32, i32) {
    %c0_i32 = arith.constant 0 : i32
    %c0_i32_0 = arith.constant 0 : i32
    %c0_i32_1 = arith.constant 0 : i32
    return %arg1, %c0_i32, %c0_i32_0 : i32, i32, i32
  }
  func.func @transform_10(%arg0: i32, %arg1: i32) -> (i32, i32, i32) {
    %c0_i32 = arith.constant 0 : i32
    %c0_i32_0 = arith.constant 0 : i32
    %c0_i32_1 = arith.constant 0 : i32
    return %arg1, %c0_i32, %c0_i32_0 : i32, i32, i32
  }
  func.func @transform_11(%arg0: i32, %arg1: i32) -> (i32, i32, i32) {
    %c0_i32 = arith.constant 0 : i32
    %c0_i32_0 = arith.constant 0 : i32
    %c0_i32_1 = arith.constant 0 : i32
    return %arg1, %c0_i32, %c0_i32_0 : i32, i32, i32
  }
  func.func @transform_12(%arg0: i32, %arg1: i32) -> (i32, i32, i32) {
    %c0_i32 = arith.constant 0 : i32
    %c0_i32_0 = arith.constant 0 : i32
    %c0_i32_1 = arith.constant 0 : i32
    return %arg1, %c0_i32, %c0_i32_0 : i32, i32, i32
  }
  func.func @transform_13(%arg0: i32, %arg1: i32) -> (i32, i32, i32) {
    %c0_i32 = arith.constant 0 : i32
    %c0_i32_0 = arith.constant 0 : i32
    %c0_i32_1 = arith.constant 0 : i32
    return %arg1, %c0_i32, %c0_i32_0 : i32, i32, i32
  }
  func.func @transform_14(%arg0: i32, %arg1: i32) -> (i32, i32, i32) {
    %c0_i32 = arith.constant 0 : i32
    %c0_i32_0 = arith.constant 0 : i32
    %c0_i32_1 = arith.constant 0 : i32
    return %arg1, %c0_i32, %c0_i32_0 : i32, i32, i32
  }
  func.func @transform_15(%arg0: i32, %arg1: i32) -> (i32, i32, i32) {
    %c0_i32 = arith.constant 0 : i32
    %c0_i32_0 = arith.constant 0 : i32
    %c0_i32_1 = arith.constant 0 : i32
    return %arg1, %c0_i32, %c0_i32_0 : i32, i32, i32
  }
  func.func @transform_16(%arg0: i32, %arg1: i32) -> (i32, i32, i32) {
    %c0_i32 = arith.constant 0 : i32
    %c0_i32_0 = arith.constant 0 : i32
    %c0_i32_1 = arith.constant 0 : i32
    return %arg0, %c0_i32, %c0_i32_0 : i32, i32, i32
  }
}

</mosaic_0001>

<bundles_post_ra>
// kernel: gpt_forward_pallas.3
= control target key start
LH: loop header
LB: loop body
LE: loop exit
PB: predicated region body
PF: predicated region fallthrough
CT: control target
= control target key end

     0   :  { %7 = vsyncpa [#allocation3], 0  ;;  %s1411_s0 = inlined_call_operand.vmem [shape: bf16[256,128], index: 0, kind: input, shape index: {}]   ;;  %s1412_s1 = inlined_call_operand.vmem [shape: bf16[128,512], index: 1, kind: input, shape index: {}]   ;;  %s1413_s2 = inlined_call_operand.hbm [shape: f32[256,512], index: 2, kind: output, shape index: {}]  }
   0x1   :  { %9 = vsyncpa [#allocation3 + $0x1], 0  ;;  %s1104_s9 = smov 0   ;;  %s1106_s10 = smov 0  }
   0x2   :  { %s1108_s11 = smov 0   ;;  %s1110_s12 = smov 0  }
   0x3   :  { %s1112_s13 = smov 0   ;;  %s1114_s14 = smov 0  }
   0x4 LB: > { %s834_s15 = sadd.s32 4294967295, %s1083_s14   ;;  %s835_s16 = sadd.s32 4294967294, %s1083_s14   ;;  %s1083_s14 = sphi %s1114_s14, %s15_s14   ;;  %s1079_s13 = sphi %s1112_s13, %s1420_s13   ;;  %s1075_s12 = sphi %s1110_s12, %s1419_s12   ;;  %s1071_s11 = sphi %s1108_s11, %s1418_s11   ;;  %s1067_s10 = sphi %s1106_s10, %s1417_s10   ;;  %s1063_s9 = sphi %s1104_s9, %s1416_s9  }
   0x5   : > { %s24_s17 = sadd.s32 1, %s1079_s13  ;;  %s88_s18 = sadd.s32 1, %s1071_s11 }
   0x6   : > { %p25_p0 = scmp.ge.s32.totalorder %s24_s17, 2  ;;  %p98_p1 = scmp.ne.s32.totalorder %s1071_s11, %s1067_s10 }
   0x7   : > { %p99_p2 = scmp.eq.s32.totalorder %s834_s15, 1  ;;  %p104_p3 = scmp.ne.s32.totalorder %s1067_s10, %s1063_s9 }
   0x8   : > { %s1422_s17 = smov (%p25_p0, %s24_s17), 0  ;;  %p105_p5 = scmp.eq.s32.totalorder %s835_s16, 1 }
   0x9   : > { %p1144_p4 = por %p99_p2, %p98_p1  ;;  %s83_s20 = ssub.s32 %s1079_s13, %s1422_s17 }
   0xa   : > { %p839_p6 = scmp.ge.s32.totalorder %s1083_s14, 1  ;;  %p86_p7 = scmp.eq.s32.totalorder %s83_s20, 0 }
   0xb   : > { %p1151_p8 = por %p105_p5, %p104_p3  ;;  %p141_p9 = scmp.lt.s32.totalorder %s1083_s14, 3 }
   0xc   : > { %s1157_s22 = scalar_select %p86_p7, %s1071_s11, %s88_s18  }
   0xd   : > { %p142_p10 = pnand %p839_p6, %p141_p9 }
   0xe   : > { %v949_v0 = vld [vmem:[%s1412_s1 + $0x4] ss:$16 sps:$4 sm:$0xff] (!%p142_p10)   ;;  %v951_v1 = vld [vmem:[%s1412_s1 + $0xc] ss:$16 sps:$4 sm:$0xff] (!%p142_p10)   ;;  %v1085_v2 = vmov (!%p142_p10), 0   ;;  %s841_s23 = sshll.u32 (!%p142_p10), %s1075_s12, 4 }
   0xf   : > { %145 = sbr.rel (%p142_p10) target bundleno = 334 (0x14e), region = 28  ;;  %471 = vmatprep.mubr.bf16.mxu0 (!%p142_p10), %v1085_v2  ;;  %584 = vmatprep.mubr.bf16.mxu1 (!%p142_p10), %v1085_v2  ;;  %v953_v3 = vld [vmem:[%s1412_s1] ss:$16 sps:$4 sm:$0xff] (!%p142_p10)   ;;  %v954_v4 = vld [vmem:[%s1412_s1 + $0x8] ss:$16 sps:$4 sm:$0xff] (!%p142_p10)   ;;  %p169_p11 = scmp.lt.s32.totalorder (!%p142_p10), %s841_s23, 31 }
  0x10   : > { %439 = vmatprep.subr.bf16.mxu0 (!%p142_p10), %v949_v0  ;;  %552 = vmatprep.subr.bf16.mxu1 (!%p142_p10), %v951_v1  ;;  %v955_v5 = vld [vmem:[%s1412_s1 + $0x24] ss:$16 sps:$4 sm:$0xff] (!%p142_p10)   ;;  %v957_v6 = vld [vmem:[%s1412_s1 + $0x2c] ss:$16 sps:$4 sm:$0xff] (!%p142_p10)   ;;  %v959_v7 = vld [vmem:[%s1412_s1 + $0x20] ss:$16 sps:$4 sm:$0xff] (!%p142_p10)  }
  0x11   : > { %440 = vmatpush1.bf16.msra.mxu0 (!%p142_p10), %v953_v3  ;;  %553 = vmatpush1.bf16.msra.mxu1 (!%p142_p10), %v954_v4  ;;  %v960_v8 = vld [vmem:[%s1412_s1 + $0x28] ss:$16 sps:$4 sm:$0xff] (!%p142_p10)   ;;  %v961_v9 = vld [vmem:[%s1412_s1 + $0x44] ss:$16 sps:$4 sm:$0xff] (!%p142_p10)   ;;  %v963_v10 = vld [vmem:[%s1412_s1 + $0x4c] ss:$16 sps:$4 sm:$0xff] (!%p142_p10)  }
  0x12   : > { %441 = vmatprep.subr.bf16.mxu0 (!%p142_p10), %v955_v5  ;;  %554 = vmatprep.subr.bf16.mxu1 (!%p142_p10), %v957_v6  ;;  %v965_v11 = vld [vmem:[%s1412_s1 + $0x40] ss:$16 sps:$4 sm:$0xff] (!%p142_p10)   ;;  %v966_v12 = vld [vmem:[%s1412_s1 + $0x48] ss:$16 sps:$4 sm:$0xff] (!%p142_p10)   ;;  %v967_v13 = vld [vmem:[%s1412_s1 + $0x64] ss:$16 sps:$4 sm:$0xff] (!%p142_p10)  }
  0x13   : > { %v969_v14 = vld [vmem:[%s1412_s1 + $0x6c] ss:$16 sps:$4 sm:$0xff] (!%p142_p10)   ;;  %v971_v15 = vld [vmem:[%s1412_s1 + $0x60] ss:$16 sps:$4 sm:$0xff] (!%p142_p10)   ;;  %v972_v16 = vld [vmem:[%s1412_s1 + $0x68] ss:$16 sps:$4 sm:$0xff] (!%p142_p10)  }
  0x14   : > { %v973_v17 = vld [vmem:[%s1412_s1 + $0x84] ss:$16 sps:$4 sm:$0xff] (!%p142_p10)   ;;  %v975_v18 = vld [vmem:[%s1412_s1 + $0x8c] ss:$16 sps:$4 sm:$0xff] (!%p142_p10)   ;;  %v977_v19 = vld [vmem:[%s1412_s1 + $0x80] ss:$16 sps:$4 sm:$0xff] (!%p142_p10)  }
  0x15   : > { %442 = vmatpush1.bf16.msra.mxu0 (!%p142_p10), %v959_v7  ;;  %555 = vmatpush1.bf16.msra.mxu1 (!%p142_p10), %v960_v8  ;;  %v978_v20 = vld [vmem:[%s1412_s1 + $0x88] ss:$16 sps:$4 sm:$0xff] (!%p142_p10)   ;;  %v979_v21 = vld [vmem:[%s1412_s1 + $0xa4] ss:$16 sps:$4 sm:$0xff] (!%p142_p10)   ;;  %v981_v22 = vld [vmem:[%s1412_s1 + $0xac] ss:$16 sps:$4 sm:$0xff] (!%p142_p10)  }
  0x16   : > { %443 = vmatprep.subr.bf16.mxu0 %v961_v9  ;;  %556 = vmatprep.subr.bf16.mxu1 %v963_v10  ;;  %s1424_s23 = smov (!%p169_p11, %s841_s23), 31  ;;  %v983_v23 = vld [vmem:[%s1412_s1 + $0xa0] ss:$16 sps:$4 sm:$0xff]   ;;  %v984_v24 = vld [vmem:[%s1412_s1 + $0xa8] ss:$16 sps:$4 sm:$0xff]   ;;  %s165_s18 = sand.u32 1, %s1067_s10  }
  0x17   : > { %s842_s5 = sshll.u32 %s1424_s23, 2  ;;  %v985_v25 = vld [vmem:[%s1412_s1 + $0xc4] ss:$16 sps:$4 sm:$0xff]   ;;  %v987_v26 = vld [vmem:[%s1412_s1 + $0xcc] ss:$16 sps:$4 sm:$0xff]   ;;  %s840_s20 = sshll.u32 %s165_s18, 9 }
  0x18   : > { %s1240_s25 = scalar_lea.vmem %s1411_s0, %s842_s5  ;;  %v989_v27 = vld [vmem:[%s1412_s1 + $0xc0] ss:$16 sps:$4 sm:$0xff]   ;;  %v990_v28 = vld [vmem:[%s1412_s1 + $0xc8] ss:$16 sps:$4 sm:$0xff]   ;;  %v991_v29 = vld [vmem:[%s1412_s1 + $0xe4] ss:$16 sps:$4 sm:$0xff]  }
  0x19   : > { %444 = vmatpush1.bf16.msra.mxu0 %v965_v11  ;;  %557 = vmatpush1.bf16.msra.mxu1 %v966_v12  ;;  %v993_v30 = vld [vmem:[%s1412_s1 + $0xec] ss:$16 sps:$4 sm:$0xff]   ;;  %v995_v31 = vld [vmem:[%s1412_s1 + $0xe0] ss:$16 sps:$4 sm:$0xff]   ;;  %v996_v32 = vld [vmem:[%s1412_s1 + $0xe8] ss:$16 sps:$4 sm:$0xff]  }
  0x1a   : > { %445 = vmatprep.subr.bf16.mxu0 %v967_v13  ;;  %558 = vmatprep.subr.bf16.mxu1 %v969_v14  ;;  %v997_v33 = vld [vmem:[%s1240_s25] sm:$0xff]   ;;  %v998_v34 = vld [vmem:[%s1240_s25 + $0x8] sm:$0xff]   ;;  %v999_v35 = vld [vmem:[%s1240_s25 + $0x10] sm:$0xff]   ;;  %s1288_s24 = scalar_lea.vmem [#allocation2], %s840_s20  ;;  %s1086_s30 = smov [#allocation2]  }
  0x1b   : > { %v1000_v36 = vld [vmem:[%s1240_s25 + $0x18] sm:$0xff]   ;;  %v1001_v37 = vld [vmem:[%s1240_s25 + $0x20] sm:$0xff]   ;;  %v1002_v38 = vld [vmem:[%s1240_s25 + $0x28] sm:$0xff]   ;;  %s746_s23 = sshll.u32 %s1288_s24, 4  ;;  %s1009_s3 = sshll.u32 %s1086_s30, 4  ;;  %s1355_s23 = int_to_ptr.vmem [resolvable:$true] %s746_s23  ;;  %s1010_s3 = int_to_ptr.vmem [resolvable:$false] %s1009_s3 }
  0x1c   : > { %v1003_v39 = vld [vmem:[%s1240_s25 + $0x30] sm:$0xff]   ;;  %v1004_v40 = vld [vmem:[%s1240_s25 + $0x38] sm:$0xff]   ;;  %s890_s25 = sshll.u32 %s1075_s12, 13  ;;  %s1365_s12 = scalar_lea.sflag [#allocation3], %s165_s18 }
  0x1d   : > { %446 = vmatpush1.bf16.msra.mxu0 %v971_v15  ;;  %559 = vmatpush1.bf16.msra.mxu1 %v972_v16  ;;  %s1353_s28 = scalar_lea.hbm %s1413_s2, %s890_s25  ;;  %s1005_s29 = scalar_lea.vmem %s1355_s23, 8192 }
  0x1e   : > { %447 = vmatprep.subr.bf16.mxu0 %v973_v17  ;;  %560 = vmatprep.subr.bf16.mxu1 %v975_v18  ;;  %p1006_p12 = scmp.ne.s32.totalorder %s1355_s23, %s1005_s29  ;;  %s1011_s4 = scalar_lea.vmem %s1010_s3, 16384 }
  0x1f   : > { %p1012_p1 = scmp.lt.s32.totalorder %s1355_s23, %s1010_s3  ;;  %p1013_p2 = scmp.lt.s32.totalorder %s1011_s4, %s1005_s29 }
  0x20   : > { %p1007_p13 = pnand %p1006_p12, %p1144_p4 }
  0x21   : > { %448 = vmatpush1.bf16.msra.mxu0 %v977_v19  ;;  %561 = vmatpush1.bf16.msra.mxu1 %v978_v20  ;;  %p1014_p3 = por %p1013_p2, %p1012_p1 }
  0x22   : > { %449 = vmatprep.subr.bf16.mxu0 %v979_v21  ;;  %562 = vmatprep.subr.bf16.mxu1 %v981_v22  ;;  %p1008_p0 = pneg %p1007_p13 }
  0x24   : > { %p1015_p5 = pnand %p1014_p3, %p1008_p0 }
  0x25   : > { %450 = vmatpush1.bf16.msra.mxu0 %v983_v23  ;;  %563 = vmatpush1.bf16.msra.mxu1 %v984_v24 }
  0x26   : > { %451 = vmatprep.subr.bf16.mxu0 %v985_v25  ;;  %564 = vmatprep.subr.bf16.mxu1 %v987_v26 }
  0x29   : > { %452 = vmatpush1.bf16.msra.mxu0 %v989_v27  ;;  %565 = vmatpush1.bf16.msra.mxu1 %v990_v28 }
  0x2a   : > { %453 = vmatprep.subr.bf16.mxu0 %v991_v29  ;;  %566 = vmatprep.subr.bf16.mxu1 %v993_v30 }
  0x2d   : > { %454 = vmatpush1.bf16.msra.mxu0 %v995_v31  ;;  %567 = vmatpush1.bf16.msra.mxu1 %v996_v32 }
  0x30   : > { %472 = vmatmul.mubr.bf16.vlgmr.msra.gmra.mrb[0].mxu0 %v997_v33  ;;  %585 = vmatmul.mubr.bf16.vlgmr.msra.gmra.mrb[0].mxu1 %v997_v33 }
  0x31   : > { %481 = vmatprep.mubr.bf16.mxu0 %v1085_v2  ;;  %594 = vmatprep.mubr.bf16.mxu1 %v1085_v2 }
  0x38   : > { %482 = vmatmul.mubr.bf16.gmra.mrb[4].mxu0 %v998_v34  ;;  %595 = vmatmul.mubr.bf16.gmra.mrb[4].mxu1 %v998_v34 }
  0x39   : > { %491 = vmatprep.mubr.bf16.mxu0 %v1085_v2  ;;  %604 = vmatprep.mubr.bf16.mxu1 %v1085_v2 }
  0x40   : > { %492 = vmatmul.mubr.bf16.gmra.mrb[8].mxu0 %v999_v35  ;;  %605 = vmatmul.mubr.bf16.gmra.mrb[8].mxu1 %v999_v35 }
  0x41   : > { %501 = vmatprep.mubr.bf16.mxu0 %v1085_v2  ;;  %614 = vmatprep.mubr.bf16.mxu1 %v1085_v2 }
  0x48   : > { %502 = vmatmul.mubr.bf16.gmra.mrb[12].mxu0 %v1000_v36  ;;  %615 = vmatmul.mubr.bf16.gmra.mrb[12].mxu1 %v1000_v36 }
  0x49   : > { %511 = vmatprep.mubr.bf16.mxu0 %v1085_v2  ;;  %624 = vmatprep.mubr.bf16.mxu1 %v1085_v2 }
  0x50   : > { %512 = vmatmul.mubr.bf16.gmra.mrb[16].mxu0 %v1001_v37  ;;  %625 = vmatmul.mubr.bf16.gmra.mrb[16].mxu1 %v1001_v37 }
  0x51   : > { %521 = vmatprep.mubr.bf16.mxu0 %v1085_v2  ;;  %634 = vmatprep.mubr.bf16.mxu1 %v1085_v2 }
  0x58   : > { %522 = vmatmul.mubr.bf16.gmra.mrb[20].mxu0 %v1002_v38  ;;  %635 = vmatmul.mubr.bf16.gmra.mrb[20].mxu1 %v1002_v38 }
  0x59   : > { %531 = vmatprep.mubr.bf16.mxu0 %v1085_v2  ;;  %644 = vmatprep.mubr.bf16.mxu1 %v1085_v2 }
  0x60   : > { %532 = vmatmul.mubr.bf16.gmra.mrb[24].mxu0 %v1003_v39  ;;  %645 = vmatmul.mubr.bf16.gmra.mrb[24].mxu1 %v1003_v39 }
  0x61   : > { %541 = vmatprep.mubr.bf16.mxu0 %v1085_v2  ;;  %654 = vmatprep.mubr.bf16.mxu1 %v1085_v2 }
  0x68   : > { %542 = vmatmul.mubr.bf16.gmra.mrb[28].mxu0 %v1004_v40  ;;  %655 = vmatmul.mubr.bf16.gmra.mrb[28].mxu1 %v1004_v40 }
 0x103   : > { %v473_v41 = vpop.f32.mrb[0].mxu0  ;;  %v586_v42 = vpop.f32.mrb[0].mxu1 }
 0x104   : > { %665 = vst [vmem:[%s1288_s24] sm:$0xff] %v473_v41  ;;  %667 = vst [vmem:[%s1288_s24 + $0x10] sm:$0xff] %v586_v42  ;;  %v475_v43 = vpop.f32.mrb[1].mxu0  ;;  %v588_v44 = vpop.f32.mrb[1].mxu1 }
 0x105   : > { %666 = vst [vmem:[%s1288_s24 + $0x8] sm:$0xff] %v475_v43  ;;  %668 = vst [vmem:[%s1288_s24 + $0x18] sm:$0xff] %v588_v44  ;;  %v477_v45 = vpop.f32.mrb[2].mxu0  ;;  %v590_v46 = vpop.f32.mrb[2].mxu1 }
 0x106   : > { %669 = vst [vmem:[%s1288_s24 + $0x20] sm:$0xff] %v477_v45  ;;  %671 = vst [vmem:[%s1288_s24 + $0x30] sm:$0xff] %v590_v46  ;;  %v479_v47 = vpop.f32.mrb[3].mxu0  ;;  %v592_v48 = vpop.f32.mrb[3].mxu1 }
 0x107   : > { %670 = vst [vmem:[%s1288_s24 + $0x28] sm:$0xff] %v479_v47  ;;  %672 = vst [vmem:[%s1288_s24 + $0x38] sm:$0xff] %v592_v48 }
 0x10b   : > { %v483_v49 = vpop.f32.mrb[4].mxu0  ;;  %v596_v50 = vpop.f32.mrb[4].mxu1 }
 0x10c   : > { %673 = vst [vmem:[%s1288_s24 + $0x40] sm:$0xff] %v483_v49  ;;  %675 = vst [vmem:[%s1288_s24 + $0x50] sm:$0xff] %v596_v50  ;;  %v485_v51 = vpop.f32.mrb[5].mxu0  ;;  %v598_v52 = vpop.f32.mrb[5].mxu1 }
 0x10d   : > { %674 = vst [vmem:[%s1288_s24 + $0x48] sm:$0xff] %v485_v51  ;;  %676 = vst [vmem:[%s1288_s24 + $0x58] sm:$0xff] %v598_v52  ;;  %v487_v53 = vpop.f32.mrb[6].mxu0  ;;  %v600_v54 = vpop.f32.mrb[6].mxu1 }
 0x10e   : > { %677 = vst [vmem:[%s1288_s24 + $0x60] sm:$0xff] %v487_v53  ;;  %679 = vst [vmem:[%s1288_s24 + $0x70] sm:$0xff] %v600_v54  ;;  %v489_v55 = vpop.f32.mrb[7].mxu0  ;;  %v602_v56 = vpop.f32.mrb[7].mxu1 }
 0x10f   : > { %678 = vst [vmem:[%s1288_s24 + $0x68] sm:$0xff] %v489_v55  ;;  %680 = vst [vmem:[%s1288_s24 + $0x78] sm:$0xff] %v602_v56 }
 0x113   : > { %v493_v57 = vpop.f32.mrb[8].mxu0  ;;  %v606_v58 = vpop.f32.mrb[8].mxu1 }
 0x114   : > { %681 = vst [vmem:[%s1288_s24 + $0x80] sm:$0xff] %v493_v57  ;;  %683 = vst [vmem:[%s1288_s24 + $0x90] sm:$0xff] %v606_v58  ;;  %v495_v59 = vpop.f32.mrb[9].mxu0  ;;  %v608_v60 = vpop.f32.mrb[9].mxu1 }
 0x115   : > { %682 = vst [vmem:[%s1288_s24 + $0x88] sm:$0xff] %v495_v59  ;;  %684 = vst [vmem:[%s1288_s24 + $0x98] sm:$0xff] %v608_v60  ;;  %v497_v61 = vpop.f32.mrb[10].mxu0  ;;  %v610_v62 = vpop.f32.mrb[10].mxu1 }
 0x116   : > { %685 = vst [vmem:[%s1288_s24 + $0xa0] sm:$0xff] %v497_v61  ;;  %687 = vst [vmem:[%s1288_s24 + $0xb0] sm:$0xff] %v610_v62  ;;  %v499_v63 = vpop.f32.mrb[11].mxu0  ;;  %v612_v0 = vpop.f32.mrb[11].mxu1 }
 0x117   : > { %686 = vst [vmem:[%s1288_s24 + $0xa8] sm:$0xff] %v499_v63  ;;  %688 = vst [vmem:[%s1288_s24 + $0xb8] sm:$0xff] %v612_v0 }
 0x11b   : > { %v503_v1 = vpop.f32.mrb[12].mxu0  ;;  %v616_v2 = vpop.f32.mrb[12].mxu1 }
 0x11c   : > { %689 = vst [vmem:[%s1288_s24 + $0xc0] sm:$0xff] %v503_v1  ;;  %691 = vst [vmem:[%s1288_s24 + $0xd0] sm:$0xff] %v616_v2  ;;  %v505_v3 = vpop.f32.mrb[13].mxu0  ;;  %v618_v4 = vpop.f32.mrb[13].mxu1 }
 0x11d   : > { %690 = vst [vmem:[%s1288_s24 + $0xc8] sm:$0xff] %v505_v3  ;;  %692 = vst [vmem:[%s1288_s24 + $0xd8] sm:$0xff] %v618_v4  ;;  %v507_v5 = vpop.f32.mrb[14].mxu0  ;;  %v620_v6 = vpop.f32.mrb[14].mxu1 }
 0x11e   : > { %693 = vst [vmem:[%s1288_s24 + $0xe0] sm:$0xff] %v507_v5  ;;  %695 = vst [vmem:[%s1288_s24 + $0xf0] sm:$0xff] %v620_v6  ;;  %v509_v7 = vpop.f32.mrb[15].mxu0  ;;  %v622_v8 = vpop.f32.mrb[15].mxu1 }
 0x11f   : > { %694 = vst [vmem:[%s1288_s24 + $0xe8] sm:$0xff] %v509_v7  ;;  %696 = vst [vmem:[%s1288_s24 + $0xf8] sm:$0xff] %v622_v8 }
 0x123   : > { %v513_v9 = vpop.f32.mrb[16].mxu0  ;;  %v626_v10 = vpop.f32.mrb[16].mxu1 }
 0x124   : > { %697 = vst [vmem:[%s1288_s24 + $0x100] sm:$0xff] %v513_v9  ;;  %699 = vst [vmem:[%s1288_s24 + $0x110] sm:$0xff] %v626_v10  ;;  %v515_v11 = vpop.f32.mrb[17].mxu0  ;;  %v628_v12 = vpop.f32.mrb[17].mxu1 }
 0x125   : > { %698 = vst [vmem:[%s1288_s24 + $0x108] sm:$0xff] %v515_v11  ;;  %700 = vst [vmem:[%s1288_s24 + $0x118] sm:$0xff] %v628_v12  ;;  %v517_v13 = vpop.f32.mrb[18].mxu0  ;;  %v630_v14 = vpop.f32.mrb[18].mxu1 }
 0x126   : > { %701 = vst [vmem:[%s1288_s24 + $0x120] sm:$0xff] %v517_v13  ;;  %703 = vst [vmem:[%s1288_s24 + $0x130] sm:$0xff] %v630_v14  ;;  %v519_v15 = vpop.f32.mrb[19].mxu0  ;;  %v632_v16 = vpop.f32.mrb[19].mxu1 }
 0x127   : > { %702 = vst [vmem:[%s1288_s24 + $0x128] sm:$0xff] %v519_v15  ;;  %704 = vst [vmem:[%s1288_s24 + $0x138] sm:$0xff] %v632_v16 }
 0x12b   : > { %v523_v17 = vpop.f32.mrb[20].mxu0  ;;  %v636_v18 = vpop.f32.mrb[20].mxu1 }
 0x12c   : > { %705 = vst [vmem:[%s1288_s24 + $0x140] sm:$0xff] %v523_v17  ;;  %707 = vst [vmem:[%s1288_s24 + $0x150] sm:$0xff] %v636_v18  ;;  %v525_v19 = vpop.f32.mrb[21].mxu0  ;;  %v638_v20 = vpop.f32.mrb[21].mxu1 }
 0x12d   : > { %706 = vst [vmem:[%s1288_s24 + $0x148] sm:$0xff] %v525_v19  ;;  %708 = vst [vmem:[%s1288_s24 + $0x158] sm:$0xff] %v638_v20  ;;  %v527_v21 = vpop.f32.mrb[22].mxu0  ;;  %v640_v22 = vpop.f32.mrb[22].mxu1 }
 0x12e   : > { %709 = vst [vmem:[%s1288_s24 + $0x160] sm:$0xff] %v527_v21  ;;  %711 = vst [vmem:[%s1288_s24 + $0x170] sm:$0xff] %v640_v22  ;;  %v529_v23 = vpop.f32.mrb[23].mxu0  ;;  %v642_v24 = vpop.f32.mrb[23].mxu1 }
 0x12f   : > { %710 = vst [vmem:[%s1288_s24 + $0x168] sm:$0xff] %v529_v23  ;;  %712 = vst [vmem:[%s1288_s24 + $0x178] sm:$0xff] %v642_v24 }
 0x133   : > { %v533_v25 = vpop.f32.mrb[24].mxu0  ;;  %v646_v26 = vpop.f32.mrb[24].mxu1 }
 0x134   : > { %713 = vst [vmem:[%s1288_s24 + $0x180] sm:$0xff] %v533_v25  ;;  %715 = vst [vmem:[%s1288_s24 + $0x190] sm:$0xff] %v646_v26  ;;  %v535_v27 = vpop.f32.mrb[25].mxu0  ;;  %v648_v28 = vpop.f32.mrb[25].mxu1 }
 0x135   : > { %714 = vst [vmem:[%s1288_s24 + $0x188] sm:$0xff] %v535_v27  ;;  %716 = vst [vmem:[%s1288_s24 + $0x198] sm:$0xff] %v648_v28  ;;  %v537_v29 = vpop.f32.mrb[26].mxu0  ;;  %v650_v30 = vpop.f32.mrb[26].mxu1 }
 0x136   : > { %717 = vst [vmem:[%s1288_s24 + $0x1a0] sm:$0xff] %v537_v29  ;;  %719 = vst [vmem:[%s1288_s24 + $0x1b0] sm:$0xff] %v650_v30  ;;  %v539_v31 = vpop.f32.mrb[27].mxu0  ;;  %v652_v32 = vpop.f32.mrb[27].mxu1 }
 0x137   : > { %718 = vst [vmem:[%s1288_s24 + $0x1a8] sm:$0xff] %v539_v31  ;;  %720 = vst [vmem:[%s1288_s24 + $0x1b8] sm:$0xff] %v652_v32 }
 0x13b   : > { %v543_v33 = vpop.f32.mrb[28].mxu0  ;;  %v656_v34 = vpop.f32.mrb[28].mxu1 }
 0x13c   : > { %721 = vst [vmem:[%s1288_s24 + $0x1c0] sm:$0xff] %v543_v33  ;;  %723 = vst [vmem:[%s1288_s24 + $0x1d0] sm:$0xff] %v656_v34  ;;  %v545_v35 = vpop.f32.mrb[29].mxu0  ;;  %v658_v36 = vpop.f32.mrb[29].mxu1 }
 0x13d   : > { %722 = vst [vmem:[%s1288_s24 + $0x1c8] sm:$0xff] %v545_v35  ;;  %724 = vst [vmem:[%s1288_s24 + $0x1d8] sm:$0xff] %v658_v36  ;;  %v547_v37 = vpop.f32.mrb[30].mxu0  ;;  %v660_v38 = vpop.f32.mrb[30].mxu1 }
 0x13e   : > { %725 = vst [vmem:[%s1288_s24 + $0x1e0] sm:$0xff] %v547_v37  ;;  %727 = vst [vmem:[%s1288_s24 + $0x1f0] sm:$0xff] %v660_v38  ;;  %v549_v39 = vpop.f32.mrb[31].mxu0  ;;  %v662_v40 = vpop.f32.mrb[31].mxu1 }
 0x13f   : > { %726 = vst [vmem:[%s1288_s24 + $0x1e8] sm:$0xff] %v549_v39  ;;  %728 = vst [vmem:[%s1288_s24 + $0x1f8] sm:$0xff] %v662_v40 }
 0x140   : > { %1018 = shalt.err (!%p1015_p5)
}
 0x141   : > { %s1019_s5 = scalar_lea.hbm %s1353_s28, 8192  ;;  %s1023_s8 = scalar_lea.hbm %s1413_s2, 16384 }
 0x142   : > { %p1020_p6 = scmp.ne.s32.totalorder %s1353_s28, %s1019_s5  ;;  %p1024_p10 = scmp.lt.u32.totalorder %s1353_s28, %s1413_s2 }
 0x143   : > { %p1025_p11 = scmp.lt.u32.totalorder %s1023_s8, %s1019_s5  ;;  %p1027_p13 = scmp.lt.u32.totalorder %s1019_s5, %s1353_s28 }
 0x144   : > { %p1021_p7 = pnand %p1020_p6, %p1144_p4 }
 0x145   : > { %p1026_p12 = por %p1025_p11, %p1024_p10 }
 0x146   : > { %p1022_p9 = pneg %p1021_p7 }
 0x147   : > { %p1028_p0 = por %p1027_p13, %p1026_p12 }
 0x149   : > { %p1029_p1 = pnand %p1028_p0, %p1022_p9 }
 0x14b   : > { %1032 = shalt.err (!%p1029_p1)
}
 0x14c   : > { %s1087_s18 = smov 512   ;;  %s1088_s20 = smov 32  }
 0x14d   : > { %891 = dma.vmem_to_hbm [thread:$0]  (%p1144_p4), %s1355_s23, 8192, %s1353_s28, %s1365_s12, %s1087_s18, %s1087_s18, %s1088_s20  }
 0x14e PF: > { %p897_p2 = scmp.ge.s32.totalorder %s1083_s14, 2  ;;  %s761_s24 = sand.u32 1, %s1063_s9  }
 0x14f   : > { %s762_s25 = scalar_lea.sflag [#allocation3], %s761_s24 }
 0x150   : > { %p894_p3 = pnand %p897_p2, %p1151_p8 }
 0x152   : > { %1058 = dma.done.wait (!%p894_p3), %s762_s25, 8192  }
 0x153   : > { %1060 = vsyncadd (!%p894_p3), %s762_s25, 4294959104  ;;  %s15_s14 = sadd.s32 1, %s1083_s14   ;;  %s1416_s9 = smov %s1067_s10 }
 0x154   : > { %p12_p5 = scmp.ge.s32.totalorder %s15_s14, 4   ;;  %s1417_s10 = smov %s1071_s11 }
 0x155   : > { %s1418_s11 = smov %s1157_s22  ;;  %s1419_s12 = smov %s1079_s13 }
 0x156   : > { %s1420_s13 = smov %s1422_s17  ;;  %14 = sbr.rel (!%p12_p5) target bundleno = 4 (0x4), region = 66 }
 0x15d   :  { %767 = vsyncpa [#allocation3], 1 }
 0x15e   :  { %769 = vsyncpa [#allocation3 + $0x1], 1 }

// kernel: gpt_forward_pallas.2
= control target key start
LH: loop header
LB: loop body
LE: loop exit
PB: predicated region body
PF: predicated region fallthrough
CT: control target
= control target key end

     0   :  { %s7551_s21 = smov 0   ;;  %s7553_s22 = smov 0   ;;  %s10677_s0 = inlined_call_operand.vmem [shape: f32[2,128,128], index: 0, kind: input, shape index: {}]   ;;  %s10678_s1 = inlined_call_operand.vmem [shape: f32[128,128], index: 1, kind: input, shape index: {}]   ;;  %s10679_s2 = inlined_call_operand.vmem [shape: f32[1,128], index: 2, kind: input, shape index: {}]   ;;  %s10680_s3 = inlined_call_operand.vmem [shape: f32[1,128], index: 3, kind: input, shape index: {}]   ;;  %s10681_s4 = inlined_call_operand.vmem [shape: f32[2,1,128], index: 4, kind: input, shape index: {}]   ;;  %s10682_s5 = inlined_call_operand.vmem [shape: f32[2,1,128], index: 5, kind: input, shape index: {}]   ;;  %s10683_s6 = inlined_call_operand.vmem [shape: bf16[2,128,384], index: 6, kind: input, shape index: {}]   ;;  %s10684_s7 = inlined_call_operand.vmem [shape: f32[2,1,384], index: 7, kind: input, shape index: {}]   ;;  %s10685_s8 = inlined_call_operand.vmem [shape: bf16[2,128,128], index: 8, kind: input, shape index: {}]   ;;  %s10686_s9 = inlined_call_operand.vmem [shape: f32[2,1,128], index: 9, kind: input, shape index: {}]   ;;  %s10687_s10 = inlined_call_operand.vmem [shape: f32[2,1,128], index: 10, kind: input, shape index: {}]   ;;  %s10688_s11 = inlined_call_operand.vmem [shape: f32[2,1,128], index: 11, kind: input, shape index: {}]   ;;  %s10689_s12 = inlined_call_operand.vmem [shape: bf16[2,128,512], index: 12, kind: input, shape index: {}]   ;;  %s10690_s13 = inlined_call_operand.vmem [shape: f32[2,1,512], index: 13, kind: input, shape index: {}]   ;;  %s10691_s14 = inlined_call_operand.vmem [shape: bf16[2,512,128], index: 14, kind: input, shape index: {}]   ;;  %s10692_s15 = inlined_call_operand.vmem [shape: f32[2,1,128], index: 15, kind: input, shape index: {}]   ;;  %s10693_s16 = inlined_call_operand.vmem [shape: bf16[2,128,128], index: 16, kind: output, shape index: {}]  }
   0x1   :  { %10790 = sst [smem:[#allocation61_spill]] %s10677_s0  ;;  %s7555_s23 = smov 0  }
   0x2   :  { %10791 = sst [smem:[#allocation62_spill]] %s10678_s1  ;;  %s7557_s24 = smov 0  }
   0x3   :  { %10792 = sst [smem:[#allocation63_spill]] %s10679_s2  ;;  %s7559_s25 = smov 0  }
   0x4   :  { %10793 = sst [smem:[#allocation64_spill]] %s10680_s3 }
   0x5   :  { %10794 = sst [smem:[#allocation65_spill]] %s10682_s5 }
   0x6   :  { %10795 = sst [smem:[#allocation66_spill]] %s10683_s6 }
   0x7   :  { %10796 = sst [smem:[#allocation67_spill]] %s10684_s7 }
   0x8   :  { %10797 = sst [smem:[#allocation68_spill]] %s10685_s8 }
   0x9   :  { %10798 = sst [smem:[#allocation69_spill]] %s10693_s16 }
   0xa LB: > { %10799 = sst [smem:[#allocation3_spill]] %s7444_s21  ;;  %s35_s26 = sadd.s32 1, %s7452_s23  ;;  %s7460_s25 = sphi %s7559_s25, %s26_s25   ;;  %s7456_s24 = sphi %s7557_s24, %s11054_s24   ;;  %s7452_s23 = sphi %s7555_s23, %s11053_s23   ;;  %s7448_s22 = sphi %s7553_s22, %s11052_s22   ;;  %s7444_s21 = sphi %s7551_s21, %s11051_s21  }
   0xb   : > { %10800 = sst [smem:[#allocation4_spill]] %s7452_s23  ;;  %s38_s27 = sadd.s32 1, %s7456_s24 }
   0xc   : > { %10801 = sst [smem:[#allocation5_spill]] %s7456_s24  ;;  %p36_p0 = scmp.ge.s32.totalorder %s35_s26, 2 }
   0xd   : > { %10802 = sst [smem:[#allocation6_spill]] %s7460_s25  ;;  %p5851_p1 = scmp.ge.s32.totalorder %s7460_s25, 1 }
   0xe   : > { %p580_p2 = scmp.lt.s32.totalorder %s7460_s25, 5  ;;  %s11056_s26 = smov (%p36_p0, %s35_s26), 0 }
   0xf   : > { %10803 = sst [smem:[#allocation7_spill]] %s11056_s26  ;;  %s11058_s27 = smov (!%p36_p0, %s38_s27), %s7456_s24 }
  0x10   : > { %p581_p3 = pnand %p5851_p1, %p580_p2  ;;  %p40_p4 = scmp.ge.s32.totalorder %s11058_s27, 2 }
  0x12   : > { %s11060_s27 = smov (%p40_p4, %s11058_s27), 0  ;;  %584 = sbr.rel (%p581_p3) target bundleno = 4290 (0x10c2), region = 84 }
  0x13   : > { %10804 = sst [smem:[#allocation8_spill]] %s11060_s27 }
  0x19   : > { %p676_p5 = scmp.lt.s32.totalorder %s7448_s22, 1  ;;  %p681_p6 = scmp.lt.s32.totalorder %s7444_s21, 1 }
  0x1a   : > { %s10805_s18 = sld [smem:[#allocation61_spill]]  ;;  %s10807_s6 = sld [smem:[#allocation66_spill]] }
  0x1b   : > { %s11062_s22 = smov (!%p676_p5, %s7448_s22), 1  ;;  %s10808_s8 = sld [smem:[#allocation68_spill]] }
  0x1c   : > { %s7585_s28 = scalar_select %p681_p6, %s7444_s21, 1 }
  0x1d   : > { %s6020_s29 = sshll.u32 %s11062_s22, 7  ;;  %s6024_s30 = sshll.u32 %s11062_s22, 6 }
  0x1e   : > { %s6744_s3 = smul.u32 192, %s7585_s28  ;;  %s6021_s1 = sshll.u32 %s7585_s28, 6 }
  0x1f   : > { %s6745_s2 = smul.u32 3, %s7585_s28  ;;  %s10809_s7 = sld [smem:[#allocation67_spill]] }
  0x20   : > { %s7590_s19 = scalar_lea.vmem %s10805_s18, %s6020_s29  ;;  %s7606_s22 = scalar_lea.vmem %s10807_s6, %s6744_s3 }
  0x21   : > { %s7611_s17 = scalar_lea.vmem %s10808_s8, %s6021_s1  ;;  %s6022_s0 = sshll.u32 %s7585_s28, 8 }
  0x22   : > { %s5859_s1 = sshll.u32 %s7585_s28, 2  ;;  %s7635_s27 = scalar_lea.vmem %s10689_s12, %s6022_s0 }
  0x23   : > { %s7640_s23 = scalar_lea.vmem %s10690_s13, %s5859_s1  ;;  %s7645_s5 = scalar_lea.vmem %s10691_s14, %s6022_s0 }
  0x24   : > { %s726_s21 = scalar_lea.vmem %s10692_s15, %s7585_s28  ;;  %s10811_s29 = sld [smem:[#allocation3_spill]] }
  0x25   : > { %s7616_s20 = scalar_lea.vmem %s10809_s7, %s6745_s2  ;;  %s10810_s7 = sld [smem:[#allocation69_spill]] }
  0x2a   : > { %p5864_p7 = scmp.ne.s32.totalorder %s10811_s29, 0 }
  0x2b   : > { %s7654_s8 = scalar_lea.vmem %s10810_s7, %s6024_s30  ;;  %v737_v0 = vld [vmem:[%s7590_s19] sm:$0xff] (!%p5864_p7)  ;;  %v738_v1 = vld [vmem:[%s7590_s19 + $0x8] sm:$0xff] (!%p5864_p7)  ;;  %v739_v2 = vld [vmem:[%s7590_s19 + $0x10] sm:$0xff] (!%p5864_p7) }
  0x2c   : > { %736 = sbr.rel (%p5864_p7) target bundleno = 52 (0x34), region = 88  ;;  %753 = vst [vmem:[#allocation2] sm:$0xff] (!%p5864_p7), %v737_v0  ;;  %754 = vst [vmem:[#allocation2 + $0x8] sm:$0xff] (!%p5864_p7), %v738_v1  ;;  %v740_v3 = vld [vmem:[%s7590_s19 + $0x18] sm:$0xff] (!%p5864_p7)  ;;  %v741_v4 = vld [vmem:[%s7590_s19 + $0x20] sm:$0xff] (!%p5864_p7) }
  0x2d   : > { %755 = vst [vmem:[#allocation2 + $0x10] sm:$0xff] (!%p5864_p7), %v739_v2  ;;  %v742_v5 = vld [vmem:[%s7590_s19 + $0x28] sm:$0xff] (!%p5864_p7)  ;;  %756 = vst [vmem:[#allocation2 + $0x18] sm:$0xff] (!%p5864_p7), %v740_v3  ;;  %v743_v6 = vld [vmem:[%s7590_s19 + $0x30] sm:$0xff] (!%p5864_p7) }
  0x2e   : > { %757 = vst [vmem:[#allocation2 + $0x20] sm:$0xff] (!%p5864_p7), %v741_v4  ;;  %758 = vst [vmem:[#allocation2 + $0x28] sm:$0xff] (!%p5864_p7), %v742_v5  ;;  %v744_v7 = vld [vmem:[%s7590_s19 + $0x38] sm:$0xff] (!%p5864_p7)  ;;  %v745_v8 = vld [vmem:[%s7590_s19 + $0x40] sm:$0xff] (!%p5864_p7) }
  0x2f   : > { %759 = vst [vmem:[#allocation2 + $0x30] sm:$0xff] (!%p5864_p7), %v743_v6  ;;  %760 = vst [vmem:[#allocation2 + $0x38] sm:$0xff] (!%p5864_p7), %v744_v7  ;;  %v746_v9 = vld [vmem:[%s7590_s19 + $0x48] sm:$0xff] (!%p5864_p7)  ;;  %v747_v10 = vld [vmem:[%s7590_s19 + $0x50] sm:$0xff] (!%p5864_p7) }
  0x30   : > { %761 = vst [vmem:[#allocation2 + $0x40] sm:$0xff] (!%p5864_p7), %v745_v8  ;;  %v748_v11 = vld [vmem:[%s7590_s19 + $0x58] sm:$0xff] (!%p5864_p7)  ;;  %762 = vst [vmem:[#allocation2 + $0x48] sm:$0xff] (!%p5864_p7), %v746_v9  ;;  %v749_v12 = vld [vmem:[%s7590_s19 + $0x60] sm:$0xff] (!%p5864_p7) }
  0x31   : > { %763 = vst [vmem:[#allocation2 + $0x50] sm:$0xff] (!%p5864_p7), %v747_v10  ;;  %764 = vst [vmem:[#allocation2 + $0x58] sm:$0xff] (!%p5864_p7), %v748_v11  ;;  %v750_v13 = vld [vmem:[%s7590_s19 + $0x68] sm:$0xff] (!%p5864_p7)  ;;  %v751_v14 = vld [vmem:[%s7590_s19 + $0x70] sm:$0xff] (!%p5864_p7) }
  0x32   : > { %765 = vst [vmem:[#allocation2 + $0x60] sm:$0xff] (!%p5864_p7), %v749_v12  ;;  %766 = vst [vmem:[#allocation2 + $0x68] sm:$0xff] (!%p5864_p7), %v750_v13  ;;  %v752_v15 = vld [vmem:[%s7590_s19 + $0x78] sm:$0xff] (!%p5864_p7) }
  0x33   : > { %767 = vst [vmem:[#allocation2 + $0x70] sm:$0xff] %v751_v14  ;;  %768 = vst [vmem:[#allocation2 + $0x78] sm:$0xff] %v752_v15 }
  0x34 PF: > { %v769_v16 = vld [vmem:[#allocation2] sm:$0xff]  ;;  %v770_v18 = vld [vmem:[#allocation2 + $0x8] sm:$0xff]  ;;  %s10812_s25 = scalar_lea.vmem %s10681_s4, %s7585_s28  ;;  %vm1443_vm0 = vcmask 261120   ;;  %s10824_s2 = sld [smem:[#allocation62_spill]]  ;;  %vm3340_vm1 = vcmask 523264   ;;  %vm3357_vm2 = vcmask 785408  }
  0x35   : > { %v771_v17 = vld [vmem:[#allocation2 + $0x10] sm:$0xff]  ;;  %787 = vadd.xlane.f32.xlu0 %v769_v16  ;;  %v772_v19 = vld [vmem:[#allocation2 + $0x18] sm:$0xff]  ;;  %v6792_v33 = vld [vmem:[%s7606_s22] ss:$12 sps:$4 sm:$0xff]   ;;  %s7464_s26 = smov 64   ;;  %s7465_s3 = smov 32  }
  0x36   : > { %791 = vadd.xlane.f32.xlu1 %v771_v17  ;;  %v773_v20 = vld [vmem:[#allocation2 + $0x20] sm:$0xff]  ;;  %v774_v21 = vld [vmem:[#allocation2 + $0x28] sm:$0xff]  ;;  %s10955_s0 = scalar_lea.vmem %s10687_s10, %s7585_s28  ;;  %s10956_s24 = scalar_lea.vmem %s10688_s11, %s7585_s28 }
  0x37   : > { %v7673_v22 = vld [vmem:[#allocation2 + $0x30] sm:$0xff]  ;;  %v7675_v23 = vld [vmem:[#allocation2 + $0x38] sm:$0xff] }
  0x38   : > { %v7677_v24 = vld [vmem:[#allocation2 + $0x40] sm:$0xff]  ;;  %v7679_v25 = vld [vmem:[#allocation2 + $0x48] sm:$0xff] }
  0x39   : > { %789 = vadd.xlane.f32.xlu0 %v770_v18  ;;  %v7683_v26 = vld [vmem:[#allocation2 + $0x50] sm:$0xff]  ;;  %v7685_v27 = vld [vmem:[#allocation2 + $0x58] sm:$0xff] }
  0x3a   : > { %793 = vadd.xlane.f32.xlu1 %v772_v19  ;;  %v7689_v28 = vld [vmem:[#allocation2 + $0x60] sm:$0xff]  ;;  %v7691_v29 = vld [vmem:[#allocation2 + $0x68] sm:$0xff]  ;;  %v7695_v30 = vld [vmem:[#allocation2 + $0x70] sm:$0xff] }
  0x3b   : > { %v7697_v31 = vld [vmem:[#allocation2 + $0x78] sm:$0xff]  ;;  %v6790_v32 = vld [vmem:[%s7606_s22 + $0x4] ss:$12 sps:$4 sm:$0xff]   ;;  %v6795_v35 = vld [vmem:[%s7606_s22 + $0x8] ss:$12 sps:$4 sm:$0xff]  }
  0x3c   : > { %v6793_v34 = vld [vmem:[%s7606_s22 + $0x1c] ss:$12 sps:$4 sm:$0xff]   ;;  %1193 = vmatprep.subr.bf16.mxu0 %v6790_v32  ;;  %6376 = vmatprep.subr.bf16.mxu1 %v6795_v35  ;;  %v6796_v10 = vld [vmem:[%s7606_s22 + $0x18] ss:$12 sps:$4 sm:$0xff]  }
  0x3d   : > { %795 = vadd.xlane.f32.xlu0 %v773_v20  ;;  %1194 = vmatpush1.bf16.msra.mxu0 %v6792_v33 }
  0x3e   : > { %797 = vadd.xlane.f32.xlu1 %v774_v21  ;;  %1195 = vmatprep.subr.bf16.mxu0 %v6793_v34  ;;  %v6801_v34 = vld [vmem:[%s7606_s22 + $0x4c] ss:$12 sps:$4 sm:$0xff]  }
  0x3f   : > { %6377 = vmatpush3.bf16.msra.mxu1 %v6795_v35  ;;  %v6803_v35 = vld [vmem:[%s7606_s22 + $0x38] ss:$12 sps:$4 sm:$0xff]  }
  0x41   : > { %799 = vadd.xlane.f32.xlu0 %v7673_v22  ;;  %1196 = vmatpush1.bf16.msra.mxu0 %v6796_v10 }
  0x42   : > { %801 = vadd.xlane.f32.xlu1 %v7675_v23 }
  0x45   : > { %803 = vadd.xlane.f32.xlu0 %v7677_v24 }
  0x46   : > { %805 = vadd.xlane.f32.xlu1 %v7679_v25 }
  0x49   : > { %807 = vadd.xlane.f32.xlu0 %v7683_v26 }
  0x4a   : > { %809 = vadd.xlane.f32.xlu1 %v7685_v27 }
  0x4d   : > { %811 = vadd.xlane.f32.xlu0 %v7689_v28 }
  0x4e   : > { %813 = vadd.xlane.f32.xlu1 %v7691_v29 }
  0x51   : > { %815 = vadd.xlane.f32.xlu0 %v7695_v30 }
  0x52   : > { %817 = vadd.xlane.f32.xlu1 %v7697_v31 }
  0xc2   : > { %v788_v36 = vpop.xlane.xlu0 %787 }
  0xc3   : > { %v792_v37 = vpop.xlane.xlu1 %791  ;;  %v820_v38 = vmul.f32 0.0078125, %v788_v36 }
  0xc4   : > { %v822_v39 = vmul.f32 0.0078125, %v792_v37 }
  0xc5   : > { %v7707_v40 = vsub.f32 %v769_v16, %v820_v38  ;;  %v6797_v16 = vld [vmem:[%s7606_s22 + $0x34] ss:$12 sps:$4 sm:$0xff]  }
  0xc6   : > { %v7709_v41 = vsub.f32 %v771_v17, %v822_v39  ;;  %v790_v42 = vpop.xlane.xlu0 %789  ;;  %v6799_v17 = vld [vmem:[%s7606_s22 + $0x20] ss:$12 sps:$4 sm:$0xff]   ;;  %1197 = vmatprep.subr.bf16.mxu0 %v6797_v16  ;;  %v6804_v38 = vld [vmem:[%s7606_s22 + $0x48] ss:$12 sps:$4 sm:$0xff]  }
  0xc7   : > { %v794_v43 = vpop.xlane.xlu1 %793  ;;  %v821_v44 = vmul.f32 0.0078125, %v790_v42  ;;  %v852_v45 = vmul.f32 %v7707_v40, %v7707_v40  ;;  %6378 = vmatprep.subr.bf16.mxu1 %v6799_v17 }
  0xc8   : > { %v823_v46 = vmul.f32 0.0078125, %v794_v43  ;;  %v854_v47 = vmul.f32 %v7709_v41, %v7709_v41  ;;  %6379 = vmatpush3.bf16.msra.mxu1 %v6799_v17 }
  0xc9   : > { %868 = vadd.xlane.f32.xlu0 %v852_v45  ;;  %v7715_v48 = vsub.f32 %v770_v18, %v821_v44  ;;  %6380 = vmatprep.subr.bf16.mxu1 %v6803_v35  ;;  %v6805_v45 = vld [vmem:[%s7606_s22 + $0x64] ss:$12 sps:$4 sm:$0xff]  }
  0xca   : > { %v7717_v49 = vsub.f32 %v772_v19, %v823_v46  ;;  %v796_v50 = vpop.xlane.xlu0 %795  ;;  %v6807_v46 = vld [vmem:[%s7606_s22 + $0x50] ss:$12 sps:$4 sm:$0xff]  }
  0xcb   : > { %v798_v51 = vpop.xlane.xlu1 %797  ;;  %v824_v52 = vmul.f32 0.0078125, %v796_v50  ;;  %v853_v53 = vmul.f32 %v7715_v48, %v7715_v48 }
  0xcc   : > { %v825_v54 = vmul.f32 0.0078125, %v798_v51  ;;  %v855_v55 = vmul.f32 %v7717_v49, %v7717_v49  ;;  %6381 = vmatpush3.bf16.msra.mxu1 %v6803_v35  ;;  %v6811_v51 = vld [vmem:[%s7606_s22 + $0x68] ss:$12 sps:$4 sm:$0xff]  }
  0xcd   : > { %872 = vadd.xlane.f32.xlu0 %v854_v47  ;;  %870 = vadd.xlane.f32.xlu1 %v853_v53  ;;  %v7723_v56 = vsub.f32 %v773_v20, %v824_v52  ;;  %v6808_v47 = vld [vmem:[%s7606_s22 + $0x60] ss:$12 sps:$4 sm:$0xff]   ;;  %v6812_v52 = vld [vmem:[%s7606_s22 + $0x78] ss:$12 sps:$4 sm:$0xff]  }
  0xce   : > { %v7725_v57 = vsub.f32 %v774_v21, %v825_v54  ;;  %v800_v58 = vpop.xlane.xlu0 %799  ;;  %6382 = vmatprep.subr.bf16.mxu1 %v6807_v46  ;;  %v6813_v53 = vld [vmem:[%s7606_s22 + $0x94] ss:$12 sps:$4 sm:$0xff]  }
  0xcf   : > { %v802_v59 = vpop.xlane.xlu1 %801  ;;  %v826_v60 = vmul.f32 0.0078125, %v800_v58  ;;  %v856_v61 = vmul.f32 %v7723_v56, %v7723_v56  ;;  %v6815_v54 = vld [vmem:[%s7606_s22 + $0x80] ss:$12 sps:$4 sm:$0xff]  }
  0xd0   : > { %v827_v62 = vmul.f32 0.0078125, %v802_v59  ;;  %v857_v63 = vmul.f32 %v7725_v57, %v7725_v57  ;;  %6383 = vmatpush3.bf16.msra.mxu1 %v6807_v46  ;;  %v6817_v58 = vld [vmem:[%s7606_s22 + $0xac] ss:$12 sps:$4 sm:$0xff]  }
  0xd1   : > { %874 = vadd.xlane.f32.xlu1 %v855_v55  ;;  %876 = vadd.xlane.f32.xlu0 %v856_v61  ;;  %v7732_v0 = vsub.f32 %v7673_v22, %v826_v60  ;;  %v6816_v55 = vld [vmem:[%s7606_s22 + $0x90] ss:$12 sps:$4 sm:$0xff]   ;;  %v6819_v59 = vld [vmem:[%s7606_s22 + $0x98] ss:$12 sps:$4 sm:$0xff]   ;;  %v6820_v60 = vld [vmem:[%s7606_s22 + $0xa8] ss:$12 sps:$4 sm:$0xff]  }
  0xd2   : > { %v7735_v1 = vsub.f32 %v7675_v23, %v827_v62  ;;  %v804_v2 = vpop.xlane.xlu0 %803  ;;  %v6800_v23 = vld [vmem:[%s7606_s22 + $0x30] ss:$12 sps:$4 sm:$0xff]   ;;  %6384 = vmatprep.subr.bf16.mxu1 %v6811_v51  ;;  %v10702_v62 = vmov 0  }
  0xd3   : > { %v806_v3 = vpop.xlane.xlu1 %805  ;;  %v828_v4 = vmul.f32 0.0078125, %v804_v2  ;;  %v858_v5 = vmul.f32 %v7732_v0, %v7732_v0  ;;  %1198 = vmatpush1.bf16.msra.mxu0 %v6800_v23  ;;  %v6821_v61 = vld [vmem:[%s7606_s22 + $0xb0] ss:$12 sps:$4 sm:$0xff]   ;;  %1225 = vmatprep.mubr.bf16.mxu0 %v10702_v62 }
  0xd4   : > { %v829_v6 = vmul.f32 0.0078125, %v806_v3  ;;  %v859_v7 = vmul.f32 %v7735_v1, %v7735_v1  ;;  %1199 = vmatprep.subr.bf16.mxu0 %v6801_v34  ;;  %6385 = vmatpush3.bf16.msra.mxu1 %v6811_v51 }
  0xd5   : > { %878 = vadd.xlane.f32.xlu1 %v857_v63  ;;  %880 = vadd.xlane.f32.xlu0 %v858_v5  ;;  %v7742_v8 = vsub.f32 %v7677_v24, %v828_v4 }
  0xd6   : > { %v7745_v9 = vsub.f32 %v7679_v25, %v829_v6  ;;  %v808_v11 = vpop.xlane.xlu0 %807  ;;  %6386 = vmatprep.subr.bf16.mxu1 %v6815_v54 }
  0xd7   : > { %v810_v12 = vpop.xlane.xlu1 %809  ;;  %v830_v13 = vmul.f32 0.0078125, %v808_v11  ;;  %v860_v14 = vmul.f32 %v7742_v8, %v7742_v8  ;;  %1200 = vmatpush1.bf16.msra.mxu0 %v6804_v38  ;;  %v7808_v38 = vld [vmem:[%s10812_s25] ss:$0 sm:$0xff] }
  0xd8   : > { %v831_v15 = vmul.f32 0.0078125, %v810_v12  ;;  %v861_v18 = vmul.f32 %v7745_v9, %v7745_v9  ;;  %1201 = vmatprep.subr.bf16.mxu0 %v6805_v45  ;;  %6387 = vmatpush3.bf16.msra.mxu1 %v6815_v54 }
  0xd9   : > { %882 = vadd.xlane.f32.xlu1 %v859_v7  ;;  %884 = vadd.xlane.f32.xlu0 %v860_v14  ;;  %v7755_v19 = vsub.f32 %v7683_v26, %v830_v13 }
  0xda   : > { %v7758_v20 = vsub.f32 %v7685_v27, %v831_v15  ;;  %v812_v21 = vpop.xlane.xlu0 %811  ;;  %6388 = vmatprep.subr.bf16.mxu1 %v6819_v59 }
  0xdb   : > { %v814_v22 = vpop.xlane.xlu1 %813  ;;  %v832_v24 = vmul.f32 0.0078125, %v812_v21  ;;  %v862_v25 = vmul.f32 %v7755_v19, %v7755_v19  ;;  %1202 = vmatpush1.bf16.msra.mxu0 %v6808_v47 }
  0xdc   : > { %v833_v32 = vmul.f32 0.0078125, %v814_v22  ;;  %v863_v26 = vmul.f32 %v7758_v20, %v7758_v20  ;;  %6389 = vmatpush3.bf16.msra.mxu1 %v6819_v59 }
  0xdd   : > { %886 = vadd.xlane.f32.xlu1 %v861_v18  ;;  %888 = vadd.xlane.f32.xlu0 %v862_v25  ;;  %v7766_v27 = vsub.f32 %v7689_v28, %v832_v24 }
  0xde   : > { %v7769_v33 = vsub.f32 %v7691_v29, %v833_v32  ;;  %v816_v36 = vpop.xlane.xlu0 %815  ;;  %6390 = vmatprep.subr.bf16.mxu1 %v6821_v61 }
  0xdf   : > { %v818_v37 = vpop.xlane.xlu1 %817  ;;  %v834_v39 = vmul.f32 0.0078125, %v816_v36  ;;  %v864_v42 = vmul.f32 %v7766_v27, %v7766_v27 }
  0xe0   : > { %v835_v43 = vmul.f32 0.0078125, %v818_v37  ;;  %v865_v28 = vmul.f32 %v7769_v33, %v7769_v33  ;;  %6391 = vmatpush3.bf16.msra.mxu1 %v6821_v61 }
  0xe1   : > { %890 = vadd.xlane.f32.xlu1 %v863_v26  ;;  %892 = vadd.xlane.f32.xlu0 %v864_v42  ;;  %v7779_v29 = vsub.f32 %v7695_v30, %v834_v39 }
  0xe2   : > { %v7782_v44 = vsub.f32 %v7697_v31, %v835_v43  ;;  %v6809_v31 = vld [vmem:[%s7606_s22 + $0x7c] ss:$12 sps:$4 sm:$0xff]   ;;  %s10813_s22 = sld [smem:[#allocation65_spill]] }
  0xe3   : > { %v866_v50 = vmul.f32 %v7779_v29, %v7779_v29  ;;  %1203 = vmatprep.subr.bf16.mxu0 %v6809_v31 }
  0xe4   : > { %v867_v30 = vmul.f32 %v7782_v44, %v7782_v44  ;;  %1204 = vmatpush1.bf16.msra.mxu0 %v6812_v52 }
  0xe5   : > { %894 = vadd.xlane.f32.xlu1 %v865_v28  ;;  %896 = vadd.xlane.f32.xlu0 %v866_v50 }
  0xe6   : > { %1205 = vmatprep.subr.bf16.mxu0 %v6813_v53 }
  0xe8   : > { %1206 = vmatpush1.bf16.msra.mxu0 %v6816_v55  ;;  %s10814_s16 = scalar_lea.vmem %s10813_s22, %s7585_s28 }
  0xe9   : > { %898 = vadd.xlane.f32.xlu1 %v867_v30  ;;  %1207 = vmatprep.subr.bf16.mxu0 %v6817_v58  ;;  %v7817_v31 = vld [vmem:[%s10814_s16] ss:$0 sm:$0xff] }
  0xec   : > { %1208 = vmatpush1.bf16.msra.mxu0 %v6820_v60 }
 0x156   : > { %v869_v63 = vpop.xlane.xlu0 %868 }
 0x157   : > { %v900_v2 = vmul.f32 0.0078125, %v869_v63 }
 0x159   : > { %v916_v3 = vadd.f32 1e-05, %v900_v2 }
 0x15a   : > { %v871_v4 = vpop.xlane.xlu1 %870  ;;  %v873_v5 = vpop.xlane.xlu0 %872 }
 0x15b   : > { %6910 = vrsqrt.f32 %v916_v3  ;;  %v901_v6 = vmul.f32 0.0078125, %v871_v4  ;;  %v902_v7 = vmul.f32 0.0078125, %v873_v5 }
 0x15d   : > { %v917_v10 = vadd.f32 1e-05, %v901_v6  ;;  %v918_v11 = vadd.f32 1e-05, %v902_v7 }
 0x15e   : > { %v875_v12 = vpop.xlane.xlu1 %874  ;;  %v877_v13 = vpop.xlane.xlu0 %876 }
 0x15f   : > { %6912 = vrsqrt.f32 %v917_v10  ;;  %v903_v14 = vmul.f32 0.0078125, %v875_v12  ;;  %v904_v15 = vmul.f32 0.0078125, %v877_v13 }
 0x160   : > { %6914 = vrsqrt.f32 %v918_v11 }
 0x161   : > { %v919_v16 = vadd.f32 1e-05, %v903_v14  ;;  %v920_v17 = vadd.f32 1e-05, %v904_v15 }
 0x162   : > { %v879_v18 = vpop.xlane.xlu1 %878  ;;  %v881_v21 = vpop.xlane.xlu0 %880 }
 0x163   : > { %6916 = vrsqrt.f32 %v919_v16  ;;  %v905_v22 = vmul.f32 0.0078125, %v879_v18  ;;  %v906_v23 = vmul.f32 0.0078125, %v881_v21 }
 0x164   : > { %6918 = vrsqrt.f32 %v920_v17 }
 0x165   : > { %v6911_v24 = vpop.eup %6910  ;;  %v921_v25 = vadd.f32 1e-05, %v905_v22  ;;  %v922_v32 = vadd.f32 1e-05, %v906_v23 }
 0x166   : > { %v883_v26 = vpop.xlane.xlu1 %882  ;;  %v885_v34 = vpop.xlane.xlu0 %884  ;;  %v948_v35 = vmul.f32 %v6911_v24, %v7707_v40 }
 0x167   : > { %6920 = vrsqrt.f32 %v921_v25  ;;  %v907_v36 = vmul.f32 0.0078125, %v883_v26  ;;  %v908_v37 = vmul.f32 0.0078125, %v885_v34 }
 0x168   : > { %6922 = vrsqrt.f32 %v922_v32  ;;  %v970_v40 = vmul.f32 %v7808_v38, %v948_v35 }
 0x169   : > { %v6913_v39 = vpop.eup %6912  ;;  %v923_v42 = vadd.f32 1e-05, %v907_v36  ;;  %v924_v43 = vadd.f32 1e-05, %v908_v37 }
 0x16a   : > { %v6915_v28 = vpop.eup %6914  ;;  %v887_v45 = vpop.xlane.xlu1 %886  ;;  %v949_v47 = vmul.f32 %v6913_v39, %v7715_v48  ;;  %v992_v61 = vadd.f32 %v7817_v31, %v970_v40 }
 0x16b   : > { %v889_v46 = vpop.xlane.xlu0 %888  ;;  %6924 = vrsqrt.f32 %v923_v42  ;;  %v909_v50 = vmul.f32 0.0078125, %v887_v45  ;;  %v950_v51 = vmul.f32 %v6915_v28, %v7709_v41 }
 0x16c   : > { %v910_v30 = vmul.f32 0.0078125, %v889_v46  ;;  %6926 = vrsqrt.f32 %v924_v43  ;;  %v971_v52 = vmul.f32 %v7808_v38, %v949_v47 }
 0x16d   : > { %v6917_v53 = vpop.eup %6916  ;;  %v925_v54 = vadd.f32 1e-05, %v909_v50  ;;  %v972_v48 = vmul.f32 %v7808_v38, %v950_v51 }
 0x16e   : > { %v926_v55 = vadd.f32 1e-05, %v910_v30  ;;  %v6919_v58 = vpop.eup %6918  ;;  %v891_v59 = vpop.xlane.xlu1 %890  ;;  %v993_v63 = vadd.f32 %v7817_v31, %v971_v52  ;;  %v951_v2 = vmul.f32 %v6917_v53, %v7717_v49 }
 0x16f   : > { %v893_v60 = vpop.xlane.xlu0 %892  ;;  %6928 = vrsqrt.f32 %v925_v54  ;;  %v911_v3 = vmul.f32 0.0078125, %v891_v59  ;;  %v952_v6 = vmul.f32 %v6919_v58, %v7723_v56  ;;  %v994_v12 = vadd.f32 %v7817_v31, %v972_v48 }
 0x170   : > { %v912_v41 = vmul.f32 0.0078125, %v893_v60  ;;  %6930 = vrsqrt.f32 %v926_v55  ;;  %v1008_v4 = vpack.c.bf16 %v993_v63, %v992_v61  ;;  %v973_v5 = vmul.f32 %v7808_v38, %v951_v2 }
 0x171   : > { %v6921_v7 = vpop.eup %6920  ;;  %v927_v10 = vadd.f32 1e-05, %v911_v3  ;;  %v974_v17 = vmul.f32 %v7808_v38, %v952_v6 }
 0x172   : > { %v928_v11 = vadd.f32 1e-05, %v912_v41  ;;  %v6923_v13 = vpop.eup %6922  ;;  %v895_v14 = vpop.xlane.xlu1 %894  ;;  %1226 = vmatmul.mubr.bf16.vlgmr.msra.gmra.mrb[0].mxu0 %v1008_v4  ;;  %6392 = vmatprep.mubr.bf16.mxu1 %v1008_v4  ;;  %v995_v49 = vadd.f32 %v7817_v31, %v973_v5  ;;  %v953_v16 = vmul.f32 %v6921_v7, %v7725_v57 }
 0x173   : > { %v897_v15 = vpop.xlane.xlu0 %896  ;;  %6932 = vrsqrt.f32 %v927_v10  ;;  %v913_v18 = vmul.f32 0.0078125, %v895_v14  ;;  %1235 = vmatprep.mubr.bf16.mxu0 %v10702_v62  ;;  %v954_v56 = vmul.f32 %v6923_v13, %v7732_v0  ;;  %v996_v35 = vadd.f32 %v7817_v31, %v974_v17 }
 0x174   : > { %v914_v21 = vmul.f32 0.0078125, %v897_v15  ;;  %6934 = vrsqrt.f32 %v928_v11  ;;  %v1009_v22 = vpack.c.bf16 %v995_v49, %v994_v12  ;;  %v975_v23 = vmul.f32 %v7808_v38, %v953_v16 }
 0x175   : > { %v6925_v24 = vpop.eup %6924  ;;  %v929_v25 = vadd.f32 1e-05, %v913_v18  ;;  %v976_v26 = vmul.f32 %v7808_v38, %v954_v56 }
 0x176   : > { %v930_v32 = vadd.f32 1e-05, %v914_v21  ;;  %v6927_v34 = vpop.eup %6926  ;;  %v899_v57 = vpop.xlane.xlu1 %898  ;;  %6393 = vmatmul.mubr.bf16.vlgmr.msra.gmra.mrb[0].mxu1 %v1009_v22  ;;  %v997_v36 = vadd.f32 %v7817_v31, %v975_v23  ;;  %v955_v37 = vmul.f32 %v6925_v24, %v7735_v1 }
 0x177   : > { %6936 = vrsqrt.f32 %v929_v25  ;;  %v915_v0 = vmul.f32 0.0078125, %v899_v57  ;;  %v956_v39 = vmul.f32 %v6927_v34, %v7742_v8  ;;  %v998_v46 = vadd.f32 %v7817_v31, %v976_v26 }
 0x178   : > { %6938 = vrsqrt.f32 %v930_v32  ;;  %v1010_v42 = vpack.c.bf16 %v997_v36, %v996_v35  ;;  %v977_v43 = vmul.f32 %v7808_v38, %v955_v37 }
 0x179   : > { %v6929_v28 = vpop.eup %6928  ;;  %v931_v45 = vadd.f32 1e-05, %v915_v0  ;;  %v978_v1 = vmul.f32 %v7808_v38, %v956_v39 }
 0x17a   : > { %v6931_v47 = vpop.eup %6930  ;;  %1236 = vmatmul.mubr.bf16.gmra.mrb[4].mxu0 %v1009_v22  ;;  %6396 = vmatprep.mubr.bf16.mxu1 %v1010_v42  ;;  %v999_v40 = vadd.f32 %v7817_v31, %v977_v43  ;;  %v957_v50 = vmul.f32 %v6929_v28, %v7745_v9 }
 0x17b   : > { %6940 = vrsqrt.f32 %v931_v45  ;;  %1245 = vmatprep.mubr.bf16.mxu0 %v10702_v62  ;;  %v958_v8 = vmul.f32 %v6931_v47, %v7755_v19  ;;  %v1000_v55 = vadd.f32 %v7817_v31, %v978_v1 }
 0x17c   : > { %v1011_v30 = vpack.c.bf16 %v999_v40, %v998_v46  ;;  %v979_v51 = vmul.f32 %v7808_v38, %v957_v50 }
 0x17d   : > { %v6933_v52 = vpop.eup %6932  ;;  %v980_v53 = vmul.f32 %v7808_v38, %v958_v8 }
 0x17e   : > { %v6935_v54 = vpop.eup %6934  ;;  %6397 = vmatmul.mubr.bf16.gmra.mrb[4].mxu1 %v1011_v30  ;;  %v1001_v48 = vadd.f32 %v7817_v31, %v979_v51  ;;  %v959_v9 = vmul.f32 %v6933_v52, %v7758_v20 }
 0x17f   : > { %v960_v58 = vmul.f32 %v6935_v54, %v7766_v27  ;;  %v1002_v61 = vadd.f32 %v7817_v31, %v980_v53 }
 0x180   : > { %v1012_v59 = vpack.c.bf16 %v1001_v48, %v1000_v55  ;;  %v981_v60 = vmul.f32 %v7808_v38, %v959_v9 }
 0x181   : > { %v6937_v19 = vpop.eup %6936  ;;  %v982_v41 = vmul.f32 %v7808_v38, %v960_v58 }
 0x182   : > { %v6939_v63 = vpop.eup %6938  ;;  %1246 = vmatmul.mubr.bf16.gmra.mrb[8].mxu0 %v1010_v42  ;;  %6400 = vmatprep.mubr.bf16.mxu1 %v1012_v59  ;;  %v1003_v2 = vadd.f32 %v7817_v31, %v981_v60  ;;  %v961_v3 = vmul.f32 %v6937_v19, %v7769_v33 }
 0x183   : > { %1255 = vmatprep.mubr.bf16.mxu0 %v10702_v62  ;;  %v962_v20 = vmul.f32 %v6939_v63, %v7779_v29  ;;  %v1004_v6 = vadd.f32 %v7817_v31, %v982_v41 }
 0x184   : > { %v1013_v27 = vpack.c.bf16 %v1003_v2, %v1002_v61  ;;  %v983_v4 = vmul.f32 %v7808_v38, %v961_v3 }
 0x185   : > { %v6941_v5 = vpop.eup %6940  ;;  %v984_v11 = vmul.f32 %v7808_v38, %v962_v20 }
 0x186   : > { %6401 = vmatmul.mubr.bf16.gmra.mrb[8].mxu1 %v1013_v27  ;;  %v1005_v7 = vadd.f32 %v7817_v31, %v983_v4  ;;  %v963_v10 = vmul.f32 %v6941_v5, %v7782_v44  ;;  %v1050_v44 = vlaneseq }
 0x187   : > { %v1006_v29 = vadd.f32 %v7817_v31, %v984_v11 }
 0x188   : > { %v1014_v33 = vpack.c.bf16 %v1005_v7, %v1004_v6  ;;  %v985_v12 = vmul.f32 %v7808_v38, %v963_v10  ;;  %v7871_v38 = vshrl.u32 %v1050_v44, 7 }
 0x18a   : > { %1256 = vmatmul.mubr.bf16.gmra.mrb[12].mxu0 %v1011_v30  ;;  %6404 = vmatprep.mubr.bf16.mxu1 %v1014_v33  ;;  %v1007_v13 = vadd.f32 %v7817_v31, %v985_v12  ;;  %10815 = vst [vmem:[#allocation9_spill] sm:$0xff] %v7871_v38  ;;  %v10701_v15 = vsub.s32 0, %v7871_v38  ;;  %v1048_v31 = vld [vmem:[%s7616_s20] sm:$0x7]  ;;  %v10699_v49 = vsub.s32 1, %v7871_v38  ;;  %v10700_v17 = vsub.s32 2, %v7871_v38 }
 0x18b   : > { %1265 = vmatprep.mubr.bf16.mxu0 %v10702_v62  ;;  %s7463_s20 = smov 96  }
 0x18c   : > { %v1015_v14 = vpack.c.bf16 %v1007_v13, %v1006_v29  ;;  %v7878_v16 = vrot.slane %v1048_v31, %v10701_v15  ;;  %v7883_v21 = vrot.slane %v1048_v31, %v10699_v49  ;;  %v7889_v32 = vrot.slane %v1048_v31, %v10700_v17 }
 0x18e   : > { %6405 = vmatmul.mubr.bf16.gmra.mrb[12].mxu1 %v1015_v14 }
 0x192   : > { %1266 = vmatmul.mubr.bf16.gmra.mrb[16].mxu0 %v1012_v59 }
 0x193   : > { %1275 = vmatprep.mubr.bf16.mxu0 %v10702_v62 }
 0x19a   : > { %1276 = vmatmul.mubr.bf16.gmra.mrb[20].mxu0 %v1013_v27 }
 0x19b   : > { %1285 = vmatprep.mubr.bf16.mxu0 %v10702_v62 }
 0x1a2   : > { %1286 = vmatmul.mubr.bf16.gmra.mrb[24].mxu0 %v1014_v33 }
 0x1a3   : > { %1295 = vmatprep.mubr.bf16.mxu0 %v10702_v62 }
 0x1aa   : > { %1296 = vmatmul.mubr.bf16.gmra.mrb[28].mxu0 %v1015_v14 }
 0x245   : > { %v1227_v18 = vpop.f32.mrb[0].mxu0 }
 0x246   : > { %v1229_v56 = vpop.f32.mrb[1].mxu0  ;;  %v1228_v23 = vadd.f32 %v1227_v18, %v7878_v16 }
 0x247   : > { %v1231_v22 = vpop.f32.mrb[2].mxu0  ;;  %v1230_v26 = vadd.f32 %v1229_v56, %v7883_v21 }
 0x248   : > { %v1232_v24 = vadd.f32 %v1231_v22, %v7878_v16  ;;  %v1233_v25 = vpop.f32.mrb[3].mxu0 }
 0x249   : > { %v1234_v34 = vadd.f32 %v1233_v25, %v7883_v21  ;;  %v6394_v57 = vpop.f32.mrb[0].mxu1 }
 0x24a   : > { %v7893_v35 = vpack.c.bf16 %v1232_v24, %v1228_v23  ;;  %v1340_v36 = vpop.f32.mrb[1].mxu1  ;;  %v1349_v39 = vadd.f32 %v6394_v57, %v7889_v32 }
 0x24b   : > { %v7895_v37 = vpack.c.bf16 %v1234_v34, %v1230_v26  ;;  %v6395_v0 = vpop.f32.mrb[2].mxu1  ;;  %v1341_v28 = vadd.f32 %v1340_v36, %v7889_v32 }
 0x24c   : > { %v1352_v42 = vadd.f32 %v6395_v0, %v7889_v32  ;;  %v1343_v43 = vpop.f32.mrb[3].mxu1  ;;  %6424 = vmatprep.mubr.msk.bf16.mxu0 %vm1443_vm0, %v7893_v35 }
 0x24d   : > { %10816 = vst [vmem:[#allocation10_spill] sm:$0xff] %v7895_v37  ;;  %v1344_v45 = vadd.f32 %v1343_v43, %v7889_v32  ;;  %1878 = vrot.lane.b32.xlu0 %v7895_v37, %s7463_s20  ;;  %v1237_v46 = vpop.f32.mrb[4].mxu0  ;;  %6712 = vmatprep.subr.msk.bf16.mxu0 %vm1443_vm0, %v7895_v37  ;;  %v1469_v47 = vsel %vm1443_vm0, %v7895_v37, 0 }
 0x24e   : > { %v7909_v40 = vpack.c.bf16 %v1352_v42, %v1349_v39  ;;  %v1238_v50 = vadd.f32 %v1237_v46, %v7878_v16  ;;  %v1239_v1 = vpop.f32.mrb[5].mxu0  ;;  %6409 = vmatpush3.bf16.xpose.msra.mxu0 %v1469_v47 }
 0x24f   : > { %v7912_v8 = vpack.c.bf16 %v1344_v45, %v1341_v28  ;;  %v1241_v30 = vpop.f32.mrb[6].mxu0  ;;  %v1240_v53 = vadd.f32 %v1239_v1, %v7883_v21 }
 0x250   : > { %v1242_v51 = vadd.f32 %v1241_v30, %v7878_v16  ;;  %v1243_v52 = vpop.f32.mrb[7].mxu0 }
 0x251   : > { %10817 = vst [vmem:[#allocation11_spill] sm:$0xff] %v7912_v8  ;;  %v1244_v54 = vadd.f32 %v1243_v52, %v7883_v21  ;;  %v6398_v55 = vpop.f32.mrb[4].mxu1  ;;  %6440 = vmatprep.subr.bf16.mxu1 %v7912_v8 }
 0x252   : > { %v7918_v48 = vpack.c.bf16 %v1242_v51, %v1238_v50  ;;  %v1356_v9 = vpop.f32.mrb[5].mxu1  ;;  %6441 = vmatpush3.bf16.msra.mxu1 %v7912_v8  ;;  %v1365_v60 = vadd.f32 %v6398_v55, %v7889_v32 }
 0x253   : > { %v7921_v58 = vpack.c.bf16 %v1244_v54, %v1240_v53  ;;  %v6399_v59 = vpop.f32.mrb[6].mxu1  ;;  %6442 = vmatprep.subr.bf16.mxu1 %v7909_v40  ;;  %v1357_v63 = vadd.f32 %v1356_v9, %v7889_v32 }
 0x254   : > { %v1368_v19 = vadd.f32 %v6399_v59, %v7889_v32  ;;  %v1359_v61 = vpop.f32.mrb[7].mxu1 }
 0x255   : > { %10818 = vst [vmem:[#allocation12_spill] sm:$0xff] %v7921_v58  ;;  %v1360_v2 = vadd.f32 %v1359_v61, %v7889_v32  ;;  %1880 = vrot.lane.b32.xlu1 %v7921_v58, %s7463_s20  ;;  %v1247_v3 = vpop.f32.mrb[8].mxu0  ;;  %6713 = vmatprep.subr.msk.bf16.mxu0 %vm1443_vm0, %v7921_v58  ;;  %v1472_v41 = vsel %vm1443_vm0, %v7921_v58, 0 }
 0x256   : > { %v7934_v20 = vpack.c.bf16 %v1368_v19, %v1365_v60  ;;  %v1248_v27 = vadd.f32 %v1247_v3, %v7878_v16  ;;  %v1249_v4 = vpop.f32.mrb[9].mxu0  ;;  %6411 = vmatpush3.bf16.xpose.msra.mxu0 %v1472_v41  ;;  %6443 = vmatpush3.bf16.msra.mxu1 %v7909_v40 }
 0x257   : > { %v7938_v5 = vpack.c.bf16 %v1360_v2, %v1357_v63  ;;  %v1251_v6 = vpop.f32.mrb[10].mxu0  ;;  %v1250_v11 = vadd.f32 %v1249_v4, %v7883_v21 }
 0x258   : > { %v1252_v7 = vadd.f32 %v1251_v6, %v7878_v16  ;;  %v1253_v10 = vpop.f32.mrb[11].mxu0 }
 0x259   : > { %10819 = vst [vmem:[#allocation13_spill] sm:$0xff] %v7938_v5  ;;  %v1254_v33 = vadd.f32 %v1253_v10, %v7883_v21  ;;  %v6402_v12 = vpop.f32.mrb[8].mxu1  ;;  %6444 = vmatprep.subr.bf16.mxu1 %v7938_v5 }
 0x25a   : > { %v7944_v29 = vpack.c.bf16 %v1252_v7, %v1248_v27  ;;  %v1372_v13 = vpop.f32.mrb[9].mxu1  ;;  %6445 = vmatpush3.bf16.msra.mxu1 %v7938_v5  ;;  %v1381_v31 = vadd.f32 %v6402_v12, %v7889_v32 }
 0x25b   : > { %v7947_v14 = vpack.c.bf16 %v1254_v33, %v1250_v11  ;;  %v6403_v44 = vpop.f32.mrb[10].mxu1  ;;  %6446 = vmatprep.subr.bf16.mxu1 %v7934_v20  ;;  %v1373_v22 = vadd.f32 %v1372_v13, %v7889_v32 }
 0x25c   : > { %v1384_v18 = vadd.f32 %v6403_v44, %v7889_v32  ;;  %v1375_v56 = vpop.f32.mrb[11].mxu1 }
 0x25d   : > { %v1376_v23 = vadd.f32 %v1375_v56, %v7889_v32  ;;  %1882 = vrot.lane.b32.xlu0 %v7947_v14, %s7463_s20  ;;  %v1257_v24 = vpop.f32.mrb[12].mxu0  ;;  %6714 = vmatprep.subr.msk.bf16.mxu0 %vm1443_vm0, %v7947_v14  ;;  %v1475_v25 = vsel %vm1443_vm0, %v7947_v14, 0 }
 0x25e   : > { %v7960_v26 = vpack.c.bf16 %v1384_v18, %v1381_v31  ;;  %v1258_v34 = vadd.f32 %v1257_v24, %v7878_v16  ;;  %v1259_v57 = vpop.f32.mrb[13].mxu0  ;;  %6413 = vmatpush3.bf16.xpose.msra.mxu0 %v1475_v25  ;;  %6447 = vmatpush3.bf16.msra.mxu1 %v7934_v20 }
 0x25f   : > { %v7964_v36 = vpack.c.bf16 %v1376_v23, %v1373_v22  ;;  %v1261_v0 = vpop.f32.mrb[14].mxu0  ;;  %v1260_v43 = vadd.f32 %v1259_v57, %v7883_v21 }
 0x260   : > { %v1262_v39 = vadd.f32 %v1261_v0, %v7878_v16  ;;  %v1263_v42 = vpop.f32.mrb[15].mxu0 }
 0x261   : > { %v1264_v28 = vadd.f32 %v1263_v42, %v7883_v21  ;;  %v6406_v45 = vpop.f32.mrb[12].mxu1  ;;  %6448 = vmatprep.subr.bf16.mxu1 %v7964_v36 }
 0x262   : > { %v7970_v46 = vpack.c.bf16 %v1262_v39, %v1258_v34  ;;  %v1388_v47 = vpop.f32.mrb[13].mxu1  ;;  %6449 = vmatpush3.bf16.msra.mxu1 %v7964_v36  ;;  %v1397_v30 = vadd.f32 %v6406_v45, %v7889_v32 }
 0x263   : > { %v7973_v50 = vpack.c.bf16 %v1264_v28, %v1260_v43  ;;  %v6407_v1 = vpop.f32.mrb[14].mxu1  ;;  %6450 = vmatprep.subr.bf16.mxu1 %v7960_v26  ;;  %v1389_v53 = vadd.f32 %v1388_v47, %v7889_v32 }
 0x264   : > { %v1400_v51 = vadd.f32 %v6407_v1, %v7889_v32  ;;  %v1391_v52 = vpop.f32.mrb[15].mxu1 }
 0x265   : > { %10820 = vst [vmem:[#allocation14_spill] sm:$0xff] %v7973_v50  ;;  %v1392_v54 = vadd.f32 %v1391_v52, %v7889_v32  ;;  %v1267_v55 = vpop.f32.mrb[16].mxu0  ;;  %6715 = vmatprep.subr.msk.bf16.mxu0 %vm1443_vm0, %v7973_v50  ;;  %v1478_v9 = vsel %vm1443_vm0, %v7973_v50, 0 }
 0x266   : > { %v7984_v59 = vpack.c.bf16 %v1400_v51, %v1397_v30  ;;  %v1268_v60 = vadd.f32 %v1267_v55, %v7878_v16  ;;  %v1269_v19 = vpop.f32.mrb[17].mxu0  ;;  %6415 = vmatpush3.bf16.xpose.msra.mxu0 %v1478_v9  ;;  %6451 = vmatpush3.bf16.msra.mxu1 %v7960_v26 }
 0x267   : > { %v7988_v61 = vpack.c.bf16 %v1392_v54, %v1389_v53  ;;  %v1271_v63 = vpop.f32.mrb[18].mxu0  ;;  %v1270_v3 = vadd.f32 %v1269_v19, %v7883_v21 }
 0x268   : > { %v1272_v32 = vadd.f32 %v1271_v63, %v7878_v16  ;;  %v1273_v2 = vpop.f32.mrb[19].mxu0 }
 0x269   : > { %10821 = vst [vmem:[#allocation15_spill] sm:$0xff] %v7988_v61  ;;  %v1274_v41 = vadd.f32 %v1273_v2, %v7883_v21  ;;  %6452 = vmatprep.subr.bf16.mxu1 %v7988_v61 }
 0x26a   : > { %v7994_v27 = vpack.c.bf16 %v1272_v32, %v1268_v60  ;;  %6453 = vmatpush3.bf16.msra.mxu1 %v7988_v61  ;;  %v8067_v32 = vld [vmem:[%s10824_s2 + $0x18] sm:$0xff] }
 0x26b   : > { %v7997_v4 = vpack.c.bf16 %v1274_v41, %v1270_v3  ;;  %6454 = vmatprep.subr.bf16.mxu1 %v7984_v59  ;;  %v8075_v41 = vld [vmem:[%s10824_s2] sm:$0xff] }
 0x26c   : > { %10822 = vst [vmem:[#allocation16_spill] sm:$0xff] %v7994_v27 }
 0x26d   : > { %v1277_v6 = vpop.f32.mrb[20].mxu0  ;;  %6716 = vmatprep.subr.msk.bf16.mxu0 %vm1443_vm0, %v7997_v4  ;;  %v1481_v7 = vsel %vm1443_vm0, %v7997_v4, 0 }
 0x26e   : > { %v1278_v10 = vadd.f32 %v1277_v6, %v7878_v16  ;;  %v1279_v11 = vpop.f32.mrb[21].mxu0  ;;  %6417 = vmatpush3.bf16.xpose.msra.mxu0 %v1481_v7  ;;  %6455 = vmatpush3.bf16.msra.mxu1 %v7984_v59 }
 0x26f   : > { %v1281_v33 = vpop.f32.mrb[22].mxu0  ;;  %v1280_v44 = vadd.f32 %v1279_v11, %v7883_v21  ;;  %v8084_v11 = vld [vmem:[%s10824_s2 + $0x8] sm:$0xff] }
 0x270   : > { %v1282_v12 = vadd.f32 %v1281_v33, %v7878_v16  ;;  %v1283_v13 = vpop.f32.mrb[23].mxu0 }
 0x271   : > { %v1284_v31 = vadd.f32 %v1283_v13, %v7883_v21 }
 0x272   : > { %v8009_v18 = vpack.c.bf16 %v1282_v12, %v1278_v10 }
 0x273   : > { %v8011_v56 = vpack.c.bf16 %v1284_v31, %v1280_v44 }
 0x275   : > { %v1287_v22 = vpop.f32.mrb[24].mxu0  ;;  %6717 = vmatprep.subr.msk.bf16.mxu0 %vm1443_vm0, %v8011_v56  ;;  %v1484_v23 = vsel %vm1443_vm0, %v8011_v56, 0 }
 0x276   : > { %v1288_v24 = vadd.f32 %v1287_v22, %v7878_v16  ;;  %v1289_v25 = vpop.f32.mrb[25].mxu0  ;;  %6419 = vmatpush3.bf16.xpose.msra.mxu0 %v1484_v23 }
 0x277   : > { %v1291_v34 = vpop.f32.mrb[26].mxu0  ;;  %v1290_v39 = vadd.f32 %v1289_v25, %v7883_v21 }
 0x278   : > { %v1292_v57 = vadd.f32 %v1291_v34, %v7878_v16  ;;  %v1293_v0 = vpop.f32.mrb[27].mxu0 }
 0x279   : > { %v1294_v42 = vadd.f32 %v1293_v0, %v7883_v21 }
 0x27a   : > { %v8021_v43 = vpack.c.bf16 %v1292_v57, %v1288_v24 }
 0x27b   : > { %v8023_v28 = vpack.c.bf16 %v1294_v42, %v1290_v39 }
 0x27c   : > { %10823 = vst [vmem:[#allocation17_spill] sm:$0xff] %v8021_v43 }
 0x27d   : > { %v1297_v45 = vpop.f32.mrb[28].mxu0  ;;  %6718 = vmatprep.subr.msk.bf16.mxu0 %vm1443_vm0, %v8023_v28  ;;  %v1487_v47 = vsel %vm1443_vm0, %v8023_v28, 0 }
 0x27e   : > { %v1298_v1 = vadd.f32 %v1297_v45, %v7878_v16  ;;  %v1299_v30 = vpop.f32.mrb[29].mxu0  ;;  %6421 = vmatpush3.bf16.xpose.msra.mxu0 %v1487_v47  ;;  %v8102_v45 = vld [vmem:[%s10824_s2 + $0x30] sm:$0xff]  ;;  %v8107_v47 = vld [vmem:[%s10824_s2 + $0x20] sm:$0xff] }
 0x27f   : > { %v1301_v51 = vpop.f32.mrb[30].mxu0  ;;  %v1300_v54 = vadd.f32 %v1299_v30, %v7883_v21  ;;  %v8115_v30 = vld [vmem:[%s10824_s2 + $0x40] sm:$0xff] }
 0x280   : > { %v1302_v52 = vadd.f32 %v1301_v51, %v7878_v16  ;;  %v1303_v53 = vpop.f32.mrb[31].mxu0 }
 0x281   : > { %v1304_v55 = vadd.f32 %v1303_v53, %v7883_v21  ;;  %v8062_v21 = vld [vmem:[%s10824_s2 + $0x10] sm:$0xff] }
 0x282   : > { %v8033_v9 = vpack.c.bf16 %v1302_v52, %v1298_v1  ;;  %v8124_v52 = vld [vmem:[%s10824_s2 + $0x38] sm:$0xff] }
 0x283   : > { %v8035_v60 = vpack.c.bf16 %v1304_v55, %v1300_v54  ;;  %v8133_v54 = vld [vmem:[%s10824_s2 + $0x48] sm:$0xff] }
 0x285   : > { %6719 = vmatprep.subr.msk.bf16.mxu0 %vm1443_vm0, %v8035_v60  ;;  %v1490_v19 = vsel %vm1443_vm0, %v8035_v60, 0 }
 0x286   : > { %6423 = vmatpush3.bf16.xpose.msra.mxu0 %v1490_v19  ;;  %v8142_v19 = vld [vmem:[%s10824_s2 + $0x28] sm:$0xff] }
 0x28d   : > { %6425 = vmatmul.mubr.msk.bf16.vlgmr.msra.gmra.mrb[32].mxu0 %vm1443_vm0, %v7918_v48 }
 0x28e   : > { %6428 = vmatprep.mubr.msk.bf16.mxu0 %vm1443_vm0, %v7944_v29 }
 0x295   : > { %6429 = vmatmul.mubr.msk.bf16.gmra.mrb[36].mxu0 %vm1443_vm0, %v7970_v46 }
 0x296   : > { %6432 = vmatprep.mubr.msk.bf16.mxu0 %vm1443_vm0, %v7994_v27 }
 0x29d   : > { %6433 = vmatmul.mubr.msk.bf16.gmra.mrb[40].mxu0 %vm1443_vm0, %v8009_v18 }
 0x29e   : > { %6436 = vmatprep.mubr.msk.bf16.mxu0 %vm1443_vm0, %v8021_v43 }
 0x2a5   : > { %6437 = vmatmul.mubr.msk.bf16.gmra.mrb[44].mxu0 %vm1443_vm0, %v8033_v9 }
 0x2bf   : > { %v8055_v16 = vpop.permute.xlu0 %1878 }
 0x2c0   : > { %6720 = vmatprep.subr.msk.bf16.mxu1 %vm1443_vm0, %v8055_v16 }
 0x360   : > { %v6426_v63 = vpop.f32.mrb[32].mxu0 }
 0x361   : > { %v8070_v2 = vadd.f32 %v6426_v63, %v8062_v21  ;;  %v1526_v3 = vpop.f32.mrb[33].mxu0 }
 0x362   : > { %v6427_v6 = vpop.f32.mrb[34].mxu0  ;;  %v8087_v33 = vadd.f32 %v1526_v3, %v8075_v41  ;;  %v8151_v3 = vld [vmem:[%s10824_s2 + $0x70] sm:$0xff] }
 0x363   : > { %v8078_v7 = vadd.f32 %v6427_v6, %v8067_v32  ;;  %1593 = vmax.xlane.f32.xlu0 %v8070_v2  ;;  %v1529_v10 = vpop.f32.mrb[35].mxu0 }
 0x364   : > { %v8091_v12 = vadd.f32 %v1529_v10, %v8084_v11  ;;  %v8160_v10 = vld [vmem:[%s10824_s2 + $0x50] sm:$0xff] }
 0x365   : > { %1595 = vmax.xlane.f32.xlu1 %v8078_v7 }
 0x367   : > { %1589 = vmax.xlane.f32.xlu0 %v8087_v33 }
 0x368   : > { %v6430_v13 = vpop.f32.mrb[36].mxu0 }
 0x369   : > { %v1542_v44 = vpop.f32.mrb[37].mxu0  ;;  %1591 = vmax.xlane.f32.xlu1 %v8091_v12  ;;  %v8110_v1 = vadd.f32 %v6430_v13, %v8102_v45 }
 0x36a   : > { %v6431_v31 = vpop.f32.mrb[38].mxu0  ;;  %v8118_v51 = vadd.f32 %v1542_v44, %v8107_v47 }
 0x36b   : > { %v1545_v22 = vpop.f32.mrb[39].mxu0  ;;  %v8136_v55 = vadd.f32 %v6431_v31, %v8124_v52  ;;  %v8173_v31 = vld [vmem:[%s10824_s2 + $0x58] sm:$0xff] }
 0x36c   : > { %v8154_v6 = vadd.f32 %v1545_v22, %v8142_v19 }
 0x370   : > { %v6434_v23 = vpop.f32.mrb[40].mxu0 }
 0x371   : > { %v1558_v24 = vpop.f32.mrb[41].mxu0  ;;  %v8167_v44 = vadd.f32 %v6434_v23, %v8160_v10 }
 0x372   : > { %v6435_v25 = vpop.f32.mrb[42].mxu0  ;;  %v8127_v53 = vadd.f32 %v1558_v24, %v8115_v30  ;;  %v8182_v24 = vld [vmem:[%s10824_s2 + $0x60] sm:$0xff] }
 0x373   : > { %v1561_v34 = vpop.f32.mrb[43].mxu0  ;;  %v8177_v22 = vadd.f32 %v6435_v25, %v8173_v31 }
 0x374   : > { %v8145_v63 = vadd.f32 %v1561_v34, %v8133_v54  ;;  %v8191_v34 = vld [vmem:[%s10824_s2 + $0x78] sm:$0xff] }
 0x378   : > { %v6438_v57 = vpop.f32.mrb[44].mxu0 }
 0x379   : > { %v1574_v0 = vpop.f32.mrb[45].mxu0  ;;  %v8163_v13 = vadd.f32 %v6438_v57, %v8151_v3  ;;  %v8200_v57 = vld [vmem:[%s10824_s2 + $0x68] sm:$0xff] }
 0x37a   : > { %1884 = vrot.lane.b32.xlu1 %v7973_v50, %s7463_s20  ;;  %v6439_v39 = vpop.f32.mrb[46].mxu0  ;;  %v8186_v23 = vadd.f32 %v1574_v0, %v8182_v24 }
 0x37b   : > { %v1577_v42 = vpop.f32.mrb[47].mxu0  ;;  %v8195_v25 = vadd.f32 %v6439_v39, %v8191_v34  ;;  %v1883_v39 = vpop.permute.xlu0 %1882 }
 0x37c   : > { %v8204_v0 = vadd.f32 %v1577_v42, %v8200_v57  ;;  %v1881_v42 = vpop.permute.xlu1 %1880 }
 0x37d   : > { %1886 = vrot.lane.b32.xlu0 %v7997_v4, %s7463_s20 }
 0x39c   : > { %1601 = vmax.xlane.f32.xlu0 %v8110_v1 }
 0x39e   : > { %1597 = vmax.xlane.f32.xlu1 %v8118_v51 }
 0x3a0   : > { %1605 = vmax.xlane.f32.xlu0 %v8127_v53 }
 0x3a2   : > { %1603 = vmax.xlane.f32.xlu1 %v8136_v55 }
 0x3a4   : > { %1607 = vmax.xlane.f32.xlu0 %v8145_v63 }
 0x3a6   : > { %1599 = vmax.xlane.f32.xlu1 %v8154_v6 }
 0x3a8   : > { %1617 = vmax.xlane.f32.xlu0 %v8163_v13 }
 0x3aa   : > { %1609 = vmax.xlane.f32.xlu1 %v8167_v44 }
 0x3ae   : > { %1611 = vmax.xlane.f32.xlu1 %v8177_v22 }
 0x3b2   : > { %1613 = vmax.xlane.f32.xlu1 %v8186_v23 }
 0x3b6   : > { %1619 = vmax.xlane.f32.xlu1 %v8195_v25 }
 0x3ba   : > { %1615 = vmax.xlane.f32.xlu1 %v8204_v0 }
 0x3be   : > { %1890 = vrot.lane.b32.xlu0 %v8023_v28, %s7463_s20 }
 0x3c2   : > { %1892 = vrot.lane.b32.xlu0 %v8035_v60, %s7463_s20 }
 0x3c6   : > { %1854 = vrot.lane.b32.xlu0 %v7893_v35, %s7463_s20 }
 0x3ca   : > { %1858 = vrot.lane.b32.xlu0 %v7944_v29, %s7463_s20 }
 0x3cb   : > { %1888 = vrot.lane.b32.xlu1 %v8011_v56, %s7463_s20 }
 0x3ce   : > { %1862 = vrot.lane.b32.xlu0 %v7994_v27, %s7463_s20 }
 0x3cf   : > { %1856 = vrot.lane.b32.xlu1 %v7918_v48, %s7463_s20 }
 0x3d2   : > { %1866 = vrot.lane.b32.xlu0 %v8021_v43, %s7463_s20 }
 0x3d3   : > { %1860 = vrot.lane.b32.xlu1 %v7970_v46, %s7463_s20 }
 0x3d6   : > { %2167 = vrot.lane.b32.xlu0 %v7912_v8, %s7463_s20 }
 0x3d7   : > { %1864 = vrot.lane.b32.xlu1 %v8009_v18, %s7463_s20 }
 0x3da   : > { %2171 = vrot.lane.b32.xlu0 %v7938_v5, %s7463_s20 }
 0x3db   : > { %1868 = vrot.lane.b32.xlu1 %v8033_v9, %s7463_s20 }
 0x3de   : > { %2179 = vrot.lane.b32.xlu0 %v7988_v61, %s7463_s20 }
 0x3df   : > { %2169 = vrot.lane.b32.xlu1 %v7909_v40, %s7463_s20 }
 0x3e2   : > { %2344 = vrot.lane.b32.xlu0 %v7895_v37, %s7464_s26 }
 0x3e3   : > { %2173 = vrot.lane.b32.xlu1 %v7934_v20, %s7463_s20 }
 0x3e6   : > { %2346 = vrot.lane.b32.xlu0 %v7921_v58, %s7464_s26 }
 0x3e7   : > { %2175 = vrot.lane.b32.xlu1 %v7964_v36, %s7463_s20 }
 0x3ea   : > { %2350 = vrot.lane.b32.xlu0 %v7973_v50, %s7464_s26 }
 0x3eb   : > { %2177 = vrot.lane.b32.xlu1 %v7960_v26, %s7463_s20 }
 0x3ef   : > { %2181 = vrot.lane.b32.xlu1 %v7984_v59, %s7463_s20 }
 0x3f0   : > { %v1594_v49 = vpop.xlane.xlu0 %1593 }
 0x3f1   : > { %v1623_v62 = vsub.f32 %v8070_v2, %v1594_v49 }
 0x3f2   : > { %v1596_v17 = vpop.xlane.xlu1 %1595 }
 0x3f3   : > { %v1624_v15 = vsub.f32 %v8078_v7, %v1596_v17  ;;  %2348 = vrot.lane.b32.xlu1 %v7947_v14, %s7464_s26  ;;  %v1641_v8 = vmul.f32 1.442695, %v1623_v62  ;;  %v1919_v62 = vsel %vm1443_vm0, %v8055_v16, 0 }
 0x3f4   : > { %v1590_v38 = vpop.xlane.xlu0 %1589 }
 0x3f5   : > { %v1643_v58 = vmul.f32 1.442695, %v1624_v15  ;;  %v1621_v50 = vsub.f32 %v8087_v33, %v1590_v38 }
 0x3f6   : > { %v1592_v37 = vpop.xlane.xlu1 %1591 }
 0x3f7   : > { %v1637_v61 = vmul.f32 1.442695, %v1621_v50  ;;  %v1622_v5 = vsub.f32 %v8091_v12, %v1592_v37  ;;  %6942 = vpow2.f32 %v1643_v58  ;;  %v1922_v37 = vsel %vm1443_vm0, %v1881_v42, 0 }
 0x3f8   : > { %v1887_v50 = vpop.permute.xlu0 %1886 }
 0x3f9   : > { %v1639_v43 = vmul.f32 1.442695, %v1622_v5  ;;  %6944 = vpow2.f32 %v1637_v61  ;;  %v1931_v61 = vsel %vm1443_vm0, %v1887_v50, 0 }
 0x3fa   : > { %v1885_v58 = vpop.permute.xlu1 %1884 }
 0x3fb   : > { %6946 = vpow2.f32 %v1639_v43  ;;  %v1928_v5 = vsel %vm1443_vm0, %v1885_v58, 0 }
 0x3fc   : > { %6948 = vpow2.f32 %v1641_v8  ;;  %v1925_v8 = vsel %vm1443_vm0, %v1883_v39, 0 }
 0x401   : > { %v8257_v17 = vpop.eup %6942 }
 0x402   : > { %10825 = vst [vmem:[#allocation18_spill] sm:$0xff] %v8257_v17 }
 0x403   : > { %v8259_v7 = vpop.eup %6944 }
 0x404   : > { %10826 = vst [vmem:[#allocation19_spill] sm:$0xff] %v8259_v7 }
 0x405   : > { %v8261_v27 = vpop.eup %6946 }
 0x406   : > { %10827 = vst [vmem:[#allocation20_spill] sm:$0xff] %v8261_v27  ;;  %v8263_v49 = vpop.eup %6948  ;;  %v1701_v38 = vpack.c.bf16 %v8261_v27, %v8259_v7 }
 0x407   : > { %10828 = vst [vmem:[#allocation21_spill] sm:$0xff] %v8263_v49  ;;  %v1702_v15 = vpack.c.bf16 %v8257_v17, %v8263_v49  ;;  %v8690_v49 = vld [vmem:[%s10824_s2 + $0x38] sm:$0xff] }
 0x408   : > { %6456 = vmatprep.mubr.bf16.mxu1 %v1701_v38 }
 0x409   : > { %6457 = vmatmul.mubr.bf16.vlgmr.msra.gmra.mrb[16].mxu1 %v1702_v15 }
 0x40a   : > { %6473 = vmatpush3.bf16.xpose.msra.mxu1 %v1919_v62 }
 0x40b   : > { %6721 = vmatprep.subr.msk.bf16.mxu1 %vm1443_vm0, %v1881_v42 }
 0x412   : > { %6475 = vmatpush3.bf16.xpose.msra.mxu1 %v1922_v37 }
 0x413   : > { %6722 = vmatprep.subr.msk.bf16.mxu1 %vm1443_vm0, %v1883_v39 }
 0x41a   : > { %6477 = vmatpush3.bf16.xpose.msra.mxu1 %v1925_v8 }
 0x41b   : > { %6723 = vmatprep.subr.msk.bf16.mxu1 %vm1443_vm0, %v1885_v58 }
 0x422   : > { %6479 = vmatpush3.bf16.xpose.msra.mxu1 %v1928_v5 }
 0x423   : > { %6724 = vmatprep.subr.msk.bf16.mxu1 %vm1443_vm0, %v1887_v50 }
 0x429   : > { %v1602_v43 = vpop.xlane.xlu0 %1601 }
 0x42a   : > { %6481 = vmatpush3.bf16.xpose.msra.mxu1 %v1931_v61  ;;  %v1627_v42 = vsub.f32 %v8110_v1, %v1602_v43 }
 0x42b   : > { %v1598_v16 = vpop.xlane.xlu1 %1597 }
 0x42c   : > { %v1625_v2 = vsub.f32 %v8118_v51, %v1598_v16  ;;  %v1649_v61 = vmul.f32 1.442695, %v1627_v42 }
 0x42d   : > { %v1606_v33 = vpop.xlane.xlu0 %1605 }
 0x42e   : > { %v1645_v38 = vmul.f32 1.442695, %v1625_v2  ;;  %v1629_v62 = vsub.f32 %v8127_v53, %v1606_v33 }
 0x42f   : > { %v1604_v12 = vpop.xlane.xlu1 %1603 }
 0x430   : > { %v1628_v39 = vsub.f32 %v8136_v55, %v1604_v12  ;;  %6950 = vpow2.f32 %v1645_v38  ;;  %v1653_v16 = vmul.f32 1.442695, %v1629_v62 }
 0x431   : > { %v1608_v15 = vpop.xlane.xlu0 %1607 }
 0x432   : > { %v1651_v37 = vmul.f32 1.442695, %v1628_v39  ;;  %v1630_v8 = vsub.f32 %v8145_v63, %v1608_v15 }
 0x433   : > { %v1600_v58 = vpop.xlane.xlu1 %1599 }
 0x434   : > { %v1655_v5 = vmul.f32 1.442695, %v1630_v8  ;;  %v1626_v50 = vsub.f32 %v8154_v6, %v1600_v58  ;;  %6952 = vpow2.f32 %v1651_v37 }
 0x435   : > { %v1618_v51 = vpop.xlane.xlu0 %1617 }
 0x436   : > { %v1647_v17 = vmul.f32 1.442695, %v1626_v50  ;;  %6954 = vpow2.f32 %v1655_v5  ;;  %v1635_v50 = vsub.f32 %v8163_v13, %v1618_v51 }
 0x437   : > { %v1610_v55 = vpop.xlane.xlu1 %1609 }
 0x438   : > { %6956 = vpow2.f32 %v1647_v17  ;;  %v1631_v1 = vsub.f32 %v8167_v44, %v1610_v55 }
 0x439   : > { %6958 = vpow2.f32 %v1649_v61  ;;  %v1891_v53 = vpop.permute.xlu0 %1890 }
 0x43a   : > { %6960 = vpow2.f32 %v1653_v16  ;;  %v1657_v43 = vmul.f32 1.442695, %v1631_v1  ;;  %v8289_v12 = vpop.eup %6950 }
 0x43b   : > { %v1612_v63 = vpop.xlane.xlu1 %1611  ;;  %10829 = vst [vmem:[#allocation22_spill] sm:$0xff] %v8289_v12 }
 0x43c   : > { %v1632_v2 = vsub.f32 %v8177_v22, %v1612_v63  ;;  %6962 = vpow2.f32 %v1657_v43 }
 0x43d   : > { %v8287_v33 = vpop.permute.xlu0 %1892 }
 0x43e   : > { %v1659_v6 = vmul.f32 1.442695, %v1632_v2  ;;  %v8291_v42 = vpop.eup %6952 }
 0x43f   : > { %v1614_v39 = vpop.xlane.xlu1 %1613  ;;  %10830 = vst [vmem:[#allocation23_spill] sm:$0xff] %v8291_v42 }
 0x440   : > { %6964 = vpow2.f32 %v1659_v6  ;;  %v8293_v17 = vpop.eup %6954  ;;  %v1633_v15 = vsub.f32 %v8186_v23, %v1614_v39 }
 0x441   : > { %10831 = vst [vmem:[#allocation24_spill] sm:$0xff] %v8293_v17  ;;  %v1855_v44 = vpop.permute.xlu0 %1854 }
 0x442   : > { %v8295_v38 = vpop.eup %6956  ;;  %v1661_v16 = vmul.f32 1.442695, %v1633_v15 }
 0x443   : > { %10832 = vst [vmem:[#allocation25_spill] sm:$0xff] %v8295_v38  ;;  %v8298_v62 = vpop.eup %6958  ;;  %v1620_v22 = vpop.xlane.xlu1 %1619  ;;  %v1703_v37 = vpack.c.bf16 %v8295_v38, %v8289_v12 }
 0x444   : > { %10833 = vst [vmem:[#allocation26_spill] sm:$0xff] %v8298_v62  ;;  %v8302_v8 = vpop.eup %6960  ;;  %v1636_v58 = vsub.f32 %v8195_v25, %v1620_v22  ;;  %v1704_v5 = vpack.c.bf16 %v8291_v42, %v8298_v62  ;;  %v1665_v25 = vmul.f32 1.442695, %v1635_v50  ;;  %6966 = vpow2.f32 %v1661_v16 }
 0x445   : > { %10834 = vst [vmem:[#allocation27_spill] sm:$0xff] %v8302_v8  ;;  %6460 = vmatprep.mubr.bf16.mxu1 %v1703_v37  ;;  %v1859_v61 = vpop.permute.xlu0 %1858  ;;  %v1705_v23 = vpack.c.bf16 %v8293_v17, %v8302_v8  ;;  %v1937_v50 = vsel %vm1443_vm0, %v1891_v53, 0 }
 0x446   : > { %6461 = vmatmul.mubr.bf16.gmra.mrb[20].mxu1 %v1704_v5  ;;  %v1667_v55 = vmul.f32 1.442695, %v1636_v58  ;;  %v8311_v63 = vpop.eup %6962 }
 0x447   : > { %v1616_v1 = vpop.xlane.xlu1 %1615  ;;  %6464 = vmatprep.mubr.bf16.mxu1 %v1705_v23  ;;  %10835 = vst [vmem:[#allocation28_spill] sm:$0xff] %v8311_v63 }
 0x448   : > { %v1634_v43 = vsub.f32 %v8204_v0, %v1616_v1  ;;  %6968 = vpow2.f32 %v1667_v55 }
 0x449   : > { %v1863_v2 = vpop.permute.xlu0 %1862 }
 0x44a   : > { %v8313_v6 = vpop.eup %6964  ;;  %v1663_v13 = vmul.f32 1.442695, %v1634_v43 }
 0x44b   : > { %10836 = vst [vmem:[#allocation29_spill] sm:$0xff] %v8313_v6  ;;  %v1889_v51 = vpop.permute.xlu1 %1888  ;;  %v1706_v39 = vpack.c.bf16 %v8313_v6, %v8311_v63 }
 0x44c   : > { %6970 = vpow2.f32 %v1663_v13  ;;  %6725 = vmatprep.subr.msk.bf16.mxu1 %vm1443_vm0, %v1889_v51  ;;  %v1934_v15 = vsel %vm1443_vm0, %v1889_v51, 0  ;;  %v1940_v13 = vsel %vm1443_vm0, %v8287_v33, 0 }
 0x44d   : > { %6972 = vpow2.f32 %v1665_v25  ;;  %6483 = vmatpush3.bf16.xpose.msra.mxu1 %v1934_v15  ;;  %v1867_v0 = vpop.permute.xlu0 %1866 }
 0x44e   : > { %6465 = vmatmul.mubr.bf16.gmra.mrb[24].mxu1 %v1706_v39  ;;  %6726 = vmatprep.subr.msk.bf16.mxu1 %vm1443_vm0, %v1891_v53  ;;  %v8320_v5 = vpop.eup %6966 }
 0x44f   : > { %v1857_v22 = vpop.permute.xlu1 %1856  ;;  %10837 = vst [vmem:[#allocation30_spill] sm:$0xff] %v8320_v5 }
 0x451   : > { %v2168_v37 = vpop.permute.xlu0 %2167 }
 0x452   : > { %6504 = vmatprep.subr.bf16.mxu0 %v2168_v37  ;;  %v8323_v23 = vpop.eup %6968 }
 0x453   : > { %v1861_v58 = vpop.permute.xlu1 %1860  ;;  %6505 = vmatpush3.bf16.msra.mxu0 %v2168_v37  ;;  %10838 = vst [vmem:[#allocation31_spill] sm:$0xff] %v8323_v23 }
 0x455   : > { %6485 = vmatpush3.bf16.xpose.msra.mxu1 %v1937_v50  ;;  %v2172_v39 = vpop.permute.xlu0 %2171 }
 0x456   : > { %v8325_v16 = vpop.eup %6970  ;;  %6727 = vmatprep.subr.msk.bf16.mxu1 %vm1443_vm0, %v8287_v33 }
 0x457   : > { %10839 = vst [vmem:[#allocation32_spill] sm:$0xff] %v8325_v16  ;;  %v8329_v55 = vpop.eup %6972  ;;  %v1865_v1 = vpop.permute.xlu1 %1864  ;;  %v1707_v43 = vpack.c.bf16 %v8325_v16, %v8320_v5 }
 0x458   : > { %10840 = vst [vmem:[#allocation33_spill] sm:$0xff] %v8329_v55  ;;  %v1708_v25 = vpack.c.bf16 %v8323_v23, %v8329_v55 }
 0x459   : > { %6468 = vmatprep.mubr.bf16.mxu1 %v1707_v43  ;;  %v2180_v33 = vpop.permute.xlu0 %2179 }
 0x45a   : > { %6469 = vmatmul.mubr.bf16.gmra.mrb[28].mxu1 %v1708_v25 }
 0x45b   : > { %v1869_v53 = vpop.permute.xlu1 %1868  ;;  %6488 = vmatprep.mubr.msk.bf16.mxu1 %vm1443_vm0, %v1855_v44 }
 0x45d   : > { %6487 = vmatpush3.bf16.xpose.msra.mxu1 %v1940_v13 }
 0x45f   : > { %v2170_v51 = vpop.permute.xlu1 %2169 }
 0x460   : > { %6506 = vmatprep.subr.bf16.mxu0 %v2170_v51 }
 0x461   : > { %6507 = vmatpush3.bf16.msra.mxu0 %v2170_v51 }
 0x462   : > { %6508 = vmatprep.subr.bf16.mxu0 %v2172_v39 }
 0x463   : > { %v2174_v15 = vpop.permute.xlu1 %2173 }
 0x464   : > { %6489 = vmatmul.mubr.msk.bf16.vlgmr.msra.gmra.mrb[32].mxu1 %vm1443_vm0, %v1857_v22 }
 0x465   : > { %6492 = vmatprep.mubr.msk.bf16.mxu1 %vm1443_vm0, %v1859_v61  ;;  %6509 = vmatpush3.bf16.msra.mxu0 %v2172_v39  ;;  %v8344_v61 = vpop.permute.xlu0 %2344 }
 0x466   : > { %6510 = vmatprep.subr.bf16.mxu0 %v2174_v15 }
 0x467   : > { %v2176_v37 = vpop.permute.xlu1 %2175 }
 0x469   : > { %6511 = vmatpush3.bf16.msra.mxu0 %v2174_v15 }
 0x46a   : > { %6512 = vmatprep.subr.bf16.mxu0 %v2176_v37 }
 0x46b   : > { %v2178_v44 = vpop.permute.xlu1 %2177 }
 0x46c   : > { %6493 = vmatmul.mubr.msk.bf16.gmra.mrb[36].mxu1 %vm1443_vm0, %v1861_v58 }
 0x46d   : > { %6496 = vmatprep.mubr.msk.bf16.mxu1 %vm1443_vm0, %v1863_v2  ;;  %6513 = vmatpush3.bf16.msra.mxu0 %v2176_v37 }
 0x46e   : > { %6514 = vmatprep.subr.bf16.mxu0 %v2178_v44 }
 0x46f   : > { %v2182_v22 = vpop.permute.xlu1 %2181 }
 0x471   : > { %6515 = vmatpush3.bf16.msra.mxu0 %v2178_v44 }
 0x472   : > { %6516 = vmatprep.subr.bf16.mxu0 %v2180_v33 }
 0x474   : > { %6497 = vmatmul.mubr.msk.bf16.gmra.mrb[40].mxu1 %vm1443_vm0, %v1865_v1 }
 0x475   : > { %6500 = vmatprep.mubr.msk.bf16.mxu1 %vm1443_vm0, %v1867_v0  ;;  %6517 = vmatpush3.bf16.msra.mxu0 %v2180_v33 }
 0x476   : > { %6518 = vmatprep.subr.bf16.mxu0 %v2182_v22 }
 0x479   : > { %6519 = vmatpush3.bf16.msra.mxu0 %v2182_v22 }
 0x47a   : > { %6728 = vmatprep.subr.msk.bf16.mxu0 %vm1443_vm0, %v8344_v61 }
 0x47c   : > { %6501 = vmatmul.mubr.msk.bf16.gmra.mrb[44].mxu1 %vm1443_vm0, %v1869_v53 }
 0x4dc   : > { %v8349_v2 = vpop.f32.mrb[16].mxu1 }
 0x4dd   : > { %10841 = vst [vmem:[#allocation34_spill] sm:$0xff] %v8349_v2  ;;  %v8351_v58 = vpop.f32.mrb[17].mxu1 }
 0x4de   : > { %10842 = vst [vmem:[#allocation35_spill] sm:$0xff] %v8351_v58  ;;  %v8353_v50 = vpop.f32.mrb[18].mxu1 }
 0x4df   : > { %10843 = vst [vmem:[#allocation36_spill] sm:$0xff] %v8353_v50  ;;  %v8355_v1 = vpop.f32.mrb[19].mxu1  ;;  %v10864_v50 = vld [vmem:[#allocation14_spill] sm:$0xff] }
 0x4e0   : > { %10844 = vst [vmem:[#allocation37_spill] sm:$0xff] %v8355_v1 }
 0x519   : > { %v8357_v43 = vpop.f32.mrb[20].mxu1 }
 0x51a   : > { %10845 = vst [vmem:[#allocation38_spill] sm:$0xff] %v8357_v43  ;;  %v8359_v0 = vpop.f32.mrb[21].mxu1 }
 0x51b   : > { %10846 = vst [vmem:[#allocation39_spill] sm:$0xff] %v8359_v0  ;;  %v8361_v25 = vpop.f32.mrb[22].mxu1 }
 0x51c   : > { %10847 = vst [vmem:[#allocation40_spill] sm:$0xff] %v8361_v25  ;;  %v8363_v13 = vpop.f32.mrb[23].mxu1 }
 0x51d   : > { %10848 = vst [vmem:[#allocation41_spill] sm:$0xff] %v8363_v13 }
 0x521   : > { %v8365_v51 = vpop.f32.mrb[24].mxu1 }
 0x522   : > { %10849 = vst [vmem:[#allocation42_spill] sm:$0xff] %v8365_v51  ;;  %v8367_v39 = vpop.f32.mrb[25].mxu1 }
 0x523   : > { %10850 = vst [vmem:[#allocation43_spill] sm:$0xff] %v8367_v39  ;;  %v8369_v53 = vpop.f32.mrb[26].mxu1 }
 0x524   : > { %10851 = vst [vmem:[#allocation44_spill] sm:$0xff] %v8369_v53  ;;  %v8371_v15 = vpop.f32.mrb[27].mxu1 }
 0x525   : > { %10852 = vst [vmem:[#allocation45_spill] sm:$0xff] %v8371_v15 }
 0x52d   : > { %v8373_v37 = vpop.f32.mrb[28].mxu1 }
 0x52e   : > { %10853 = vst [vmem:[#allocation46_spill] sm:$0xff] %v8373_v37  ;;  %v8375_v44 = vpop.f32.mrb[29].mxu1 }
 0x52f   : > { %10854 = vst [vmem:[#allocation47_spill] sm:$0xff] %v8375_v44  ;;  %v8377_v33 = vpop.f32.mrb[30].mxu1 }
 0x530   : > { %10855 = vst [vmem:[#allocation48_spill] sm:$0xff] %v8377_v33  ;;  %v8379_v22 = vpop.f32.mrb[31].mxu1 }
 0x531   : > { %10856 = vst [vmem:[#allocation49_spill] sm:$0xff] %v8379_v22 }
 0x537   : > { %v6490_v16 = vpop.f32.mrb[32].mxu1 }
 0x538   : > { %v8382_v23 = vadd.f32 %v6490_v16, %v8062_v21  ;;  %v1976_v55 = vpop.f32.mrb[33].mxu1 }
 0x539   : > { %v6491_v51 = vpop.f32.mrb[34].mxu1  ;;  %v8389_v37 = vadd.f32 %v1976_v55, %v8075_v41 }
 0x53a   : > { %2043 = vmax.xlane.f32.xlu0 %v8382_v23  ;;  %v1979_v39 = vpop.f32.mrb[35].mxu1  ;;  %v8394_v44 = vadd.f32 %v6491_v51, %v8067_v32 }
 0x53b   : > { %v8386_v53 = vadd.f32 %v1979_v39, %v8084_v11 }
 0x53d   : > { %2041 = vmax.xlane.f32.xlu1 %v8386_v53 }
 0x53e   : > { %2039 = vmax.xlane.f32.xlu0 %v8389_v37 }
 0x53f   : > { %v6494_v22 = vpop.f32.mrb[36].mxu1 }
 0x540   : > { %v8397_v21 = vadd.f32 %v6494_v22, %v8102_v45  ;;  %v1992_v16 = vpop.f32.mrb[37].mxu1 }
 0x541   : > { %v6495_v33 = vpop.f32.mrb[38].mxu1  ;;  %v8405_v55 = vadd.f32 %v1992_v16, %v8107_v47 }
 0x542   : > { %2045 = vmax.xlane.f32.xlu0 %v8394_v44  ;;  %2051 = vmax.xlane.f32.xlu1 %v8397_v21  ;;  %v1995_v11 = vpop.f32.mrb[39].mxu1  ;;  %v8410_v45 = vadd.f32 %v6495_v33, %v8124_v52 }
 0x543   : > { %v8402_v41 = vadd.f32 %v1995_v11, %v8142_v19 }
 0x546   : > { %2049 = vmax.xlane.f32.xlu0 %v8402_v41  ;;  %2047 = vmax.xlane.f32.xlu1 %v8405_v55 }
 0x547   : > { %v6498_v32 = vpop.f32.mrb[40].mxu1 }
 0x548   : > { %v8413_v51 = vadd.f32 %v6498_v32, %v8160_v10  ;;  %v2008_v39 = vpop.f32.mrb[41].mxu1 }
 0x549   : > { %v6499_v22 = vpop.f32.mrb[42].mxu1  ;;  %v8418_v47 = vadd.f32 %v2008_v39, %v8115_v30 }
 0x54a   : > { %2053 = vmax.xlane.f32.xlu1 %v8410_v45  ;;  %2059 = vmax.xlane.f32.xlu0 %v8413_v51  ;;  %v2011_v11 = vpop.f32.mrb[43].mxu1  ;;  %v8422_v5 = vadd.f32 %v6499_v22, %v8173_v31  ;;  %v10861_v22 = vld [vmem:[#allocation15_spill] sm:$0xff] }
 0x54b   : > { %v8430_v25 = vadd.f32 %v2011_v11, %v8133_v54  ;;  %v10862_v11 = vld [vmem:[#allocation10_spill] sm:$0xff] }
 0x54e   : > { %2055 = vmax.xlane.f32.xlu1 %v8418_v47 }
 0x54f   : > { %v6502_v16 = vpop.f32.mrb[44].mxu1 }
 0x550   : > { %v2024_v52 = vpop.f32.mrb[45].mxu1  ;;  %v8434_v30 = vadd.f32 %v6502_v16, %v8151_v3  ;;  %v10857_v3 = vld [vmem:[#allocation16_spill] sm:$0xff] }
 0x551   : > { %v8425_v33 = vadd.f32 %v2024_v52, %v8182_v24  ;;  %v6503_v32 = vpop.f32.mrb[46].mxu1  ;;  %v8493_v52 = vpop.permute.xlu1 %2348 }
 0x552   : > { %2061 = vmax.xlane.f32.xlu1 %v8422_v5  ;;  %v2027_v15 = vpop.f32.mrb[47].mxu1  ;;  %v8438_v39 = vadd.f32 %v6503_v32, %v8191_v34  ;;  %v10858_v34 = vld [vmem:[#allocation17_spill] sm:$0xff]  ;;  %v10863_v32 = vld [vmem:[#allocation12_spill] sm:$0xff] }
 0x553   : > { %2063 = vmax.xlane.f32.xlu0 %v8425_v33  ;;  %v8456_v54 = vadd.f32 %v2027_v15, %v8200_v57  ;;  %v10860_v57 = vld [vmem:[#allocation13_spill] sm:$0xff]  ;;  %v8485_v15 = vpop.permute.xlu0 %2346 }
 0x556   : > { %2057 = vmax.xlane.f32.xlu1 %v8430_v25 }
 0x557   : > { %v8491_v16 = vpop.permute.xlu0 %2350 }
 0x55a   : > { %2067 = vmax.xlane.f32.xlu1 %v8434_v30 }
 0x55e   : > { %2069 = vmax.xlane.f32.xlu1 %v8438_v39 }
 0x569   : > { %2354 = vrot.lane.b32.xlu0 %v8011_v56, %s7464_s26 }
 0x56f   : > { %2352 = vrot.lane.b32.xlu1 %v7997_v4, %s7464_s26 }
 0x573   : > { %2330 = vrot.lane.b32.xlu1 %v7918_v48, %s7464_s26 }
 0x577   : > { %2334 = vrot.lane.b32.xlu1 %v7970_v46, %s7464_s26 }
 0x57b   : > { %2338 = vrot.lane.b32.xlu1 %v8009_v18, %s7464_s26 }
 0x57f   : > { %2342 = vrot.lane.b32.xlu1 %v8033_v9, %s7464_s26 }
 0x583   : > { %2627 = vrot.lane.b32.xlu1 %v7909_v40, %s7464_s26 }
 0x587   : > { %2631 = vrot.lane.b32.xlu1 %v7934_v20, %s7464_s26 }
 0x588   : > { %2065 = vmax.xlane.f32.xlu0 %v8456_v54 }
 0x58b   : > { %2633 = vrot.lane.b32.xlu1 %v7964_v36, %s7464_s26 }
 0x58f   : > { %2635 = vrot.lane.b32.xlu1 %v7960_v26, %s7464_s26 }
 0x593   : > { %2639 = vrot.lane.b32.xlu1 %v7984_v59, %s7464_s26 }
 0x597   : > { %2806 = vrot.lane.b32.xlu1 %v7947_v14, %s7465_s3  ;;  %v10859_v14 = vld [vmem:[#allocation11_spill] sm:$0xff] }
 0x59e   : > { %2356 = vrot.lane.b32.xlu0 %v8023_v28, %s7464_s26 }
 0x5a2   : > { %2358 = vrot.lane.b32.xlu0 %v8035_v60, %s7464_s26 }
 0x5a6   : > { %2328 = vrot.lane.b32.xlu0 %v7893_v35, %s7464_s26 }
 0x5aa   : > { %2332 = vrot.lane.b32.xlu0 %v7944_v29, %s7464_s26 }
 0x5ae   : > { %2336 = vrot.lane.b32.xlu0 %v10857_v3, %s7464_s26 }
 0x5b2   : > { %2340 = vrot.lane.b32.xlu0 %v10858_v34, %s7464_s26 }
 0x5b6   : > { %2625 = vrot.lane.b32.xlu0 %v10859_v14, %s7464_s26 }
 0x5ba   : > { %2629 = vrot.lane.b32.xlu0 %v10860_v57, %s7464_s26 }
 0x5be   : > { %2637 = vrot.lane.b32.xlu0 %v10861_v22, %s7464_s26 }
 0x5c2   : > { %2802 = vrot.lane.b32.xlu0 %v10862_v11, %s7465_s3 }
 0x5c6   : > { %2804 = vrot.lane.b32.xlu0 %v10863_v32, %s7465_s3 }
 0x5c7   : > { %v2044_v13 = vpop.xlane.xlu0 %2043 }
 0x5c8   : > { %v2073_v2 = vsub.f32 %v8382_v23, %v2044_v13 }
 0x5ca   : > { %v2042_v43 = vpop.xlane.xlu1 %2041  ;;  %2808 = vrot.lane.b32.xlu0 %v10864_v50, %s7465_s3  ;;  %v2091_v17 = vmul.f32 1.442695, %v2073_v2 }
 0x5cb   : > { %v2072_v0 = vsub.f32 %v8386_v53, %v2042_v43  ;;  %v2040_v1 = vpop.xlane.xlu0 %2039 }
 0x5cc   : > { %v2071_v58 = vsub.f32 %v8389_v37, %v2040_v1 }
 0x5cd   : > { %v2089_v11 = vmul.f32 1.442695, %v2072_v0 }
 0x5ce   : > { %v2087_v6 = vmul.f32 1.442695, %v2071_v58 }
 0x5cf   : > { %6974 = vpow2.f32 %v2089_v11  ;;  %v2052_v63 = vpop.xlane.xlu1 %2051  ;;  %v2046_v8 = vpop.xlane.xlu0 %2045 }
 0x5d0   : > { %6976 = vpow2.f32 %v2087_v6  ;;  %v2074_v32 = vsub.f32 %v8394_v44, %v2046_v8  ;;  %v2077_v38 = vsub.f32 %v8397_v21, %v2052_v63 }
 0x5d1   : > { %6978 = vpow2.f32 %v2091_v17 }
 0x5d2   : > { %v2093_v42 = vmul.f32 1.442695, %v2074_v32  ;;  %v2099_v0 = vmul.f32 1.442695, %v2077_v38  ;;  %v2385_v32 = vsel %vm1443_vm0, %v8344_v61, 0 }
 0x5d3   : > { %v2048_v50 = vpop.xlane.xlu1 %2047  ;;  %v2050_v62 = vpop.xlane.xlu0 %2049 }
 0x5d4   : > { %v2075_v43 = vsub.f32 %v8405_v55, %v2048_v50  ;;  %v2076_v23 = vsub.f32 %v8402_v41, %v2050_v62  ;;  %6980 = vpow2.f32 %v2093_v42 }
 0x5d6   : > { %v2095_v1 = vmul.f32 1.442695, %v2075_v43  ;;  %v2097_v58 = vmul.f32 1.442695, %v2076_v23 }
 0x5d7   : > { %v2054_v13 = vpop.xlane.xlu1 %2053  ;;  %v2060_v38 = vpop.xlane.xlu0 %2059 }
 0x5d8   : > { %6982 = vpow2.f32 %v2095_v1  ;;  %v2078_v6 = vsub.f32 %v8410_v45, %v2054_v13  ;;  %v2081_v55 = vsub.f32 %v8413_v51, %v2060_v38 }
 0x5d9   : > { %v8507_v2 = vpop.eup %6974  ;;  %6984 = vpow2.f32 %v2097_v58 }
 0x5da   : > { %v8509_v8 = vpop.eup %6976  ;;  %v2101_v63 = vmul.f32 1.442695, %v2078_v6  ;;  %6986 = vpow2.f32 %v2099_v0  ;;  %v2107_v1 = vmul.f32 1.442695, %v2081_v55 }
 0x5db   : > { %v2056_v17 = vpop.xlane.xlu1 %2055  ;;  %v2151_v53 = vpack.c.bf16 %v8507_v2, %v8509_v8  ;;  %v8513_v42 = vpop.eup %6978 }
 0x5dc   : > { %6988 = vpow2.f32 %v2101_v63  ;;  %v2079_v62 = vsub.f32 %v8418_v47, %v2056_v17 }
 0x5dd   : > { %6520 = vmatprep.mubr.bf16.mxu0 %v2151_v53  ;;  %v2391_v53 = vsel %vm1443_vm0, %v8493_v52, 0 }
 0x5de   : > { %v8516_v37 = vpop.eup %6980  ;;  %v2103_v11 = vmul.f32 1.442695, %v2079_v62 }
 0x5df   : > { %v2062_v44 = vpop.xlane.xlu1 %2061  ;;  %v2152_v41 = vpack.c.bf16 %v8516_v37, %v8513_v42 }
 0x5e0   : > { %v2082_v21 = vsub.f32 %v8422_v5, %v2062_v44  ;;  %6990 = vpow2.f32 %v2103_v11 }
 0x5e1   : > { %6521 = vmatmul.mubr.bf16.vlgmr.msra.gmra.mrb[48].mxu0 %v2152_v41 }
 0x5e2   : > { %v8522_v45 = vpop.eup %6982  ;;  %v2109_v47 = vmul.f32 1.442695, %v2082_v21  ;;  %6537 = vmatpush3.bf16.xpose.msra.mxu0 %v2385_v32  ;;  %v2394_v21 = vsel %vm1443_vm0, %v8491_v16, 0 }
 0x5e3   : > { %v8526_v50 = vpop.eup %6984  ;;  %v2058_v43 = vpop.xlane.xlu1 %2057  ;;  %6729 = vmatprep.subr.msk.bf16.mxu0 %vm1443_vm0, %v8485_v15 }
 0x5e4   : > { %v2080_v5 = vsub.f32 %v8430_v25, %v2058_v43  ;;  %v2153_v51 = vpack.c.bf16 %v8526_v50, %v8522_v45  ;;  %v8533_v23 = vpop.eup %6986  ;;  %6992 = vpow2.f32 %v2109_v47  ;;  %v2388_v25 = vsel %vm1443_vm0, %v8485_v15, 0 }
 0x5e6   : > { %v8535_v58 = vpop.eup %6988  ;;  %v2105_v61 = vmul.f32 1.442695, %v2080_v5  ;;  %6524 = vmatprep.mubr.bf16.mxu0 %v2153_v51 }
 0x5e7   : > { %v2154_v0 = vpack.c.bf16 %v8535_v58, %v8533_v23  ;;  %v2068_v13 = vpop.xlane.xlu1 %2067 }
 0x5e8   : > { %6994 = vpow2.f32 %v2105_v61 }
 0x5e9   : > { %6996 = vpow2.f32 %v2107_v1  ;;  %6525 = vmatmul.mubr.bf16.gmra.mrb[52].mxu0 %v2154_v0 }
 0x5ea   : > { %6539 = vmatpush3.bf16.xpose.msra.mxu0 %v2388_v25  ;;  %v8543_v6 = vpop.eup %6990 }
 0x5eb   : > { %6730 = vmatprep.subr.msk.bf16.mxu0 %vm1443_vm0, %v8493_v52  ;;  %10865 = vst [vmem:[#allocation16_spill] sm:$0xff] %v8543_v6  ;;  %v2070_v44 = vpop.xlane.xlu1 %2069  ;;  %v2064_v52 = vpop.xlane.xlu0 %2063 }
 0x5ec   : > { %v2083_v47 = vsub.f32 %v8425_v33, %v2064_v52  ;;  %v2086_v43 = vsub.f32 %v8438_v39, %v2070_v44 }
 0x5ee   : > { %v8545_v63 = vpop.eup %6992  ;;  %v2111_v5 = vmul.f32 1.442695, %v2083_v47  ;;  %v2117_v51 = vmul.f32 1.442695, %v2086_v43 }
 0x5ef   : > { %10866 = vst [vmem:[#allocation17_spill] sm:$0xff] %v8545_v63  ;;  %v2353_v41 = vpop.permute.xlu1 %2352  ;;  %v2355_v11 = vpop.permute.xlu0 %2354 }
 0x5f0   : > { %v2397_v55 = vsel %vm1443_vm0, %v2353_v41, 0  ;;  %v2400_v32 = vsel %vm1443_vm0, %v2355_v11, 0  ;;  %6998 = vpow2.f32 %v2111_v5 }
 0x5f1   : > { %7000 = vpow2.f32 %v2117_v51 }
 0x5f2   : > { %v8547_v17 = vpop.eup %6994  ;;  %6541 = vmatpush3.bf16.xpose.msra.mxu0 %v2391_v53 }
 0x5f3   : > { %v8551_v38 = vpop.eup %6996  ;;  %v2155_v15 = vpack.c.bf16 %v8547_v17, %v8543_v6  ;;  %6731 = vmatprep.subr.msk.bf16.mxu0 %vm1443_vm0, %v8491_v16  ;;  %v2085_v16 = vsub.f32 %v8434_v30, %v2068_v13  ;;  %v2331_v53 = vpop.permute.xlu1 %2330 }
 0x5f4   : > { %10867 = vst [vmem:[#allocation11_spill] sm:$0xff] %v8551_v38  ;;  %v2156_v62 = vpack.c.bf16 %v8545_v63, %v8551_v38 }
 0x5f5   : > { %6528 = vmatprep.mubr.bf16.mxu0 %v2155_v15  ;;  %v2115_v0 = vmul.f32 1.442695, %v2085_v16 }
 0x5f6   : > { %6529 = vmatmul.mubr.bf16.gmra.mrb[56].mxu0 %v2156_v62 }
 0x5f7   : > { %v2335_v30 = vpop.permute.xlu1 %2334 }
 0x5fa   : > { %6543 = vmatpush3.bf16.xpose.msra.mxu0 %v2394_v21  ;;  %v8572_v62 = vpop.eup %6998 }
 0x5fb   : > { %6732 = vmatprep.subr.msk.bf16.mxu0 %vm1443_vm0, %v2353_v41  ;;  %10868 = vst [vmem:[#allocation13_spill] sm:$0xff] %v8572_v62  ;;  %v8575_v44 = vpop.eup %7000  ;;  %v2339_v52 = vpop.permute.xlu1 %2338 }
 0x5fc   : > { %10869 = vst [vmem:[#allocation15_spill] sm:$0xff] %v8575_v44 }
 0x5ff   : > { %v2343_v43 = vpop.permute.xlu1 %2342 }
 0x602   : > { %6545 = vmatpush3.bf16.xpose.msra.mxu0 %v2397_v55 }
 0x603   : > { %6733 = vmatprep.subr.msk.bf16.mxu0 %vm1443_vm0, %v2355_v11  ;;  %v2628_v5 = vpop.permute.xlu1 %2627 }
 0x60a   : > { %6547 = vmatpush3.bf16.xpose.msra.mxu0 %v2400_v32 }
 0x615   : > { %v2066_v1 = vpop.xlane.xlu0 %2065 }
 0x616   : > { %v2084_v61 = vsub.f32 %v8456_v54, %v2066_v1  ;;  %v2632_v1 = vpop.permute.xlu1 %2631 }
 0x618   : > { %v2113_v25 = vmul.f32 1.442695, %v2084_v61 }
 0x619   : > { %v2357_v15 = vpop.permute.xlu0 %2356 }
 0x61a   : > { %7002 = vpow2.f32 %v2113_v25  ;;  %6734 = vmatprep.subr.msk.bf16.mxu0 %vm1443_vm0, %v2357_v15  ;;  %v2403_v33 = vsel %vm1443_vm0, %v2357_v15, 0 }
 0x61b   : > { %7004 = vpow2.f32 %v2115_v0  ;;  %6549 = vmatpush3.bf16.xpose.msra.mxu0 %v2403_v33  ;;  %v2634_v0 = vpop.permute.xlu1 %2633 }
 0x61d   : > { %v2359_v39 = vpop.permute.xlu0 %2358 }
 0x61e   : > { %6735 = vmatprep.subr.msk.bf16.mxu0 %vm1443_vm0, %v2359_v39  ;;  %v2406_v54 = vsel %vm1443_vm0, %v2359_v39, 0 }
 0x61f   : > { %v2636_v25 = vpop.permute.xlu1 %2635 }
 0x621   : > { %v2329_v13 = vpop.permute.xlu0 %2328 }
 0x623   : > { %6551 = vmatpush3.bf16.xpose.msra.mxu0 %v2406_v54  ;;  %v2640_v15 = vpop.permute.xlu1 %2639 }
 0x624   : > { %v8577_v21 = vpop.eup %7002 }
 0x625   : > { %10870 = vst [vmem:[#allocation10_spill] sm:$0xff] %v8577_v21  ;;  %v8579_v41 = vpop.eup %7004  ;;  %v2333_v55 = vpop.permute.xlu0 %2332  ;;  %v2157_v11 = vpack.c.bf16 %v8577_v21, %v8572_v62  ;;  %v8703_v21 = vld [vmem:[%s10824_s2 + $0x40] sm:$0xff] }
 0x626   : > { %10871 = vst [vmem:[#allocation12_spill] sm:$0xff] %v8579_v41  ;;  %v2158_v32 = vpack.c.bf16 %v8575_v44, %v8579_v41 }
 0x627   : > { %6532 = vmatprep.mubr.bf16.mxu0 %v2157_v11 }
 0x628   : > { %6533 = vmatmul.mubr.bf16.gmra.mrb[60].mxu0 %v2158_v32 }
 0x629   : > { %6552 = vmatprep.mubr.msk.bf16.mxu0 %vm1443_vm0, %v2329_v13  ;;  %v2337_v47 = vpop.permute.xlu0 %2336 }
 0x62d   : > { %v2341_v16 = vpop.permute.xlu0 %2340 }
 0x630   : > { %6553 = vmatmul.mubr.msk.bf16.vlgmr.msra.gmra.mrb[64].mxu0 %vm1443_vm0, %v2331_v53 }
 0x631   : > { %6556 = vmatprep.mubr.msk.bf16.mxu0 %vm1443_vm0, %v2333_v55  ;;  %v2626_v51 = vpop.permute.xlu0 %2625 }
 0x632   : > { %6568 = vmatprep.subr.bf16.mxu1 %v2626_v51 }
 0x633   : > { %6569 = vmatpush3.bf16.msra.mxu1 %v2626_v51 }
 0x634   : > { %6570 = vmatprep.subr.bf16.mxu1 %v2628_v5 }
 0x635   : > { %v2630_v61 = vpop.permute.xlu0 %2629 }
 0x637   : > { %6571 = vmatpush3.bf16.msra.mxu1 %v2628_v5 }
 0x638   : > { %6557 = vmatmul.mubr.msk.bf16.gmra.mrb[68].mxu0 %vm1443_vm0, %v2335_v30  ;;  %6572 = vmatprep.subr.bf16.mxu1 %v2630_v61 }
 0x639   : > { %6560 = vmatprep.mubr.msk.bf16.mxu0 %vm1443_vm0, %v2337_v47  ;;  %v2638_v53 = vpop.permute.xlu0 %2637 }
 0x63b   : > { %6573 = vmatpush3.bf16.msra.mxu1 %v2630_v61 }
 0x63c   : > { %6574 = vmatprep.subr.bf16.mxu1 %v2632_v1 }
 0x63d   : > { %v8593_v33 = vpop.permute.xlu0 %2802 }
 0x63f   : > { %6575 = vmatpush3.bf16.msra.mxu1 %v2632_v1 }
 0x640   : > { %6561 = vmatmul.mubr.msk.bf16.gmra.mrb[72].mxu0 %vm1443_vm0, %v2339_v52  ;;  %6576 = vmatprep.subr.bf16.mxu1 %v2634_v0 }
 0x641   : > { %6564 = vmatprep.mubr.msk.bf16.mxu0 %vm1443_vm0, %v2341_v16 }
 0x643   : > { %6577 = vmatpush3.bf16.msra.mxu1 %v2634_v0 }
 0x644   : > { %6578 = vmatprep.subr.bf16.mxu1 %v2636_v25 }
 0x647   : > { %6579 = vmatpush3.bf16.msra.mxu1 %v2636_v25 }
 0x648   : > { %6565 = vmatmul.mubr.msk.bf16.gmra.mrb[76].mxu0 %vm1443_vm0, %v2343_v43  ;;  %6580 = vmatprep.subr.bf16.mxu1 %v2638_v53 }
 0x64b   : > { %6581 = vmatpush3.bf16.msra.mxu1 %v2638_v53  ;;  %v8632_v53 = vld [vmem:[%s10824_s2 + $0x10] sm:$0xff] }
 0x64c   : > { %6582 = vmatprep.subr.bf16.mxu1 %v2640_v15 }
 0x64f   : > { %6583 = vmatpush3.bf16.msra.mxu1 %v2640_v15 }
 0x650   : > { %6736 = vmatprep.subr.msk.bf16.mxu1 %vm1443_vm0, %v8593_v33 }
 0x6b4   : > { %v8597_v39 = vpop.f32.mrb[48].mxu0 }
 0x6b5   : > { %v8599_v30 = vpop.f32.mrb[49].mxu0 }
 0x6b6   : > { %v8601_v13 = vpop.f32.mrb[50].mxu0 }
 0x6b7   : > { %v8603_v54 = vpop.f32.mrb[51].mxu0 }
 0x6bc   : > { %v8605_v52 = vpop.f32.mrb[52].mxu0 }
 0x6bd   : > { %10872 = vst [vmem:[#allocation14_spill] sm:$0xff] %v8605_v52  ;;  %v8607_v55 = vpop.f32.mrb[53].mxu0 }
 0x6be   : > { %10873 = vst [vmem:[#allocation50_spill] sm:$0xff] %v8607_v55  ;;  %v8609_v11 = vpop.f32.mrb[54].mxu0 }
 0x6bf   : > { %10874 = vst [vmem:[#allocation51_spill] sm:$0xff] %v8609_v11  ;;  %v8611_v32 = vpop.f32.mrb[55].mxu0  ;;  %v8667_v11 = vld [vmem:[%s10824_s2 + $0x30] sm:$0xff] }
 0x6c0   : > { %10875 = vst [vmem:[#allocation52_spill] sm:$0xff] %v8611_v32 }
 0x6c9   : > { %v8613_v47 = vpop.f32.mrb[56].mxu0 }
 0x6ca   : > { %10876 = vst [vmem:[#allocation53_spill] sm:$0xff] %v8613_v47  ;;  %v8615_v43 = vpop.f32.mrb[57].mxu0 }
 0x6cb   : > { %10877 = vst [vmem:[#allocation54_spill] sm:$0xff] %v8615_v43  ;;  %v8617_v16 = vpop.f32.mrb[58].mxu0 }
 0x6cc   : > { %10878 = vst [vmem:[#allocation55_spill] sm:$0xff] %v8617_v16  ;;  %v8619_v5 = vpop.f32.mrb[59].mxu0 }
 0x6cd   : > { %10879 = vst [vmem:[#allocation56_spill] sm:$0xff] %v8619_v5  ;;  %v8659_v5 = vld [vmem:[%s10824_s2 + $0x18] sm:$0xff] }
 0x6fb   : > { %v8621_v51 = vpop.f32.mrb[60].mxu0 }
 0x6fc   : > { %10880 = vst [vmem:[#allocation57_spill] sm:$0xff] %v8621_v51  ;;  %v8623_v1 = vpop.f32.mrb[61].mxu0 }
 0x6fd   : > { %10881 = vst [vmem:[#allocation58_spill] sm:$0xff] %v8623_v1  ;;  %v8625_v61 = vpop.f32.mrb[62].mxu0  ;;  %v8649_v1 = vld [vmem:[%s10824_s2] sm:$0xff] }
 0x6fe   : > { %10882 = vst [vmem:[#allocation59_spill] sm:$0xff] %v8625_v61  ;;  %v8627_v0 = vpop.f32.mrb[63].mxu0  ;;  %v8641_v61 = vld [vmem:[%s10824_s2 + $0x8] sm:$0xff] }
 0x6ff   : > { %10883 = vst [vmem:[#allocation60_spill] sm:$0xff] %v8627_v0 }
 0x703   : > { %v6554_v25 = vpop.f32.mrb[64].mxu0 }
 0x704   : > { %v8635_v15 = vadd.f32 %v8632_v53, %v6554_v25  ;;  %v2442_v47 = vpop.f32.mrb[65].mxu0 }
 0x705   : > { %v6555_v16 = vpop.f32.mrb[66].mxu0  ;;  %v8652_v25 = vadd.f32 %v8649_v1, %v2442_v47 }
 0x706   : > { %2509 = vmax.xlane.f32.xlu0 %v8635_v15  ;;  %v2445_v51 = vpop.f32.mrb[67].mxu0 }
 0x707   : > { %v8644_v0 = vadd.f32 %v8641_v61, %v2445_v51  ;;  %v8662_v51 = vadd.f32 %v8659_v5, %v6555_v16  ;;  %v8680_v16 = vld [vmem:[%s10824_s2 + $0x20] sm:$0xff] }
 0x709   : > { %2507 = vmax.xlane.f32.xlu1 %v8644_v0 }
 0x70a   : > { %2505 = vmax.xlane.f32.xlu0 %v8652_v25 }
 0x70b   : > { %v6558_v43 = vpop.f32.mrb[68].mxu0 }
 0x70c   : > { %v8670_v47 = vadd.f32 %v8667_v11, %v6558_v43  ;;  %v2458_v52 = vpop.f32.mrb[69].mxu0 }
 0x70d   : > { %v6559_v32 = vpop.f32.mrb[70].mxu0  ;;  %v8683_v27 = vadd.f32 %v8680_v16, %v2458_v52 }
 0x70e   : > { %2511 = vmax.xlane.f32.xlu0 %v8662_v51  ;;  %2517 = vmax.xlane.f32.xlu1 %v8670_v47  ;;  %v2461_v55 = vpop.f32.mrb[71].mxu0 }
 0x70f   : > { %v8675_v12 = vadd.f32 %v2461_v55, %v8142_v19  ;;  %v8693_v19 = vadd.f32 %v8690_v49, %v6559_v32 }
 0x712   : > { %2515 = vmax.xlane.f32.xlu0 %v8675_v12  ;;  %2513 = vmax.xlane.f32.xlu1 %v8683_v27 }
 0x713   : > { %v6562_v43 = vpop.f32.mrb[72].mxu0 }
 0x714   : > { %v8696_v55 = vadd.f32 %v6562_v43, %v8160_v10  ;;  %v2474_v7 = vpop.f32.mrb[73].mxu0 }
 0x715   : > { %v6563_v44 = vpop.f32.mrb[74].mxu0  ;;  %v8706_v41 = vadd.f32 %v8703_v21, %v2474_v7  ;;  %v8720_v7 = vld [vmem:[%s10824_s2 + $0x48] sm:$0xff] }
 0x716   : > { %2519 = vmax.xlane.f32.xlu1 %v8693_v19  ;;  %2525 = vmax.xlane.f32.xlu0 %v8696_v55  ;;  %v2477_v52 = vpop.f32.mrb[75].mxu0  ;;  %v8710_v10 = vadd.f32 %v6563_v44, %v8173_v31  ;;  %v8729_v31 = vld [vmem:[%s10824_s2 + $0x70] sm:$0xff]  ;;  %v8738_v44 = vld [vmem:[%s10824_s2 + $0x78] sm:$0xff] }
 0x717   : > { %v8723_v6 = vadd.f32 %v8720_v7, %v2477_v52 }
 0x71a   : > { %2521 = vmax.xlane.f32.xlu1 %v8706_v41 }
 0x71b   : > { %v6566_v32 = vpop.f32.mrb[76].mxu0 }
 0x71c   : > { %v2490_v43 = vpop.f32.mrb[77].mxu0 }
 0x71d   : > { %v8713_v62 = vadd.f32 %v2490_v43, %v8182_v24  ;;  %v6567_v38 = vpop.f32.mrb[78].mxu0  ;;  %v8732_v24 = vadd.f32 %v8729_v31, %v6566_v32 }
 0x71e   : > { %2527 = vmax.xlane.f32.xlu1 %v8710_v10  ;;  %v2493_v63 = vpop.f32.mrb[79].mxu0  ;;  %v8741_v52 = vadd.f32 %v8738_v44, %v6567_v38 }
 0x71f   : > { %2529 = vmax.xlane.f32.xlu0 %v8713_v62 }
 0x722   : > { %2523 = vmax.xlane.f32.xlu1 %v8723_v6 }
 0x726   : > { %2533 = vmax.xlane.f32.xlu1 %v8732_v24 }
 0x72a   : > { %2535 = vmax.xlane.f32.xlu1 %v8741_v52 }
 0x735   : > { %2812 = vrot.lane.b32.xlu0 %v8011_v56, %s7465_s3  ;;  %v8761_v56 = vld [vmem:[%s10824_s2 + $0x68] sm:$0xff] }
 0x73b   : > { %2810 = vrot.lane.b32.xlu1 %v7997_v4, %s7465_s3  ;;  %v8764_v4 = vadd.f32 %v8761_v56, %v2493_v63 }
 0x73f   : > { %2788 = vrot.lane.b32.xlu1 %v7918_v48, %s7465_s3  ;;  %v8795_v48 = vpop.permute.xlu1 %2806 }
 0x743   : > { %2792 = vrot.lane.b32.xlu1 %v7970_v46, %s7465_s3 }
 0x747   : > { %2796 = vrot.lane.b32.xlu1 %v8009_v18, %s7465_s3 }
 0x74b   : > { %2800 = vrot.lane.b32.xlu1 %v8033_v9, %s7465_s3 }
 0x74f   : > { %3085 = vrot.lane.b32.xlu1 %v7909_v40, %s7465_s3 }
 0x753   : > { %3093 = vrot.lane.b32.xlu1 %v7960_v26, %s7465_s3 }
 0x754   : > { %2531 = vmax.xlane.f32.xlu0 %v8764_v4 }
 0x76a   : > { %2814 = vrot.lane.b32.xlu0 %v8023_v28, %s7465_s3 }
 0x76e   : > { %2816 = vrot.lane.b32.xlu0 %v8035_v60, %s7465_s3 }
 0x772   : > { %2786 = vrot.lane.b32.xlu0 %v7893_v35, %s7465_s3  ;;  %v8787_v35 = vpop.permute.xlu0 %2804 }
 0x776   : > { %2790 = vrot.lane.b32.xlu0 %v7944_v29, %s7465_s3  ;;  %v8793_v40 = vpop.permute.xlu0 %2808 }
 0x777   : > { %2121 = vadd.xlane.f32.xlu1 %v8507_v2 }
 0x77a   : > { %2794 = vrot.lane.b32.xlu0 %v10857_v3, %s7465_s3 }
 0x77b   : > { %2125 = vadd.xlane.f32.xlu1 %v8516_v37 }
 0x77e   : > { %2798 = vrot.lane.b32.xlu0 %v10858_v34, %s7465_s3 }
 0x782   : > { %3083 = vrot.lane.b32.xlu0 %v10859_v14, %s7465_s3 }
 0x786   : > { %3087 = vrot.lane.b32.xlu0 %v10860_v57, %s7465_s3 }
 0x78a   : > { %3089 = vrot.lane.b32.xlu0 %v7934_v20, %s7465_s3 }
 0x78e   : > { %3091 = vrot.lane.b32.xlu0 %v7964_v36, %s7465_s3 }
 0x792   : > { %3095 = vrot.lane.b32.xlu0 %v10861_v22, %s7465_s3 }
 0x793   : > { %v2510_v29 = vpop.xlane.xlu0 %2509 }
 0x794   : > { %v2539_v20 = vsub.f32 %v8635_v15, %v2510_v29 }
 0x796   : > { %v2508_v26 = vpop.xlane.xlu1 %2507  ;;  %3097 = vrot.lane.b32.xlu0 %v7984_v59, %s7465_s3  ;;  %v2557_v34 = vmul.f32 1.442695, %v2539_v20 }
 0x797   : > { %v2538_v46 = vsub.f32 %v8644_v0, %v2508_v26  ;;  %v2506_v18 = vpop.xlane.xlu0 %2505 }
 0x798   : > { %v2537_v28 = vsub.f32 %v8652_v25, %v2506_v18 }
 0x799   : > { %v2555_v36 = vmul.f32 1.442695, %v2538_v46 }
 0x79a   : > { %v2553_v9 = vmul.f32 1.442695, %v2537_v28 }
 0x79b   : > { %7006 = vpow2.f32 %v2555_v36  ;;  %v2518_v60 = vpop.xlane.xlu1 %2517  ;;  %v2512_v3 = vpop.xlane.xlu0 %2511 }
 0x79c   : > { %7008 = vpow2.f32 %v2553_v9  ;;  %v2540_v14 = vsub.f32 %v8662_v51, %v2512_v3  ;;  %v2543_v22 = vsub.f32 %v8670_v47, %v2518_v60  ;;  %v2843_v3 = vsel %vm1443_vm0, %v8593_v33, 0 }
 0x79d   : > { %7010 = vpow2.f32 %v2557_v34 }
 0x79e   : > { %v2559_v57 = vmul.f32 1.442695, %v2540_v14  ;;  %v2565_v15 = vmul.f32 1.442695, %v2543_v22 }
 0x79f   : > { %v2514_v59 = vpop.xlane.xlu1 %2513  ;;  %v2516_v2 = vpop.xlane.xlu0 %2515 }
 0x7a0   : > { %v2541_v37 = vsub.f32 %v8683_v27, %v2514_v59  ;;  %v2542_v63 = vsub.f32 %v8675_v12, %v2516_v2  ;;  %7012 = vpow2.f32 %v2559_v57 }
 0x7a2   : > { %v2561_v38 = vmul.f32 1.442695, %v2541_v37  ;;  %v2563_v0 = vmul.f32 1.442695, %v2542_v63 }
 0x7a3   : > { %v2520_v25 = vpop.xlane.xlu1 %2519  ;;  %v2526_v26 = vpop.xlane.xlu0 %2525 }
 0x7a4   : > { %7014 = vpow2.f32 %v2561_v38  ;;  %v2544_v32 = vsub.f32 %v8693_v19, %v2520_v25  ;;  %v2547_v36 = vsub.f32 %v8696_v55, %v2526_v26 }
 0x7a5   : > { %v8809_v43 = vpop.eup %7006  ;;  %7016 = vpow2.f32 %v2563_v0 }
 0x7a6   : > { %v8811_v51 = vpop.eup %7008  ;;  %v2567_v47 = vmul.f32 1.442695, %v2544_v32  ;;  %7018 = vpow2.f32 %v2565_v15  ;;  %v2573_v22 = vmul.f32 1.442695, %v2547_v36  ;;  %v2852_v32 = vsel %vm1443_vm0, %v8793_v40, 0 }
 0x7a7   : > { %v2522_v29 = vpop.xlane.xlu1 %2521  ;;  %v2617_v27 = vpack.c.bf16 %v8809_v43, %v8811_v51  ;;  %v8815_v12 = vpop.eup %7010 }
 0x7a8   : > { %7020 = vpow2.f32 %v2567_v47  ;;  %v2545_v46 = vsub.f32 %v8706_v41, %v2522_v29 }
 0x7a9   : > { %6584 = vmatprep.mubr.bf16.mxu1 %v2617_v27 }
 0x7aa   : > { %v8818_v18 = vpop.eup %7012  ;;  %v2569_v60 = vmul.f32 1.442695, %v2545_v46 }
 0x7ab   : > { %v2528_v19 = vpop.xlane.xlu1 %2527  ;;  %v2618_v28 = vpack.c.bf16 %v8818_v18, %v8815_v12 }
 0x7ac   : > { %v2548_v20 = vsub.f32 %v8710_v10, %v2528_v19  ;;  %7022 = vpow2.f32 %v2569_v60 }
 0x7ad   : > { %6585 = vmatmul.mubr.bf16.vlgmr.msra.gmra.mrb[48].mxu1 %v2618_v28 }
 0x7ae   : > { %v8824_v9 = vpop.eup %7014  ;;  %v2575_v41 = vmul.f32 1.442695, %v2548_v20  ;;  %6601 = vmatpush3.bf16.xpose.msra.mxu1 %v2843_v3 }
 0x7af   : > { %v8828_v34 = vpop.eup %7016  ;;  %v2524_v14 = vpop.xlane.xlu1 %2523  ;;  %6737 = vmatprep.subr.msk.bf16.mxu1 %vm1443_vm0, %v8787_v35 }
 0x7b0   : > { %v2546_v10 = vsub.f32 %v8723_v6, %v2524_v14  ;;  %v2619_v55 = vpack.c.bf16 %v8828_v34, %v8824_v9  ;;  %v8835_v57 = vpop.eup %7018  ;;  %7024 = vpow2.f32 %v2575_v41  ;;  %v2846_v6 = vsel %vm1443_vm0, %v8787_v35, 0 }
 0x7b2   : > { %v8837_v59 = vpop.eup %7020  ;;  %v2571_v33 = vmul.f32 1.442695, %v2546_v10  ;;  %6588 = vmatprep.mubr.bf16.mxu1 %v2619_v55 }
 0x7b3   : > { %v2620_v2 = vpack.c.bf16 %v8837_v59, %v8835_v57  ;;  %v2534_v37 = vpop.xlane.xlu1 %2533 }
 0x7b4   : > { %7026 = vpow2.f32 %v2571_v33 }
 0x7b5   : > { %7028 = vpow2.f32 %v2573_v22  ;;  %2119 = vadd.xlane.f32.xlu0 %v8509_v8  ;;  %6589 = vmatmul.mubr.bf16.gmra.mrb[52].mxu1 %v2620_v2  ;;  %v2849_v8 = vsel %vm1443_vm0, %v8795_v48, 0 }
 0x7b6   : > { %6603 = vmatpush3.bf16.xpose.msra.mxu1 %v2846_v6  ;;  %v8847_v63 = vpop.eup %7022 }
 0x7b7   : > { %6738 = vmatprep.subr.msk.bf16.mxu1 %vm1443_vm0, %v8795_v48  ;;  %v2536_v25 = vpop.xlane.xlu1 %2535  ;;  %v2530_v48 = vpop.xlane.xlu0 %2529 }
 0x7b8   : > { %v2549_v46 = vsub.f32 %v8713_v62, %v2530_v48  ;;  %v2552_v19 = vsub.f32 %v8741_v52, %v2536_v25 }
 0x7b9   : > { %2123 = vadd.xlane.f32.xlu0 %v8513_v42 }
 0x7ba   : > { %v8849_v38 = vpop.eup %7024  ;;  %v2577_v20 = vmul.f32 1.442695, %v2549_v46  ;;  %v2583_v28 = vmul.f32 1.442695, %v2552_v19 }
 0x7bb   : > { %v2811_v47 = vpop.permute.xlu1 %2810  ;;  %v2813_v27 = vpop.permute.xlu0 %2812 }
 0x7bc   : > { %v2855_v29 = vsel %vm1443_vm0, %v2811_v47, 0  ;;  %v2858_v26 = vsel %vm1443_vm0, %v2813_v27, 0  ;;  %7030 = vpow2.f32 %v2577_v20  ;;  %v10884_v20 = vmov 0  }
 0x7bd   : > { %7032 = vpow2.f32 %v2583_v28 }
 0x7be   : > { %v8851_v0 = vpop.eup %7026  ;;  %6605 = vmatpush3.bf16.xpose.msra.mxu1 %v2849_v8 }
 0x7bf   : > { %v8855_v15 = vpop.eup %7028  ;;  %v2621_v35 = vpack.c.bf16 %v8851_v0, %v8847_v63  ;;  %6739 = vmatprep.subr.msk.bf16.mxu1 %vm1443_vm0, %v8793_v40  ;;  %v2551_v40 = vsub.f32 %v8732_v24, %v2534_v37  ;;  %v2789_v62 = vpop.permute.xlu1 %2788 }
 0x7c0   : > { %v2622_v42 = vpack.c.bf16 %v8849_v38, %v8855_v15 }
 0x7c1   : > { %6592 = vmatprep.mubr.bf16.mxu1 %v2621_v35  ;;  %v2581_v3 = vmul.f32 1.442695, %v2551_v40 }
 0x7c2   : > { %6593 = vmatmul.mubr.bf16.gmra.mrb[56].mxu1 %v2622_v42 }
 0x7c3   : > { %v2793_v24 = vpop.permute.xlu1 %2792 }
 0x7c6   : > { %6607 = vmatpush3.bf16.xpose.msra.mxu1 %v2852_v32  ;;  %v8876_v22 = vpop.eup %7030 }
 0x7c7   : > { %6740 = vmatprep.subr.msk.bf16.mxu1 %vm1443_vm0, %v2811_v47  ;;  %v8879_v33 = vpop.eup %7032  ;;  %v2797_v42 = vpop.permute.xlu1 %2796 }
 0x7cb   : > { %v2801_v32 = vpop.permute.xlu1 %2800 }
 0x7ce   : > { %6609 = vmatpush3.bf16.xpose.msra.mxu1 %v2855_v29 }
 0x7cf   : > { %6741 = vmatprep.subr.msk.bf16.mxu1 %vm1443_vm0, %v2813_v27  ;;  %v3086_v29 = vpop.permute.xlu1 %3085 }
 0x7d3   : > { %v3094_v19 = vpop.permute.xlu1 %3093 }
 0x7d6   : > { %6611 = vmatpush3.bf16.xpose.msra.mxu1 %v2858_v26 }
 0x7e1   : > { %v2532_v36 = vpop.xlane.xlu0 %2531 }
 0x7e2   : > { %v2550_v60 = vsub.f32 %v8764_v4, %v2532_v36 }
 0x7e4   : > { %v2579_v41 = vmul.f32 1.442695, %v2550_v60 }
 0x7e5   : > { %v2815_v14 = vpop.permute.xlu0 %2814 }
 0x7e6   : > { %7034 = vpow2.f32 %v2579_v41  ;;  %6742 = vmatprep.subr.msk.bf16.mxu1 %vm1443_vm0, %v2815_v14  ;;  %v2861_v10 = vsel %vm1443_vm0, %v2815_v14, 0 }
 0x7e7   : > { %7036 = vpow2.f32 %v2581_v3  ;;  %6613 = vmatpush3.bf16.xpose.msra.mxu1 %v2861_v10 }
 0x7e9   : > { %v2817_v52 = vpop.permute.xlu0 %2816 }
 0x7ea   : > { %6743 = vmatprep.subr.msk.bf16.mxu1 %vm1443_vm0, %v2817_v52  ;;  %v2864_v4 = vsel %vm1443_vm0, %v2817_v52, 0 }
 0x7ed   : > { %v2787_v55 = vpop.permute.xlu0 %2786 }
 0x7ef   : > { %6615 = vmatpush3.bf16.xpose.msra.mxu1 %v2864_v4 }
 0x7f0   : > { %v8881_v2 = vpop.eup %7034 }
 0x7f1   : > { %v8883_v6 = vpop.eup %7036  ;;  %v2791_v37 = vpop.permute.xlu0 %2790  ;;  %v2623_v8 = vpack.c.bf16 %v8881_v2, %v8876_v22 }
 0x7f2   : > { %v2624_v35 = vpack.c.bf16 %v8879_v33, %v8883_v6 }
 0x7f3   : > { %6596 = vmatprep.mubr.bf16.mxu1 %v2623_v8 }
 0x7f4   : > { %6597 = vmatmul.mubr.bf16.gmra.mrb[60].mxu1 %v2624_v35 }
 0x7f5   : > { %6616 = vmatprep.mubr.msk.bf16.mxu1 %vm1443_vm0, %v2787_v55  ;;  %v2795_v25 = vpop.permute.xlu0 %2794 }
 0x7f9   : > { %v2799_v47 = vpop.permute.xlu0 %2798 }
 0x7fc   : > { %6617 = vmatmul.mubr.msk.bf16.vlgmr.msra.gmra.mrb[64].mxu1 %vm1443_vm0, %v2789_v62 }
 0x7fd   : > { %6620 = vmatprep.mubr.msk.bf16.mxu1 %vm1443_vm0, %v2791_v37  ;;  %v3084_v48 = vpop.permute.xlu0 %3083 }
 0x7fe   : > { %6632 = vmatprep.subr.bf16.mxu0 %v3084_v48 }
 0x7ff   : > { %6633 = vmatpush3.bf16.msra.mxu0 %v3084_v48 }
 0x800   : > { %6634 = vmatprep.subr.bf16.mxu0 %v3086_v29 }
 0x801   : > { %v3088_v27 = vpop.permute.xlu0 %3087 }
 0x803   : > { %6635 = vmatpush3.bf16.msra.mxu0 %v3086_v29 }
 0x804   : > { %6621 = vmatmul.mubr.msk.bf16.gmra.mrb[68].mxu1 %vm1443_vm0, %v2793_v24  ;;  %6636 = vmatprep.subr.bf16.mxu0 %v3088_v27  ;;  %v2122_v36 = vpop.xlane.xlu1 %2121 }
 0x805   : > { %6624 = vmatprep.mubr.msk.bf16.mxu1 %vm1443_vm0, %v2795_v25  ;;  %v3090_v26 = vpop.permute.xlu0 %3089  ;;  %7038 = vrcp.f32 %v2122_v36 }
 0x807   : > { %6637 = vmatpush3.bf16.msra.mxu0 %v3088_v27 }
 0x808   : > { %6638 = vmatprep.subr.bf16.mxu0 %v3090_v26  ;;  %v2126_v60 = vpop.xlane.xlu1 %2125 }
 0x809   : > { %v3092_v46 = vpop.permute.xlu0 %3091 }
 0x80b   : > { %6639 = vmatpush3.bf16.msra.mxu0 %v3090_v26 }
 0x80c   : > { %6625 = vmatmul.mubr.msk.bf16.gmra.mrb[72].mxu1 %vm1443_vm0, %v2797_v42  ;;  %6640 = vmatprep.subr.bf16.mxu0 %v3092_v46 }
 0x80d   : > { %6628 = vmatprep.mubr.msk.bf16.mxu1 %vm1443_vm0, %v2799_v47  ;;  %v3096_v40 = vpop.permute.xlu0 %3095 }
 0x80f   : > { %6641 = vmatpush3.bf16.msra.mxu0 %v3092_v46  ;;  %v7039_v14 = vpop.eup %7038 }
 0x810   : > { %6642 = vmatprep.subr.bf16.mxu0 %v3094_v19  ;;  %v8902_v52 = vmul.f32 %v7039_v14, %v8603_v54 }
 0x811   : > { %v3098_v28 = vpop.permute.xlu0 %3097 }
 0x813   : > { %6643 = vmatpush3.bf16.msra.mxu0 %v3094_v19 }
 0x814   : > { %6629 = vmatmul.mubr.msk.bf16.gmra.mrb[76].mxu1 %vm1443_vm0, %v2801_v32  ;;  %6644 = vmatprep.subr.bf16.mxu0 %v3096_v40 }
 0x815   : > { %4042 = vmatprep.mubr.bf16.mxu1 %v10884_v20 }
 0x817   : > { %6645 = vmatpush3.bf16.msra.mxu0 %v3096_v40 }
 0x818   : > { %6646 = vmatprep.subr.bf16.mxu0 %v3098_v28 }
 0x81b   : > { %6647 = vmatpush3.bf16.msra.mxu0 %v3098_v28 }
 0x842   : > { %v2120_v3 = vpop.xlane.xlu0 %2119 }
 0x843   : > { %7040 = vrcp.f32 %v2120_v3 }
 0x844   : > { %7042 = vrcp.f32 %v2126_v60 }
 0x846   : > { %v2124_v41 = vpop.xlane.xlu0 %2123 }
 0x847   : > { %7044 = vrcp.f32 %v2124_v41 }
 0x84d   : > { %v7041_v10 = vpop.eup %7040 }
 0x84e   : > { %v8899_v62 = vmul.f32 %v7041_v10, %v8599_v30  ;;  %v7043_v24 = vpop.eup %7042 }
 0x84f   : > { %v8910_v8 = vmul.f32 %v7043_v24, %v8601_v13 }
 0x851   : > { %v7045_v4 = vpop.eup %7044 }
 0x852   : > { %v8907_v37 = vmul.f32 %v7045_v4, %v8597_v39 }
 0x880   : > { %v8914_v42 = vpop.f32.mrb[48].mxu1 }
 0x881   : > { %v8916_v30 = vpop.f32.mrb[49].mxu1 }
 0x882   : > { %v8918_v54 = vpop.f32.mrb[50].mxu1 }
 0x883   : > { %v8920_v25 = vpop.f32.mrb[51].mxu1 }
 0x888   : > { %v8922_v32 = vpop.f32.mrb[52].mxu1 }
 0x889   : > { %v8924_v47 = vpop.f32.mrb[53].mxu1 }
 0x88a   : > { %v8926_v39 = vpop.f32.mrb[54].mxu1 }
 0x88b   : > { %v8928_v48 = vpop.f32.mrb[55].mxu1 }
 0x895   : > { %v8930_v13 = vpop.f32.mrb[56].mxu1 }
 0x896   : > { %v8932_v29 = vpop.f32.mrb[57].mxu1 }
 0x897   : > { %v8934_v27 = vpop.f32.mrb[58].mxu1 }
 0x898   : > { %v8936_v26 = vpop.f32.mrb[59].mxu1 }
 0x8c7   : > { %v8938_v46 = vpop.f32.mrb[60].mxu1 }
 0x8c8   : > { %v8940_v19 = vpop.f32.mrb[61].mxu1 }
 0x8c9   : > { %v8942_v40 = vpop.f32.mrb[62].mxu1 }
 0x8ca   : > { %v8944_v28 = vpop.f32.mrb[63].mxu1 }
 0x8cf   : > { %v6618_v36 = vpop.f32.mrb[64].mxu1 }
 0x8d0   : > { %v8947_v60 = vadd.f32 %v8632_v53, %v6618_v36  ;;  %v2900_v3 = vpop.f32.mrb[65].mxu1 }
 0x8d1   : > { %v8950_v41 = vadd.f32 %v8649_v1, %v2900_v3  ;;  %v6619_v14 = vpop.f32.mrb[66].mxu1 }
 0x8d2   : > { %2967 = vmax.xlane.f32.xlu1 %v8947_v60  ;;  %v2903_v10 = vpop.f32.mrb[67].mxu1  ;;  %v8959_v1 = vadd.f32 %v8659_v5, %v6619_v14 }
 0x8d3   : > { %2963 = vmax.xlane.f32.xlu0 %v8950_v41 }
 0x8d6   : > { %2587 = vadd.xlane.f32.xlu1 %v8809_v43  ;;  %v8964_v43 = vadd.f32 %v8641_v61, %v2903_v10 }
 0x8d7   : > { %2585 = vadd.xlane.f32.xlu0 %v8811_v51  ;;  %v6622_v24 = vpop.f32.mrb[68].mxu1 }
 0x8d8   : > { %v2916_v4 = vpop.f32.mrb[69].mxu1 }
 0x8d9   : > { %v6623_v35 = vpop.f32.mrb[70].mxu1  ;;  %v8967_v3 = vadd.f32 %v8680_v16, %v2916_v4  ;;  %v7370_v16 = vld [vmem:[%s10824_s2 + $0x50] sm:$0xff]  ;;  %v7372_v4 = vld [vmem:[%s10824_s2 + $0x58] sm:$0xff] }
 0x8da   : > { %2591 = vadd.xlane.f32.xlu1 %v8818_v18  ;;  %v2919_v53 = vpop.f32.mrb[71].mxu1 }
 0x8db   : > { %2589 = vadd.xlane.f32.xlu0 %v8815_v12 }
 0x8de   : > { %2969 = vmax.xlane.f32.xlu1 %v8959_v1 }
 0x8df   : > { %2127 = vadd.xlane.f32.xlu0 %v8522_v45  ;;  %v6626_v36 = vpop.f32.mrb[72].mxu1  ;;  %v8974_v45 = vadd.f32 %v8667_v11, %v6622_v24  ;;  %v7371_v11 = vld [vmem:[%s10824_s2 + $0x28] sm:$0xff] }
 0x8e0   : > { %v2932_v51 = vpop.f32.mrb[73].mxu1  ;;  %v8979_v12 = vadd.f32 %v7370_v16, %v6626_v36  ;;  %v8994_v24 = vadd.f32 %v7371_v11, %v2919_v53  ;;  %v10897_v53 = vld [vmem:[#allocation26_spill] sm:$0xff] }
 0x8e1   : > { %v6627_v55 = vpop.f32.mrb[74].mxu1 }
 0x8e2   : > { %2965 = vmax.xlane.f32.xlu1 %v8964_v43  ;;  %v2935_v18 = vpop.f32.mrb[75].mxu1  ;;  %v8999_v36 = vadd.f32 %v7372_v4, %v6627_v55 }
 0x8e3   : > { %2971 = vmax.xlane.f32.xlu0 %v8967_v3 }
 0x8e6   : > { %2129 = vadd.xlane.f32.xlu1 %v8526_v50  ;;  %v8984_v50 = vadd.f32 %v8690_v49, %v6623_v35  ;;  %v10896_v35 = vld [vmem:[#allocation18_spill] sm:$0xff] }
 0x8e7   : > { %2131 = vadd.xlane.f32.xlu0 %v8533_v23  ;;  %v6630_v5 = vpop.f32.mrb[76].mxu1  ;;  %v8987_v23 = vadd.f32 %v8703_v21, %v2932_v51  ;;  %v9013_v21 = vadd.f32 %v8720_v7, %v2935_v18  ;;  %v10899_v51 = vld [vmem:[#allocation23_spill] sm:$0xff] }
 0x8e8   : > { %v2948_v61 = vpop.f32.mrb[77].mxu1  ;;  %v9008_v49 = vadd.f32 %v8729_v31, %v6630_v5  ;;  %v10885_v31 = vld [vmem:[#allocation16_spill] sm:$0xff] }
 0x8e9   : > { %v6631_v14 = vpop.f32.mrb[78].mxu1 }
 0x8ea   : > { %2975 = vmax.xlane.f32.xlu1 %v8974_v45  ;;  %v2951_v10 = vpop.f32.mrb[79].mxu1  ;;  %v9027_v7 = vadd.f32 %v8738_v44, %v6631_v14  ;;  %v10890_v44 = vld [vmem:[#allocation10_spill] sm:$0xff]  ;;  %v10902_v14 = vld [vmem:[#allocation24_spill] sm:$0xff] }
 0x8eb   : > { %2983 = vmax.xlane.f32.xlu0 %v8979_v12 }
 0x8ee   : > { %2977 = vmax.xlane.f32.xlu1 %v8984_v50 }
 0x8ef   : > { %2979 = vmax.xlane.f32.xlu0 %v8987_v23 }
 0x8f2   : > { %2973 = vmax.xlane.f32.xlu1 %v8994_v24 }
 0x8f3   : > { %2985 = vmax.xlane.f32.xlu0 %v8999_v36 }
 0x8f6   : > { %2133 = vadd.xlane.f32.xlu1 %v8535_v58  ;;  %v7373_v58 = vld [vmem:[%s10824_s2 + $0x60] sm:$0xff] }
 0x8f7   : > { %2593 = vadd.xlane.f32.xlu0 %v8824_v9  ;;  %v9018_v55 = vadd.f32 %v7373_v58, %v2948_v61  ;;  %v10886_v9 = vld [vmem:[#allocation17_spill] sm:$0xff] }
 0x8fa   : > { %2595 = vadd.xlane.f32.xlu1 %v8828_v34  ;;  %v10887_v34 = vld [vmem:[#allocation11_spill] sm:$0xff] }
 0x8fb   : > { %2597 = vadd.xlane.f32.xlu0 %v8835_v57  ;;  %v9032_v57 = vadd.f32 %v8761_v56, %v2951_v10  ;;  %v10892_v56 = vld [vmem:[#allocation19_spill] sm:$0xff] }
 0x8fe   : > { %2599 = vadd.xlane.f32.xlu1 %v8837_v59  ;;  %v10889_v59 = vld [vmem:[#allocation12_spill] sm:$0xff] }
 0x8ff   : > { %2991 = vmax.xlane.f32.xlu0 %v9008_v49 }
 0x902   : > { %2981 = vmax.xlane.f32.xlu1 %v9013_v21 }
 0x903   : > { %2987 = vmax.xlane.f32.xlu0 %v9018_v55 }
 0x906   : > { %2137 = vadd.xlane.f32.xlu1 %v8547_v17  ;;  %v10888_v17 = vld [vmem:[#allocation13_spill] sm:$0xff] }
 0x907   : > { %2135 = vadd.xlane.f32.xlu0 %v10885_v31 }
 0x90a   : > { %2141 = vadd.xlane.f32.xlu1 %v10886_v9 }
 0x90b   : > { %2139 = vadd.xlane.f32.xlu0 %v10887_v34 }
 0x90e   : > { %2993 = vmax.xlane.f32.xlu1 %v9027_v7 }
 0x90f   : > { %2601 = vadd.xlane.f32.xlu0 %v8847_v63  ;;  %v10891_v63 = vld [vmem:[#allocation15_spill] sm:$0xff] }
 0x912   : > { %2989 = vmax.xlane.f32.xlu1 %v9032_v57 }
 0x913   : > { %2605 = vadd.xlane.f32.xlu0 %v8855_v15  ;;  %v10894_v15 = vld [vmem:[#allocation20_spill] sm:$0xff] }
 0x916   : > { %2603 = vadd.xlane.f32.xlu1 %v8851_v0  ;;  %v10893_v0 = vld [vmem:[#allocation21_spill] sm:$0xff] }
 0x917   : > { %2143 = vadd.xlane.f32.xlu0 %v10888_v17 }
 0x91a   : > { %2607 = vadd.xlane.f32.xlu1 %v8849_v38  ;;  %v10895_v38 = vld [vmem:[#allocation22_spill] sm:$0xff] }
 0x91b   : > { %2147 = vadd.xlane.f32.xlu0 %v10889_v59 }
 0x91e   : > { %2145 = vadd.xlane.f32.xlu1 %v10890_v44 }
 0x91f   : > { %2609 = vadd.xlane.f32.xlu0 %v8876_v22  ;;  %v10898_v22 = vld [vmem:[#allocation25_spill] sm:$0xff] }
 0x922   : > { %2149 = vadd.xlane.f32.xlu1 %v10891_v63 }
 0x923   : > { %2613 = vadd.xlane.f32.xlu0 %v8883_v6 }
 0x926   : > { %2611 = vadd.xlane.f32.xlu1 %v8881_v2  ;;  %v10900_v2 = vpack.c.bf16 %v8902_v52, %v8899_v62 }
 0x927   : > { %1669 = vadd.xlane.f32.xlu0 %v10892_v56 }
 0x92a   : > { %2615 = vadd.xlane.f32.xlu1 %v8879_v33  ;;  %v10901_v33 = vpack.c.bf16 %v8910_v8, %v8907_v37 }
 0x92b   : > { %1673 = vadd.xlane.f32.xlu0 %v10893_v0 }
 0x92e   : > { %1671 = vadd.xlane.f32.xlu1 %v10894_v15 }
 0x92f   : > { %1677 = vadd.xlane.f32.xlu0 %v10895_v38 }
 0x932   : > { %1675 = vadd.xlane.f32.xlu1 %v10896_v35 }
 0x933   : > { %1681 = vadd.xlane.f32.xlu0 %v10897_v53 }
 0x936   : > { %1679 = vadd.xlane.f32.xlu1 %v10898_v22 }
 0x93a   : > { %1683 = vadd.xlane.f32.xlu1 %v10899_v51 }
 0x949   : > { %3252 = vrot.lane.b32.xlu0 %v10900_v2, %s7465_s3 }
 0x94b   : > { %3254 = vrot.lane.b32.xlu1 %v10901_v33, %s7465_s3 }
 0x95f   : > { %v2968_v6 = vpop.xlane.xlu1 %2967 }
 0x960   : > { %v2964_v18 = vpop.xlane.xlu0 %2963  ;;  %v2997_v37 = vsub.f32 %v8947_v60, %v2968_v6 }
 0x961   : > { %v2995_v11 = vsub.f32 %v8950_v41, %v2964_v18 }
 0x962   : > { %v3015_v44 = vmul.f32 1.442695, %v2997_v37 }
 0x963   : > { %v2588_v5 = vpop.xlane.xlu1 %2587  ;;  %v3011_v8 = vmul.f32 1.442695, %v2995_v11 }
 0x964   : > { %v2586_v61 = vpop.xlane.xlu0 %2585  ;;  %7046 = vrcp.f32 %v2588_v5 }
 0x965   : > { %7048 = vrcp.f32 %v2586_v61 }
 0x967   : > { %v2592_v16 = vpop.xlane.xlu1 %2591 }
 0x968   : > { %7050 = vrcp.f32 %v2592_v16  ;;  %1687 = vadd.xlane.f32.xlu0 %v10902_v14  ;;  %v2590_v10 = vpop.xlane.xlu0 %2589 }
 0x969   : > { %7052 = vrcp.f32 %v2590_v10 }
 0x96a   : > { %7054 = vpow2.f32 %v3011_v8  ;;  %v10904_v8 = vld [vmem:[#allocation52_spill] sm:$0xff] }
 0x96b   : > { %v2970_v62 = vpop.xlane.xlu1 %2969 }
 0x96c   : > { %v2998_v52 = vsub.f32 %v8959_v1, %v2970_v62  ;;  %v2128_v4 = vpop.xlane.xlu0 %2127 }
 0x96d   : > { %7056 = vrcp.f32 %v2128_v4 }
 0x96e   : > { %v3017_v58 = vmul.f32 1.442695, %v2998_v52  ;;  %v7047_v9 = vpop.eup %7046 }
 0x96f   : > { %v2966_v31 = vpop.xlane.xlu1 %2965  ;;  %v7049_v59 = vpop.eup %7048  ;;  %v2763_v63 = vmul.f32 %v7047_v9, %v8920_v25 }
 0x970   : > { %v2996_v34 = vsub.f32 %v8964_v43, %v2966_v31  ;;  %v2972_v17 = vpop.xlane.xlu0 %2971  ;;  %v2762_v1 = vmul.f32 %v7049_v59, %v8916_v30  ;;  %7058 = vpow2.f32 %v3017_v58 }
 0x971   : > { %v2999_v51 = vsub.f32 %v8967_v3, %v2972_v17 }
 0x972   : > { %v7051_v41 = vpop.eup %7050  ;;  %v3013_v56 = vmul.f32 1.442695, %v2996_v34  ;;  %v2778_v38 = vpack.c.bf16 %v2763_v63, %v2762_v1 }
 0x973   : > { %v7053_v0 = vpop.eup %7052  ;;  %v2130_v60 = vpop.xlane.xlu1 %2129  ;;  %v2765_v15 = vmul.f32 %v7051_v41, %v8918_v54 }
 0x974   : > { %7060 = vpow2.f32 %v3013_v56  ;;  %v2132_v35 = vpop.xlane.xlu0 %2131  ;;  %v2764_v43 = vmul.f32 %v7053_v0, %v8914_v42  ;;  %3276 = vrot.lane.b32.xlu1 %v2778_v38, %s7464_s26  ;;  %v9074_v30 = vpop.eup %7054  ;;  %v3019_v42 = vmul.f32 1.442695, %v2999_v51 }
 0x975   : > { %7062 = vpow2.f32 %v3015_v44 }
 0x976   : > { %7064 = vrcp.f32 %v2130_v60  ;;  %v2779_v25 = vpack.c.bf16 %v2765_v15, %v2764_v43 }
 0x977   : > { %v2976_v53 = vpop.xlane.xlu1 %2975  ;;  %v7057_v54 = vpop.eup %7056  ;;  %7066 = vpow2.f32 %v3019_v42  ;;  %v10906_v42 = vld [vmem:[#allocation51_spill] sm:$0xff] }
 0x978   : > { %v2984_v22 = vpop.xlane.xlu0 %2983  ;;  %3278 = vrot.lane.b32.xlu1 %v2779_v25, %s7464_s26  ;;  %v3001_v5 = vsub.f32 %v8974_v45, %v2976_v53  ;;  %v10903_v45 = vld [vmem:[#allocation50_spill] sm:$0xff]  ;;  %7068 = vrcp.f32 %v2132_v35 }
 0x979   : > { %v9090_v37 = vmul.f32 %v7057_v54, %v10903_v45  ;;  %v3005_v15 = vsub.f32 %v8979_v12, %v2984_v22  ;;  %v10905_v12 = vld [vmem:[#allocation14_spill] sm:$0xff] }
 0x97a   : > { %v9077_v18 = vpop.eup %7058  ;;  %v3023_v4 = vmul.f32 1.442695, %v3001_v5 }
 0x97b   : > { %v2978_v2 = vpop.xlane.xlu1 %2977 }
 0x97c   : > { %v3002_v33 = vsub.f32 %v8984_v50, %v2978_v2  ;;  %v2980_v6 = vpop.xlane.xlu0 %2979 }
 0x97d   : > { %v3003_v44 = vsub.f32 %v8987_v23, %v2980_v6  ;;  %v3031_v6 = vmul.f32 1.442695, %v3005_v15 }
 0x97e   : > { %v9080_v61 = vpop.eup %7060  ;;  %v3025_v14 = vmul.f32 1.442695, %v3002_v33 }
 0x97f   : > { %v9082_v16 = vpop.eup %7062  ;;  %v2974_v3 = vpop.xlane.xlu1 %2973  ;;  %v3075_v10 = vpack.c.bf16 %v9080_v61, %v9074_v30  ;;  %v3027_v35 = vmul.f32 1.442695, %v3003_v44 }
 0x980   : > { %v7065_v11 = vpop.eup %7064  ;;  %v3000_v62 = vsub.f32 %v8994_v24, %v2974_v3  ;;  %v2986_v52 = vpop.xlane.xlu0 %2985  ;;  %v3076_v50 = vpack.c.bf16 %v9077_v18, %v9082_v16  ;;  %7070 = vpow2.f32 %v3025_v14 }
 0x981   : > { %6648 = vmatprep.mubr.bf16.mxu0 %v3075_v10  ;;  %v9093_v58 = vmul.f32 %v7065_v11, %v10904_v8  ;;  %v9098_v63 = vpop.eup %7066  ;;  %v3006_v41 = vsub.f32 %v8999_v36, %v2986_v52 }
 0x982   : > { %v3021_v31 = vmul.f32 1.442695, %v3000_v62  ;;  %6649 = vmatmul.mubr.bf16.vlgmr.msra.gmra.mrb[80].mxu0 %v3076_v50  ;;  %v7069_v1 = vpop.eup %7068 }
 0x983   : > { %v2134_v9 = vpop.xlane.xlu1 %2133  ;;  %v2322_v24 = vpack.c.bf16 %v9093_v58, %v9090_v37  ;;  %v3033_v25 = vmul.f32 1.442695, %v3006_v41  ;;  %v2310_v22 = vmul.f32 %v7069_v1, %v10905_v12  ;;  %v10909_v12 = vld [vmem:[#allocation28_spill] sm:$0xff] }
 0x984   : > { %7072 = vpow2.f32 %v3021_v31  ;;  %v2594_v34 = vpop.xlane.xlu0 %2593 }
 0x985   : > { %7074 = vpow2.f32 %v3023_v4 }
 0x986   : > { %7076 = vrcp.f32 %v2134_v9 }
 0x987   : > { %7078 = vrcp.f32 %v2594_v34  ;;  %v2596_v17 = vpop.xlane.xlu1 %2595 }
 0x988   : > { %7080 = vrcp.f32 %v2596_v17  ;;  %v2598_v59 = vpop.xlane.xlu0 %2597 }
 0x989   : > { %7082 = vrcp.f32 %v2598_v59 }
 0x98a   : > { %v9101_v60 = vpop.eup %7070 }
 0x98b   : > { %v2600_v56 = vpop.xlane.xlu1 %2599 }
 0x98c   : > { %7084 = vrcp.f32 %v2600_v56  ;;  %v2992_v0 = vpop.xlane.xlu0 %2991 }
 0x98d   : > { %7086 = vpow2.f32 %v3027_v35  ;;  %v3009_v8 = vsub.f32 %v9008_v49, %v2992_v0  ;;  %v10907_v0 = vld [vmem:[#allocation27_spill] sm:$0xff] }
 0x98e   : > { %v9104_v38 = vpop.eup %7072  ;;  %7088 = vpow2.f32 %v3033_v25 }
 0x98f   : > { %v9106_v43 = vpop.eup %7074  ;;  %v2982_v23 = vpop.xlane.xlu1 %2981  ;;  %v3077_v53 = vpack.c.bf16 %v9104_v38, %v9098_v63  ;;  %v3039_v59 = vmul.f32 1.442695, %v3009_v8 }
 0x990   : > { %v7077_v51 = vpop.eup %7076  ;;  %v3004_v36 = vsub.f32 %v9013_v21, %v2982_v23  ;;  %v2988_v2 = vpop.xlane.xlu0 %2987  ;;  %v3078_v54 = vpack.c.bf16 %v9101_v60, %v9106_v43 }
 0x991   : > { %v7079_v33 = vpop.eup %7078  ;;  %6652 = vmatprep.mubr.bf16.mxu0 %v3077_v53  ;;  %v2311_v5 = vmul.f32 %v7077_v51, %v10906_v42 }
 0x992   : > { %v7081_v14 = vpop.eup %7080  ;;  %v3029_v3 = vmul.f32 1.442695, %v3004_v36  ;;  %6653 = vmatmul.mubr.bf16.gmra.mrb[84].mxu0 %v3078_v54  ;;  %v2766_v21 = vmul.f32 %v7079_v33, %v8924_v47 }
 0x993   : > { %v2138_v10 = vpop.xlane.xlu1 %2137  ;;  %v2323_v11 = vpack.c.bf16 %v2311_v5, %v2310_v22  ;;  %v2767_v62 = vmul.f32 %v7081_v14, %v8928_v48  ;;  %v7083_v52 = vpop.eup %7082  ;;  %v3007_v48 = vsub.f32 %v9018_v55, %v2988_v2  ;;  %v10908_v2 = vld [vmem:[#allocation56_spill] sm:$0xff]  ;;  %v10910_v22 = vld [vmem:[#allocation54_spill] sm:$0xff]  ;;  %v10911_v14 = vld [vmem:[#allocation55_spill] sm:$0xff] }
 0x994   : > { %7090 = vpow2.f32 %v3029_v3  ;;  %v2136_v50 = vpop.xlane.xlu0 %2135  ;;  %v9120_v9 = vmul.f32 %v7083_v52, %v8922_v32  ;;  %v10913_v52 = vld [vmem:[#allocation29_spill] sm:$0xff] }
 0x995   : > { %7092 = vpow2.f32 %v3031_v6  ;;  %3258 = vrot.lane.b32.xlu0 %v2323_v11, %s7465_s3  ;;  %v2780_v4 = vpack.c.bf16 %v2767_v62, %v2766_v21  ;;  %v3035_v41 = vmul.f32 1.442695, %v3007_v48  ;;  %v10912_v21 = vld [vmem:[#allocation53_spill] sm:$0xff] }
 0x996   : > { %v7085_v45 = vpop.eup %7084  ;;  %7094 = vrcp.f32 %v2138_v10 }
 0x997   : > { %7096 = vrcp.f32 %v2136_v50  ;;  %v2142_v31 = vpop.xlane.xlu1 %2141  ;;  %v9123_v47 = vmul.f32 %v7085_v45, %v8926_v39  ;;  %v9129_v44 = vpop.eup %7086 }
 0x998   : > { %7098 = vrcp.f32 %v2142_v31  ;;  %v2140_v34 = vpop.xlane.xlu0 %2139  ;;  %v9132_v39 = vpop.eup %7088 }
 0x999   : > { %3280 = vrot.lane.b32.xlu0 %v2780_v4, %s7464_s26  ;;  %7100 = vrcp.f32 %v2140_v34  ;;  %v2781_v17 = vpack.c.bf16 %v9123_v47, %v9120_v9 }
 0x99a   : > { %7102 = vpow2.f32 %v3039_v59 }
 0x99b   : > { %v2994_v49 = vpop.xlane.xlu1 %2993  ;;  %7104 = vpow2.f32 %v3035_v41 }
 0x99c   : > { %v3010_v32 = vsub.f32 %v9027_v7, %v2994_v49  ;;  %v2602_v56 = vpop.xlane.xlu0 %2601  ;;  %1685 = vadd.xlane.f32.xlu1 %v10907_v0 }
 0x99d   : > { %7106 = vrcp.f32 %v2602_v56 }
 0x99e   : > { %v9134_v1 = vpop.eup %7090  ;;  %v3041_v55 = vmul.f32 1.442695, %v3010_v32 }
 0x99f   : > { %v9137_v15 = vpop.eup %7092  ;;  %v2990_v35 = vpop.xlane.xlu1 %2989  ;;  %v3079_v25 = vpack.c.bf16 %v9134_v1, %v9129_v44 }
 0x9a0   : > { %v7095_v23 = vpop.eup %7094  ;;  %v3008_v53 = vsub.f32 %v9032_v57, %v2990_v35  ;;  %v2606_v7 = vpop.xlane.xlu0 %2605  ;;  %v3080_v51 = vpack.c.bf16 %v9132_v39, %v9137_v15  ;;  %7108 = vpow2.f32 %v3041_v55  ;;  %1689 = vadd.xlane.f32.xlu1 %v10909_v12 }
 0x9a1   : > { %v7097_v36 = vpop.eup %7096  ;;  %6656 = vmatprep.mubr.bf16.mxu0 %v3079_v25  ;;  %v9145_v54 = vmul.f32 %v7095_v23, %v10908_v2  ;;  %7110 = vrcp.f32 %v2606_v7 }
 0x9a2   : > { %v7099_v33 = vpop.eup %7098  ;;  %v3037_v6 = vmul.f32 1.442695, %v3008_v53  ;;  %6657 = vmatmul.mubr.bf16.gmra.mrb[88].mxu0 %v3080_v51  ;;  %v9149_v42 = vmul.f32 %v7097_v36, %v10910_v22  ;;  %v10914_v51 = vld [vmem:[#allocation58_spill] sm:$0xff] }
 0x9a3   : > { %v7101_v57 = vpop.eup %7100  ;;  %v2604_v5 = vpop.xlane.xlu1 %2603  ;;  %v9152_v3 = vmul.f32 %v7099_v33, %v10911_v14 }
 0x9a4   : > { %7112 = vpow2.f32 %v3037_v6  ;;  %v2144_v10 = vpop.xlane.xlu0 %2143  ;;  %v2324_v11 = vpack.c.bf16 %v9145_v54, %v9149_v42  ;;  %v9157_v62 = vmul.f32 %v7101_v57, %v10912_v21  ;;  %1691 = vadd.xlane.f32.xlu1 %v10913_v52  ;;  %v9162_v8 = vpop.eup %7102  ;;  %v10915_v57 = vld [vmem:[#allocation57_spill] sm:$0xff] }
 0x9a5   : > { %7114 = vrcp.f32 %v2604_v5  ;;  %v9164_v31 = vpop.eup %7104 }
 0x9a6   : > { %7116 = vrcp.f32 %v2144_v10  ;;  %v2325_v50 = vpack.c.bf16 %v9152_v3, %v9157_v62 }
 0x9a7   : > { %v2608_v4 = vpop.xlane.xlu1 %2607  ;;  %v7107_v48 = vpop.eup %7106 }
 0x9a8   : > { %7118 = vrcp.f32 %v2608_v4  ;;  %v2148_v45 = vpop.xlane.xlu0 %2147  ;;  %v9175_v53 = vmul.f32 %v7107_v48, %v8932_v29 }
 0x9a9   : > { %7120 = vrcp.f32 %v2148_v45 }
 0x9aa   : > { %v9166_v59 = vpop.eup %7108 }
 0x9ab   : > { %v2146_v34 = vpop.xlane.xlu1 %2145  ;;  %v7111_v41 = vpop.eup %7110  ;;  %v3082_v23 = vpack.c.bf16 %v9166_v59, %v9162_v8 }
 0x9ac   : > { %7122 = vrcp.f32 %v2146_v34  ;;  %v2610_v49 = vpop.xlane.xlu0 %2609  ;;  %v9186_v22 = vmul.f32 %v7111_v41, %v8930_v13  ;;  %v10917_v41 = vld [vmem:[#allocation59_spill] sm:$0xff] }
 0x9ad   : > { %7124 = vrcp.f32 %v2610_v49 }
 0x9ae   : > { %v9168_v32 = vpop.eup %7112 }
 0x9af   : > { %v7115_v56 = vpop.eup %7114  ;;  %v2150_v55 = vpop.xlane.xlu1 %2149  ;;  %v3081_v0 = vpack.c.bf16 %v9168_v32, %v9164_v31 }
 0x9b0   : > { %v7117_v35 = vpop.eup %7116  ;;  %7126 = vrcp.f32 %v2150_v55  ;;  %v2614_v25 = vpop.xlane.xlu0 %2613  ;;  %v9178_v7 = vmul.f32 %v7115_v56, %v8936_v26 }
 0x9b1   : > { %6660 = vmatprep.mubr.bf16.mxu0 %v3081_v0  ;;  %v9181_v36 = vmul.f32 %v7117_v35, %v10914_v51 }
 0x9b2   : > { %v7119_v2 = vpop.eup %7118  ;;  %6661 = vmatmul.mubr.bf16.gmra.mrb[92].mxu0 %v3082_v23  ;;  %v2782_v33 = vpack.c.bf16 %v9178_v7, %v9175_v53  ;;  %v10935_v7 = vld [vmem:[#allocation48_spill] sm:$0xff] }
 0x9b3   : > { %v7121_v6 = vpop.eup %7120  ;;  %v2612_v12 = vpop.xlane.xlu1 %2611  ;;  %v9189_v29 = vmul.f32 %v7119_v2, %v8934_v27  ;;  %v10916_v27 = vld [vmem:[#allocation60_spill] sm:$0xff] }
 0x9b4   : > { %7128 = vrcp.f32 %v2612_v12  ;;  %v1670_v26 = vpop.xlane.xlu0 %1669  ;;  %v9192_v5 = vmul.f32 %v7121_v6, %v10915_v57 }
 0x9b5   : > { %7130 = vrcp.f32 %v1670_v26  ;;  %v2783_v14 = vpack.c.bf16 %v9189_v29, %v9186_v22  ;;  %3256 = vrot.lane.b32.xlu1 %v2322_v24, %s7465_s3  ;;  %v6826_v22 = vld [vmem:[%s7611_s17 + $0x20] sm:$0xff]  }
 0x9b6   : > { %v7123_v10 = vpop.eup %7122  ;;  %7132 = vrcp.f32 %v2614_v25  ;;  %v10918_v25 = vld [vmem:[#allocation35_spill] sm:$0xff] }
 0x9b7   : > { %v7125_v21 = vpop.eup %7124  ;;  %v2616_v13 = vpop.xlane.xlu1 %2615  ;;  %v9201_v52 = vmul.f32 %v7123_v10, %v10916_v27 }
 0x9b8   : > { %3047 = vadd.xlane.f32.xlu0 %v9082_v16  ;;  %7134 = vrcp.f32 %v2616_v13  ;;  %v1674_v4 = vpop.xlane.xlu0 %1673  ;;  %v9205_v45 = vmul.f32 %v7125_v21, %v8940_v19  ;;  %v10920_v13 = vld [vmem:[#allocation37_spill] sm:$0xff] }
 0x9b9   : > { %7136 = vrcp.f32 %v1674_v4  ;;  %v2326_v48 = vpack.c.bf16 %v9201_v52, %v9181_v36 }
 0x9ba   : > { %v7127_v34 = vpop.eup %7126 }
 0x9bb   : > { %v1672_v49 = vpop.xlane.xlu1 %1671  ;;  %v9210_v37 = vmul.f32 %v7127_v34, %v10917_v41 }
 0x9bc   : > { %3043 = vadd.xlane.f32.xlu0 %v9074_v30  ;;  %7138 = vrcp.f32 %v1672_v49  ;;  %v1678_v58 = vpop.xlane.xlu0 %1677 }
 0x9bd   : > { %7140 = vrcp.f32 %v1678_v58  ;;  %v2327_v16 = vpack.c.bf16 %v9210_v37, %v9192_v5 }
 0x9be   : > { %v7129_v24 = vpop.eup %7128 }
 0x9bf   : > { %v7131_v19 = vpop.eup %7130  ;;  %v1676_v56 = vpop.xlane.xlu1 %1675  ;;  %v9216_v55 = vmul.f32 %v7129_v24, %v8944_v28  ;;  %v10922_v24 = vld [vmem:[#allocation36_spill] sm:$0xff] }
 0x9c0   : > { %v7133_v0 = vpop.eup %7132  ;;  %3055 = vadd.xlane.f32.xlu0 %v9106_v43  ;;  %7142 = vrcp.f32 %v1676_v56  ;;  %v1682_v35 = vpop.xlane.xlu0 %1681  ;;  %v1822_v23 = vmul.f32 %v7131_v19, %v10918_v25  ;;  %v10919_v43 = vld [vmem:[#allocation34_spill] sm:$0xff] }
 0x9c1   : > { %7144 = vrcp.f32 %v1682_v35  ;;  %v2784_v30 = vpack.c.bf16 %v9216_v55, %v9205_v45  ;;  %v9223_v12 = vmul.f32 %v7133_v0, %v8938_v46  ;;  %v10921_v46 = vld [vmem:[#allocation39_spill] sm:$0xff]  ;;  %v10923_v56 = vld [vmem:[#allocation38_spill] sm:$0xff] }
 0x9c2   : > { %v7135_v51 = vpop.eup %7134 }
 0x9c3   : > { %v7137_v2 = vpop.eup %7136  ;;  %v1680_v6 = vpop.xlane.xlu1 %1679  ;;  %v9226_v28 = vmul.f32 %v7135_v51, %v8942_v40 }
 0x9c4   : > { %3051 = vadd.xlane.f32.xlu0 %v9098_v63  ;;  %7146 = vrcp.f32 %v1680_v6  ;;  %v1824_v26 = vmul.f32 %v7137_v2, %v10919_v43  ;;  %v3253_v41 = vpop.permute.xlu0 %3252  ;;  %v10924_v2 = vld [vmem:[#allocation41_spill] sm:$0xff] }
 0x9c5   : > { %v2785_v57 = vpack.c.bf16 %v9226_v28, %v9223_v12 }
 0x9c6   : > { %v7139_v10 = vpop.eup %7138 }
 0x9c7   : > { %v7141_v21 = vpop.eup %7140  ;;  %v1823_v27 = vmul.f32 %v7139_v10, %v10920_v13  ;;  %v1684_v4 = vpop.xlane.xlu1 %1683  ;;  %v10925_v10 = vld [vmem:[#allocation40_spill] sm:$0xff] }
 0x9c8   : > { %3063 = vadd.xlane.f32.xlu0 %v9137_v15  ;;  %7148 = vrcp.f32 %v1684_v4  ;;  %v1826_v34 = vmul.f32 %v7141_v21, %v10921_v46 }
 0x9c9   : > { %v1838_v40 = vpack.c.bf16 %v1823_v27, %v1822_v23 }
 0x9ca   : > { %v7143_v49 = vpop.eup %7142 }
 0x9cb   : > { %v7145_v63 = vpop.eup %7144  ;;  %v3318_v58 = vsel %vm1443_vm0, %v1838_v40, %v3253_v41  ;;  %v1825_v19 = vmul.f32 %v7143_v49, %v10922_v24  ;;  %v3255_v51 = vpop.permute.xlu1 %3254  ;;  %v10930_v41 = vld [vmem:[#allocation43_spill] sm:$0xff] }
 0x9cc   : > { %3059 = vadd.xlane.f32.xlu0 %v9129_v44  ;;  %v1828_v0 = vmul.f32 %v7145_v63, %v10923_v56 }
 0x9cd   : > { %v1839_v35 = vpack.c.bf16 %v1825_v19, %v1824_v26  ;;  %v10931_v19 = vld [vmem:[#allocation42_spill] sm:$0xff] }
 0x9ce   : > { %v7147_v25 = vpop.eup %7146 }
 0x9cf   : > { %v3321_v15 = vsel %vm1443_vm0, %v1839_v35, %v3255_v51  ;;  %v1827_v6 = vmul.f32 %v7147_v25, %v10924_v2  ;;  %v10932_v35 = vld [vmem:[#allocation44_spill] sm:$0xff]  ;;  %v6823_v2 = vld [vmem:[%s7611_s17 + $0x8] sm:$0xff]  }
 0x9d0   : > { %3071 = vadd.xlane.f32.xlu0 %v9162_v8 }
 0x9d1   : > { %v1840_v23 = vpack.c.bf16 %v1827_v6, %v1826_v34  ;;  %v10929_v34 = vld [vmem:[#allocation31_spill] sm:$0xff] }
 0x9d2   : > { %v7149_v43 = vpop.eup %7148  ;;  %v6824_v6 = vld [vmem:[%s7611_s17 + $0x10] sm:$0xff]  }
 0x9d3   : > { %v1829_v21 = vmul.f32 %v7149_v43, %v10925_v10  ;;  %v6825_v43 = vld [vmem:[%s7611_s17 + $0x18] sm:$0xff]  }
 0x9d4   : > { %3067 = vadd.xlane.f32.xlu0 %v9164_v31 }
 0x9d5   : > { %v1841_v13 = vpack.c.bf16 %v1829_v21, %v1828_v0  ;;  %v6828_v21 = vld [vmem:[%s7611_s17 + $0x30] sm:$0xff]  }
 0x9d9   : > { %3049 = vadd.xlane.f32.xlu1 %v9077_v18 }
 0x9dd   : > { %3045 = vadd.xlane.f32.xlu1 %v9080_v61 }
 0x9e1   : > { %3057 = vadd.xlane.f32.xlu1 %v9101_v60  ;;  %v10926_v60 = vld [vmem:[#allocation45_spill] sm:$0xff] }
 0x9e5   : > { %3053 = vadd.xlane.f32.xlu1 %v9104_v38 }
 0x9e6   : > { %v3277_v44 = vpop.permute.xlu1 %3276 }
 0x9e7   : > { %v9249_v26 = vsel %vm3340_vm1, %v3318_v58, %v3277_v44 }
 0x9e9   : > { %3065 = vadd.xlane.f32.xlu1 %v9132_v39 }
 0x9ea   : > { %v3279_v8 = vpop.permute.xlu1 %3278 }
 0x9eb   : > { %v9253_v27 = vsel %vm3340_vm1, %v3321_v15, %v3279_v8  ;;  %v6822_v15 = vld [vmem:[%s7611_s17] sm:$0xff]  }
 0x9ec   : > { %6664 = vmatprep.subr.bf16.mxu0 %v6822_v15 }
 0x9ed   : > { %3061 = vadd.xlane.f32.xlu1 %v9134_v1  ;;  %v10927_v1 = vld [vmem:[#allocation30_spill] sm:$0xff]  ;;  %6665 = vmatpush3.bf16.msra.mxu0 %v6822_v15 }
 0x9ee   : > { %6666 = vmatprep.subr.bf16.mxu0 %v6823_v2 }
 0x9f1   : > { %3073 = vadd.xlane.f32.xlu1 %v9166_v59  ;;  %6667 = vmatpush3.bf16.msra.mxu0 %v6823_v2 }
 0x9f2   : > { %6668 = vmatprep.subr.bf16.mxu0 %v6824_v6 }
 0x9f5   : > { %v1688_v18 = vpop.xlane.xlu0 %1687  ;;  %3069 = vadd.xlane.f32.xlu1 %v9168_v32  ;;  %v10928_v32 = vld [vmem:[#allocation33_spill] sm:$0xff]  ;;  %6669 = vmatpush3.bf16.msra.mxu0 %v6824_v6 }
 0x9f6   : > { %7150 = vrcp.f32 %v1688_v18  ;;  %6670 = vmatprep.subr.bf16.mxu0 %v6825_v43 }
 0x9f9   : > { %6671 = vmatpush3.bf16.msra.mxu0 %v6825_v43 }
 0x9fa   : > { %6672 = vmatprep.subr.bf16.mxu0 %v6826_v22 }
 0x9fd   : > { %6673 = vmatpush3.bf16.msra.mxu0 %v6826_v22 }
 0xa00   : > { %v7151_v61 = vpop.eup %7150 }
 0xa01   : > { %v9259_v38 = vmul.f32 %v7151_v61, %v10926_v60 }
 0xa06   : > { %3282 = vrot.lane.b32.xlu1 %v2781_v17, %s7464_s26 }
 0xa07   : > { %v3259_v31 = vpop.permute.xlu0 %3258 }
 0xa08   : > { %v9262_v4 = vsel %vm1443_vm0, %v1841_v13, %v3259_v31 }
 0xa0b   : > { %v3281_v9 = vpop.permute.xlu0 %3280 }
 0xa29   : > { %v1686_v39 = vpop.xlane.xlu1 %1685 }
 0xa2a   : > { %7152 = vrcp.f32 %v1686_v39  ;;  %1693 = vadd.xlane.f32.xlu1 %v10927_v1  ;;  %v6829_v39 = vld [vmem:[%s7611_s17 + $0x38] sm:$0xff]  }
 0xa2d   : > { %v1690_v59 = vpop.xlane.xlu1 %1689 }
 0xa2e   : > { %7154 = vrcp.f32 %v1690_v59  ;;  %1697 = vadd.xlane.f32.xlu1 %v10928_v32 }
 0xa31   : > { %v1692_v46 = vpop.xlane.xlu1 %1691 }
 0xa32   : > { %7156 = vrcp.f32 %v1692_v46  ;;  %1699 = vadd.xlane.f32.xlu1 %v10929_v34 }
 0xa34   : > { %v7153_v40 = vpop.eup %7152 }
 0xa35   : > { %v3257_v49 = vpop.permute.xlu1 %3256  ;;  %v9272_v63 = vmul.f32 %v7153_v40, %v10930_v41 }
 0xa36   : > { %v3324_v47 = vsel %vm1443_vm0, %v1840_v23, %v3257_v49 }
 0xa37   : > { %v1842_v17 = vpack.c.bf16 %v9259_v38, %v9272_v63  ;;  %v9278_v58 = vsel %vm3340_vm1, %v3324_v47, %v3281_v9 }
 0xa38   : > { %v7155_v24 = vpop.eup %7154 }
 0xa39   : > { %v9281_v56 = vmul.f32 %v7155_v24, %v10931_v19 }
 0xa3c   : > { %v7157_v0 = vpop.eup %7156 }
 0xa3d   : > { %v9284_v25 = vmul.f32 %v7157_v0, %v10932_v35 }
 0xa3f   : > { %v1843_v51 = vpack.c.bf16 %v9284_v25, %v9281_v56 }
 0xa43   : > { %3260 = vrot.lane.b32.xlu1 %v2324_v11, %s7465_s3 }
 0xa45   : > { %v3048_v42 = vpop.xlane.xlu0 %3047 }
 0xa46   : > { %7158 = vrcp.f32 %v3048_v42 }
 0xa47   : > { %3286 = vrot.lane.b32.xlu1 %v2783_v14, %s7464_s26  ;;  %v6827_v14 = vld [vmem:[%s7611_s17 + $0x28] sm:$0xff]  }
 0xa48   : > { %6674 = vmatprep.subr.bf16.mxu0 %v6827_v14 }
 0xa49   : > { %v3044_v29 = vpop.xlane.xlu0 %3043  ;;  %6675 = vmatpush3.bf16.msra.mxu0 %v6827_v14 }
 0xa4a   : > { %6676 = vmatprep.subr.bf16.mxu0 %v6828_v21 }
 0xa4d   : > { %v3056_v13 = vpop.xlane.xlu0 %3055  ;;  %6677 = vmatpush3.bf16.msra.mxu0 %v6828_v21 }
 0xa4e   : > { %6678 = vmatprep.subr.bf16.mxu0 %v6829_v39 }
 0xa50   : > { %v7159_v46 = vpop.eup %7158 }
 0xa51   : > { %v3052_v31 = vpop.xlane.xlu0 %3051  ;;  %6679 = vmatpush3.bf16.msra.mxu0 %v6829_v39 }
 0xa55   : > { %v6650_v23 = vpop.f32.mrb[80].mxu0  ;;  %v3064_v59 = vpop.xlane.xlu0 %3063 }
 0xa56   : > { %v3141_v54 = vpop.f32.mrb[81].mxu0  ;;  %v3222_v40 = vmul.f32 %v7159_v46, %v6650_v23 }
 0xa57   : > { %v6651_v11 = vpop.f32.mrb[82].mxu0 }
 0xa58   : > { %v3144_v10 = vpop.f32.mrb[83].mxu0 }
 0xa59   : > { %v3060_v9 = vpop.xlane.xlu0 %3059 }
 0xa65   : > { %v6654_v44 = vpop.f32.mrb[84].mxu0 }
 0xa66   : > { %v3157_v8 = vpop.f32.mrb[85].mxu0  ;;  %v3050_v61 = vpop.xlane.xlu1 %3049 }
 0xa67   : > { %v6655_v18 = vpop.f32.mrb[86].mxu0  ;;  %7160 = vrcp.f32 %v3050_v61 }
 0xa68   : > { %v3160_v60 = vpop.f32.mrb[87].mxu0  ;;  %7162 = vrcp.f32 %v3044_v29 }
 0xa6a   : > { %v3046_v1 = vpop.xlane.xlu1 %3045 }
 0xa6b   : > { %7164 = vrcp.f32 %v3046_v1 }
 0xa6c   : > { %7166 = vrcp.f32 %v3056_v13 }
 0xa6e   : > { %v3058_v32 = vpop.xlane.xlu1 %3057 }
 0xa6f   : > { %7168 = vrcp.f32 %v3058_v32 }
 0xa70   : > { %7170 = vrcp.f32 %v3052_v31 }
 0xa71   : > { %v7161_v34 = vpop.eup %7160 }
 0xa72   : > { %v3054_v49 = vpop.xlane.xlu1 %3053  ;;  %v3223_v41 = vmul.f32 %v7161_v34, %v6651_v11  ;;  %v7163_v24 = vpop.eup %7162 }
 0xa73   : > { %7172 = vrcp.f32 %v3054_v49  ;;  %v3220_v2 = vmul.f32 %v7163_v24, %v3141_v54  ;;  %v3072_v11 = vpop.xlane.xlu0 %3071 }
 0xa74   : > { %v3237_v0 = vpack.c.bf16 %v3223_v41, %v3222_v40  ;;  %7174 = vrcp.f32 %v3064_v59 }
 0xa75   : > { %v6658_v47 = vpop.f32.mrb[88].mxu0  ;;  %v7165_v35 = vpop.eup %7164 }
 0xa76   : > { %v3173_v19 = vpop.f32.mrb[89].mxu0  ;;  %v3066_v6 = vpop.xlane.xlu1 %3065  ;;  %3302 = vrot.lane.b32.xlu0 %v3237_v0, %s7463_s20  ;;  %v3221_v42 = vmul.f32 %v7165_v35, %v3144_v10 }
 0xa77   : > { %v6659_v15 = vpop.f32.mrb[90].mxu0  ;;  %7176 = vrcp.f32 %v3066_v6  ;;  %v7167_v22 = vpop.eup %7166 }
 0xa78   : > { %v3176_v43 = vpop.f32.mrb[91].mxu0  ;;  %v3236_v23 = vpack.c.bf16 %v3221_v42, %v3220_v2  ;;  %7178 = vrcp.f32 %v3060_v9  ;;  %v3226_v14 = vmul.f32 %v7167_v22, %v6654_v44  ;;  %v3068_v10 = vpop.xlane.xlu0 %3067 }
 0xa79   : > { %v7169_v29 = vpop.eup %7168 }
 0xa7a   : > { %v3062_v21 = vpop.xlane.xlu1 %3061  ;;  %3300 = vrot.lane.b32.xlu0 %v3236_v23, %s7463_s20  ;;  %v3227_v13 = vmul.f32 %v7169_v29, %v6655_v18  ;;  %v7171_v61 = vpop.eup %7170 }
 0xa7b   : > { %7180 = vrcp.f32 %v3062_v21  ;;  %v3224_v39 = vmul.f32 %v7171_v61, %v3157_v8 }
 0xa7c   : > { %v3239_v31 = vpack.c.bf16 %v3227_v13, %v3226_v14  ;;  %7182 = vrcp.f32 %v3072_v11 }
 0xa7d   : > { %v7173_v54 = vpop.eup %7172 }
 0xa7e   : > { %v3074_v1 = vpop.xlane.xlu1 %3073  ;;  %v3225_v59 = vmul.f32 %v7173_v54, %v3160_v60  ;;  %v7175_v32 = vpop.eup %7174 }
 0xa7f   : > { %7184 = vrcp.f32 %v3074_v1  ;;  %v3230_v40 = vmul.f32 %v7175_v32, %v6658_v47  ;;  %v10937_v32 = vld [vmem:[#allocation49_spill] sm:$0xff] }
 0xa80   : > { %v3238_v46 = vpack.c.bf16 %v3225_v59, %v3224_v39  ;;  %7186 = vrcp.f32 %v3068_v10  ;;  %v10936_v59 = vld [vmem:[#allocation47_spill] sm:$0xff] }
 0xa81   : > { %v7177_v34 = vpop.eup %7176 }
 0xa82   : > { %v3231_v44 = vmul.f32 %v7177_v34, %v6659_v15  ;;  %v3070_v49 = vpop.xlane.xlu1 %3069  ;;  %v7179_v18 = vpop.eup %7178 }
 0xa83   : > { %7188 = vrcp.f32 %v3070_v49  ;;  %v3228_v2 = vmul.f32 %v7179_v18, %v3173_v19 }
 0xa84   : > { %v3241_v9 = vpack.c.bf16 %v3231_v44, %v3230_v40 }
 0xa85   : > { %v6662_v41 = vpop.f32.mrb[92].mxu0  ;;  %v7181_v0 = vpop.eup %7180 }
 0xa86   : > { %v3189_v24 = vpop.f32.mrb[93].mxu0  ;;  %3310 = vrot.lane.b32.xlu1 %v3241_v9, %s7463_s20  ;;  %v3229_v60 = vmul.f32 %v7181_v0, %v3176_v43  ;;  %v7183_v6 = vpop.eup %7182  ;;  %v10933_v43 = vld [vmem:[#allocation32_spill] sm:$0xff] }
 0xa87   : > { %v6663_v35 = vpop.f32.mrb[94].mxu0  ;;  %v3234_v23 = vmul.f32 %v7183_v6, %v6662_v41  ;;  %v3283_v13 = vpop.permute.xlu1 %3282 }
 0xa88   : > { %v3192_v8 = vpop.f32.mrb[95].mxu0  ;;  %v3240_v42 = vpack.c.bf16 %v3229_v60, %v3228_v2  ;;  %v3348_v61 = vsel %vm3340_vm1, %v9262_v4, %v3283_v13 }
 0xa89   : > { %v7185_v22 = vpop.eup %7184 }
 0xa8a   : > { %v3235_v29 = vmul.f32 %v7185_v22, %v6663_v35  ;;  %3266 = vrot.lane.b32.xlu1 %v2327_v16, %s7465_s3  ;;  %v7187_v47 = vpop.eup %7186 }
 0xa8b   : > { %v3232_v14 = vmul.f32 %v7187_v47, %v3189_v24 }
 0xa8c   : > { %v3243_v15 = vpack.c.bf16 %v3235_v29, %v3234_v23 }
 0xa8d   : > { %v7189_v11 = vpop.eup %7188 }
 0xa8e   : > { %v3233_v21 = vmul.f32 %v7189_v11, %v3192_v8  ;;  %3290 = vrot.lane.b32.xlu1 %v2785_v57, %s7464_s26 }
 0xa90   : > { %v3242_v19 = vpack.c.bf16 %v3233_v21, %v3232_v14  ;;  %v7374_v14 = vld [vmem:[#allocation2] sm:$0xff] }
 0xa92   : > { %3314 = vrot.lane.b32.xlu1 %v3243_v15, %s7463_s20 }
 0xa99   : > { %1695 = vadd.xlane.f32.xlu0 %v10933_v43  ;;  %v7375_v43 = vld [vmem:[#allocation2 + $0x8] sm:$0xff] }
 0xaaf   : > { %3304 = vrot.lane.b32.xlu0 %v3238_v46, %s7463_s20 }
 0xab3   : > { %3306 = vrot.lane.b32.xlu0 %v3239_v31, %s7463_s20 }
 0xab7   : > { %v1694_v5 = vpop.xlane.xlu1 %1693  ;;  %3262 = vrot.lane.b32.xlu0 %v2325_v50, %s7465_s3  ;;  %v10934_v50 = vld [vmem:[#allocation46_spill] sm:$0xff] }
 0xabb   : > { %v1698_v37 = vpop.xlane.xlu1 %1697  ;;  %3284 = vrot.lane.b32.xlu0 %v2782_v33, %s7464_s26 }
 0xabc   : > { %7190 = vrcp.f32 %v1698_v37 }
 0xabf   : > { %v1700_v16 = vpop.xlane.xlu1 %1699  ;;  %3308 = vrot.lane.b32.xlu0 %v3240_v42, %s7463_s20 }
 0xac0   : > { %7192 = vrcp.f32 %v1700_v16 }
 0xac1   : > { %7194 = vrcp.f32 %v1694_v5  ;;  %v7376_v5 = vld [vmem:[#allocation2 + $0x10] sm:$0xff] }
 0xac3   : > { %3264 = vrot.lane.b32.xlu0 %v2326_v48, %s7465_s3  ;;  %v3261_v48 = vpop.permute.xlu1 %3260 }
 0xac4   : > { %v3330_v44 = vsel %vm1443_vm0, %v1842_v17, %v3261_v48  ;;  %v7379_v48 = vld [vmem:[#allocation2 + $0x28] sm:$0xff] }
 0xac6   : > { %v7191_v3 = vpop.eup %7190 }
 0xac7   : > { %3288 = vrot.lane.b32.xlu0 %v2784_v30, %s7464_s26  ;;  %v1836_v53 = vmul.f32 %v7191_v3, %v10934_v50  ;;  %s10938_s26 = scalar_lea.vmem %s10686_s9, %s7585_s28  ;;  %v7377_v3 = vld [vmem:[#allocation2 + $0x18] sm:$0xff]  ;;  %s11047_s28 = sld [smem:[#allocation3_spill]] }
 0xac8   : > { %v9374_v42 = vld [vmem:[%s10938_s26] ss:$0 sm:$0xff] }
 0xaca   : > { %v7193_v62 = vpop.eup %7192 }
 0xacb   : > { %3312 = vrot.lane.b32.xlu0 %v3242_v19, %s7463_s20  ;;  %v1837_v33 = vmul.f32 %v7193_v62, %v10935_v7  ;;  %v7195_v54 = vpop.eup %7194 }
 0xacc   : > { %v1834_v10 = vmul.f32 %v7195_v54, %v10936_v59 }
 0xacd   : > { %v1845_v12 = vpack.c.bf16 %v1837_v33, %v1836_v53  ;;  %p5999_p8 = scmp.ne.s32.totalorder %s11047_s28, 1 }
 0xace   : > { %s11048_s6 = sld [smem:[#allocation63_spill]] (!%p5999_p8)  ;;  %s11049_s30 = sld [smem:[#allocation64_spill]] (!%p5999_p8) }
 0xae8   : > { %v3303_v28 = vpop.permute.xlu0 %3302 }
 0xae9   : > { %v3362_v52 = vsel %vm3357_vm2, %v9253_v27, %v3303_v28 }
 0xaec   : > { %v3301_v57 = vpop.permute.xlu0 %3300 }
 0xaed   : > { %v3359_v36 = vsel %vm3357_vm2, %v9249_v26, %v3301_v57  ;;  %v3287_v26 = vpop.permute.xlu1 %3286  ;;  %v7378_v57 = vld [vmem:[#allocation2 + $0x20] sm:$0xff] }
 0xaee   : > { %6680 = vmatprep.mubr.bf16.mxu0 %v3359_v36 }
 0xaef   : > { %6681 = vmatmul.mubr.bf16.vlgmr.msra.gmra.mrb[96].mxu0 %v3362_v52 }
 0xaf8   : > { %v3311_v34 = vpop.permute.xlu1 %3310 }
 0xafc   : > { %v3267_v49 = vpop.permute.xlu1 %3266 }
 0xafd   : > { %v3339_v63 = vsel %vm1443_vm0, %v1845_v12, %v3267_v49 }
 0xb00   : > { %v3291_v25 = vpop.permute.xlu1 %3290 }
 0xb01   : > { %v3356_v8 = vsel %vm3340_vm1, %v3339_v63, %v3291_v25 }
 0xb04   : > { %v3315_v35 = vpop.permute.xlu1 %3314 }
 0xb05   : > { %v3380_v6 = vsel %vm3357_vm2, %v3356_v8, %v3315_v35  ;;  %v7386_v35 = vld [vmem:[#allocation2 + $0x60] sm:$0xff] }
 0xb26   : > { %v1696_v45 = vpop.xlane.xlu0 %1695 }
 0xb27   : > { %7196 = vrcp.f32 %v1696_v45 }
 0xb2a   : > { %v3305_v55 = vpop.permute.xlu0 %3304 }
 0xb2b   : > { %v3365_v30 = vsel %vm3357_vm2, %v9278_v58, %v3305_v55 }
 0xb2c   : > { %6684 = vmatprep.mubr.bf16.mxu0 %v3365_v30  ;;  %v7380_v30 = vld [vmem:[#allocation2 + $0x30] sm:$0xff] }
 0xb2e   : > { %v3307_v31 = vpop.permute.xlu0 %3306 }
 0xb2f   : > { %v3368_v39 = vsel %vm3357_vm2, %v3348_v61, %v3307_v31  ;;  %v7381_v31 = vld [vmem:[#allocation2 + $0x38] sm:$0xff] }
 0xb30   : > { %6685 = vmatmul.mubr.bf16.gmra.mrb[100].mxu0 %v3368_v39 }
 0xb31   : > { %v7197_v27 = vpop.eup %7196 }
 0xb32   : > { %v3263_v1 = vpop.permute.xlu0 %3262  ;;  %v1835_v46 = vmul.f32 %v7197_v27, %v10937_v32  ;;  %v7382_v32 = vld [vmem:[#allocation2 + $0x40] sm:$0xff] }
 0xb33   : > { %v3333_v58 = vsel %vm1443_vm0, %v1843_v51, %v3263_v1 }
 0xb34   : > { %v1844_v40 = vpack.c.bf16 %v1835_v46, %v1834_v10  ;;  %v3352_v41 = vsel %vm3340_vm1, %v3333_v58, %v3287_v26  ;;  %v7383_v58 = vld [vmem:[#allocation2 + $0x48] sm:$0xff] }
 0xb35   : > { %v3374_v0 = vsel %vm3357_vm2, %v3352_v41, %v3311_v34  ;;  %v7385_v41 = vld [vmem:[#allocation2 + $0x58] sm:$0xff] }
 0xb36   : > { %v3285_v4 = vpop.permute.xlu0 %3284 }
 0xb37   : > { %v3350_v18 = vsel %vm3340_vm1, %v3330_v44, %v3285_v4  ;;  %v7384_v44 = vld [vmem:[#allocation2 + $0x50] sm:$0xff] }
 0xb3a   : > { %v3309_v9 = vpop.permute.xlu0 %3308 }
 0xb3b   : > { %v3371_v24 = vsel %vm3357_vm2, %v3350_v18, %v3309_v9 }
 0xb3c   : > { %6688 = vmatprep.mubr.bf16.mxu0 %v3371_v24 }
 0xb3d   : > { %6689 = vmatmul.mubr.bf16.gmra.mrb[104].mxu0 %v3374_v0 }
 0xb3e   : > { %v3265_v56 = vpop.permute.xlu0 %3264 }
 0xb3f   : > { %v3336_v38 = vsel %vm1443_vm0, %v1844_v40, %v3265_v56 }
 0xb42   : > { %v3289_v51 = vpop.permute.xlu0 %3288 }
 0xb43   : > { %v3354_v17 = vsel %vm3340_vm1, %v3336_v38, %v3289_v51 }
 0xb46   : > { %v3313_v2 = vpop.permute.xlu0 %3312 }
 0xb47   : > { %v3377_v60 = vsel %vm3357_vm2, %v3354_v17, %v3313_v2  ;;  %v7387_v2 = vld [vmem:[#allocation2 + $0x68] sm:$0xff] }
 0xb48   : > { %6692 = vmatprep.mubr.bf16.mxu0 %v3377_v60  ;;  %v7388_v60 = vld [vmem:[#allocation2 + $0x70] sm:$0xff] }
 0xb49   : > { %6693 = vmatmul.mubr.bf16.gmra.mrb[108].mxu0 %v3380_v6 }
 0xb4a   : > { %4155 = vmatprep.mubr.bf16.mxu0 %v10884_v20 }
 0xbc2   : > { %v6682_v22 = vpop.f32.mrb[96].mxu0 }
 0xbc3   : > { %v3487_v23 = vpop.f32.mrb[97].mxu0  ;;  %v3496_v11 = vadd.f32 %v6682_v22, %v9374_v42  ;;  %v7389_v22 = vld [vmem:[#allocation2 + $0x78] sm:$0xff] }
 0xbc4   : > { %v3488_v29 = vadd.f32 %v9374_v42, %v3487_v23  ;;  %v6683_v47 = vpop.f32.mrb[98].mxu0 }
 0xbc5   : > { %v3490_v15 = vpop.f32.mrb[99].mxu0  ;;  %v9384_v37 = vadd.f32 %v7376_v5, %v3496_v11  ;;  %v3499_v16 = vadd.f32 %v6683_v47, %v9374_v42  ;;  %v6833_v47 = vld [vmem:[%s7635_s27 + $0x8] ss:$16 sps:$4 sm:$0xff]   ;;  %v6838_v11 = vld [vmem:[%s7635_s27 + $0x24] ss:$16 sps:$4 sm:$0xff]  }
 0xbc6   : > { %v9378_v21 = vadd.f32 %v7374_v14, %v3488_v29  ;;  %v3491_v19 = vadd.f32 %v9374_v42, %v3490_v15  ;;  %v6832_v29 = vld [vmem:[%s7635_s27 + $0x4] ss:$16 sps:$4 sm:$0xff]   ;;  %v6835_v15 = vld [vmem:[%s7635_s27 + $0xc] ss:$16 sps:$4 sm:$0xff]  }
 0xbc7   : > { %10941 = vst [vmem:[#allocation11_spill] sm:$0xff] %v9384_v37  ;;  %v9389_v62 = vadd.f32 %v7377_v3, %v3499_v16  ;;  %4010 = vmatprep.subr.bf16.mxu1 %v6832_v29  ;;  %v6841_v14 = vld [vmem:[%s7635_s27 + $0x2c] ss:$16 sps:$4 sm:$0xff]   ;;  %4123 = vmatprep.subr.bf16.mxu0 %v6835_v15 }
 0xbc8   : > { %10939 = vst [vmem:[#allocation16_spill] sm:$0xff] %v9378_v21  ;;  %v9381_v13 = vadd.f32 %v7375_v43, %v3491_v19  ;;  %3568 = vadd.xlane.f32.xlu0 %v9378_v21  ;;  %v6836_v19 = vld [vmem:[%s7635_s27 + $0x20] ss:$16 sps:$4 sm:$0xff]   ;;  %4124 = vmatpush1.bf16.msra.mxu0 %v6833_v47  ;;  %v6839_v43 = vld [vmem:[%s7635_s27 + $0x28] ss:$16 sps:$4 sm:$0xff]  }
 0xbc9   : > { %10942 = vst [vmem:[#allocation13_spill] sm:$0xff] %v9389_v62  ;;  %4125 = vmatprep.subr.bf16.mxu0 %v6841_v14 }
 0xbca   : > { %10940 = vst [vmem:[#allocation17_spill] sm:$0xff] %v9381_v13  ;;  %3570 = vadd.xlane.f32.xlu1 %v9381_v13 }
 0xbcc   : > { %3572 = vadd.xlane.f32.xlu0 %v9384_v37  ;;  %4126 = vmatpush1.bf16.msra.mxu0 %v6839_v43 }
 0xbd0   : > { %3574 = vadd.xlane.f32.xlu0 %v9389_v62 }
 0xc03   : > { %v6686_v50 = vpop.f32.mrb[100].mxu0 }
 0xc04   : > { %v3503_v53 = vpop.f32.mrb[101].mxu0  ;;  %v3512_v28 = vadd.f32 %v6686_v50, %v9374_v42 }
 0xc05   : > { %v3504_v7 = vadd.f32 %v9374_v42, %v3503_v53  ;;  %v6687_v33 = vpop.f32.mrb[102].mxu0 }
 0xc06   : > { %v3506_v12 = vpop.f32.mrb[103].mxu0  ;;  %v3515_v45 = vadd.f32 %v6687_v33, %v9374_v42  ;;  %v9401_v61 = vadd.f32 %v7380_v30, %v3512_v28 }
 0xc07   : > { %v9394_v36 = vadd.f32 %v7378_v57, %v3504_v7  ;;  %v3507_v52 = vadd.f32 %v9374_v42, %v3506_v12 }
 0xc08   : > { %10945 = vst [vmem:[#allocation15_spill] sm:$0xff] %v9401_v61  ;;  %v9404_v54 = vadd.f32 %v7381_v31, %v3515_v45 }
 0xc09   : > { %10943 = vst [vmem:[#allocation12_spill] sm:$0xff] %v9394_v36  ;;  %v9398_v55 = vadd.f32 %v7379_v48, %v3507_v52  ;;  %3576 = vadd.xlane.f32.xlu0 %v9394_v36 }
 0xc0a   : > { %10946 = vst [vmem:[#allocation19_spill] sm:$0xff] %v9404_v54 }
 0xc0b   : > { %10944 = vst [vmem:[#allocation10_spill] sm:$0xff] %v9398_v55  ;;  %3578 = vadd.xlane.f32.xlu1 %v9398_v55 }
 0xc0d   : > { %3580 = vadd.xlane.f32.xlu0 %v9401_v61 }
 0xc0f   : > { %3582 = vadd.xlane.f32.xlu1 %v9404_v54 }
 0xc10   : > { %v6690_v26 = vpop.f32.mrb[104].mxu0 }
 0xc11   : > { %v3519_v39 = vpop.f32.mrb[105].mxu0  ;;  %v3528_v10 = vadd.f32 %v6690_v26, %v9374_v42 }
 0xc12   : > { %v3520_v27 = vadd.f32 %v9374_v42, %v3519_v39  ;;  %v6691_v1 = vpop.f32.mrb[106].mxu0  ;;  %v6844_v39 = vld [vmem:[%s7635_s27 + $0x44] ss:$16 sps:$4 sm:$0xff]  }
 0xc13   : > { %v3522_v59 = vpop.f32.mrb[107].mxu0  ;;  %v3531_v40 = vadd.f32 %v6691_v1, %v9374_v42  ;;  %v9417_v49 = vadd.f32 %v7384_v44, %v3528_v10  ;;  %v6842_v1 = vld [vmem:[%s7635_s27 + $0x40] ss:$16 sps:$4 sm:$0xff]   ;;  %v6850_v10 = vld [vmem:[%s7635_s27 + $0x64] ss:$16 sps:$4 sm:$0xff]  }
 0xc14   : > { %v9410_v46 = vadd.f32 %v7382_v32, %v3520_v27  ;;  %v3523_v34 = vadd.f32 %v9374_v42, %v3522_v59  ;;  %v6847_v27 = vld [vmem:[%s7635_s27 + $0x4c] ss:$16 sps:$4 sm:$0xff]   ;;  %v6845_v59 = vld [vmem:[%s7635_s27 + $0x48] ss:$16 sps:$4 sm:$0xff]  }
 0xc15   : > { %10949 = vst [vmem:[#allocation22_spill] sm:$0xff] %v9417_v49  ;;  %v9420_v18 = vadd.f32 %v7385_v41, %v3531_v40  ;;  %4127 = vmatprep.subr.bf16.mxu0 %v6847_v27  ;;  %v6853_v32 = vld [vmem:[%s7635_s27 + $0x6c] ss:$16 sps:$4 sm:$0xff]   ;;  %v6851_v40 = vld [vmem:[%s7635_s27 + $0x68] ss:$16 sps:$4 sm:$0xff]  }
 0xc16   : > { %10947 = vst [vmem:[#allocation21_spill] sm:$0xff] %v9410_v46  ;;  %v9414_v4 = vadd.f32 %v7383_v58, %v3523_v34  ;;  %3584 = vadd.xlane.f32.xlu0 %v9410_v46  ;;  %4128 = vmatpush1.bf16.msra.mxu0 %v6845_v59  ;;  %v6848_v34 = vld [vmem:[%s7635_s27 + $0x60] ss:$16 sps:$4 sm:$0xff]   ;;  %v6856_v58 = vld [vmem:[%s7635_s27 + $0x84] ss:$16 sps:$4 sm:$0xff]  }
 0xc17   : > { %10950 = vst [vmem:[#allocation18_spill] sm:$0xff] %v9420_v18  ;;  %4129 = vmatprep.subr.bf16.mxu0 %v6853_v32  ;;  %v6859_v44 = vld [vmem:[%s7635_s27 + $0x8c] ss:$16 sps:$4 sm:$0xff]   ;;  %v6854_v41 = vld [vmem:[%s7635_s27 + $0x80] ss:$16 sps:$4 sm:$0xff]  }
 0xc18   : > { %10948 = vst [vmem:[#allocation20_spill] sm:$0xff] %v9414_v4  ;;  %3586 = vadd.xlane.f32.xlu1 %v9414_v4 }
 0xc1a   : > { %3588 = vadd.xlane.f32.xlu0 %v9417_v49  ;;  %4130 = vmatpush1.bf16.msra.mxu0 %v6851_v40 }
 0xc1b   : > { %4131 = vmatprep.subr.bf16.mxu0 %v6859_v44 }
 0xc1c   : > { %3590 = vadd.xlane.f32.xlu1 %v9420_v18  ;;  %v6694_v9 = vpop.f32.mrb[108].mxu0 }
 0xc1d   : > { %v3535_v24 = vpop.f32.mrb[109].mxu0  ;;  %v3544_v51 = vadd.f32 %v6694_v9, %v9374_v42  ;;  %v6857_v9 = vld [vmem:[%s7635_s27 + $0x88] ss:$16 sps:$4 sm:$0xff]  }
 0xc1e   : > { %v3536_v0 = vadd.f32 %v9374_v42, %v3535_v24  ;;  %v6695_v56 = vpop.f32.mrb[110].mxu0  ;;  %4132 = vmatpush1.bf16.msra.mxu0 %v6857_v9  ;;  %v6862_v24 = vld [vmem:[%s7635_s27 + $0xa4] ss:$16 sps:$4 sm:$0xff]  }
 0xc1f   : > { %v3538_v25 = vpop.f32.mrb[111].mxu0  ;;  %v3547_v17 = vadd.f32 %v6695_v56, %v9374_v42  ;;  %v9433_v6 = vadd.f32 %v7388_v60, %v3544_v51  ;;  %v6860_v56 = vld [vmem:[%s7635_s27 + $0xa0] ss:$16 sps:$4 sm:$0xff]   ;;  %v6868_v51 = vld [vmem:[%s7635_s27 + $0xc4] ss:$16 sps:$4 sm:$0xff]  }
 0xc20   : > { %v9426_v38 = vadd.f32 %v7386_v35, %v3536_v0  ;;  %v3539_v63 = vadd.f32 %v9374_v42, %v3538_v25  ;;  %v6830_v42 = vld [vmem:[%s7635_s27] ss:$16 sps:$4 sm:$0xff]   ;;  %v6865_v0 = vld [vmem:[%s7635_s27 + $0xac] ss:$16 sps:$4 sm:$0xff]   ;;  %v6863_v25 = vld [vmem:[%s7635_s27 + $0xa8] ss:$16 sps:$4 sm:$0xff]  }
 0xc21   : > { %10953 = vst [vmem:[#allocation23_spill] sm:$0xff] %v9433_v6  ;;  %v9436_v23 = vadd.f32 %v7389_v22, %v3547_v17  ;;  %4011 = vmatpush1.bf16.msra.mxu1 %v6830_v42  ;;  %4133 = vmatprep.subr.bf16.mxu0 %v6865_v0  ;;  %v6871_v35 = vld [vmem:[%s7635_s27 + $0xcc] ss:$16 sps:$4 sm:$0xff]   ;;  %v6869_v17 = vld [vmem:[%s7635_s27 + $0xc8] ss:$16 sps:$4 sm:$0xff]  }
 0xc22   : > { %10951 = vst [vmem:[#allocation26_spill] sm:$0xff] %v9426_v38  ;;  %v9430_v8 = vadd.f32 %v7387_v2, %v3539_v63  ;;  %3592 = vadd.xlane.f32.xlu0 %v9426_v38  ;;  %4012 = vmatprep.subr.bf16.mxu1 %v6838_v11  ;;  %v6866_v63 = vld [vmem:[%s7635_s27 + $0xc0] ss:$16 sps:$4 sm:$0xff]   ;;  %v6874_v60 = vld [vmem:[%s7635_s27 + $0xe4] ss:$16 sps:$4 sm:$0xff]  }
 0xc23   : > { %10954 = vst [vmem:[#allocation24_spill] sm:$0xff] %v9436_v23  ;;  %4134 = vmatpush1.bf16.msra.mxu0 %v6863_v25  ;;  %v6872_v2 = vld [vmem:[%s7635_s27 + $0xe0] ss:$16 sps:$4 sm:$0xff]   ;;  %v6875_v22 = vld [vmem:[%s7635_s27 + $0xe8] ss:$16 sps:$4 sm:$0xff]  }
 0xc24   : > { %10952 = vst [vmem:[#allocation25_spill] sm:$0xff] %v9430_v8  ;;  %3594 = vadd.xlane.f32.xlu1 %v9430_v8  ;;  %4135 = vmatprep.subr.bf16.mxu0 %v6871_v35  ;;  %v6877_v42 = vld [vmem:[%s7635_s27 + $0xec] ss:$16 sps:$4 sm:$0xff]  }
 0xc25   : > { %4013 = vmatpush1.bf16.msra.mxu1 %v6836_v19 }
 0xc26   : > { %3596 = vadd.xlane.f32.xlu0 %v9433_v6  ;;  %4014 = vmatprep.subr.bf16.mxu1 %v6844_v39 }
 0xc27   : > { %4136 = vmatpush1.bf16.msra.mxu0 %v6869_v17 }
 0xc28   : > { %3598 = vadd.xlane.f32.xlu1 %v9436_v23  ;;  %4137 = vmatprep.subr.bf16.mxu0 %v6877_v42 }
 0xc29   : > { %4015 = vmatpush1.bf16.msra.mxu1 %v6842_v1 }
 0xc2a   : > { %4016 = vmatprep.subr.bf16.mxu1 %v6850_v10 }
 0xc2b   : > { %4138 = vmatpush1.bf16.msra.mxu0 %v6875_v22 }
 0xc2d   : > { %4017 = vmatpush1.bf16.msra.mxu1 %v6848_v34 }
 0xc2e   : > { %4018 = vmatprep.subr.bf16.mxu1 %v6856_v58 }
 0xc31   : > { %4019 = vmatpush1.bf16.msra.mxu1 %v6854_v41 }
 0xc32   : > { %4020 = vmatprep.subr.bf16.mxu1 %v6862_v24 }
 0xc35   : > { %4021 = vmatpush1.bf16.msra.mxu1 %v6860_v56 }
 0xc36   : > { %4022 = vmatprep.subr.bf16.mxu1 %v6868_v51 }
 0xc39   : > { %4023 = vmatpush1.bf16.msra.mxu1 %v6866_v63 }
 0xc3a   : > { %4024 = vmatprep.subr.bf16.mxu1 %v6874_v60 }
 0xc3d   : > { %4025 = vmatpush1.bf16.msra.mxu1 %v6872_v2 }
 0xc55   : > { %v3569_v5 = vpop.xlane.xlu0 %3568 }
 0xc56   : > { %v3600_v16 = vmul.f32 0.0078125, %v3569_v5 }
 0xc57   : > { %v3571_v3 = vpop.xlane.xlu1 %3570 }
 0xc58   : > { %v9449_v50 = vsub.f32 %v9378_v21, %v3600_v16  ;;  %v3601_v53 = vmul.f32 0.0078125, %v3571_v3 }
 0xc59   : > { %v3573_v7 = vpop.xlane.xlu0 %3572 }
 0xc5a   : > { %v9452_v33 = vsub.f32 %v9381_v13, %v3601_v53  ;;  %v3602_v12 = vmul.f32 0.0078125, %v3573_v7  ;;  %v3632_v28 = vmul.f32 %v9449_v50, %v9449_v50 }
 0xc5c   : > { %v9457_v57 = vsub.f32 %v9384_v37, %v3602_v12  ;;  %3648 = vadd.xlane.f32.xlu0 %v3632_v28  ;;  %v3633_v52 = vmul.f32 %v9452_v33, %v9452_v33 }
 0xc5d   : > { %v3575_v45 = vpop.xlane.xlu0 %3574 }
 0xc5e   : > { %v3603_v48 = vmul.f32 0.0078125, %v3575_v45  ;;  %3650 = vadd.xlane.f32.xlu1 %v3633_v52  ;;  %v3634_v30 = vmul.f32 %v9457_v57, %v9457_v57 }
 0xc60   : > { %v9464_v31 = vsub.f32 %v9389_v62, %v3603_v48  ;;  %3652 = vadd.xlane.f32.xlu0 %v3634_v30 }
 0xc62   : > { %v3635_v26 = vmul.f32 %v9464_v31, %v9464_v31 }
 0xc64   : > { %3654 = vadd.xlane.f32.xlu1 %v3635_v26 }
 0xc96   : > { %v3577_v29 = vpop.xlane.xlu0 %3576 }
 0xc97   : > { %v3604_v47 = vmul.f32 0.0078125, %v3577_v29 }
 0xc98   : > { %v3579_v15 = vpop.xlane.xlu1 %3578 }
 0xc99   : > { %v9493_v11 = vsub.f32 %v9394_v36, %v3604_v47  ;;  %v3605_v14 = vmul.f32 0.0078125, %v3579_v15 }
 0xc9a   : > { %v3581_v19 = vpop.xlane.xlu0 %3580 }
 0xc9b   : > { %v9496_v43 = vsub.f32 %v9398_v55, %v3605_v14  ;;  %v3606_v5 = vmul.f32 0.0078125, %v3581_v19  ;;  %v3636_v16 = vmul.f32 %v9493_v11, %v9493_v11 }
 0xc9c   : > { %v3583_v3 = vpop.xlane.xlu1 %3582 }
 0xc9d   : > { %v9501_v53 = vsub.f32 %v9401_v61, %v3606_v5  ;;  %v3607_v7 = vmul.f32 0.0078125, %v3583_v3  ;;  %3656 = vadd.xlane.f32.xlu0 %v3636_v16  ;;  %v3637_v12 = vmul.f32 %v9496_v43, %v9496_v43 }
 0xc9f   : > { %v9506_v28 = vsub.f32 %v9404_v54, %v3607_v7  ;;  %3658 = vadd.xlane.f32.xlu1 %v3637_v12  ;;  %v3638_v52 = vmul.f32 %v9501_v53, %v9501_v53 }
 0xca1   : > { %3660 = vadd.xlane.f32.xlu0 %v3638_v52  ;;  %v3639_v45 = vmul.f32 %v9506_v28, %v9506_v28 }
 0xca3   : > { %3662 = vadd.xlane.f32.xlu1 %v3639_v45  ;;  %v3585_v48 = vpop.xlane.xlu0 %3584 }
 0xca4   : > { %v3608_v30 = vmul.f32 0.0078125, %v3585_v48 }
 0xca5   : > { %v3587_v26 = vpop.xlane.xlu1 %3586 }
 0xca6   : > { %v9513_v39 = vsub.f32 %v9410_v46, %v3608_v30  ;;  %v3609_v27 = vmul.f32 0.0078125, %v3587_v26 }
 0xca7   : > { %v3589_v1 = vpop.xlane.xlu0 %3588 }
 0xca8   : > { %v9516_v59 = vsub.f32 %v9414_v4, %v3609_v27  ;;  %v3610_v10 = vmul.f32 0.0078125, %v3589_v1  ;;  %v3640_v32 = vmul.f32 %v9513_v39, %v9513_v39 }
 0xca9   : > { %v3591_v34 = vpop.xlane.xlu1 %3590 }
 0xcaa   : > { %v9521_v40 = vsub.f32 %v9417_v49, %v3610_v10  ;;  %v3611_v58 = vmul.f32 0.0078125, %v3591_v34  ;;  %3664 = vadd.xlane.f32.xlu0 %v3640_v32  ;;  %v3641_v44 = vmul.f32 %v9516_v59, %v9516_v59  ;;  %v9557_v32 = vld [vmem:[%s10955_s0] ss:$0 sm:$0xff] }
 0xcac   : > { %v9526_v41 = vsub.f32 %v9420_v18, %v3611_v58  ;;  %3666 = vadd.xlane.f32.xlu1 %v3641_v44  ;;  %v3642_v9 = vmul.f32 %v9521_v40, %v9521_v40 }
 0xcae   : > { %3668 = vadd.xlane.f32.xlu0 %v3642_v9  ;;  %v3643_v24 = vmul.f32 %v9526_v41, %v9526_v41 }
 0xcaf   : > { %v3593_v0 = vpop.xlane.xlu0 %3592 }
 0xcb0   : > { %v3612_v56 = vmul.f32 0.0078125, %v3593_v0  ;;  %3670 = vadd.xlane.f32.xlu1 %v3643_v24  ;;  %v9567_v0 = vld [vmem:[%s10956_s24] ss:$0 sm:$0xff] }
 0xcb1   : > { %v3595_v25 = vpop.xlane.xlu1 %3594 }
 0xcb2   : > { %v9533_v51 = vsub.f32 %v9426_v38, %v3612_v56  ;;  %v3613_v35 = vmul.f32 0.0078125, %v3595_v25 }
 0xcb3   : > { %v3597_v63 = vpop.xlane.xlu0 %3596 }
 0xcb4   : > { %v9536_v17 = vsub.f32 %v9430_v8, %v3613_v35  ;;  %v3614_v2 = vmul.f32 0.0078125, %v3597_v63  ;;  %v3644_v60 = vmul.f32 %v9533_v51, %v9533_v51 }
 0xcb5   : > { %v3599_v22 = vpop.xlane.xlu1 %3598 }
 0xcb6   : > { %v9541_v42 = vsub.f32 %v9433_v6, %v3614_v2  ;;  %v3615_v29 = vmul.f32 0.0078125, %v3599_v22  ;;  %3672 = vadd.xlane.f32.xlu0 %v3644_v60  ;;  %v3645_v47 = vmul.f32 %v9536_v17, %v9536_v17 }
 0xcb8   : > { %v9546_v15 = vsub.f32 %v9436_v23, %v3615_v29  ;;  %3674 = vadd.xlane.f32.xlu1 %v3645_v47  ;;  %v3646_v14 = vmul.f32 %v9541_v42, %v9541_v42 }
 0xcba   : > { %3676 = vadd.xlane.f32.xlu0 %v3646_v14  ;;  %v3647_v19 = vmul.f32 %v9546_v15, %v9546_v15 }
 0xcbc   : > { %3678 = vadd.xlane.f32.xlu1 %v3647_v19 }
 0xce9   : > { %v3649_v5 = vpop.xlane.xlu0 %3648 }
 0xcea   : > { %v3680_v16 = vmul.f32 0.0078125, %v3649_v5 }
 0xceb   : > { %v3651_v3 = vpop.xlane.xlu1 %3650 }
 0xcec   : > { %v3696_v7 = vadd.f32 1e-05, %v3680_v16  ;;  %v3681_v12 = vmul.f32 0.0078125, %v3651_v3 }
 0xced   : > { %v3653_v52 = vpop.xlane.xlu0 %3652 }
 0xcee   : > { %7198 = vrsqrt.f32 %v3696_v7  ;;  %v3697_v45 = vadd.f32 1e-05, %v3681_v12  ;;  %v3682_v48 = vmul.f32 0.0078125, %v3653_v52 }
 0xcf0   : > { %7200 = vrsqrt.f32 %v3697_v45  ;;  %v3698_v30 = vadd.f32 1e-05, %v3682_v48 }
 0xcf1   : > { %v3655_v26 = vpop.xlane.xlu1 %3654 }
 0xcf2   : > { %7202 = vrsqrt.f32 %v3698_v30  ;;  %v3683_v27 = vmul.f32 0.0078125, %v3655_v26 }
 0xcf4   : > { %v3699_v1 = vadd.f32 1e-05, %v3683_v27 }
 0xcf6   : > { %7204 = vrsqrt.f32 %v3699_v1 }
 0xcf8   : > { %v7199_v10 = vpop.eup %7198 }
 0xcf9   : > { %v3728_v34 = vmul.f32 %v7199_v10, %v9449_v50 }
 0xcfa   : > { %v7201_v58 = vpop.eup %7200 }
 0xcfb   : > { %v3750_v44 = vmul.f32 %v9557_v32, %v3728_v34  ;;  %v3729_v9 = vmul.f32 %v7201_v58, %v9452_v33 }
 0xcfc   : > { %v7203_v24 = vpop.eup %7202 }
 0xcfd   : > { %v3751_v56 = vmul.f32 %v9557_v32, %v3729_v9  ;;  %v3772_v25 = vadd.f32 %v9567_v0, %v3750_v44  ;;  %v3730_v50 = vmul.f32 %v7203_v24, %v9457_v57 }
 0xcff   : > { %v3773_v35 = vadd.f32 %v9567_v0, %v3751_v56  ;;  %v3752_v33 = vmul.f32 %v9557_v32, %v3730_v50 }
 0xd00   : > { %v7205_v63 = vpop.eup %7204 }
 0xd01   : > { %v3788_v2 = vpack.c.bf16 %v3773_v35, %v3772_v25  ;;  %v3731_v60 = vmul.f32 %v7205_v63, %v9464_v31  ;;  %v3774_v47 = vadd.f32 %v9567_v0, %v3752_v33 }
 0xd03   : > { %4043 = vmatmul.mubr.bf16.vlgmr.msra.gmra.mrb[80].mxu1 %v3788_v2  ;;  %4156 = vmatmul.mubr.bf16.vlgmr.msra.gmra.mrb[112].mxu0 %v3788_v2  ;;  %v3753_v22 = vmul.f32 %v9557_v32, %v3731_v60 }
 0xd04   : > { %4052 = vmatprep.mubr.bf16.mxu1 %v10884_v20  ;;  %4165 = vmatprep.mubr.bf16.mxu0 %v10884_v20 }
 0xd05   : > { %v3775_v29 = vadd.f32 %v9567_v0, %v3753_v22 }
 0xd07   : > { %v3789_v14 = vpack.c.bf16 %v3775_v29, %v3774_v47 }
 0xd0b   : > { %4053 = vmatmul.mubr.bf16.gmra.mrb[84].mxu1 %v3789_v14  ;;  %4166 = vmatmul.mubr.bf16.gmra.mrb[116].mxu0 %v3789_v14 }
 0xd0c   : > { %4062 = vmatprep.mubr.bf16.mxu1 %v10884_v20  ;;  %4175 = vmatprep.mubr.bf16.mxu0 %v10884_v20 }
 0xd2a   : > { %v3657_v57 = vpop.xlane.xlu0 %3656 }
 0xd2b   : > { %v3684_v31 = vmul.f32 0.0078125, %v3657_v57 }
 0xd2c   : > { %v3659_v19 = vpop.xlane.xlu1 %3658 }
 0xd2d   : > { %v3700_v5 = vadd.f32 1e-05, %v3684_v31  ;;  %v3685_v16 = vmul.f32 0.0078125, %v3659_v19 }
 0xd2e   : > { %v3661_v3 = vpop.xlane.xlu0 %3660 }
 0xd2f   : > { %7206 = vrsqrt.f32 %v3700_v5  ;;  %v3701_v7 = vadd.f32 1e-05, %v3685_v16  ;;  %v3686_v12 = vmul.f32 0.0078125, %v3661_v3 }
 0xd30   : > { %v3663_v52 = vpop.xlane.xlu1 %3662 }
 0xd31   : > { %7208 = vrsqrt.f32 %v3701_v7  ;;  %v3702_v45 = vadd.f32 1e-05, %v3686_v12  ;;  %v3687_v48 = vmul.f32 0.0078125, %v3663_v52 }
 0xd33   : > { %7210 = vrsqrt.f32 %v3702_v45  ;;  %v3703_v30 = vadd.f32 1e-05, %v3687_v48 }
 0xd35   : > { %7212 = vrsqrt.f32 %v3703_v30 }
 0xd37   : > { %v3665_v26 = vpop.xlane.xlu0 %3664 }
 0xd38   : > { %v3688_v27 = vmul.f32 0.0078125, %v3665_v26 }
 0xd39   : > { %v7207_v1 = vpop.eup %7206  ;;  %v3667_v10 = vpop.xlane.xlu1 %3666 }
 0xd3a   : > { %v3704_v34 = vadd.f32 1e-05, %v3688_v27  ;;  %v3689_v58 = vmul.f32 0.0078125, %v3667_v10  ;;  %v3732_v44 = vmul.f32 %v7207_v1, %v9493_v11 }
 0xd3b   : > { %v7209_v9 = vpop.eup %7208  ;;  %v3669_v24 = vpop.xlane.xlu0 %3668 }
 0xd3c   : > { %7214 = vrsqrt.f32 %v3704_v34  ;;  %v3705_v56 = vadd.f32 1e-05, %v3689_v58  ;;  %v3690_v25 = vmul.f32 0.0078125, %v3669_v24  ;;  %v3733_v35 = vmul.f32 %v7209_v9, %v9496_v43 }
 0xd3d   : > { %v7211_v50 = vpop.eup %7210  ;;  %v3671_v63 = vpop.xlane.xlu1 %3670  ;;  %v3754_v2 = vmul.f32 %v9557_v32, %v3732_v44 }
 0xd3e   : > { %7216 = vrsqrt.f32 %v3705_v56  ;;  %v3691_v60 = vmul.f32 0.0078125, %v3671_v63  ;;  %v3755_v33 = vmul.f32 %v9557_v32, %v3733_v35  ;;  %v3706_v29 = vadd.f32 1e-05, %v3690_v25 }
 0xd3f   : > { %v7213_v22 = vpop.eup %7212  ;;  %v3776_v47 = vadd.f32 %v9567_v0, %v3754_v2  ;;  %v3734_v57 = vmul.f32 %v7211_v50, %v9501_v53 }
 0xd40   : > { %v3707_v11 = vadd.f32 1e-05, %v3691_v60  ;;  %v3777_v14 = vadd.f32 %v9567_v0, %v3755_v33  ;;  %v3735_v31 = vmul.f32 %v7213_v22, %v9506_v28 }
 0xd41   : > { %v3756_v3 = vmul.f32 %v9557_v32, %v3734_v57  ;;  %v6878_v57 = vld [vmem:[%s7645_s5 + $0x40] sm:$0xff]  }
 0xd42   : > { %7218 = vrsqrt.f32 %v3707_v11  ;;  %v3790_v43 = vpack.c.bf16 %v3777_v14, %v3776_v47  ;;  %v3757_v19 = vmul.f32 %v9557_v32, %v3735_v31  ;;  %v9616_v31 = vld [vmem:[%s7645_s5 + $0xc0] sm:$0xff]   ;;  %6248 = vmatprep.subr.bf16.mxu1 %v6878_v57 }
 0xd43   : > { %7220 = vrsqrt.f32 %v3706_v29  ;;  %v3673_v5 = vpop.xlane.xlu0 %3672  ;;  %v3778_v26 = vadd.f32 %v9567_v0, %v3756_v3  ;;  %6312 = vmatprep.subr.bf16.mxu0 %v9616_v31  ;;  %v10957_v57 = vld [vmem:[#allocation9_spill] sm:$0xff] }
 0xd44   : > { %v3692_v16 = vmul.f32 0.0078125, %v3673_v5  ;;  %4063 = vmatmul.mubr.bf16.gmra.mrb[88].mxu1 %v3790_v43  ;;  %4176 = vmatmul.mubr.bf16.gmra.mrb[120].mxu0 %v3790_v43  ;;  %v3779_v28 = vadd.f32 %v9567_v0, %v3757_v19  ;;  %v6880_v5 = vld [vmem:[%s7645_s5] sm:$0xff]  }
 0xd45   : > { %v3675_v7 = vpop.xlane.xlu1 %3674  ;;  %4072 = vmatprep.mubr.bf16.mxu1 %v10884_v20  ;;  %4185 = vmatprep.mubr.bf16.mxu0 %v10884_v20 }
 0xd46   : > { %v7215_v12 = vpop.eup %7214  ;;  %v3693_v53 = vmul.f32 0.0078125, %v3675_v7  ;;  %v3708_v52 = vadd.f32 1e-05, %v3692_v16  ;;  %v3791_v58 = vpack.c.bf16 %v3779_v28, %v3778_v26  ;;  %v9622_v16 = vld [vmem:[%s7645_s5 + $0x80] sm:$0xff]   ;;  %v6882_v7 = vld [vmem:[%s7645_s5 + $0x48] sm:$0xff]   ;;  %6249 = vmatpush3.bf16.msra.mxu1 %v6880_v5  ;;  %v10959_v5 = vsub.s32 2, %v10957_v57 }
 0xd47   : > { %v3677_v30 = vpop.xlane.xlu0 %3676  ;;  %v3736_v27 = vmul.f32 %v7215_v12, %v9513_v39  ;;  %v9629_v12 = vld [vmem:[%s7645_s5 + $0xc8] sm:$0xff]   ;;  %6313 = vmatpush3.bf16.msra.mxu0 %v9622_v16  ;;  %6250 = vmatprep.subr.bf16.mxu1 %v6882_v7 }
 0xd48   : > { %v7217_v45 = vpop.eup %7216  ;;  %v3709_v48 = vadd.f32 1e-05, %v3693_v53  ;;  %v3694_v44 = vmul.f32 0.0078125, %v3677_v30  ;;  %6314 = vmatprep.subr.bf16.mxu0 %v9629_v12 }
 0xd49   : > { %v3679_v1 = vpop.xlane.xlu1 %3678  ;;  %v3737_v10 = vmul.f32 %v7217_v45, %v9516_v59  ;;  %v3758_v56 = vmul.f32 %v9557_v32, %v3736_v27  ;;  %v9636_v45 = vld [vmem:[%s7645_s5 + $0x88] sm:$0xff]  }
 0xd4a   : > { %7222 = vrsqrt.f32 %v3709_v48  ;;  %v3695_v34 = vmul.f32 0.0078125, %v3679_v1  ;;  %v3710_v50 = vadd.f32 1e-05, %v3694_v44  ;;  %v9645_v1 = vld [vmem:[%s7645_s5 + $0xd0] sm:$0xff]   ;;  %v6890_v44 = vld [vmem:[%s7645_s5 + $0x58] sm:$0xff]  }
 0xd4b   : > { %7224 = vrsqrt.f32 %v3708_v52  ;;  %v3759_v9 = vmul.f32 %v9557_v32, %v3737_v10  ;;  %v3780_v63 = vadd.f32 %v9567_v0, %v3758_v56  ;;  %v6884_v52 = vld [vmem:[%s7645_s5 + $0x8] sm:$0xff]   ;;  %6315 = vmatpush3.bf16.msra.mxu0 %v9636_v45 }
 0xd4c   : > { %v7219_v24 = vpop.eup %7218  ;;  %4073 = vmatmul.mubr.bf16.gmra.mrb[92].mxu1 %v3791_v58  ;;  %4186 = vmatmul.mubr.bf16.gmra.mrb[124].mxu0 %v3791_v58  ;;  %v3711_v35 = vadd.f32 1e-05, %v3695_v34  ;;  %v9652_v34 = vld [vmem:[%s7645_s5 + $0x90] sm:$0xff]  }
 0xd4d   : > { %v7221_v25 = vpop.eup %7220  ;;  %4082 = vmatprep.mubr.bf16.mxu1 %v10884_v20  ;;  %4195 = vmatprep.mubr.bf16.mxu0 %v10884_v20  ;;  %v3781_v39 = vadd.f32 %v9567_v0, %v3759_v9  ;;  %v3739_v59 = vmul.f32 %v7219_v24, %v9526_v41  ;;  %v9660_v9 = vld [vmem:[%s7645_s5 + $0xd8] sm:$0xff]  }
 0xd4e   : > { %v3738_v2 = vmul.f32 %v7221_v25, %v9521_v40  ;;  %7226 = vrsqrt.f32 %v3711_v35  ;;  %6251 = vmatpush3.bf16.msra.mxu1 %v6884_v52  ;;  %6316 = vmatprep.subr.bf16.mxu0 %v9645_v1  ;;  %v9664_v24 = vld [vmem:[%s7645_s5 + $0x98] sm:$0xff]   ;;  %v9670_v25 = vld [vmem:[%s7645_s5 + $0xe0] sm:$0xff]  }
 0xd4f   : > { %v3792_v60 = vpack.c.bf16 %v3781_v39, %v3780_v63  ;;  %v3761_v33 = vmul.f32 %v9557_v32, %v3739_v59  ;;  %7228 = vrsqrt.f32 %v3710_v50  ;;  %6317 = vmatpush3.bf16.msra.mxu0 %v9652_v34  ;;  %v6896_v35 = vld [vmem:[%s7645_s5 + $0x20] sm:$0xff]   ;;  %v6898_v59 = vld [vmem:[%s7645_s5 + $0x68] sm:$0xff]  }
 0xd50   : > { %v3760_v29 = vmul.f32 %v9557_v32, %v3738_v2  ;;  %6318 = vmatprep.subr.bf16.mxu0 %v9660_v9  ;;  %v9674_v39 = vld [vmem:[%s7645_s5 + $0xa0] sm:$0xff]   ;;  %v9679_v50 = vld [vmem:[%s7645_s5 + $0xe8] sm:$0xff]  }
 0xd51   : > { %v3783_v40 = vadd.f32 %v9567_v0, %v3761_v33  ;;  %v6900_v63 = vld [vmem:[%s7645_s5 + $0x28] sm:$0xff]   ;;  %v9689_v33 = vld [vmem:[%s7645_s5 + $0xf0] sm:$0xff]  }
 0xd52   : > { %v3782_v11 = vadd.f32 %v9567_v0, %v3760_v29  ;;  %v9684_v2 = vld [vmem:[%s7645_s5 + $0xa8] sm:$0xff]   ;;  %v9694_v29 = vld [vmem:[%s7645_s5 + $0xb0] sm:$0xff]  }
 0xd53   : > { %6319 = vmatpush3.bf16.msra.mxu0 %v9664_v24 }
 0xd54   : > { %v7223_v22 = vpop.eup %7222  ;;  %4083 = vmatmul.mubr.bf16.gmra.mrb[96].mxu1 %v3792_v60  ;;  %4196 = vmatmul.mubr.bf16.gmra.mrb[128].mxu0 %v3792_v60  ;;  %v3793_v43 = vpack.c.bf16 %v3783_v40, %v3782_v11  ;;  %v6902_v60 = vld [vmem:[%s7645_s5 + $0x70] sm:$0xff]   ;;  %v9699_v40 = vld [vmem:[%s7645_s5 + $0xf8] sm:$0xff]  }
 0xd55   : > { %v7225_v41 = vpop.eup %7224  ;;  %4092 = vmatprep.mubr.bf16.mxu1 %v10884_v20  ;;  %4205 = vmatprep.mubr.bf16.mxu0 %v10884_v20  ;;  %v3741_v47 = vmul.f32 %v7223_v22, %v9536_v17  ;;  %v6904_v22 = vld [vmem:[%s7645_s5 + $0x30] sm:$0xff]   ;;  %v9704_v11 = vld [vmem:[%s7645_s5 + $0xb8] sm:$0xff]  }
 0xd56   : > { %v3740_v14 = vmul.f32 %v7225_v41, %v9533_v51  ;;  %6320 = vmatprep.subr.bf16.mxu0 %v9670_v25  ;;  %v6906_v41 = vld [vmem:[%s7645_s5 + $0x78] sm:$0xff]  }
 0xd57   : > { %v3763_v19 = vmul.f32 %v9557_v32, %v3741_v47  ;;  %6321 = vmatpush3.bf16.msra.mxu0 %v9674_v39  ;;  %v6908_v47 = vld [vmem:[%s7645_s5 + $0x38] sm:$0xff]  }
 0xd58   : > { %v7227_v17 = vpop.eup %7226  ;;  %v3762_v51 = vmul.f32 %v9557_v32, %v3740_v14  ;;  %6322 = vmatprep.subr.bf16.mxu0 %v9679_v50  ;;  %v3828_v14 = vld [vmem:[%s7640_s23] sm:$0xf] }
 0xd59   : > { %v7229_v3 = vpop.eup %7228  ;;  %v3785_v53 = vadd.f32 %v9567_v0, %v3763_v19  ;;  %v3743_v28 = vmul.f32 %v7227_v17, %v9546_v15  ;;  %v6886_v15 = vld [vmem:[%s7645_s5 + $0x50] sm:$0xff]   ;;  %v9716_v17 = vrot.slane %v3828_v14, %v10959_v5 }
 0xd5a   : > { %v3784_v48 = vadd.f32 %v9567_v0, %v3762_v51  ;;  %v3742_v30 = vmul.f32 %v7229_v3, %v9541_v42  ;;  %v6888_v42 = vld [vmem:[%s7645_s5 + $0x10] sm:$0xff]   ;;  %6252 = vmatprep.subr.bf16.mxu1 %v6886_v15  ;;  %v3844_v51 = vsub.s32 3, %v10957_v57 }
 0xd5b   : > { %v3765_v27 = vmul.f32 %v9557_v32, %v3743_v28  ;;  %6253 = vmatpush3.bf16.msra.mxu1 %v6888_v42  ;;  %6323 = vmatpush3.bf16.msra.mxu0 %v9684_v2 }
 0xd5c   : > { %4093 = vmatmul.mubr.bf16.gmra.mrb[100].mxu1 %v3793_v43  ;;  %4206 = vmatmul.mubr.bf16.gmra.mrb[132].mxu0 %v3793_v43  ;;  %v3794_v26 = vpack.c.bf16 %v3785_v53, %v3784_v48  ;;  %v3764_v10 = vmul.f32 %v9557_v32, %v3742_v30  ;;  %v10958_v43 = vsub.s32 0, %v10957_v57  ;;  %v10960_v53 = vsub.s32 1, %v10957_v57 }
 0xd5d   : > { %4102 = vmatprep.mubr.bf16.mxu1 %v10884_v20  ;;  %4215 = vmatprep.mubr.bf16.mxu0 %v10884_v20  ;;  %v3787_v58 = vadd.f32 %v9567_v0, %v3765_v27 }
 0xd5e   : > { %v3786_v32 = vadd.f32 %v9567_v0, %v3764_v10  ;;  %6254 = vmatprep.subr.bf16.mxu1 %v6890_v44  ;;  %v6894_v0 = vld [vmem:[%s7645_s5 + $0x60] sm:$0xff]   ;;  %6324 = vmatprep.subr.bf16.mxu0 %v9689_v33  ;;  %v9712_v19 = vrot.slane %v3828_v14, %v10958_v43  ;;  %v9721_v28 = vrot.slane %v3828_v14, %v10960_v53 }
 0xd5f   : > { %6325 = vmatpush3.bf16.msra.mxu0 %v9694_v29 }
 0xd60   : > { %v3795_v56 = vpack.c.bf16 %v3787_v58, %v3786_v32  ;;  %6326 = vmatprep.subr.bf16.mxu0 %v9699_v40 }
 0xd63   : > { %6327 = vmatpush3.bf16.msra.mxu0 %v9704_v11 }
 0xd64   : > { %4103 = vmatmul.mubr.bf16.gmra.mrb[104].mxu1 %v3794_v26  ;;  %4216 = vmatmul.mubr.bf16.gmra.mrb[136].mxu0 %v3794_v26  ;;  %v9725_v26 = vrot.slane %v3828_v14, %v3844_v51 }
 0xd65   : > { %4112 = vmatprep.mubr.bf16.mxu1 %v10884_v20  ;;  %4225 = vmatprep.mubr.bf16.mxu0 %v10884_v20  ;;  %v6892_v20 = vld [vmem:[%s7645_s5 + $0x18] sm:$0xff]  }
 0xd66   : > { %6255 = vmatpush3.bf16.msra.mxu1 %v6892_v20 }
 0xd67   : > { %6256 = vmatprep.subr.bf16.mxu1 %v6894_v0 }
 0xd6a   : > { %6257 = vmatpush3.bf16.msra.mxu1 %v6896_v35 }
 0xd6b   : > { %6258 = vmatprep.subr.bf16.mxu1 %v6898_v59 }
 0xd6c   : > { %4113 = vmatmul.mubr.bf16.gmra.mrb[108].mxu1 %v3795_v56  ;;  %4226 = vmatmul.mubr.bf16.gmra.mrb[140].mxu0 %v3795_v56 }
 0xd6e   : > { %6259 = vmatpush3.bf16.msra.mxu1 %v6900_v63 }
 0xd6f   : > { %6260 = vmatprep.subr.bf16.mxu1 %v6902_v60 }
 0xd72   : > { %6261 = vmatpush3.bf16.msra.mxu1 %v6904_v22 }
 0xd73   : > { %6262 = vmatprep.subr.bf16.mxu1 %v6906_v41 }
 0xd76   : > { %6263 = vmatpush3.bf16.msra.mxu1 %v6908_v47 }
 0xd77   : > { %6696 = vmatprep.subr.bf16.mxu1 %v9616_v31 }
 0xdd6   : > { %v4044_v3 = vpop.f32.mrb[80].mxu1  ;;  %v4157_v7 = vpop.f32.mrb[112].mxu0 }
 0xdd7   : > { %v4045_v52 = vadd.f32 %v4044_v3, %v9712_v19  ;;  %v4158_v31 = vadd.f32 %v4157_v7, %v9716_v17  ;;  %v4046_v48 = vpop.f32.mrb[81].mxu1  ;;  %v4159_v30 = vpop.f32.mrb[113].mxu0 }
 0xdd8   : > { %v4048_v27 = vpop.f32.mrb[82].mxu1  ;;  %v4161_v15 = vpop.f32.mrb[114].mxu0  ;;  %v9728_v58 = vadd.f32 %v4046_v48, %v9721_v28  ;;  %v9738_v63 = vadd.f32 %v4159_v30, %v9725_v26 }
 0xdd9   : > { %v4300_v10 = vmul.f32 0.044715, %v4045_v52  ;;  %v4302_v42 = vmul.f32 0.044715, %v4158_v31  ;;  %v4049_v32 = vadd.f32 %v4048_v27, %v9712_v19  ;;  %v9732_v44 = vadd.f32 %v4161_v15, %v9716_v17  ;;  %v4050_v20 = vpop.f32.mrb[83].mxu1  ;;  %v4163_v56 = vpop.f32.mrb[115].mxu0 }
 0xdda   : > { %v9735_v59 = vadd.f32 %v4050_v20, %v9721_v28  ;;  %v9741_v22 = vadd.f32 %v4163_v56, %v9725_v26  ;;  %v9743_v41 = vmul.f32 0.5, %v4045_v52  ;;  %v4301_v43 = vmul.f32 0.044715, %v9728_v58 }
 0xddb   : > { %v4364_v0 = vmul.f32 %v4300_v10, %v4045_v52  ;;  %v4366_v35 = vmul.f32 %v4302_v42, %v4158_v31  ;;  %v4304_v60 = vmul.f32 0.044715, %v4049_v32  ;;  %v4306_v57 = vmul.f32 0.044715, %v9732_v44 }
 0xddc   : > { %v4305_v51 = vmul.f32 0.044715, %v9735_v59  ;;  %v9748_v48 = vmul.f32 0.5, %v4158_v31  ;;  %v4303_v42 = vmul.f32 0.044715, %v9738_v63  ;;  %v4242_v18 = vmul.f32 0.5, %v9732_v44 }
 0xddd   : > { %v4428_v47 = vmul.f32 %v4364_v0, %v4045_v52  ;;  %v4430_v14 = vmul.f32 %v4366_v35, %v4158_v31  ;;  %v4368_v5 = vmul.f32 %v4304_v60, %v4049_v32  ;;  %v4370_v27 = vmul.f32 %v4306_v57, %v9732_v44 }
 0xdde   : > { %v4054_v3 = vpop.f32.mrb[84].mxu1  ;;  %v4167_v7 = vpop.f32.mrb[116].mxu0  ;;  %v4307_v56 = vmul.f32 0.044715, %v9741_v22  ;;  %v4369_v8 = vmul.f32 %v4305_v51, %v9735_v59 }
 0xddf   : > { %v4492_v53 = vadd.f32 %v4428_v47, %v4045_v52  ;;  %v4494_v30 = vadd.f32 %v4430_v14, %v4158_v31  ;;  %v4056_v15 = vpop.f32.mrb[85].mxu1  ;;  %v4169_v10 = vpop.f32.mrb[117].mxu0  ;;  %v4432_v20 = vmul.f32 %v4368_v5, %v4049_v32  ;;  %v9754_v0 = vadd.f32 %v4054_v3, %v9712_v19 }
 0xde0   : > { %v4058_v35 = vpop.f32.mrb[86].mxu1  ;;  %v4171_v60 = vpop.f32.mrb[118].mxu0  ;;  %v4434_v52 = vmul.f32 %v4370_v27, %v9732_v44  ;;  %v4365_v14 = vmul.f32 %v4301_v43, %v9728_v58  ;;  %v9760_v5 = vadd.f32 %v4167_v7, %v9716_v17  ;;  %v4371_v43 = vmul.f32 %v4307_v56, %v9741_v22 }
 0xde1   : > { %v4556_v23 = vmul.f32 0.7978846, %v4492_v53  ;;  %v4558_v6 = vmul.f32 0.7978846, %v4494_v30  ;;  %v4060_v47 = vpop.f32.mrb[87].mxu1  ;;  %v4173_v31 = vpop.f32.mrb[119].mxu0  ;;  %v4496_v57 = vadd.f32 %v4432_v20, %v4049_v32  ;;  %v9765_v53 = vadd.f32 %v4056_v15, %v9721_v28 }
 0xde2   : > { %v4498_v3 = vadd.f32 %v4434_v52, %v9732_v44  ;;  %v4308_v38 = vmul.f32 0.044715, %v9754_v0  ;;  %v4367_v30 = vmul.f32 %v4303_v42, %v9738_v63  ;;  %v9771_v7 = vadd.f32 %v4169_v10, %v9725_v26 }
 0xde3   : > { %7230 = vtanh.f32 %v4556_v23  ;;  %v4560_v27 = vmul.f32 0.7978846, %v4496_v57  ;;  %v4309_v51 = vmul.f32 0.044715, %v9765_v53  ;;  %v9774_v23 = vadd.f32 %v4058_v35, %v9712_v19 }
 0xde4   : > { %7232 = vtanh.f32 %v4558_v6  ;;  %v4562_v20 = vmul.f32 0.7978846, %v4498_v3  ;;  %v4429_v52 = vmul.f32 %v4365_v14, %v9728_v58  ;;  %v4433_v15 = vmul.f32 %v4369_v8, %v9735_v59 }
 0xde5   : > { %7234 = vtanh.f32 %v4560_v27  ;;  %v9779_v6 = vadd.f32 %v4171_v60, %v9716_v17  ;;  %v4372_v42 = vmul.f32 %v4308_v38, %v9754_v0  ;;  %v4310_v56 = vmul.f32 0.044715, %v9760_v5 }
 0xde6   : > { %7236 = vtanh.f32 %v4562_v20  ;;  %v4311_v57 = vmul.f32 0.044715, %v9771_v7  ;;  %v4240_v10 = vmul.f32 0.5, %v4049_v32  ;;  %v4373_v3 = vmul.f32 %v4309_v51, %v9765_v53 }
 0xde7   : > { %v9786_v35 = vadd.f32 %v4060_v47, %v9721_v28  ;;  %v9789_v14 = vadd.f32 %v4173_v31, %v9725_v26  ;;  %v4431_v8 = vmul.f32 %v4367_v30, %v9738_v63  ;;  %v4435_v60 = vmul.f32 %v4371_v43, %v9741_v22 }
 0xde8   : > { %v4312_v27 = vmul.f32 0.044715, %v9774_v23  ;;  %v4314_v38 = vmul.f32 0.044715, %v9779_v6  ;;  %v4375_v20 = vmul.f32 %v4311_v57, %v9771_v7  ;;  %v4493_v47 = vadd.f32 %v4429_v52, %v9728_v58 }
 0xde9   : > { %v4313_v32 = vmul.f32 0.044715, %v9786_v35  ;;  %v4315_v51 = vmul.f32 0.044715, %v9789_v14  ;;  %v4436_v31 = vmul.f32 %v4372_v42, %v9754_v0  ;;  %v4374_v30 = vmul.f32 %v4310_v56, %v9760_v5 }
 0xdea   : > { %v4497_v43 = vadd.f32 %v4433_v15, %v9735_v59  ;;  %v4437_v49 = vmul.f32 %v4373_v3, %v9765_v53  ;;  %v4557_v46 = vmul.f32 0.7978846, %v4493_v47  ;;  %v4376_v61 = vmul.f32 %v4312_v27, %v9774_v23 }
 0xdeb   : > { %v4377_v4 = vmul.f32 %v4313_v32, %v9786_v35  ;;  %v4379_v57 = vmul.f32 %v4315_v51, %v9789_v14  ;;  %v4495_v52 = vadd.f32 %v4431_v8, %v9738_v63  ;;  %v4499_v44 = vadd.f32 %v4435_v60, %v9741_v22 }
 0xdec   : > { %v4561_v55 = vmul.f32 0.7978846, %v4497_v43  ;;  %v4439_v56 = vmul.f32 %v4375_v20, %v9771_v7  ;;  %v4378_v15 = vmul.f32 %v4314_v38, %v9779_v6  ;;  %7238 = vtanh.f32 %v4557_v46 }
 0xded   : > { %v7231_v54 = vpop.eup %7230  ;;  %v4441_v3 = vmul.f32 %v4377_v4, %v9786_v35  ;;  %v4559_v32 = vmul.f32 0.7978846, %v4495_v52  ;;  %v4563_v51 = vmul.f32 0.7978846, %v4499_v44  ;;  %v4438_v27 = vmul.f32 %v4374_v30, %v9760_v5 }
 0xdee   : > { %v7233_v42 = vpop.eup %7232  ;;  %7240 = vtanh.f32 %v4561_v55  ;;  %v4684_v47 = vadd.f32 1.0, %v7231_v54  ;;  %v4443_v43 = vmul.f32 %v4379_v57, %v9789_v14  ;;  %v4501_v60 = vadd.f32 %v4437_v49, %v9765_v53 }
 0xdef   : > { %v7235_v36 = vpop.eup %7234  ;;  %v4686_v8 = vadd.f32 1.0, %v7233_v42  ;;  %v4440_v20 = vmul.f32 %v4376_v61, %v9774_v23  ;;  %7242 = vtanh.f32 %v4559_v32  ;;  %v4505_v4 = vadd.f32 %v4441_v3, %v9786_v35 }
 0xdf0   : > { %v7237_v62 = vpop.eup %7236  ;;  %v4688_v38 = vadd.f32 1.0, %v7235_v36  ;;  %v4442_v55 = vmul.f32 %v4378_v15, %v9779_v6  ;;  %7244 = vtanh.f32 %v4563_v51  ;;  %v4565_v54 = vmul.f32 0.7978846, %v4501_v60 }
 0xdf1   : > { %v4690_v46 = vadd.f32 1.0, %v7237_v62  ;;  %v4748_v52 = vmul.f32 %v4684_v47, %v9743_v41  ;;  %v4569_v44 = vmul.f32 0.7978846, %v4505_v4  ;;  %v4503_v57 = vadd.f32 %v4439_v56, %v9771_v7 }
 0xdf2   : > { %v4752_v30 = vmul.f32 %v4688_v38, %v4240_v10  ;;  %v4750_v49 = vmul.f32 %v4686_v8, %v9748_v48  ;;  %7246 = vtanh.f32 %v4565_v54  ;;  %v4507_v61 = vadd.f32 %v4443_v43, %v9789_v14 }
 0xdf3   : > { %v4754_v42 = vmul.f32 %v4690_v46, %v4242_v18  ;;  %7248 = vtanh.f32 %v4569_v44  ;;  %v4567_v3 = vmul.f32 0.7978846, %v4503_v57  ;;  %v4500_v62 = vadd.f32 %v4436_v31, %v9754_v0 }
 0xdf4   : > { %v4812_v36 = vpack.c.bf16 %v4752_v30, %v4748_v52  ;;  %v4571_v15 = vmul.f32 0.7978846, %v4507_v61  ;;  %v4504_v51 = vadd.f32 %v4440_v20, %v9774_v23  ;;  %v4502_v41 = vadd.f32 %v4438_v27, %v9760_v5 }
 0xdf5   : > { %v4814_v32 = vpack.c.bf16 %v4754_v42, %v4750_v49  ;;  %7250 = vtanh.f32 %v4567_v3  ;;  %v4564_v56 = vmul.f32 0.7978846, %v4500_v62  ;;  %v4506_v18 = vadd.f32 %v4442_v55, %v9779_v6 }
 0xdf6   : > { %v7239_v10 = vpop.eup %7238  ;;  %7252 = vtanh.f32 %v4571_v15  ;;  %v4568_v48 = vmul.f32 0.7978846, %v4504_v51  ;;  %v4237_v43 = vmul.f32 0.5, %v9728_v58  ;;  %v4566_v60 = vmul.f32 0.7978846, %v4502_v41 }
 0xdf7   : > { %v4685_v8 = vadd.f32 1.0, %v7239_v10  ;;  %v4241_v38 = vmul.f32 0.5, %v9735_v59  ;;  %7254 = vtanh.f32 %v4564_v56  ;;  %v4570_v31 = vmul.f32 0.7978846, %v4506_v18 }
 0xdf8   : > { %v7241_v47 = vpop.eup %7240  ;;  %7256 = vtanh.f32 %v4568_v48  ;;  %v4239_v30 = vmul.f32 0.5, %v9738_v63  ;;  %v4243_v55 = vmul.f32 0.5, %v9741_v22  ;;  %v4245_v3 = vmul.f32 0.5, %v9765_v53 }
 0xdf9   : > { %v4689_v4 = vadd.f32 1.0, %v7241_v47  ;;  %v7243_v20 = vpop.eup %7242  ;;  %v4749_v27 = vmul.f32 %v4685_v8, %v4237_v43  ;;  %7258 = vtanh.f32 %v4566_v60  ;;  %v4249_v15 = vmul.f32 0.5, %v9786_v35 }
 0xdfa   : > { %v7245_v46 = vpop.eup %7244  ;;  %v4687_v52 = vadd.f32 1.0, %v7243_v20  ;;  %7260 = vtanh.f32 %v4570_v31  ;;  %v4247_v48 = vmul.f32 0.5, %v9771_v7  ;;  %v4251_v18 = vmul.f32 0.5, %v9789_v14 }
 0xdfb   : > { %v4753_v54 = vmul.f32 %v4689_v4, %v4241_v38  ;;  %v4691_v44 = vadd.f32 1.0, %v7245_v46  ;;  %v4244_v4 = vmul.f32 0.5, %v9754_v0 }
 0xdfc   : > { %v7247_v58 = vpop.eup %7246  ;;  %v4751_v59 = vmul.f32 %v4687_v52, %v4239_v30 }
 0xdfd   : > { %v4813_v57 = vpack.c.bf16 %v4753_v54, %v4749_v27  ;;  %v7249_v49 = vpop.eup %7248  ;;  %v4755_v42 = vmul.f32 %v4691_v44, %v4243_v55  ;;  %v4693_v61 = vadd.f32 1.0, %v7247_v58  ;;  %v4250_v27 = vmul.f32 0.5, %v9779_v6 }
 0xdfe   : > { %v4697_v62 = vadd.f32 1.0, %v7249_v49 }
 0xdff   : > { %5132 = vmatprep.mubr.bf16.mxu1 %v4813_v57  ;;  %v7251_v51 = vpop.eup %7250  ;;  %v4815_v41 = vpack.c.bf16 %v4755_v42, %v4751_v59  ;;  %v4757_v10 = vmul.f32 %v4693_v61, %v4245_v3 }
 0xe00   : > { %5133 = vmatmul.mubr.bf16.vlgmr.msra.gmra.mrb[112].mxu1 %v4812_v36  ;;  %v7253_v63 = vpop.eup %7252  ;;  %v4761_v22 = vmul.f32 %v4697_v62, %v4249_v15  ;;  %v4695_v56 = vadd.f32 1.0, %v7251_v51 }
 0xe01   : > { %6704 = vmatpush3.bf16.msra.mxu1 %v9622_v16  ;;  %5229 = vmatprep.mubr.bf16.mxu0 %v4815_v41  ;;  %v4699_v47 = vadd.f32 1.0, %v7253_v63  ;;  %v7255_v53 = vpop.eup %7254  ;;  %v4248_v16 = vmul.f32 0.5, %v9774_v23 }
 0xe02   : > { %6697 = vmatprep.subr.bf16.mxu1 %v9629_v12  ;;  %5230 = vmatmul.mubr.bf16.vlgmr.msra.gmra.mrb[144].mxu0 %v4814_v32  ;;  %v4817_v35 = vpack.c.bf16 %v4761_v22, %v4757_v10  ;;  %v7257_v43 = vpop.eup %7256  ;;  %v4759_v8 = vmul.f32 %v4695_v56, %v4247_v48  ;;  %v4692_v60 = vadd.f32 1.0, %v7255_v53  ;;  %v4246_v12 = vmul.f32 0.5, %v9760_v5 }
 0xe03   : > { %v4763_v36 = vmul.f32 %v4699_v47, %v4251_v18  ;;  %v7259_v38 = vpop.eup %7258  ;;  %v4696_v31 = vadd.f32 1.0, %v7257_v43 }
 0xe04   : > { %5140 = vmatprep.mubr.bf16.mxu1 %v4817_v35  ;;  %v7261_v7 = vpop.eup %7260  ;;  %v4694_v20 = vadd.f32 1.0, %v7259_v38  ;;  %v4756_v32 = vmul.f32 %v4692_v60, %v4244_v4 }
 0xe05   : > { %6705 = vmatpush3.bf16.msra.mxu1 %v9636_v45  ;;  %v4819_v14 = vpack.c.bf16 %v4763_v36, %v4759_v8  ;;  %v4760_v46 = vmul.f32 %v4696_v31, %v4248_v16  ;;  %v4698_v54 = vadd.f32 1.0, %v7261_v7 }
 0xe06   : > { %6698 = vmatprep.subr.bf16.mxu1 %v9645_v1  ;;  %v4758_v0 = vmul.f32 %v4694_v20, %v4246_v12 }
 0xe07   : > { %5237 = vmatprep.mubr.bf16.mxu0 %v4819_v14  ;;  %v4816_v52 = vpack.c.bf16 %v4760_v46, %v4756_v32  ;;  %v4762_v30 = vmul.f32 %v4698_v54, %v4250_v27 }
 0xe09   : > { %6706 = vmatpush3.bf16.msra.mxu1 %v9652_v34  ;;  %v4818_v45 = vpack.c.bf16 %v4762_v30, %v4758_v0 }
 0xe0a   : > { %6699 = vmatprep.subr.bf16.mxu1 %v9660_v9  ;;  %5141 = vmatmul.mubr.bf16.gmra.mrb[116].mxu1 %v4816_v52 }
 0xe0b   : > { %5238 = vmatmul.mubr.bf16.gmra.mrb[148].mxu0 %v4818_v45 }
 0xe0d   : > { %6707 = vmatpush3.bf16.msra.mxu1 %v9664_v24 }
 0xe0e   : > { %6700 = vmatprep.subr.bf16.mxu1 %v9670_v25 }
 0xe11   : > { %6708 = vmatpush3.bf16.msra.mxu1 %v9674_v39 }
 0xe12   : > { %6701 = vmatprep.subr.bf16.mxu1 %v9679_v50 }
 0xe15   : > { %6709 = vmatpush3.bf16.msra.mxu1 %v9684_v2 }
 0xe16   : > { %6702 = vmatprep.subr.bf16.mxu1 %v9689_v33 }
 0xe17   : > { %v4064_v1 = vpop.f32.mrb[88].mxu1  ;;  %v4177_v5 = vpop.f32.mrb[120].mxu0 }
 0xe18   : > { %v9851_v34 = vadd.f32 %v4064_v1, %v9712_v19  ;;  %v9854_v9 = vadd.f32 %v4177_v5, %v9716_v17  ;;  %v4066_v23 = vpop.f32.mrb[89].mxu1  ;;  %v4179_v24 = vpop.f32.mrb[121].mxu0 }
 0xe19   : > { %v9857_v25 = vadd.f32 %v4066_v23, %v9721_v28  ;;  %v9860_v39 = vadd.f32 %v4179_v24, %v9725_v26  ;;  %v4068_v50 = vpop.f32.mrb[90].mxu1  ;;  %v4181_v2 = vpop.f32.mrb[122].mxu0  ;;  %6710 = vmatpush3.bf16.msra.mxu1 %v9694_v29 }
 0xe1a   : > { %v4316_v6 = vmul.f32 0.044715, %v9851_v34  ;;  %v9864_v33 = vadd.f32 %v4068_v50, %v9712_v19  ;;  %v9867_v55 = vadd.f32 %v4181_v2, %v9716_v17  ;;  %v4070_v44 = vpop.f32.mrb[91].mxu1  ;;  %v4183_v58 = vpop.f32.mrb[123].mxu0  ;;  %v4318_v57 = vmul.f32 0.044715, %v9854_v9  ;;  %6703 = vmatprep.subr.bf16.mxu1 %v9699_v40 }
 0xe1b   : > { %v4317_v49 = vmul.f32 0.044715, %v9857_v25  ;;  %v9873_v59 = vadd.f32 %v4070_v44, %v9721_v28  ;;  %v9876_v42 = vadd.f32 %v4183_v58, %v9725_v26  ;;  %v4319_v61 = vmul.f32 0.044715, %v9860_v39 }
 0xe1c   : > { %v4320_v3 = vmul.f32 0.044715, %v9864_v33  ;;  %v4322_v15 = vmul.f32 0.044715, %v9867_v55  ;;  %v4380_v51 = vmul.f32 %v4316_v6, %v9851_v34  ;;  %v4382_v41 = vmul.f32 %v4318_v57, %v9854_v9 }
 0xe1d   : > { %v4321_v29 = vmul.f32 0.044715, %v9873_v59  ;;  %v4323_v62 = vmul.f32 0.044715, %v9876_v42  ;;  %6711 = vmatpush3.bf16.msra.mxu1 %v9704_v11  ;;  %v4381_v63 = vmul.f32 %v4317_v49, %v9857_v25  ;;  %v4383_v22 = vmul.f32 %v4319_v61, %v9860_v39 }
 0xe1e   : > { %v4384_v56 = vmul.f32 %v4320_v3, %v9864_v33  ;;  %v4386_v53 = vmul.f32 %v4322_v15, %v9867_v55  ;;  %v9921_v27 = vmul.f32 %v4380_v51, %v9851_v34  ;;  %v9924_v54 = vmul.f32 %v4382_v41, %v9854_v9 }
 0xe1f   : > { %v4074_v10 = vpop.f32.mrb[92].mxu1  ;;  %v4187_v40 = vpop.f32.mrb[124].mxu0  ;;  %v4385_v35 = vmul.f32 %v4321_v29, %v9873_v59  ;;  %v4387_v38 = vmul.f32 %v4323_v62, %v9876_v42  ;;  %v9929_v30 = vmul.f32 %v4381_v63, %v9857_v25  ;;  %v9932_v45 = vmul.f32 %v4383_v22, %v9860_v39 }
 0xe20   : > { %v9891_v48 = vadd.f32 %v4074_v10, %v9712_v19  ;;  %v9894_v18 = vadd.f32 %v4187_v40, %v9716_v17  ;;  %v4076_v47 = vpop.f32.mrb[93].mxu1  ;;  %v4189_v11 = vpop.f32.mrb[125].mxu0  ;;  %v9937_v23 = vmul.f32 %v4384_v56, %v9864_v33  ;;  %v9940_v24 = vmul.f32 %v4386_v53, %v9867_v55 }
 0xe21   : > { %v9899_v43 = vadd.f32 %v4076_v47, %v9721_v28  ;;  %v9902_v8 = vadd.f32 %v4189_v11, %v9725_v26  ;;  %v4078_v36 = vpop.f32.mrb[94].mxu1  ;;  %v4191_v60 = vpop.f32.mrb[126].mxu0  ;;  %v9943_v50 = vmul.f32 %v4385_v35, %v9873_v59  ;;  %v9947_v6 = vmul.f32 %v4387_v38, %v9876_v42 }
 0xe22   : > { %10961 = vst [vmem:[#allocation50_spill] sm:$0xff] %v9891_v48  ;;  %10962 = vst [vmem:[#allocation52_spill] sm:$0xff] %v9894_v18  ;;  %v4324_v4 = vmul.f32 0.044715, %v9891_v48  ;;  %v9907_v16 = vadd.f32 %v4078_v36, %v9712_v19  ;;  %v9910_v31 = vadd.f32 %v4191_v60, %v9716_v17  ;;  %v4080_v7 = vpop.f32.mrb[95].mxu1  ;;  %v4193_v14 = vpop.f32.mrb[127].mxu0 }
 0xe23   : > { %v4326_v12 = vmul.f32 0.044715, %v9894_v18  ;;  %v4325_v20 = vmul.f32 0.044715, %v9899_v43  ;;  %v9915_v32 = vadd.f32 %v4080_v7, %v9721_v28  ;;  %v9918_v46 = vadd.f32 %v4193_v14, %v9725_v26 }
 0xe24   : > { %10963 = vst [vmem:[#allocation14_spill] sm:$0xff] %v9907_v16  ;;  %10964 = vst [vmem:[#allocation51_spill] sm:$0xff] %v9910_v31  ;;  %v4327_v52 = vmul.f32 0.044715, %v9902_v8  ;;  %v4328_v0 = vmul.f32 0.044715, %v9907_v16  ;;  %v4388_v44 = vmul.f32 %v4324_v4, %v9891_v48 }
 0xe25   : > { %v4330_v1 = vmul.f32 0.044715, %v9910_v31  ;;  %v4329_v5 = vmul.f32 0.044715, %v9915_v32  ;;  %v4331_v2 = vmul.f32 0.044715, %v9918_v46  ;;  %v4390_v58 = vmul.f32 %v4326_v12, %v9894_v18 }
 0xe26   : > { %v4389_v57 = vmul.f32 %v4325_v20, %v9899_v43  ;;  %v4391_v3 = vmul.f32 %v4327_v52, %v9902_v8  ;;  %v4392_v15 = vmul.f32 %v4328_v0, %v9907_v16  ;;  %v9983_v20 = vmul.f32 %v4388_v44, %v9891_v48 }
 0xe27   : > { %v4084_v49 = vpop.f32.mrb[96].mxu1  ;;  %v4197_v61 = vpop.f32.mrb[128].mxu0  ;;  %v4394_v63 = vmul.f32 %v4330_v1, %v9910_v31  ;;  %v4393_v10 = vmul.f32 %v4329_v5, %v9915_v32  ;;  %v4395_v11 = vmul.f32 %v4331_v2, %v9918_v46  ;;  %v9986_v52 = vmul.f32 %v4390_v58, %v9894_v18 }
 0xe28   : > { %v9955_v29 = vadd.f32 %v4084_v49, %v9712_v19  ;;  %v9958_v62 = vadd.f32 %v4197_v61, %v9716_v17  ;;  %v4086_v51 = vpop.f32.mrb[97].mxu1  ;;  %v4199_v41 = vpop.f32.mrb[129].mxu0  ;;  %10969 = vst [vmem:[#allocation55_spill] sm:$0xff] %v9983_v20  ;;  %v9993_v5 = vmul.f32 %v4389_v57, %v9899_v43  ;;  %v9996_v2 = vmul.f32 %v4391_v3, %v9902_v8 }
 0xe29   : > { %v9963_v40 = vadd.f32 %v4086_v51, %v9721_v28  ;;  %v9966_v22 = vadd.f32 %v4199_v41, %v9725_v26  ;;  %v4088_v56 = vpop.f32.mrb[98].mxu1  ;;  %v4201_v47 = vpop.f32.mrb[130].mxu0  ;;  %10970 = vst [vmem:[#allocation53_spill] sm:$0xff] %v9986_v52  ;;  %v10001_v44 = vmul.f32 %v4392_v15, %v9907_v16  ;;  %v10004_v58 = vmul.f32 %v4394_v63, %v9910_v31 }
 0xe2a   : > { %10965 = vst [vmem:[#allocation27_spill] sm:$0xff] %v9955_v29  ;;  %10966 = vst [vmem:[#allocation56_spill] sm:$0xff] %v9958_v62  ;;  %v4332_v53 = vmul.f32 0.044715, %v9955_v29  ;;  %v9971_v35 = vadd.f32 %v4088_v56, %v9712_v19  ;;  %v9974_v36 = vadd.f32 %v4201_v47, %v9716_v17  ;;  %v4090_v60 = vpop.f32.mrb[99].mxu1  ;;  %v4203_v38 = vpop.f32.mrb[131].mxu0  ;;  %v10007_v51 = vmul.f32 %v4393_v10, %v9915_v32 }
 0xe2b   : > { %v4334_v4 = vmul.f32 0.044715, %v9958_v62  ;;  %v4333_v7 = vmul.f32 0.044715, %v9963_v40  ;;  %v4335_v14 = vmul.f32 0.044715, %v9966_v22  ;;  %v9980_v12 = vadd.f32 %v4090_v60, %v9721_v28 }
 0xe2c   : > { %10967 = vst [vmem:[#allocation28_spill] sm:$0xff] %v9971_v35  ;;  %10968 = vst [vmem:[#allocation54_spill] sm:$0xff] %v9974_v36  ;;  %v4336_v0 = vmul.f32 0.044715, %v9971_v35  ;;  %v9990_v1 = vadd.f32 %v4203_v38, %v9725_v26  ;;  %v4338_v49 = vmul.f32 0.044715, %v9974_v36  ;;  %v10010_v41 = vmul.f32 %v4395_v11, %v9918_v46 }
 0xe2d   : > { %v4337_v61 = vmul.f32 0.044715, %v9980_v12  ;;  %10972 = vst [vmem:[#allocation58_spill] sm:$0xff] %v10001_v44  ;;  %10973 = vst [vmem:[#allocation57_spill] sm:$0xff] %v10004_v58  ;;  %v4396_v57 = vmul.f32 %v4332_v53, %v9955_v29  ;;  %v4398_v3 = vmul.f32 %v4334_v4, %v9958_v62  ;;  %v4397_v56 = vmul.f32 %v4333_v7, %v9963_v40 }
 0xe2e   : > { %10971 = vst [vmem:[#allocation29_spill] sm:$0xff] %v9990_v1  ;;  %v4399_v47 = vmul.f32 %v4335_v14, %v9966_v22  ;;  %v4400_v38 = vmul.f32 %v4336_v0, %v9971_v35  ;;  %v4339_v63 = vmul.f32 0.044715, %v9990_v1  ;;  %v4402_v4 = vmul.f32 %v4338_v49, %v9974_v36 }
 0xe2f   : > { %v4094_v60 = vpop.f32.mrb[100].mxu1  ;;  %v4207_v15 = vpop.f32.mrb[132].mxu0  ;;  %v4401_v7 = vmul.f32 %v4337_v61, %v9980_v12  ;;  %v10049_v44 = vmul.f32 %v4396_v57, %v9955_v29  ;;  %v10057_v20 = vmul.f32 %v4397_v56, %v9963_v40 }
 0xe30   : > { %v10019_v10 = vadd.f32 %v4094_v60, %v9712_v19  ;;  %v10022_v11 = vadd.f32 %v4207_v15, %v9716_v17  ;;  %v4096_v37 = vpop.f32.mrb[101].mxu1  ;;  %v4209_v53 = vpop.f32.mrb[133].mxu0  ;;  %v10060_v48 = vmul.f32 %v4399_v47, %v9966_v22  ;;  %v10065_v57 = vmul.f32 %v4400_v38, %v9971_v35 }
 0xe31   : > { %v10027_v14 = vadd.f32 %v4096_v37, %v9721_v28  ;;  %v10030_v13 = vadd.f32 %v4209_v53, %v9725_v26  ;;  %v4098_v0 = vpop.f32.mrb[102].mxu1  ;;  %v4211_v21 = vpop.f32.mrb[134].mxu0  ;;  %10980 = vst [vmem:[#allocation36_spill] sm:$0xff] %v10049_v44  ;;  %v10074_v56 = vmul.f32 %v4401_v7, %v9980_v12 }
 0xe32   : > { %10974 = vst [vmem:[#allocation60_spill] sm:$0xff] %v10019_v10  ;;  %10975 = vst [vmem:[#allocation59_spill] sm:$0xff] %v10022_v11  ;;  %v4340_v60 = vmul.f32 0.044715, %v10019_v10  ;;  %v4342_v58 = vmul.f32 0.044715, %v10022_v11  ;;  %v10035_v15 = vadd.f32 %v4098_v0, %v9712_v19  ;;  %v10038_v31 = vadd.f32 %v4211_v21, %v9716_v17 }
 0xe33   : > { %10976 = vst [vmem:[#allocation35_spill] sm:$0xff] %v10030_v13  ;;  %v4100_v49 = vpop.f32.mrb[103].mxu1  ;;  %v4213_v61 = vpop.f32.mrb[135].mxu0  ;;  %v4341_v37 = vmul.f32 0.044715, %v10027_v14  ;;  %v10052_v0 = vmul.f32 %v4398_v3, %v9958_v62  ;;  %v4403_v21 = vmul.f32 %v4339_v63, %v9990_v1  ;;  %10982 = vst [vmem:[#allocation41_spill] sm:$0xff] %v10060_v48  ;;  %v10071_v62 = vmul.f32 %v4402_v4, %v9974_v36 }
 0xe34   : > { %10977 = vst [vmem:[#allocation34_spill] sm:$0xff] %v10035_v15  ;;  %10978 = vst [vmem:[#allocation37_spill] sm:$0xff] %v10038_v31  ;;  %v4343_v52 = vmul.f32 0.044715, %v10030_v13  ;;  %v10043_v53 = vadd.f32 %v4100_v49, %v9721_v28  ;;  %v10046_v18 = vadd.f32 %v4213_v61, %v9725_v26  ;;  %v4344_v16 = vmul.f32 0.044715, %v10035_v15 }
 0xe35   : > { %10981 = vst [vmem:[#allocation38_spill] sm:$0xff] %v10052_v0  ;;  %v4346_v49 = vmul.f32 0.044715, %v10038_v31  ;;  %10983 = vst [vmem:[#allocation40_spill] sm:$0xff] %v10065_v57  ;;  %v4404_v3 = vmul.f32 %v4340_v60, %v10019_v10  ;;  %v4406_v0 = vmul.f32 %v4342_v58, %v10022_v11  ;;  %v4405_v47 = vmul.f32 %v4341_v37, %v10027_v14 }
 0xe36   : > { %10979 = vst [vmem:[#allocation39_spill] sm:$0xff] %v10046_v18  ;;  %v4345_v61 = vmul.f32 0.044715, %v10043_v53  ;;  %v4347_v63 = vmul.f32 0.044715, %v10046_v18  ;;  %10984 = vst [vmem:[#allocation45_spill] sm:$0xff] %v10071_v62  ;;  %v4407_v44 = vmul.f32 %v4343_v52, %v10030_v13  ;;  %v10079_v38 = vmul.f32 %v4403_v21, %v9990_v1 }
 0xe37   : > { %v4104_v29 = vpop.f32.mrb[104].mxu1  ;;  %v4217_v48 = vpop.f32.mrb[136].mxu0  ;;  %v4408_v60 = vmul.f32 %v4344_v16, %v10035_v15  ;;  %v4410_v7 = vmul.f32 %v4346_v49, %v10038_v31  ;;  %v10095_v16 = vmul.f32 %v4404_v3, %v10019_v10  ;;  %v10102_v49 = vmul.f32 %v4405_v47, %v10027_v14 }
 0xe38   : > { %10985 = vst [vmem:[#allocation30_spill] sm:$0xff] %v10079_v38  ;;  %v10083_v58 = vadd.f32 %v4104_v29, %v9712_v19  ;;  %v4218_v4 = vadd.f32 %v4217_v48, %v9716_v17  ;;  %v4106_v62 = vpop.f32.mrb[105].mxu1  ;;  %v4219_v36 = vpop.f32.mrb[137].mxu0  ;;  %v4409_v37 = vmul.f32 %v4345_v61, %v10043_v53  ;;  %v10098_v29 = vmul.f32 %v4406_v0, %v10022_v11 }
 0xe39   : > { %v10089_v52 = vadd.f32 %v4106_v62, %v9721_v28  ;;  %v10092_v57 = vadd.f32 %v4219_v36, %v9725_v26  ;;  %v4108_v21 = vpop.f32.mrb[106].mxu1  ;;  %v4221_v35 = vpop.f32.mrb[138].mxu0  ;;  %10987 = vst [vmem:[#allocation31_spill] sm:$0xff] %v10095_v16  ;;  %v4411_v48 = vmul.f32 %v4347_v63, %v10046_v18  ;;  %v10105_v62 = vmul.f32 %v4407_v44, %v10030_v13 }
 0xe3a   : > { %10988 = vst [vmem:[#allocation43_spill] sm:$0xff] %v10098_v29  ;;  %v4350_v38 = vmul.f32 0.044715, %v4218_v4  ;;  %v4348_v36 = vmul.f32 0.044715, %v10083_v58  ;;  %v4509_v61 = vadd.f32 %v9929_v30, %v9857_v25  ;;  %v4110_v1 = vpop.f32.mrb[107].mxu1  ;;  %v10111_v3 = vmul.f32 %v4408_v60, %v10035_v15 }
 0xe3b   : > { %10986 = vst [vmem:[#allocation33_spill] sm:$0xff] %v10092_v57  ;;  %10989 = vst [vmem:[#allocation42_spill] sm:$0xff] %v10105_v62  ;;  %v4349_v29 = vmul.f32 0.044715, %v10089_v52  ;;  %v4513_v63 = vadd.f32 %v9943_v50, %v9873_v59  ;;  %v4223_v47 = vpop.f32.mrb[139].mxu0  ;;  %v10117_v11 = vmul.f32 %v4410_v7, %v10038_v31  ;;  %v10120_v44 = vmul.f32 %v4409_v37, %v10043_v53 }
 0xe3c   : > { %10990 = vst [vmem:[#allocation44_spill] sm:$0xff] %v10111_v3  ;;  %v4414_v0 = vmul.f32 %v4350_v38, %v4218_v4  ;;  %v4351_v16 = vmul.f32 0.044715, %v10092_v57  ;;  %v4573_v30 = vmul.f32 0.7978846, %v4509_v61  ;;  %v10124_v10 = vmul.f32 %v4411_v48, %v10046_v18 }
 0xe3d   : > { %10991 = vst [vmem:[#allocation32_spill] sm:$0xff] %v10117_v11  ;;  %v10126_v60 = vmul.f32 0.5, %v4218_v4  ;;  %v4577_v38 = vmul.f32 0.7978846, %v4513_v63  ;;  %v4511_v3 = vadd.f32 %v9932_v45, %v9860_v39  ;;  %v4412_v50 = vmul.f32 %v4348_v36, %v10083_v58 }
 0xe3e   : > { %10992 = vst [vmem:[#allocation46_spill] sm:$0xff] %v10124_v10  ;;  %v10132_v7 = vmul.f32 0.5, %v9857_v25  ;;  %7262 = vtanh.f32 %v4573_v30  ;;  %v4515_v37 = vadd.f32 %v9947_v6, %v9876_v42  ;;  %v4478_v31 = vmul.f32 %v4414_v0, %v4218_v4 }
 0xe3f   : > { %10993 = vst [vmem:[#allocation48_spill] sm:$0xff] %v10126_v60  ;;  %v4114_v11 = vpop.f32.mrb[108].mxu1  ;;  %v4227_v61 = vpop.f32.mrb[140].mxu0  ;;  %v4413_v48 = vmul.f32 %v4349_v29, %v10089_v52  ;;  %7264 = vtanh.f32 %v4577_v38  ;;  %v4575_v60 = vmul.f32 0.7978846, %v4511_v3  ;;  %v4415_v45 = vmul.f32 %v4351_v16, %v10092_v57 }
 0xe40   : > { %v4116_v63 = vpop.f32.mrb[109].mxu1  ;;  %v10137_v15 = vpop.f32.mrb[141].mxu0  ;;  %v4257_v36 = vmul.f32 0.5, %v9873_v59  ;;  %v4579_v25 = vmul.f32 0.7978846, %v4515_v37  ;;  %v4222_v30 = vadd.f32 %v4221_v35, %v9716_v17  ;;  %v10147_v0 = vmul.f32 0.5, %v9860_v39 }
 0xe41   : > { %v10142_v10 = vpop.f32.mrb[110].mxu1  ;;  %v10144_v6 = vpop.f32.mrb[142].mxu0  ;;  %7266 = vtanh.f32 %v4575_v60  ;;  %v10150_v29 = vadd.f32 %v4108_v21, %v9712_v19  ;;  %v4508_v3 = vadd.f32 %v9921_v27, %v9851_v34  ;;  %v4259_v35 = vmul.f32 0.5, %v9876_v42 }
 0xe42   : > { %v10154_v16 = vpop.f32.mrb[111].mxu1  ;;  %v10156_v59 = vpop.f32.mrb[143].mxu0  ;;  %7268 = vtanh.f32 %v4579_v25  ;;  %v4354_v38 = vmul.f32 0.044715, %v4222_v30  ;;  %v4512_v37 = vadd.f32 %v9937_v23, %v9864_v33  ;;  %v10162_v39 = vmul.f32 %v4412_v50, %v10083_v58 }
 0xe43   : > { %v4542_v60 = vadd.f32 %v4478_v31, %v4218_v4  ;;  %v10165_v21 = vmul.f32 %v4413_v48, %v10089_v52  ;;  %v4572_v18 = vmul.f32 0.7978846, %v4508_v3  ;;  %v10168_v27 = vmul.f32 %v4415_v45, %v10092_v57 }
 0xe44   : > { %10994 = vst [vmem:[#allocation47_spill] sm:$0xff] %v10162_v39  ;;  %v4418_v62 = vmul.f32 %v4354_v38, %v4222_v30  ;;  %v4576_v13 = vmul.f32 0.7978846, %v4512_v37  ;;  %v4510_v42 = vadd.f32 %v9924_v54, %v9854_v9  ;;  %v4352_v25 = vmul.f32 0.044715, %v10150_v29 }
 0xe45   : > { %10995 = vst [vmem:[#allocation49_spill] sm:$0xff] %v10168_v27  ;;  %7270 = vtanh.f32 %v4572_v18  ;;  %v4514_v23 = vadd.f32 %v9940_v24, %v9867_v55  ;;  %v10176_v31 = vadd.f32 %v4110_v1, %v9721_v28  ;;  %v10179_v48 = vadd.f32 %v4223_v47, %v9725_v26 }
 0xe46   : > { %v4482_v4 = vmul.f32 %v4418_v62, %v4222_v30  ;;  %7272 = vtanh.f32 %v4576_v13  ;;  %v4574_v50 = vmul.f32 0.7978846, %v4510_v42  ;;  %v4606_v45 = vmul.f32 0.7978846, %v4542_v60 }
 0xe47   : > { %v4578_v3 = vmul.f32 0.7978846, %v4514_v23  ;;  %v4353_v38 = vmul.f32 0.044715, %v10176_v31  ;;  %v10183_v54 = vadd.f32 %v4114_v11, %v9712_v19  ;;  %v4252_v24 = vmul.f32 0.5, %v9851_v34 }
 0xe48   : > { %v7263_v18 = vpop.eup %7262  ;;  %v4546_v37 = vadd.f32 %v4482_v4, %v4222_v30  ;;  %v4256_v1 = vmul.f32 0.5, %v9864_v33  ;;  %7274 = vtanh.f32 %v4574_v50  ;;  %v4355_v47 = vmul.f32 0.044715, %v10179_v48 }
 0xe49   : > { %v7265_v62 = vpop.eup %7264  ;;  %v4701_v13 = vadd.f32 1.0, %v7263_v18  ;;  %7276 = vtanh.f32 %v4578_v3  ;;  %v4356_v60 = vmul.f32 0.044715, %v10183_v54  ;;  %v4416_v23 = vmul.f32 %v4352_v25, %v10150_v29 }
 0xe4a   : > { %v4705_v42 = vadd.f32 1.0, %v7265_v62  ;;  %v4417_v11 = vmul.f32 %v4353_v38, %v10176_v31  ;;  %v10192_v27 = vadd.f32 %v4227_v61, %v9716_v17  ;;  %7278 = vtanh.f32 %v4606_v45 }
 0xe4b   : > { %v7267_v4 = vpop.eup %7266  ;;  %v10194_v34 = vmul.f32 0.5, %v4222_v30  ;;  %v4610_v33 = vmul.f32 0.7978846, %v4546_v37  ;;  %v10197_v50 = vadd.f32 %v4116_v63, %v9721_v28  ;;  %v4765_v18 = vmul.f32 %v4701_v13, %v10132_v7 }
 0xe4c   : > { %v7269_v3 = vpop.eup %7268  ;;  %v4769_v57 = vmul.f32 %v4705_v42, %v4257_v36  ;;  %v4703_v62 = vadd.f32 1.0, %v7267_v4  ;;  %v4254_v25 = vmul.f32 0.5, %v9854_v9  ;;  %v4258_v38 = vmul.f32 0.5, %v9867_v55 }
 0xe4d   : > { %v4707_v39 = vadd.f32 1.0, %v7269_v3  ;;  %v4419_v61 = vmul.f32 %v4355_v47, %v10179_v48  ;;  %v4420_v45 = vmul.f32 %v4356_v60, %v10183_v54  ;;  %v10205_v37 = vmul.f32 %v4416_v23, %v10150_v29 }
 0xe4e   : > { %v4821_v30 = vpack.c.bf16 %v4769_v57, %v4765_v18  ;;  %v10208_v63 = vmul.f32 %v4417_v11, %v10176_v31  ;;  %v4358_v7 = vmul.f32 0.044715, %v10192_v27  ;;  %v4767_v13 = vmul.f32 %v4703_v62, %v10147_v0 }
 0xe4f   : > { %v7271_v36 = vpop.eup %7270  ;;  %v4771_v9 = vmul.f32 %v4707_v39, %v4259_v35  ;;  %7280 = vtanh.f32 %v4610_v33  ;;  %v4357_v55 = vmul.f32 0.044715, %v10197_v50  ;;  %v10215_v57 = vadd.f32 %v10137_v15, %v9725_v26 }
 0xe50   : > { %v7273_v42 = vpop.eup %7272  ;;  %5148 = vmatprep.mubr.bf16.mxu1 %v4821_v30  ;;  %v4700_v47 = vadd.f32 1.0, %v7271_v36  ;;  %v4517_v60 = vadd.f32 %v9993_v5, %v9899_v43  ;;  %v4521_v23 = vadd.f32 %v10007_v51, %v9915_v32  ;;  %v10222_v0 = vmul.f32 %v4419_v61, %v10179_v48 }
 0xe51   : > { %v4823_v11 = vpack.c.bf16 %v4771_v9, %v4767_v13  ;;  %v4704_v4 = vadd.f32 1.0, %v7273_v42  ;;  %v10225_v35 = vmul.f32 %v4420_v45, %v10183_v54  ;;  %v4422_v3 = vmul.f32 %v4358_v7, %v10192_v27 }
 0xe52   : > { %v7275_v39 = vpop.eup %7274  ;;  %v4764_v33 = vmul.f32 %v4700_v47, %v4252_v24  ;;  %v4581_v15 = vmul.f32 0.7978846, %v4517_v60  ;;  %v4585_v18 = vmul.f32 0.7978846, %v4521_v23  ;;  %v4519_v51 = vadd.f32 %v9996_v2, %v9902_v8  ;;  %v10997_v23 = vld [vmem:[#allocation55_spill] sm:$0xff] }
 0xe53   : > { %v7277_v62 = vpop.eup %7276  ;;  %5245 = vmatprep.mubr.bf16.mxu0 %v4823_v11  ;;  %v4768_v5 = vmul.f32 %v4704_v4, %v4256_v1  ;;  %v4702_v30 = vadd.f32 1.0, %v7275_v39  ;;  %v4523_v61 = vadd.f32 %v10010_v41, %v9918_v46  ;;  %v4359_v45 = vmul.f32 0.044715, %v10215_v57  ;;  %v10999_v39 = vld [vmem:[#allocation58_spill] sm:$0xff] }
 0xe54   : > { %v4706_v36 = vadd.f32 1.0, %v7277_v62  ;;  %7282 = vtanh.f32 %v4581_v15  ;;  %v10235_v24 = vadd.f32 %v10142_v10, %v9712_v19  ;;  %v10237_v7 = vpop.eup %7278  ;;  %v4421_v1 = vmul.f32 %v4357_v55, %v10197_v50  ;;  %v10996_v10 = vld [vmem:[#allocation50_spill] sm:$0xff]  ;;  %v11000_v62 = vld [vmem:[#allocation52_spill] sm:$0xff] }
 0xe55   : > { %v4820_v13 = vpack.c.bf16 %v4768_v5, %v4764_v33  ;;  %7284 = vtanh.f32 %v4585_v18  ;;  %v4583_v9 = vmul.f32 0.7978846, %v4519_v51  ;;  %v4766_v42 = vmul.f32 %v4702_v30, %v4254_v25  ;;  %v11001_v5 = vld [vmem:[#allocation53_spill] sm:$0xff]  ;;  %v11002_v51 = vld [vmem:[#allocation51_spill] sm:$0xff] }
 0xe56   : > { %v4770_v2 = vmul.f32 %v4706_v36, %v4258_v38  ;;  %v4587_v47 = vmul.f32 0.7978846, %v4523_v61  ;;  %v10242_v41 = vadd.f32 %v10144_v6, %v9716_v17  ;;  %v4261_v60 = vmul.f32 0.5, %v9899_v43  ;;  %v10998_v6 = vld [vmem:[#allocation14_spill] sm:$0xff]  ;;  %v11003_v61 = vld [vmem:[#allocation57_spill] sm:$0xff] }
 0xe57   : > { %5149 = vmatmul.mubr.bf16.gmra.mrb[120].mxu1 %v4820_v13  ;;  %7286 = vtanh.f32 %v4583_v9  ;;  %v4360_v19 = vmul.f32 0.044715, %v10235_v24  ;;  %v4516_v11 = vadd.f32 %v10997_v23, %v10996_v10  ;;  %v10249_v55 = vmul.f32 %v4422_v3, %v10192_v27 }
 0xe58   : > { %v4822_v4 = vpack.c.bf16 %v4770_v2, %v4766_v42  ;;  %v4423_v25 = vmul.f32 %v4359_v45, %v10215_v57  ;;  %7288 = vtanh.f32 %v4587_v47  ;;  %v10255_v17 = vmul.f32 %v4421_v1, %v10197_v50 }
 0xe59   : > { %v10252_v38 = vpop.eup %7280  ;;  %v4362_v43 = vmul.f32 0.044715, %v10242_v41  ;;  %v4520_v33 = vadd.f32 %v10999_v39, %v10998_v6  ;;  %v4580_v15 = vmul.f32 0.7978846, %v4516_v11  ;;  %v4265_v18 = vmul.f32 0.5, %v9915_v32 }
 0xe5a   : > { %5246 = vmatmul.mubr.bf16.gmra.mrb[152].mxu0 %v4822_v4  ;;  %v4263_v3 = vmul.f32 0.5, %v9902_v8  ;;  %v4518_v30 = vadd.f32 %v11001_v5, %v11000_v62  ;;  %v4522_v36 = vadd.f32 %v11003_v61, %v11002_v51  ;;  %v4267_v45 = vmul.f32 0.5, %v9918_v46 }
 0xe5b   : > { %v4424_v13 = vmul.f32 %v4360_v19, %v10235_v24  ;;  %v4584_v1 = vmul.f32 0.7978846, %v4520_v33  ;;  %7290 = vtanh.f32 %v4580_v15  ;;  %v10269_v9 = vmul.f32 %v4423_v25, %v10215_v57 }
 0xe5c   : > { %v4260_v42 = vmul.f32 0.5, %v10996_v10  ;;  %v4582_v32 = vmul.f32 0.7978846, %v4518_v30  ;;  %v4586_v2 = vmul.f32 0.7978846, %v4522_v36  ;;  %v4426_v8 = vmul.f32 %v4362_v43, %v10242_v41 }
 0xe5d   : > { %v4264_v47 = vmul.f32 0.5, %v10998_v6  ;;  %7292 = vtanh.f32 %v4584_v1  ;;  %v10275_v23 = vmul.f32 0.5, %v11000_v62  ;;  %v10278_v19 = vmul.f32 0.5, %v11002_v51  ;;  %v11004_v51 = vld [vmem:[#allocation41_spill] sm:$0xff] }
 0xe5e   : > { %v7283_v46 = vpop.eup %7282  ;;  %7294 = vtanh.f32 %v4582_v32  ;;  %v4525_v11 = vadd.f32 %v10057_v20, %v9963_v40  ;;  %v4529_v10 = vadd.f32 %v10074_v56, %v9980_v12  ;;  %v10285_v43 = vmul.f32 %v4424_v13, %v10235_v24  ;;  %v11005_v13 = vld [vmem:[#allocation29_spill] sm:$0xff] }
 0xe5f   : > { %v7285_v4 = vpop.eup %7284  ;;  %v4709_v25 = vadd.f32 1.0, %v7283_v46  ;;  %7296 = vtanh.f32 %v4586_v2  ;;  %v10289_v6 = vadd.f32 %v10154_v16, %v9721_v28  ;;  %v10293_v33 = vadd.f32 %v10156_v59, %v9725_v26  ;;  %v11006_v26 = vld [vmem:[#allocation30_spill] sm:$0xff] }
 0xe60   : > { %v4713_v39 = vadd.f32 1.0, %v7285_v4  ;;  %v4589_v15 = vmul.f32 0.7978846, %v4525_v11  ;;  %v4593_v20 = vmul.f32 0.7978846, %v4529_v10  ;;  %v10296_v56 = vmul.f32 %v4426_v8, %v10242_v41  ;;  %v11007_v4 = vld [vmem:[#allocation27_spill] sm:$0xff] }
 0xe61   : > { %v7287_v62 = vpop.eup %7286  ;;  %v4773_v5 = vmul.f32 %v4709_v25, %v4261_v60  ;;  %v10299_v30 = vmul.f32 0.5, %v9963_v40  ;;  %v4527_v61 = vadd.f32 %v11004_v51, %v9966_v22  ;;  %v4531_v59 = vadd.f32 %v11006_v26, %v11005_v13 }
 0xe62   : > { %v7289_v28 = vpop.eup %7288  ;;  %v4777_v16 = vmul.f32 %v4713_v39, %v4265_v18  ;;  %v4711_v36 = vadd.f32 1.0, %v7287_v62  ;;  %7298 = vtanh.f32 %v4589_v15  ;;  %v4361_v32 = vmul.f32 0.044715, %v10289_v6  ;;  %v11008_v18 = vld [vmem:[#allocation36_spill] sm:$0xff] }
 0xe63   : > { %v4715_v1 = vadd.f32 1.0, %v7289_v28  ;;  %7300 = vtanh.f32 %v4593_v20  ;;  %v4591_v60 = vmul.f32 0.7978846, %v4527_v61  ;;  %v4363_v40 = vmul.f32 0.044715, %v10293_v33  ;;  %v11009_v39 = vld [vmem:[#allocation28_spill] sm:$0xff] }
 0xe64   : > { %v4825_v2 = vpack.c.bf16 %v4777_v16, %v4773_v5  ;;  %v4775_v8 = vmul.f32 %v4711_v36, %v4263_v3  ;;  %v4595_v46 = vmul.f32 0.7978846, %v4531_v59  ;;  %v4524_v25 = vadd.f32 %v11008_v18, %v11007_v4  ;;  %v11010_v15 = vld [vmem:[#allocation40_spill] sm:$0xff] }
 0xe65   : > { %v7291_v11 = vpop.eup %7290  ;;  %v4779_v10 = vmul.f32 %v4715_v1, %v4267_v45  ;;  %7302 = vtanh.f32 %v4591_v60  ;;  %v4528_v62 = vadd.f32 %v11010_v15, %v11009_v39  ;;  %v4273_v28 = vmul.f32 0.5, %v9980_v12  ;;  %v11011_v36 = vld [vmem:[#allocation56_spill] sm:$0xff]  ;;  %v11012_v45 = vld [vmem:[#allocation38_spill] sm:$0xff] }
 0xe66   : > { %5156 = vmatprep.mubr.bf16.mxu1 %v4825_v2  ;;  %v4708_v51 = vadd.f32 1.0, %v7291_v11  ;;  %v4271_v20 = vmul.f32 0.5, %v9966_v22  ;;  %7304 = vtanh.f32 %v4595_v46  ;;  %v4588_v61 = vmul.f32 0.7978846, %v4524_v25  ;;  %v11013_v2 = vld [vmem:[#allocation54_spill] sm:$0xff]  ;;  %v11014_v11 = vld [vmem:[#allocation45_spill] sm:$0xff] }
 0xe67   : > { %v7293_v3 = vpop.eup %7292  ;;  %v4827_v5 = vpack.c.bf16 %v4779_v10, %v4775_v8  ;;  %v4592_v16 = vmul.f32 0.7978846, %v4528_v62  ;;  %v4526_v26 = vadd.f32 %v11012_v45, %v11011_v36  ;;  %v4425_v60 = vmul.f32 %v4361_v32, %v10289_v6 }
 0xe68   : > { %v7295_v59 = vpop.eup %7294  ;;  %v4712_v1 = vadd.f32 1.0, %v7293_v3  ;;  %v4427_v18 = vmul.f32 %v4363_v40, %v10293_v33  ;;  %v4530_v15 = vadd.f32 %v11014_v11, %v11013_v2  ;;  %v4772_v22 = vmul.f32 %v4708_v51, %v4260_v42 }
 0xe69   : > { %v7297_v12 = vpop.eup %7296  ;;  %5253 = vmatprep.mubr.bf16.mxu0 %v4827_v5  ;;  %v4710_v46 = vadd.f32 1.0, %v7295_v59  ;;  %7306 = vtanh.f32 %v4588_v61  ;;  %v4590_v8 = vmul.f32 0.7978846, %v4526_v26  ;;  %v4275_v45 = vmul.f32 0.5, %v11005_v13  ;;  %v11015_v59 = vld [vmem:[#allocation35_spill] sm:$0xff] }
 0xe6a   : > { %v4776_v10 = vmul.f32 %v4712_v1, %v4264_v47  ;;  %v4714_v25 = vadd.f32 1.0, %v7297_v12  ;;  %7308 = vtanh.f32 %v4592_v16  ;;  %v4594_v62 = vmul.f32 0.7978846, %v4530_v15  ;;  %v11016_v1 = vld [vmem:[#allocation42_spill] sm:$0xff]  ;;  %v11017_v15 = vld [vmem:[#allocation39_spill] sm:$0xff] }
 0xe6b   : > { %7310 = vtanh.f32 %v4590_v8  ;;  %v4533_v32 = vadd.f32 %v10102_v49, %v10027_v14  ;;  %v4537_v40 = vadd.f32 %v10120_v44, %v10043_v53  ;;  %v4774_v42 = vmul.f32 %v4710_v46, %v10275_v23  ;;  %v11018_v12 = vld [vmem:[#allocation46_spill] sm:$0xff] }
 0xe6c   : > { %v7299_v3 = vpop.eup %7298  ;;  %v4824_v11 = vpack.c.bf16 %v4776_v10, %v4772_v22  ;;  %v4778_v51 = vmul.f32 %v4714_v25, %v10278_v19  ;;  %7312 = vtanh.f32 %v4594_v62  ;;  %v10327_v5 = vmul.f32 %v4425_v60, %v10289_v6 }
 0xe6d   : > { %v7301_v47 = vpop.eup %7300  ;;  %v4717_v61 = vadd.f32 1.0, %v7299_v3  ;;  %v4597_v13 = vmul.f32 0.7978846, %v4533_v32  ;;  %v4601_v16 = vmul.f32 0.7978846, %v4537_v40  ;;  %v4535_v44 = vadd.f32 %v11016_v1, %v11015_v59  ;;  %v11019_v3 = vld [vmem:[#allocation60_spill] sm:$0xff] }
 0xe6e   : > { %5157 = vmatmul.mubr.bf16.gmra.mrb[124].mxu1 %v4824_v11  ;;  %v4826_v26 = vpack.c.bf16 %v4778_v51, %v4774_v42  ;;  %v4721_v49 = vadd.f32 1.0, %v7301_v47  ;;  %v4539_v22 = vadd.f32 %v11018_v12, %v11017_v15  ;;  %v10334_v19 = vmul.f32 %v4427_v18, %v10293_v33  ;;  %v11020_v11 = vld [vmem:[#allocation31_spill] sm:$0xff]  ;;  %v11021_v51 = vld [vmem:[#allocation34_spill] sm:$0xff]  ;;  %v11022_v47 = vld [vmem:[#allocation44_spill] sm:$0xff] }
 0xe6f   : > { %v7303_v23 = vpop.eup %7302  ;;  %v4781_v46 = vmul.f32 %v4717_v61, %v10299_v30  ;;  %v4268_v60 = vmul.f32 0.5, %v11007_v4  ;;  %7314 = vtanh.f32 %v4597_v13  ;;  %v4599_v62 = vmul.f32 0.7978846, %v4535_v44  ;;  %v11023_v44 = vld [vmem:[#allocation59_spill] sm:$0xff] }
 0xe70   : > { %v7305_v8 = vpop.eup %7304  ;;  %5254 = vmatmul.mubr.bf16.gmra.mrb[156].mxu0 %v4826_v26  ;;  %v4785_v10 = vmul.f32 %v4721_v49, %v4273_v28  ;;  %v4719_v25 = vadd.f32 1.0, %v7303_v23  ;;  %7316 = vtanh.f32 %v4601_v16  ;;  %v4603_v40 = vmul.f32 0.7978846, %v4539_v22  ;;  %v11024_v22 = vld [vmem:[#allocation43_spill] sm:$0xff] }
 0xe71   : > { %v4723_v32 = vadd.f32 1.0, %v7305_v8  ;;  %v4532_v42 = vadd.f32 %v11020_v11, %v11019_v3  ;;  %v4536_v18 = vadd.f32 %v11022_v47, %v11021_v51  ;;  %v4272_v30 = vmul.f32 0.5, %v11009_v39  ;;  %v11025_v8 = vld [vmem:[#allocation37_spill] sm:$0xff]  ;;  %v11026_v11 = vld [vmem:[#allocation32_spill] sm:$0xff] }
 0xe72   : > { %v4829_v1 = vpack.c.bf16 %v4785_v10, %v4781_v46  ;;  %v4783_v12 = vmul.f32 %v4719_v25, %v4271_v20  ;;  %7318 = vtanh.f32 %v4599_v62  ;;  %v4270_v49 = vmul.f32 0.5, %v11011_v36 }
 0xe73   : > { %v7307_v4 = vpop.eup %7306  ;;  %v4787_v61 = vmul.f32 %v4723_v32, %v4275_v45  ;;  %7320 = vtanh.f32 %v4603_v40  ;;  %v4596_v28 = vmul.f32 0.7978846, %v4532_v42  ;;  %v4600_v13 = vmul.f32 0.7978846, %v4536_v18 }
 0xe74   : > { %v7309_v16 = vpop.eup %7308  ;;  %5164 = vmatprep.mubr.bf16.mxu1 %v4829_v1  ;;  %v4716_v26 = vadd.f32 1.0, %v7307_v4  ;;  %v4534_v23 = vadd.f32 %v11024_v22, %v11023_v44  ;;  %v4538_v46 = vadd.f32 %v11026_v11, %v11025_v8  ;;  %v4274_v25 = vmul.f32 0.5, %v11013_v2 }
 0xe75   : > { %v7311_v20 = vpop.eup %7310  ;;  %v4831_v10 = vpack.c.bf16 %v4787_v61, %v4783_v12  ;;  %v4720_v39 = vadd.f32 1.0, %v7309_v16  ;;  %7322 = vtanh.f32 %v4596_v28  ;;  %v4277_v32 = vmul.f32 0.5, %v10027_v14 }
 0xe76   : > { %v7313_v45 = vpop.eup %7312  ;;  %v4718_v62 = vadd.f32 1.0, %v7311_v20  ;;  %7324 = vtanh.f32 %v4600_v13  ;;  %v4598_v40 = vmul.f32 0.7978846, %v4534_v23  ;;  %v4780_v36 = vmul.f32 %v4716_v26, %v4268_v60  ;;  %v11027_v23 = vld [vmem:[#allocation47_spill] sm:$0xff] }
 0xe77   : > { %5261 = vmatprep.mubr.bf16.mxu0 %v4831_v10  ;;  %v4784_v42 = vmul.f32 %v4720_v39, %v4272_v30  ;;  %v4722_v47 = vadd.f32 1.0, %v7313_v45  ;;  %v4602_v18 = vmul.f32 0.7978846, %v4538_v46  ;;  %v4281_v1 = vmul.f32 0.5, %v10043_v53 }
 0xe78   : > { %7326 = vtanh.f32 %v4598_v40  ;;  %v4541_v12 = vadd.f32 %v10165_v21, %v10089_v52  ;;  %v4545_v2 = vadd.f32 %v10208_v63, %v10176_v31  ;;  %v4782_v28 = vmul.f32 %v4718_v62, %v4270_v49 }
 0xe79   : > { %v7315_v4 = vpop.eup %7314  ;;  %v4828_v61 = vpack.c.bf16 %v4784_v42, %v4780_v36  ;;  %v4786_v14 = vmul.f32 %v4722_v47, %v4274_v25  ;;  %7328 = vtanh.f32 %v4602_v18  ;;  %v4279_v60 = vmul.f32 0.5, %v11015_v59 }
 0xe7a   : > { %v7317_v13 = vpop.eup %7316  ;;  %v4725_v16 = vadd.f32 1.0, %v7315_v4  ;;  %v4605_v30 = vmul.f32 0.7978846, %v4541_v12  ;;  %v4609_v26 = vmul.f32 0.7978846, %v4545_v2  ;;  %v4540_v21 = vadd.f32 %v11027_v23, %v10083_v58  ;;  %v11028_v23 = vld [vmem:[#allocation33_spill] sm:$0xff] }
 0xe7b   : > { %5165 = vmatmul.mubr.bf16.gmra.mrb[128].mxu1 %v4828_v61  ;;  %v4830_v53 = vpack.c.bf16 %v4786_v14, %v4782_v28  ;;  %v4729_v22 = vadd.f32 1.0, %v7317_v13  ;;  %v4544_v63 = vadd.f32 %v10205_v37, %v10150_v29  ;;  %v4283_v49 = vmul.f32 0.5, %v11017_v15 }
 0xe7c   : > { %v7319_v11 = vpop.eup %7318  ;;  %v4789_v46 = vmul.f32 %v4725_v16, %v4277_v32  ;;  %v4276_v20 = vmul.f32 0.5, %v11019_v3  ;;  %7330 = vtanh.f32 %v4605_v30  ;;  %v4604_v25 = vmul.f32 0.7978846, %v4540_v21  ;;  %v11029_v21 = vld [vmem:[#allocation49_spill] sm:$0xff] }
 0xe7d   : > { %v7321_v10 = vpop.eup %7320  ;;  %5262 = vmatmul.mubr.bf16.gmra.mrb[160].mxu0 %v4830_v53  ;;  %v4793_v59 = vmul.f32 %v4729_v22, %v4281_v1  ;;  %v4727_v39 = vadd.f32 1.0, %v7319_v11  ;;  %7332 = vtanh.f32 %v4609_v26  ;;  %v4608_v62 = vmul.f32 0.7978846, %v4544_v63 }
 0xe7e   : > { %v4731_v45 = vadd.f32 1.0, %v7321_v10  ;;  %v4549_v40 = vadd.f32 %v10255_v17, %v10197_v50  ;;  %v4553_v37 = vadd.f32 %v10327_v5, %v10289_v6  ;;  %v4280_v3 = vmul.f32 0.5, %v11021_v51 }
 0xe7f   : > { %v7323_v32 = vpop.eup %7322  ;;  %v4833_v36 = vpack.c.bf16 %v4793_v59, %v4789_v46  ;;  %v4791_v15 = vmul.f32 %v4727_v39, %v4279_v60  ;;  %7334 = vtanh.f32 %v4604_v25  ;;  %v4278_v2 = vmul.f32 0.5, %v11023_v44 }
 0xe80   : > { %v7325_v42 = vpop.eup %7324  ;;  %v4795_v47 = vmul.f32 %v4731_v45, %v4283_v49  ;;  %v4724_v18 = vadd.f32 1.0, %v7323_v32  ;;  %7336 = vtanh.f32 %v4608_v62  ;;  %v4613_v1 = vmul.f32 0.7978846, %v4549_v40  ;;  %v11030_v32 = vld [vmem:[#allocation48_spill] sm:$0xff] }
 0xe81   : > { %5172 = vmatprep.mubr.bf16.mxu1 %v4833_v36  ;;  %v4728_v12 = vadd.f32 1.0, %v7325_v42  ;;  %v4617_v4 = vmul.f32 0.7978846, %v4553_v37  ;;  %v4548_v17 = vadd.f32 %v10225_v35, %v10183_v54  ;;  %v4552_v51 = vadd.f32 %v10285_v43, %v10235_v24 }
 0xe82   : > { %v7327_v5 = vpop.eup %7326  ;;  %v4835_v61 = vpack.c.bf16 %v4795_v47, %v4791_v15  ;;  %v4788_v28 = vmul.f32 %v4724_v18, %v4276_v20  ;;  %7338 = vtanh.f32 %v4613_v1  ;;  %v4282_v30 = vmul.f32 0.5, %v11025_v8 }
 0xe83   : > { %v7329_v14 = vpop.eup %7328  ;;  %v4792_v13 = vmul.f32 %v4728_v12, %v4280_v3  ;;  %v4726_v16 = vadd.f32 1.0, %v7327_v5  ;;  %7340 = vtanh.f32 %v4617_v4  ;;  %v4612_v60 = vmul.f32 0.7978846, %v4548_v17 }
 0xe84   : > { %5269 = vmatprep.mubr.bf16.mxu0 %v4835_v61  ;;  %v4730_v44 = vadd.f32 1.0, %v7329_v14  ;;  %v4285_v26 = vmul.f32 0.5, %v10089_v52  ;;  %v4616_v53 = vmul.f32 0.7978846, %v4552_v51  ;;  %v4543_v63 = vadd.f32 %v11029_v21, %v11028_v23 }
 0xe85   : > { %v4832_v35 = vpack.c.bf16 %v4792_v13, %v4788_v28  ;;  %v4790_v22 = vmul.f32 %v4726_v16, %v4278_v2  ;;  %7342 = vtanh.f32 %v4612_v60  ;;  %v4547_v46 = vadd.f32 %v10222_v0, %v10179_v48 }
 0xe86   : > { %v7331_v11 = vpop.eup %7330  ;;  %v4794_v43 = vmul.f32 %v4730_v44, %v4282_v30  ;;  %7344 = vtanh.f32 %v4616_v53  ;;  %v4734_v49 = vadd.f32 1.0, %v10237_v7  ;;  %v4289_v8 = vmul.f32 0.5, %v10176_v31 }
 0xe87   : > { %v7333_v20 = vpop.eup %7332  ;;  %5173 = vmatmul.mubr.bf16.gmra.mrb[132].mxu1 %v4832_v35  ;;  %v4733_v52 = vadd.f32 1.0, %v7331_v11  ;;  %v4607_v10 = vmul.f32 0.7978846, %v4543_v63  ;;  %v4738_v59 = vadd.f32 1.0, %v10252_v38  ;;  %v4284_v45 = vmul.f32 0.5, %v10083_v58 }
 0xe88   : > { %v4834_v39 = vpack.c.bf16 %v4794_v43, %v4790_v22  ;;  %v4737_v25 = vadd.f32 1.0, %v7333_v20  ;;  %v4611_v62 = vmul.f32 0.7978846, %v4547_v46  ;;  %v10383_v0 = vmul.f32 %v4734_v49, %v11030_v32 }
 0xe89   : > { %v7335_v40 = vpop.eup %7334  ;;  %v4797_v37 = vmul.f32 %v4733_v52, %v4285_v26  ;;  %7346 = vtanh.f32 %v4607_v10  ;;  %v10386_v7 = vmul.f32 %v4738_v59, %v10194_v34  ;;  %v4551_v38 = vadd.f32 %v10269_v9, %v10215_v57 }
 0xe8a   : > { %v7337_v36 = vpop.eup %7336  ;;  %5270 = vmatmul.mubr.bf16.gmra.mrb[164].mxu0 %v4834_v39  ;;  %v4801_v31 = vmul.f32 %v4737_v25, %v4289_v8  ;;  %v4732_v15 = vadd.f32 1.0, %v7335_v40  ;;  %7348 = vtanh.f32 %v4611_v62  ;;  %v4288_v58 = vmul.f32 0.5, %v10150_v29 }
 0xe8b   : > { %v4736_v3 = vadd.f32 1.0, %v7337_v36  ;;  %v4838_v42 = vpack.c.bf16 %v10386_v7, %v10383_v0  ;;  %v4555_v47 = vadd.f32 %v10334_v19, %v10293_v33  ;;  %v4293_v12 = vmul.f32 0.5, %v10197_v50  ;;  %v10417_v0 = vld [vmem:[%s726_s21] ss:$0 sm:$0xff]  ;;  %v11031_v7 = vld [vmem:[#allocation16_spill] sm:$0xff] }
 0xe8c   : > { %v7339_v18 = vpop.eup %7338  ;;  %v4837_v34 = vpack.c.bf16 %v4801_v31, %v4797_v37  ;;  %v4796_v1 = vmul.f32 %v4732_v15, %v4284_v45  ;;  %v4615_v2 = vmul.f32 0.7978846, %v4551_v38  ;;  %v4550_v29 = vadd.f32 %v10249_v55, %v10192_v27 }
 0xe8d   : > { %v7341_v4 = vpop.eup %7340  ;;  %v4800_v17 = vmul.f32 %v4736_v3, %v4288_v58  ;;  %v4741_v5 = vadd.f32 1.0, %v7339_v18  ;;  %v4619_v61 = vmul.f32 0.7978846, %v4555_v47  ;;  %v4297_v9 = vmul.f32 0.5, %v10289_v6 }
 0xe8e   : > { %5180 = vmatprep.mubr.bf16.mxu1 %v4837_v34  ;;  %v4745_v28 = vadd.f32 1.0, %v7341_v4  ;;  %7350 = vtanh.f32 %v4615_v2  ;;  %v4554_v19 = vadd.f32 %v10296_v56, %v10242_v41  ;;  %v4614_v50 = vmul.f32 0.7978846, %v4550_v29  ;;  %v11032_v29 = vld [vmem:[#allocation17_spill] sm:$0xff] }
 0xe8f   : > { %v7343_v51 = vpop.eup %7342  ;;  %v4836_v14 = vpack.c.bf16 %v4800_v17, %v4796_v1  ;;  %7352 = vtanh.f32 %v4619_v61  ;;  %v4805_v16 = vmul.f32 %v4741_v5, %v4293_v12  ;;  %v4292_v55 = vmul.f32 0.5, %v10183_v54 }
 0xe90   : > { %v7345_v13 = vpop.eup %7344  ;;  %v4809_v60 = vmul.f32 %v4745_v28, %v4297_v9  ;;  %v4740_v30 = vadd.f32 1.0, %v7343_v51  ;;  %v4618_v44 = vmul.f32 0.7978846, %v4554_v19  ;;  %v4296_v26 = vmul.f32 0.5, %v10235_v24 }
 0xe91   : > { %5181 = vmatmul.mubr.bf16.gmra.mrb[136].mxu1 %v4836_v14  ;;  %v4744_v6 = vadd.f32 1.0, %v7345_v13  ;;  %7354 = vtanh.f32 %v4614_v50  ;;  %v4287_v43 = vmul.f32 0.5, %v11028_v23  ;;  %v4291_v46 = vmul.f32 0.5, %v10179_v48 }
 0xe92   : > { %v4841_v53 = vpack.c.bf16 %v4809_v60, %v4805_v16  ;;  %7356 = vtanh.f32 %v4618_v44  ;;  %v4804_v56 = vmul.f32 %v4740_v30, %v4292_v55  ;;  %v4295_v59 = vmul.f32 0.5, %v10215_v57 }
 0xe93   : > { %v7347_v35 = vpop.eup %7346  ;;  %v4808_v22 = vmul.f32 %v4744_v6, %v4296_v26  ;;  %v4299_v39 = vmul.f32 0.5, %v10293_v33  ;;  %v4294_v48 = vmul.f32 0.5, %v10192_v27  ;;  %v4298_v32 = vmul.f32 0.5, %v10242_v41 }
 0xe94   : > { %v7349_v21 = vpop.eup %7348  ;;  %5188 = vmatprep.mubr.bf16.mxu1 %v4841_v53  ;;  %v4735_v63 = vadd.f32 1.0, %v7347_v35  ;;  %v11033_v35 = vld [vmem:[#allocation11_spill] sm:$0xff] }
 0xe95   : > { %v4840_v11 = vpack.c.bf16 %v4808_v22, %v4804_v56  ;;  %v4739_v49 = vadd.f32 1.0, %v7349_v21 }
 0xe96   : > { %v4799_v20 = vmul.f32 %v4735_v63, %v4287_v43  ;;  %v11034_v63 = vld [vmem:[#allocation13_spill] sm:$0xff] }
 0xe97   : > { %v4803_v54 = vmul.f32 %v4739_v49, %v4291_v46 }
 0xe98   : > { %v7351_v8 = vpop.eup %7350 }
 0xe99   : > { %v7353_v24 = vpop.eup %7352  ;;  %5189 = vmatmul.mubr.bf16.gmra.mrb[140].mxu1 %v4840_v11  ;;  %v4839_v52 = vpack.c.bf16 %v4803_v54, %v4799_v20  ;;  %v4743_v10 = vadd.f32 1.0, %v7351_v8 }
 0xe9a   : > { %v4747_v25 = vadd.f32 1.0, %v7353_v24 }
 0xe9b   : > { %v7355_v45 = vpop.eup %7354  ;;  %5277 = vmatprep.mubr.bf16.mxu1 %v4839_v52  ;;  %v4807_v40 = vmul.f32 %v4743_v10, %v4295_v59 }
 0xe9c   : > { %v7357_v62 = vpop.eup %7356  ;;  %v4811_v23 = vmul.f32 %v4747_v25, %v4299_v39  ;;  %v4742_v37 = vadd.f32 1.0, %v7355_v45 }
 0xe9d   : > { %v4746_v36 = vadd.f32 1.0, %v7357_v62 }
 0xe9e   : > { %v4843_v31 = vpack.c.bf16 %v4811_v23, %v4807_v40  ;;  %v4806_v15 = vmul.f32 %v4742_v37, %v4294_v48  ;;  %v11035_v40 = vld [vmem:[#allocation12_spill] sm:$0xff] }
 0xe9f   : > { %v4810_v38 = vmul.f32 %v4746_v36, %v4298_v32  ;;  %v11036_v32 = vld [vmem:[#allocation10_spill] sm:$0xff] }
 0xea1   : > { %5278 = vmatmul.mubr.bf16.vlgmr.msra.gmra.mrb[144].mxu1 %v4838_v42  ;;  %v4842_v57 = vpack.c.bf16 %v4810_v38, %v4806_v15 }
 0xea2   : > { %5285 = vmatprep.mubr.bf16.mxu1 %v4843_v31 }
 0xea9   : > { %5286 = vmatmul.mubr.bf16.gmra.mrb[148].mxu1 %v4842_v57 }
 0xed3   : > { %v6264_v33 = vpop.f32.mrb[112].mxu1 }
 0xed4   : > { %v6265_v58 = vpop.f32.mrb[113].mxu1 }
 0xed5   : > { %v6266_v3 = vadd.f32 %v6265_v58, %v6264_v33  ;;  %v6267_v47 = vpop.f32.mrb[114].mxu1  ;;  %v6328_v18 = vpop.f32.mrb[144].mxu0 }
 0xed6   : > { %v6268_v27 = vpop.f32.mrb[115].mxu1  ;;  %v6329_v34 = vpop.f32.mrb[145].mxu0 }
 0xed7   : > { %v6269_v41 = vadd.f32 %v6268_v27, %v6267_v47  ;;  %v6330_v1 = vadd.f32 %v6329_v34, %v6328_v18  ;;  %v6331_v12 = vpop.f32.mrb[146].mxu0 }
 0xed8   : > { %v6332_v2 = vpop.f32.mrb[147].mxu0 }
 0xed9   : > { %v5232_v4 = vadd.f32 %v6330_v1, %v6266_v3  ;;  %v6333_v17 = vadd.f32 %v6332_v2, %v6331_v12  ;;  %v11037_v2 = vld [vmem:[#allocation15_spill] sm:$0xff] }
 0xedb   : > { %v5294_v42 = vadd.f32 %v5232_v4, %v11031_v7  ;;  %v5235_v5 = vadd.f32 %v6333_v17, %v6269_v41 }
 0xedd   : > { %v10421_v61 = vadd.f32 %v10417_v0, %v5294_v42  ;;  %v5295_v9 = vadd.f32 %v5235_v5, %v11032_v29  ;;  %v6270_v28 = vpop.f32.mrb[116].mxu1  ;;  %v11038_v42 = vld [vmem:[#allocation19_spill] sm:$0xff] }
 0xede   : > { %v6271_v19 = vpop.f32.mrb[117].mxu1  ;;  %v6334_v14 = vpop.f32.mrb[148].mxu0 }
 0xedf   : > { %5333 = vst [vmem:[#allocation2] sm:$0xff] %v10421_v61  ;;  %v10426_v51 = vadd.f32 %v10417_v0, %v5295_v9  ;;  %v6272_v50 = vadd.f32 %v6271_v19, %v6270_v28  ;;  %v6273_v13 = vpop.f32.mrb[118].mxu1  ;;  %v6335_v16 = vpop.f32.mrb[149].mxu0  ;;  %5355 = vadd.xlane.f32.xlu0 (!%p5999_p8), %v10421_v61 }
 0xee0   : > { %v6274_v60 = vpop.f32.mrb[119].mxu1  ;;  %v6336_v30 = vadd.f32 %v6335_v16, %v6334_v14  ;;  %v6337_v44 = vpop.f32.mrb[150].mxu0 }
 0xee1   : > { %5334 = vst [vmem:[#allocation2 + $0x8] sm:$0xff] %v10426_v51  ;;  %v6275_v55 = vadd.f32 %v6274_v60, %v6273_v13  ;;  %v6338_v26 = vpop.f32.mrb[151].mxu0 }
 0xee2   : > { %v5240_v6 = vadd.f32 %v6336_v30, %v6272_v50  ;;  %v6339_v53 = vadd.f32 %v6338_v26, %v6337_v44 }
 0xee3   : > { %5357 = vadd.xlane.f32.xlu0 (!%p5999_p8), %v10426_v51 }
 0xee4   : > { %v5296_v56 = vadd.f32 %v5240_v6, %v11033_v35  ;;  %v5243_v22 = vadd.f32 %v6339_v53, %v6275_v55  ;;  %v11039_v53 = vld [vmem:[#allocation21_spill] sm:$0xff] }
 0xee6   : > { %v10431_v21 = vadd.f32 %v10417_v0, %v5296_v56  ;;  %v5297_v11 = vadd.f32 %v5243_v22, %v11034_v63  ;;  %v11040_v63 = vld [vmem:[#allocation20_spill] sm:$0xff] }
 0xee8   : > { %5335 = vst [vmem:[#allocation2 + $0x10] sm:$0xff] %v10431_v21  ;;  %v10436_v43 = vadd.f32 %v10417_v0, %v5297_v11  ;;  %5359 = vadd.xlane.f32.xlu1 (!%p5999_p8), %v10431_v21 }
 0xeea   : > { %5336 = vst [vmem:[#allocation2 + $0x18] sm:$0xff] %v10436_v43 }
 0xeec   : > { %5361 = vadd.xlane.f32.xlu1 (!%p5999_p8), %v10436_v43 }
 0xf2a   : > { %v6276_v46 = vpop.f32.mrb[120].mxu1 }
 0xf2b   : > { %v6277_v49 = vpop.f32.mrb[121].mxu1 }
 0xf2c   : > { %v6278_v20 = vadd.f32 %v6277_v49, %v6276_v46  ;;  %v6279_v54 = vpop.f32.mrb[122].mxu1 }
 0xf2d   : > { %v6340_v8 = vpop.f32.mrb[152].mxu0  ;;  %v6280_v24 = vpop.f32.mrb[123].mxu1 }
 0xf2e   : > { %v6341_v52 = vpop.f32.mrb[153].mxu0  ;;  %v6281_v10 = vadd.f32 %v6280_v24, %v6279_v54 }
 0xf2f   : > { %v6342_v59 = vadd.f32 %v6341_v52, %v6340_v8  ;;  %v6343_v39 = vpop.f32.mrb[154].mxu0 }
 0xf30   : > { %v6344_v25 = vpop.f32.mrb[155].mxu0 }
 0xf31   : > { %v5248_v45 = vadd.f32 %v6342_v59, %v6278_v20  ;;  %v6345_v62 = vadd.f32 %v6344_v25, %v6343_v39 }
 0xf33   : > { %v5298_v23 = vadd.f32 %v5248_v45, %v11035_v40  ;;  %v5251_v37 = vadd.f32 %v6345_v62, %v6281_v10 }
 0xf35   : > { %v10441_v48 = vadd.f32 %v10417_v0, %v5298_v23  ;;  %v5299_v36 = vadd.f32 %v5251_v37, %v11036_v32  ;;  %v11041_v23 = vld [vmem:[#allocation22_spill] sm:$0xff] }
 0xf37   : > { %5337 = vst [vmem:[#allocation2 + $0x20] sm:$0xff] %v10441_v48  ;;  %v10446_v31 = vadd.f32 %v10417_v0, %v5299_v36  ;;  %5363 = vadd.xlane.f32.xlu0 (!%p5999_p8), %v10441_v48 }
 0xf39   : > { %5338 = vst [vmem:[#allocation2 + $0x28] sm:$0xff] %v10446_v31  ;;  %5365 = vadd.xlane.f32.xlu1 (!%p5999_p8), %v10446_v31 }
 0xf41   : > { %v6282_v15 = vpop.f32.mrb[124].mxu1 }
 0xf42   : > { %v6283_v38 = vpop.f32.mrb[125].mxu1 }
 0xf43   : > { %v6346_v57 = vpop.f32.mrb[156].mxu0  ;;  %v6284_v33 = vadd.f32 %v6283_v38, %v6282_v15  ;;  %v6285_v58 = vpop.f32.mrb[126].mxu1  ;;  %v11042_v38 = vld [vmem:[#allocation18_spill] sm:$0xff] }
 0xf44   : > { %v6347_v3 = vpop.f32.mrb[157].mxu0  ;;  %v6286_v47 = vpop.f32.mrb[127].mxu1 }
 0xf45   : > { %v6348_v18 = vadd.f32 %v6347_v3, %v6346_v57  ;;  %v6349_v27 = vpop.f32.mrb[158].mxu0  ;;  %v6287_v34 = vadd.f32 %v6286_v47, %v6285_v58 }
 0xf46   : > { %v6350_v41 = vpop.f32.mrb[159].mxu0 }
 0xf47   : > { %v5256_v1 = vadd.f32 %v6348_v18, %v6284_v33  ;;  %v6351_v12 = vadd.f32 %v6350_v41, %v6349_v27 }
 0xf49   : > { %v5300_v4 = vadd.f32 %v5256_v1, %v11037_v2  ;;  %v5259_v17 = vadd.f32 %v6351_v12, %v6287_v34 }
 0xf4b   : > { %v10451_v7 = vadd.f32 %v10417_v0, %v5300_v4  ;;  %v5301_v5 = vadd.f32 %v5259_v17, %v11038_v42 }
 0xf4d   : > { %5339 = vst [vmem:[#allocation2 + $0x30] sm:$0xff] %v10451_v7  ;;  %v10456_v29 = vadd.f32 %v10417_v0, %v5301_v5  ;;  %5367 = vadd.xlane.f32.xlu0 (!%p5999_p8), %v10451_v7 }
 0xf4e   : > { %v6288_v9 = vpop.f32.mrb[128].mxu1 }
 0xf4f   : > { %5340 = vst [vmem:[#allocation2 + $0x38] sm:$0xff] %v10456_v29  ;;  %v6289_v28 = vpop.f32.mrb[129].mxu1  ;;  %5369 = vadd.xlane.f32.xlu1 (!%p5999_p8), %v10456_v29 }
 0xf50   : > { %v6352_v19 = vpop.f32.mrb[160].mxu0  ;;  %v6290_v14 = vadd.f32 %v6289_v28, %v6288_v9  ;;  %v6291_v50 = vpop.f32.mrb[130].mxu1 }
 0xf51   : > { %v6353_v13 = vpop.f32.mrb[161].mxu0  ;;  %v6292_v16 = vpop.f32.mrb[131].mxu1 }
 0xf52   : > { %v6354_v60 = vadd.f32 %v6353_v13, %v6352_v19  ;;  %v6355_v30 = vpop.f32.mrb[162].mxu0  ;;  %v6293_v44 = vadd.f32 %v6292_v16, %v6291_v50  ;;  %v11043_v50 = vld [vmem:[#allocation26_spill] sm:$0xff] }
 0xf53   : > { %v6356_v55 = vpop.f32.mrb[163].mxu0 }
 0xf54   : > { %v5264_v26 = vadd.f32 %v6354_v60, %v6290_v14  ;;  %v6357_v6 = vadd.f32 %v6356_v55, %v6355_v30  ;;  %v11044_v30 = vld [vmem:[#allocation25_spill] sm:$0xff] }
 0xf56   : > { %v5302_v35 = vadd.f32 %v5264_v26, %v11039_v53  ;;  %v5267_v56 = vadd.f32 %v6357_v6, %v6293_v44 }
 0xf58   : > { %v10461_v22 = vadd.f32 %v10417_v0, %v5302_v35  ;;  %v5303_v11 = vadd.f32 %v5267_v56, %v11040_v63 }
 0xf5a   : > { %5341 = vst [vmem:[#allocation2 + $0x40] sm:$0xff] %v10461_v22  ;;  %v10466_v46 = vadd.f32 %v10417_v0, %v5303_v11  ;;  %v6294_v49 = vpop.f32.mrb[132].mxu1  ;;  %5371 = vadd.xlane.f32.xlu0 (!%p5999_p8), %v10461_v22 }
 0xf5b   : > { %v6295_v20 = vpop.f32.mrb[133].mxu1 }
 0xf5c   : > { %5342 = vst [vmem:[#allocation2 + $0x48] sm:$0xff] %v10466_v46  ;;  %v6296_v54 = vadd.f32 %v6295_v20, %v6294_v49  ;;  %v6297_v8 = vpop.f32.mrb[134].mxu1  ;;  %v11045_v49 = vld [vmem:[#allocation23_spill] sm:$0xff]  ;;  %5373 = vadd.xlane.f32.xlu1 (!%p5999_p8), %v10466_v46 }
 0xf5d   : > { %v6358_v24 = vpop.f32.mrb[164].mxu0  ;;  %v6298_v52 = vpop.f32.mrb[135].mxu1 }
 0xf5e   : > { %v6359_v10 = vpop.f32.mrb[165].mxu0  ;;  %v6299_v59 = vadd.f32 %v6298_v52, %v6297_v8 }
 0xf5f   : > { %v6360_v39 = vadd.f32 %v6359_v10, %v6358_v24  ;;  %v6361_v25 = vpop.f32.mrb[166].mxu0  ;;  %v11046_v24 = vld [vmem:[#allocation24_spill] sm:$0xff] }
 0xf60   : > { %v6362_v45 = vpop.f32.mrb[167].mxu0 }
 0xf61   : > { %v5272_v62 = vadd.f32 %v6360_v39, %v6296_v54  ;;  %v6363_v40 = vadd.f32 %v6362_v45, %v6361_v25 }
 0xf63   : > { %v5304_v37 = vadd.f32 %v5272_v62, %v11041_v23  ;;  %v5275_v32 = vadd.f32 %v6363_v40, %v6299_v59 }
 0xf64   : > { %v6300_v36 = vpop.f32.mrb[136].mxu1 }
 0xf65   : > { %v10471_v15 = vadd.f32 %v10417_v0, %v5304_v37  ;;  %v5305_v57 = vadd.f32 %v5275_v32, %v11042_v38  ;;  %v6301_v33 = vpop.f32.mrb[137].mxu1 }
 0xf66   : > { %v6302_v58 = vadd.f32 %v6301_v33, %v6300_v36  ;;  %v6303_v3 = vpop.f32.mrb[138].mxu1 }
 0xf67   : > { %5343 = vst [vmem:[#allocation2 + $0x50] sm:$0xff] %v10471_v15  ;;  %v10476_v47 = vadd.f32 %v10417_v0, %v5305_v57  ;;  %v6304_v18 = vpop.f32.mrb[139].mxu1  ;;  %5375 = vadd.xlane.f32.xlu0 (!%p5999_p8), %v10471_v15 }
 0xf68   : > { %v6305_v27 = vadd.f32 %v6304_v18, %v6303_v3 }
 0xf69   : > { %5344 = vst [vmem:[#allocation2 + $0x58] sm:$0xff] %v10476_v47  ;;  %5377 = vadd.xlane.f32.xlu1 (!%p5999_p8), %v10476_v47 }
 0xf6c   : > { %v6306_v34 = vpop.f32.mrb[140].mxu1 }
 0xf6d   : > { %v6307_v41 = vpop.f32.mrb[141].mxu1 }
 0xf6e   : > { %v6308_v1 = vadd.f32 %v6307_v41, %v6306_v34  ;;  %v6309_v12 = vpop.f32.mrb[142].mxu1 }
 0xf6f   : > { %v6310_v2 = vpop.f32.mrb[143].mxu1 }
 0xf70   : > { %v6311_v4 = vadd.f32 %v6310_v2, %v6309_v12 }
 0xf74   : > { %v6364_v17 = vpop.f32.mrb[144].mxu1 }
 0xf75   : > { %v6365_v42 = vpop.f32.mrb[145].mxu1  ;;  %v5360_v59 = vpop.xlane.xlu1 (!%p5999_p8), %5359 }
 0xf76   : > { %v6366_v5 = vadd.f32 %v6365_v42, %v6364_v17  ;;  %v6367_v9 = vpop.f32.mrb[146].mxu1  ;;  %v5389_v25 = vmul.f32 (!%p5999_p8), 0.0078125, %v5360_v59 }
 0xf77   : > { %v6368_v28 = vpop.f32.mrb[147].mxu1 }
 0xf78   : > { %v5280_v19 = vadd.f32 %v6366_v5, %v6302_v58  ;;  %v6369_v14 = vadd.f32 %v6368_v28, %v6367_v9  ;;  %v10520_v62 = vsub.f32 (!%p5999_p8), %v10431_v21, %v5389_v25 }
 0xf79   : > { %v5362_v23 = vpop.xlane.xlu1 (!%p5999_p8), %5361 }
 0xf7a   : > { %v5306_v13 = vadd.f32 %v5280_v19, %v11043_v50  ;;  %v5283_v16 = vadd.f32 %v6369_v14, %v6305_v27  ;;  %v5390_v36 = vmul.f32 (!%p5999_p8), 0.0078125, %v5362_v23 }
 0xf7c   : > { %v10481_v60 = vadd.f32 %v10417_v0, %v5306_v13  ;;  %v5307_v44 = vadd.f32 %v5283_v16, %v11044_v30  ;;  %v6370_v55 = vpop.f32.mrb[148].mxu1  ;;  %v10528_v57 = vsub.f32 (!%p5999_p8), %v10436_v43, %v5390_v36 }
 0xf7d   : > { %v6371_v26 = vpop.f32.mrb[149].mxu1 }
 0xf7e   : > { %5345 = vst [vmem:[#allocation2 + $0x60] sm:$0xff] %v10481_v60  ;;  %v10486_v6 = vadd.f32 %v10417_v0, %v5307_v44  ;;  %v6372_v53 = vadd.f32 %v6371_v26, %v6370_v55  ;;  %v6373_v35 = vpop.f32.mrb[150].mxu1  ;;  %5379 = vadd.xlane.f32.xlu0 (!%p5999_p8), %v10481_v60  ;;  %v5422_v43 = vmul.f32 (!%p5999_p8), %v10528_v57, %v10528_v57 }
 0xf7f   : > { %v6374_v56 = vpop.f32.mrb[151].mxu1 }
 0xf80   : > { %5346 = vst [vmem:[#allocation2 + $0x68] sm:$0xff] %v10486_v6  ;;  %v5288_v63 = vadd.f32 %v6372_v53, %v6308_v1  ;;  %v6375_v11 = vadd.f32 %v6374_v56, %v6373_v35  ;;  %5381 = vadd.xlane.f32.xlu1 (!%p5999_p8), %v10486_v6 }
 0xf82   : > { %v5308_v20 = vadd.f32 %v5288_v63, %v11045_v49  ;;  %v5291_v54 = vadd.f32 %v6375_v11, %v6311_v4  ;;  %5352 = sbr.rel (%p5999_p8) target bundleno = 4290 (0x10c2), region = 92 }
 0xf84   : > { %v10491_v8 = vadd.f32 %v10417_v0, %v5308_v20  ;;  %v5309_v52 = vadd.f32 %v5291_v54, %v11046_v24 }
 0xf86   : > { %5347 = vst [vmem:[#allocation2 + $0x70] sm:$0xff] %v10491_v8  ;;  %v10496_v10 = vadd.f32 %v10417_v0, %v5309_v52  ;;  %5383 = vadd.xlane.f32.xlu0 (!%p5999_p8), %v10491_v8  ;;  %v5356_v0 = vpop.xlane.xlu0 (!%p5999_p8), %5355 }
 0xf87   : > { %v5387_v39 = vmul.f32 (!%p5999_p8), 0.0078125, %v5356_v0 }
 0xf88   : > { %5348 = vst [vmem:[#allocation2 + $0x78] sm:$0xff] %v10496_v10  ;;  %5385 = vadd.xlane.f32.xlu1 (!%p5999_p8), %v10496_v10 }
 0xf89   : > { %v10517_v45 = vsub.f32 %v10421_v61, %v5387_v39  ;;  %v5421_v61 = vmul.f32 %v10520_v62, %v10520_v62 }
 0xf8a   : > { %v5358_v40 = vpop.xlane.xlu0 %5357 }
 0xf8b   : > { %v5388_v37 = vmul.f32 0.0078125, %v5358_v40  ;;  %v5419_v32 = vmul.f32 %v10517_v45, %v10517_v45 }
 0xf8d   : > { %v10525_v38 = vsub.f32 %v10426_v51, %v5388_v37  ;;  %5435 = vadd.xlane.f32.xlu0 %v5419_v32 }
 0xf8f   : > { %v5420_v3 = vmul.f32 %v10525_v38, %v10525_v38 }
 0xf91   : > { %5439 = vadd.xlane.f32.xlu0 %v5421_v61  ;;  %5437 = vadd.xlane.f32.xlu1 %v5420_v3 }
 0xf95   : > { %5441 = vadd.xlane.f32.xlu1 %v5422_v43 }
 0xfc4   : > { %v5364_v33 = vpop.xlane.xlu0 %5363 }
 0xfc5   : > { %v5391_v58 = vmul.f32 0.0078125, %v5364_v33 }
 0xfc6   : > { %v5366_v21 = vpop.xlane.xlu1 %5365 }
 0xfc7   : > { %v5392_v18 = vmul.f32 0.0078125, %v5366_v21  ;;  %v10535_v27 = vsub.f32 %v10441_v48, %v5391_v58 }
 0xfc9   : > { %v10538_v51 = vsub.f32 %v10446_v31, %v5392_v18  ;;  %v5423_v12 = vmul.f32 %v10535_v27, %v10535_v27 }
 0xfcb   : > { %5443 = vadd.xlane.f32.xlu0 %v5423_v12  ;;  %v5424_v31 = vmul.f32 %v10538_v51, %v10538_v51 }
 0xfcd   : > { %5445 = vadd.xlane.f32.xlu1 %v5424_v31 }
 0xfda   : > { %v5368_v34 = vpop.xlane.xlu0 %5367 }
 0xfdb   : > { %v5393_v1 = vmul.f32 0.0078125, %v5368_v34 }
 0xfdc   : > { %v5370_v41 = vpop.xlane.xlu1 %5369 }
 0xfdd   : > { %v5394_v2 = vmul.f32 0.0078125, %v5370_v41  ;;  %v10545_v4 = vsub.f32 %v10451_v7, %v5393_v1 }
 0xfdf   : > { %v10548_v48 = vsub.f32 %v10456_v29, %v5394_v2  ;;  %v5425_v9 = vmul.f32 %v10545_v4, %v10545_v4 }
 0xfe1   : > { %5447 = vadd.xlane.f32.xlu0 %v5425_v9  ;;  %v5426_v29 = vmul.f32 %v10548_v48, %v10548_v48  ;;  %v10600_v9 = vld [vmem:[%s11048_s6] ss:$0 sm:$0xff] }
 0xfe3   : > { %5449 = vadd.xlane.f32.xlu1 %v5426_v29 }
 0xfe7   : > { %v5372_v17 = vpop.xlane.xlu0 %5371 }
 0xfe8   : > { %v5395_v5 = vmul.f32 0.0078125, %v5372_v17 }
 0xfe9   : > { %v5374_v42 = vpop.xlane.xlu1 %5373 }
 0xfea   : > { %v5396_v28 = vmul.f32 0.0078125, %v5374_v42  ;;  %v10555_v19 = vsub.f32 %v10461_v22, %v5395_v5 }
 0xfec   : > { %v10558_v7 = vsub.f32 %v10466_v46, %v5396_v28  ;;  %v5427_v16 = vmul.f32 %v10555_v19, %v10555_v19 }
 0xfee   : > { %5451 = vadd.xlane.f32.xlu0 %v5427_v16  ;;  %v5428_v46 = vmul.f32 %v10558_v7, %v10558_v7 }
 0xff0   : > { %5453 = vadd.xlane.f32.xlu1 %v5428_v46 }
 0xff4   : > { %v5376_v14 = vpop.xlane.xlu0 %5375 }
 0xff5   : > { %v5397_v13 = vmul.f32 0.0078125, %v5376_v14 }
 0xff6   : > { %v5378_v50 = vpop.xlane.xlu1 %5377 }
 0xff7   : > { %v5398_v30 = vmul.f32 0.0078125, %v5378_v50  ;;  %v10565_v44 = vsub.f32 %v10471_v15, %v5397_v13 }
 0xff9   : > { %v10568_v22 = vsub.f32 %v10476_v47, %v5398_v30  ;;  %v5429_v35 = vmul.f32 %v10565_v44, %v10565_v44 }
 0xffb   : > { %5455 = vadd.xlane.f32.xlu0 %v5429_v35  ;;  %v5430_v47 = vmul.f32 %v10568_v22, %v10568_v22 }
 0xffd   : > { %5457 = vadd.xlane.f32.xlu1 %v5430_v47 }
0x100b   : > { %v5380_v55 = vpop.xlane.xlu0 %5379 }
0x100c   : > { %v5399_v53 = vmul.f32 0.0078125, %v5380_v55 }
0x100d   : > { %v5382_v26 = vpop.xlane.xlu1 %5381 }
0x100e   : > { %v5400_v56 = vmul.f32 0.0078125, %v5382_v26  ;;  %v10575_v63 = vsub.f32 %v10481_v60, %v5399_v53  ;;  %v10607_v26 = vld [vmem:[%s11049_s30] ss:$0 sm:$0xff] }
0x1010   : > { %v10578_v15 = vsub.f32 %v10486_v6, %v5400_v56  ;;  %v5431_v54 = vmul.f32 %v10575_v63, %v10575_v63 }
0x1012   : > { %5459 = vadd.xlane.f32.xlu0 %v5431_v54  ;;  %v5432_v6 = vmul.f32 %v10578_v15, %v10578_v15 }
0x1013   : > { %v5384_v11 = vpop.xlane.xlu0 %5383 }
0x1014   : > { %v5401_v20 = vmul.f32 0.0078125, %v5384_v11  ;;  %5461 = vadd.xlane.f32.xlu1 %v5432_v6 }
0x1015   : > { %v5386_v49 = vpop.xlane.xlu1 %5385 }
0x1016   : > { %v5402_v24 = vmul.f32 0.0078125, %v5386_v49  ;;  %v10585_v52 = vsub.f32 %v10491_v8, %v5401_v20 }
0x1018   : > { %v10588_v60 = vsub.f32 %v10496_v10, %v5402_v24  ;;  %v5433_v0 = vmul.f32 %v10585_v52, %v10585_v52 }
0x101a   : > { %5463 = vadd.xlane.f32.xlu0 %v5433_v0  ;;  %v5434_v59 = vmul.f32 %v10588_v60, %v10588_v60  ;;  %v5436_v39 = vpop.xlane.xlu0 %5435 }
0x101b   : > { %v5467_v8 = vmul.f32 0.0078125, %v5436_v39 }
0x101c   : > { %5465 = vadd.xlane.f32.xlu1 %v5434_v59 }
0x101d   : > { %v5483_v25 = vadd.f32 1e-05, %v5467_v8 }
0x101e   : > { %v5438_v40 = vpop.xlane.xlu1 %5437  ;;  %v5440_v23 = vpop.xlane.xlu0 %5439 }
0x101f   : > { %7390 = vrsqrt.f32 %v5483_v25  ;;  %v5468_v10 = vmul.f32 0.0078125, %v5438_v40  ;;  %v5469_v37 = vmul.f32 0.0078125, %v5440_v23 }
0x1021   : > { %v5484_v32 = vadd.f32 1e-05, %v5468_v10  ;;  %v5485_v36 = vadd.f32 1e-05, %v5469_v37 }
0x1022   : > { %v5442_v61 = vpop.xlane.xlu1 %5441 }
0x1023   : > { %7392 = vrsqrt.f32 %v5484_v32  ;;  %v5470_v21 = vmul.f32 0.0078125, %v5442_v61 }
0x1024   : > { %7394 = vrsqrt.f32 %v5485_v36 }
0x1025   : > { %v5486_v3 = vadd.f32 1e-05, %v5470_v21 }
0x1027   : > { %7396 = vrsqrt.f32 %v5486_v3 }
0x1029   : > { %v7391_v12 = vpop.eup %7390 }
0x102a   : > { %v5515_v17 = vmul.f32 %v7391_v12, %v10517_v45 }
0x102c   : > { %v5537_v30 = vmul.f32 %v10600_v9, %v5515_v17 }
0x102d   : > { %v7393_v14 = vpop.eup %7392 }
0x102e   : > { %v7395_v16 = vpop.eup %7394  ;;  %v5516_v46 = vmul.f32 %v7393_v14, %v10525_v38  ;;  %v5559_v38 = vadd.f32 %v10607_v26, %v5537_v30 }
0x102f   : > { %v5517_v53 = vmul.f32 %v7395_v16, %v10520_v62 }
0x1030   : > { %v5538_v47 = vmul.f32 %v10600_v9, %v5516_v46 }
0x1031   : > { %v7397_v11 = vpop.eup %7396  ;;  %v5539_v6 = vmul.f32 %v10600_v9, %v5517_v53 }
0x1032   : > { %v5560_v24 = vadd.f32 %v10607_v26, %v5538_v47  ;;  %v5518_v0 = vmul.f32 %v7397_v11, %v10528_v57 }
0x1033   : > { %v5561_v61 = vadd.f32 %v10607_v26, %v5539_v6 }
0x1034   : > { %v6044_v25 = vpack.c.bf16 %v5560_v24, %v5559_v38  ;;  %v5540_v40 = vmul.f32 %v10600_v9, %v5518_v0 }
0x1036   : > { %6045 = vst [vmem:[%s7654_s8] sm:$0xff] %v6044_v25   ;;  %v5562_v57 = vadd.f32 %v10607_v26, %v5540_v40 }
0x1058   : > { %v5444_v33 = vpop.xlane.xlu0 %5443 }
0x1059   : > { %v5471_v58 = vmul.f32 0.0078125, %v5444_v33 }
0x105a   : > { %v5446_v43 = vpop.xlane.xlu1 %5445 }
0x105b   : > { %v5487_v18 = vadd.f32 1e-05, %v5471_v58  ;;  %v5472_v41 = vmul.f32 0.0078125, %v5446_v43  ;;  %v6049_v43 = vpack.c.bf16 %v5562_v57, %v5561_v61 }
0x105d   : > { %7398 = vrsqrt.f32 %v5487_v18  ;;  %v5488_v2 = vadd.f32 1e-05, %v5472_v41  ;;  %6081 = vst [vmem:[%s7654_s8 + $0x8] sm:$0xff] %v6049_v43  }
0x105f   : > { %7400 = vrsqrt.f32 %v5488_v2 }
0x1067   : > { %v7399_v54 = vpop.eup %7398 }
0x1068   : > { %v5519_v39 = vmul.f32 %v7399_v54, %v10535_v27 }
0x1069   : > { %v7401_v10 = vpop.eup %7400 }
0x106a   : > { %v5541_v37 = vmul.f32 %v10600_v9, %v5519_v39  ;;  %v5520_v27 = vmul.f32 %v7401_v10, %v10538_v51 }
0x106c   : > { %v5563_v12 = vadd.f32 %v10607_v26, %v5541_v37 }
0x106e   : > { %v5448_v34 = vpop.xlane.xlu0 %5447 }
0x106f   : > { %v5473_v1 = vmul.f32 0.0078125, %v5448_v34  ;;  %v5542_v34 = vmul.f32 %v10600_v9, %v5520_v27 }
0x1070   : > { %v5450_v42 = vpop.xlane.xlu1 %5449 }
0x1071   : > { %v5489_v31 = vadd.f32 1e-05, %v5473_v1  ;;  %v5474_v28 = vmul.f32 0.0078125, %v5450_v42  ;;  %v5564_v51 = vadd.f32 %v10607_v26, %v5542_v34 }
0x1073   : > { %7402 = vrsqrt.f32 %v5489_v31  ;;  %v5490_v50 = vadd.f32 1e-05, %v5474_v28  ;;  %v6054_v14 = vpack.c.bf16 %v5564_v51, %v5563_v12 }
0x1075   : > { %7404 = vrsqrt.f32 %v5490_v50  ;;  %6082 = vst [vmem:[%s7654_s8 + $0x10] sm:$0xff] %v6054_v14  }
0x107b   : > { %v5452_v5 = vpop.xlane.xlu0 %5451 }
0x107c   : > { %v5475_v29 = vmul.f32 0.0078125, %v5452_v5 }
0x107d   : > { %v5454_v45 = vpop.xlane.xlu1 %5453  ;;  %v7403_v36 = vpop.eup %7402 }
0x107e   : > { %v5491_v13 = vadd.f32 1e-05, %v5475_v29  ;;  %v5476_v35 = vmul.f32 0.0078125, %v5454_v45  ;;  %v5521_v3 = vmul.f32 %v7403_v36, %v10545_v4 }
0x107f   : > { %v7405_v1 = vpop.eup %7404 }
0x1080   : > { %7406 = vrsqrt.f32 %v5491_v13  ;;  %v5492_v49 = vadd.f32 1e-05, %v5476_v35  ;;  %v5543_v17 = vmul.f32 %v10600_v9, %v5521_v3  ;;  %v5522_v4 = vmul.f32 %v7405_v1, %v10548_v48 }
0x1082   : > { %7408 = vrsqrt.f32 %v5492_v49  ;;  %v5544_v50 = vmul.f32 %v10600_v9, %v5522_v4  ;;  %v5565_v46 = vadd.f32 %v10607_v26, %v5543_v17 }
0x1084   : > { %v5566_v45 = vadd.f32 %v10607_v26, %v5544_v50 }
0x1086   : > { %v6059_v53 = vpack.c.bf16 %v5566_v45, %v5565_v46 }
0x1088   : > { %v5456_v55 = vpop.xlane.xlu0 %5455  ;;  %6083 = vst [vmem:[%s7654_s8 + $0x18] sm:$0xff] %v6059_v53  }
0x1089   : > { %v5477_v56 = vmul.f32 0.0078125, %v5456_v55 }
0x108a   : > { %v5458_v62 = vpop.xlane.xlu1 %5457  ;;  %v7407_v31 = vpop.eup %7406 }
0x108b   : > { %v5493_v20 = vadd.f32 1e-05, %v5477_v56  ;;  %v5478_v8 = vmul.f32 0.0078125, %v5458_v62  ;;  %v5523_v28 = vmul.f32 %v7407_v31, %v10555_v19 }
0x108c   : > { %v7409_v13 = vpop.eup %7408 }
0x108d   : > { %7410 = vrsqrt.f32 %v5493_v20  ;;  %v5494_v32 = vadd.f32 1e-05, %v5478_v8  ;;  %v5545_v48 = vmul.f32 %v10600_v9, %v5523_v28  ;;  %v5524_v55 = vmul.f32 %v7409_v13, %v10558_v7 }
0x108f   : > { %7412 = vrsqrt.f32 %v5494_v32  ;;  %v5546_v35 = vmul.f32 %v10600_v9, %v5524_v55  ;;  %v5567_v11 = vadd.f32 %v10607_v26, %v5545_v48 }
0x1091   : > { %v5568_v49 = vadd.f32 %v10607_v26, %v5546_v35 }
0x1097   : > { %v7411_v30 = vpop.eup %7410 }
0x1098   : > { %v5525_v19 = vmul.f32 %v7411_v30, %v10565_v44  ;;  %v6064_v44 = vpack.c.bf16 %v5568_v49, %v5567_v11 }
0x1099   : > { %v7413_v56 = vpop.eup %7412 }
0x109a   : > { %v5547_v20 = vmul.f32 %v10600_v9, %v5525_v19  ;;  %v5526_v54 = vmul.f32 %v7413_v56, %v10568_v22  ;;  %6084 = vst [vmem:[%s7654_s8 + $0x20] sm:$0xff] %v6064_v44  }
0x109c   : > { %v5548_v38 = vmul.f32 %v10600_v9, %v5526_v54  ;;  %v5569_v0 = vadd.f32 %v10607_v26, %v5547_v20 }
0x109e   : > { %v5570_v62 = vadd.f32 %v10607_v26, %v5548_v38 }
0x109f   : > { %v5460_v59 = vpop.xlane.xlu0 %5459 }
0x10a0   : > { %v5479_v23 = vmul.f32 0.0078125, %v5460_v59  ;;  %v6069_v8 = vpack.c.bf16 %v5570_v62, %v5569_v0 }
0x10a1   : > { %v5462_v21 = vpop.xlane.xlu1 %5461 }
0x10a2   : > { %v5495_v33 = vadd.f32 1e-05, %v5479_v23  ;;  %v5480_v18 = vmul.f32 0.0078125, %v5462_v21  ;;  %6085 = vst [vmem:[%s7654_s8 + $0x28] sm:$0xff] %v6069_v8  }
0x10a4   : > { %7414 = vrsqrt.f32 %v5495_v33  ;;  %v5496_v2 = vadd.f32 1e-05, %v5480_v18 }
0x10a6   : > { %7416 = vrsqrt.f32 %v5496_v2 }
0x10a7   : > { %v5464_v58 = vpop.xlane.xlu0 %5463 }
0x10a8   : > { %v5481_v41 = vmul.f32 0.0078125, %v5464_v58 }
0x10a9   : > { %v5466_v5 = vpop.xlane.xlu1 %5465 }
0x10aa   : > { %v5497_v42 = vadd.f32 1e-05, %v5481_v41  ;;  %v5482_v29 = vmul.f32 0.0078125, %v5466_v5 }
0x10ac   : > { %7418 = vrsqrt.f32 %v5497_v42  ;;  %v5498_v16 = vadd.f32 1e-05, %v5482_v29 }
0x10ae   : > { %7420 = vrsqrt.f32 %v5498_v16  ;;  %v7415_v47 = vpop.eup %7414 }
0x10af   : > { %v5527_v7 = vmul.f32 %v7415_v47, %v10575_v63 }
0x10b0   : > { %v7417_v24 = vpop.eup %7416 }
0x10b1   : > { %v5549_v59 = vmul.f32 %v10600_v9, %v5527_v7  ;;  %v5528_v39 = vmul.f32 %v7417_v24, %v10578_v15 }
0x10b3   : > { %v5550_v63 = vmul.f32 %v10600_v9, %v5528_v39  ;;  %v5571_v40 = vadd.f32 %v10607_v26, %v5549_v59 }
0x10b5   : > { %v5572_v23 = vadd.f32 %v10607_v26, %v5550_v63 }
0x10b6   : > { %v7419_v6 = vpop.eup %7418 }
0x10b7   : > { %v5529_v22 = vmul.f32 %v7419_v6, %v10585_v52  ;;  %v6074_v32 = vpack.c.bf16 %v5572_v23, %v5571_v40 }
0x10b8   : > { %v7421_v25 = vpop.eup %7420 }
0x10b9   : > { %v5551_v10 = vmul.f32 %v10600_v9, %v5529_v22  ;;  %v5530_v37 = vmul.f32 %v7421_v25, %v10588_v60  ;;  %6086 = vst [vmem:[%s7654_s8 + $0x30] sm:$0xff] %v6074_v32  }
0x10bb   : > { %v5552_v36 = vmul.f32 %v10600_v9, %v5530_v37  ;;  %v5573_v15 = vadd.f32 %v10607_v26, %v5551_v10 }
0x10bd   : > { %v5574_v52 = vadd.f32 %v10607_v26, %v5552_v36 }
0x10bf   : > { %v6079_v61 = vpack.c.bf16 %v5574_v52, %v5573_v15 }
0x10c1   : > { %6087 = vst [vmem:[%s7654_s8 + $0x38] sm:$0xff] %v6079_v61  }
0x10c2 PF: > { %s11050_s19 = sld [smem:[#allocation6_spill]]  ;;  %s11051_s21 = sld [smem:[#allocation4_spill]] }
0x10c3   : > { %s11052_s22 = sld [smem:[#allocation5_spill]]  ;;  %s11053_s23 = sld [smem:[#allocation7_spill]] }
0x10c4   : > { %s11054_s24 = sld [smem:[#allocation8_spill]] }
0x10c8   : > { %s26_s25 = sadd.s32 1, %s11050_s19  }
0x10c9   : > { %p23_p9 = scmp.ge.s32.totalorder %s26_s25, 6  }
0x10cb   :  { %25 = sbr.rel (!%p23_p9) target bundleno = 10 (0xa), region = 158 }

</bundles_post_ra>
